<compile_context>
chip_gen: v6e
topology: v6e:2x2x1
jax: 0.10.0
libtpu: 0.0.40
codegen_flags: <defaults>
</compile_context>

<pallas_src>
import functools
import math

import jax
import jax.numpy as jnp
from jax.experimental import pallas as pl
from jax.experimental.pallas import tpu as pltpu

# ----------------------------- config ---------------------------------------
BATCH    = 2
SEQ_X    = 8            # encoder source length
SEQ_Y    = 9            # raw target length (shift_y -> 8 decoder positions)
HIDDEN   = 32
N_HEADS  = 4
HEAD_DIM = HIDDEN // N_HEADS
FFN_DIM  = 4 * HIDDEN
N_LAYERS = 2
VOCAB    = 64
PAD_ID   = 0
MAX_LEN  = 64
NEG_INF  = float("-inf")
LN_EPS   = 1e-5
EMB_SCALE = math.sqrt(HIDDEN)

ENC_NAMES = ["ln0_g", "ln0_b", "wqkv", "bqkv", "wo", "bo",
             "ln1_g", "ln1_b", "w1", "b1", "w2", "b2"]
DEC_NAMES = ["ln0_g", "ln0_b", "s_wqkv", "s_bqkv", "s_wo", "s_bo",
             "ln1_g", "ln1_b", "c_wq", "c_bq", "c_wkv", "c_bkv", "c_wo", "c_bo",
             "ln2_g", "ln2_b", "w1", "b1", "w2", "b2"]
PARAM_ORDER = (["enc_table", "dec_table", "pe"]
               + ["e_" + n for n in ENC_NAMES]
               + ["d_" + n for n in DEC_NAMES]
               + ["gen_w", "gen_b"])


def _full_spec(shape):
    """Full-array block (grid=(1,)) — everything stays resident in VMEM."""
    zeros = (0,) * len(shape)
    return pl.BlockSpec(shape, lambda i, _z=zeros: _z)


# ----------------- in-kernel building blocks (traced inside pallas) ----------
def _ln(x, g, b, eps=LN_EPS):
    mu = jnp.mean(x, axis=-1, keepdims=True)
    var = jnp.mean(jnp.square(x - mu), axis=-1, keepdims=True)
    return (x - mu) * jax.lax.rsqrt(var + eps) * g + b


def _mha(q_all, k_all, v_all, w_o, b_o, keep_masks, B, Sq, Sk, H, Dh):
    """q_all: (B*Sq, D); k_all/v_all: (B*Sk, D).
    keep_masks: python list (len B) of (Sq, Sk) bool arrays (True = attend).
    Head concat is folded into the output projection (sum of per-head
    o_h @ Wo[h*Dh:(h+1)*Dh, :] contributions) — no transposes."""
    scale = 1.0 / math.sqrt(Dh)
    rows = []
    for b in range(B):
        q_b = q_all[b * Sq:(b + 1) * Sq, :]
        k_b = k_all[b * Sk:(b + 1) * Sk, :]
        v_b = v_all[b * Sk:(b + 1) * Sk, :]
        keep = keep_masks[b]
        acc = None
        for h in range(H):
            q = q_b[:, h * Dh:(h + 1) * Dh]
            k = k_b[:, h * Dh:(h + 1) * Dh]
            v = v_b[:, h * Dh:(h + 1) * Dh]
            # q @ k^T without an explicit transpose (contract on last dims).
            s = jax.lax.dot_general(q, k, (((1,), (1,)), ((), ())),
                                    preferred_element_type=jnp.float32) * scale
            s = jnp.where(keep, s, NEG_INF)
            m = jnp.max(s, axis=-1, keepdims=True)
            p = jnp.exp(s - m)
            l = jnp.sum(p, axis=-1, keepdims=True)
            o = jnp.dot(p, v, preferred_element_type=jnp.float32) / l
            contrib = jnp.dot(o, w_o[h * Dh:(h + 1) * Dh, :],
                              preferred_element_type=jnp.float32)
            acc = contrib if acc is None else acc + contrib
        rows.append(acc)
    out = rows[0] if B == 1 else jnp.concatenate(rows, axis=0)
    return out + b_o


def _embed_rows(tok_rows, table, pe, S, B, V, scale):
    """One-hot matmul embedding lookup (no gather) + sinusoidal PE add.
    tok_rows: (B*S, 1) int32."""
    col = jax.lax.broadcasted_iota(jnp.int32, (B * S, V), 1)
    onehot = (col == tok_rows).astype(jnp.float32)
    e = jnp.dot(onehot, table, preferred_element_type=jnp.float32) * scale
    pe_s = pe[0:S, :]
    pe_all = pe_s if B == 1 else jnp.concatenate([pe_s] * B, axis=0)
    return e + pe_all


# --------------------------- fully fused model kernel ------------------------
def _hybrid_kernel(x_bs_ref, x_rows_ref, y_rows_ref, lbl_ref,
                   enc_tab_ref, dec_tab_ref, pe_ref,
                   e_ln0g, e_ln0b, e_wqkv, e_bqkv, e_wo, e_bo,
                   e_ln1g, e_ln1b, e_w1, e_b1, e_w2, e_b2,
                   d_ln0g, d_ln0b, d_swqkv, d_sbqkv, d_swo, d_sbo,
                   d_ln1g, d_ln1b, d_cwq, d_cbq, d_cwkv, d_cbkv, d_cwo, d_cbo,
                   d_ln2g, d_ln2b, d_w1, d_b1, d_w2, d_b2,
                   gen_w, gen_b,
                   logit_ref, loss_ref, *,
                   B, Sx, Sy, H, Dh, L, V):
    D = H * Dh

    # ---- masks built in-kernel (no HBM mask arrays) -------------------------
    x_bs = x_bs_ref[...]                                      # (B, Sx) int32
    keep_enc = [jnp.broadcast_to(x_bs[b:b + 1, :] != PAD_ID, (Sx, Sx))
                for b in range(B)]
    keep_cross = [jnp.broadcast_to(x_bs[b:b + 1, :] != PAD_ID, (Sy, Sx))
                  for b in range(B)]
    row = jax.lax.broadcasted_iota(jnp.int32, (Sy, Sy), 0)
    col = jax.lax.broadcasted_iota(jnp.int32, (Sy, Sy), 1)
    keep_causal = [col <= row] * B

    # ---- encoder -------------------------------------------------------------
    h = _embed_rows(x_rows_ref[...], enc_tab_ref[...], pe_ref[...],
                    Sx, B, V, EMB_SCALE)
    for l in range(L):
        xn = _ln(h, e_ln0g[l], e_ln0b[l])
        qkv = jnp.dot(xn, e_wqkv[l], preferred_element_type=jnp.float32) + e_bqkv[l]
        attn = _mha(qkv[:, 0:D], qkv[:, D:2 * D], qkv[:, 2 * D:3 * D],
                    e_wo[l], e_bo[l], keep_enc, B, Sx, Sx, H, Dh)
        h = h + attn
        xn = _ln(h, e_ln1g[l], e_ln1b[l])
        h1 = jnp.maximum(
            jnp.dot(xn, e_w1[l], preferred_element_type=jnp.float32) + e_b1[l], 0.0)
        h = h + jnp.dot(h1, e_w2[l], preferred_element_type=jnp.float32) + e_b2[l]
    memory = h                                                # (B*Sx, D)

    # ---- decoder -------------------------------------------------------------
    d = _embed_rows(y_rows_ref[...], dec_tab_ref[...], pe_ref[...],
                    Sy, B, V, EMB_SCALE)
    for l in range(L):
        # masked self-attention
        xn = _ln(d, d_ln0g[l], d_ln0b[l])
        qkv = jnp.dot(xn, d_swqkv[l], preferred_element_type=jnp.float32) + d_sbqkv[l]
        attn = _mha(qkv[:, 0:D], qkv[:, D:2 * D], qkv[:, 2 * D:3 * D],
                    d_swo[l], d_sbo[l], keep_causal, B, Sy, Sy, H, Dh)
        d = d + attn
        # cross-attention over encoder memory
        xn = _ln(d, d_ln1g[l], d_ln1b[l])
        q_all = jnp.dot(xn, d_cwq[l], preferred_element_type=jnp.float32) + d_cbq[l]
        kv_all = jnp.dot(memory, d_cwkv[l], preferred_element_type=jnp.float32) + d_cbkv[l]
        attn = _mha(q_all, kv_all[:, 0:D], kv_all[:, D:2 * D],
                    d_cwo[l], d_cbo[l], keep_cross, B, Sy, Sx, H, Dh)
        d = d + attn
        # feed-forward
        xn = _ln(d, d_ln2g[l], d_ln2b[l])
        h1 = jnp.maximum(
            jnp.dot(xn, d_w1[l], preferred_element_type=jnp.float32) + d_b1[l], 0.0)
        d = d + jnp.dot(h1, d_w2[l], preferred_element_type=jnp.float32) + d_b2[l]

    # ---- generator + log-softmax + mean cross-entropy ------------------------
    logits = jnp.dot(d, gen_w[...], preferred_element_type=jnp.float32) + gen_b[...]
    logit_ref[...] = logits.astype(logit_ref.dtype)
    m = jnp.max(logits, axis=-1, keepdims=True)
    z = logits - m
    lse = jnp.log(jnp.sum(jnp.exp(z), axis=-1, keepdims=True))
    logp = z - lse
    colv = jax.lax.broadcasted_iota(jnp.int32, logits.shape, 1)
    onehot = (colv == lbl_ref[...]).astype(jnp.float32)
    per_tok = -jnp.sum(logp * onehot, axis=-1, keepdims=True)          # (M, 1)
    ones_row = jnp.ones((1, B * Sy), jnp.float32)
    total = jnp.dot(ones_row, per_tok, preferred_element_type=jnp.float32)
    loss_ref[...] = total * (1.0 / (B * Sy))   # CrossEntropyLoss default: mean


# ----------------------------- pallas wrapper ---------------------------------
@jax.jit
def hybrid_forward(params, x, y):
    # shift_y
    y_in, label = y[:, :-1], y[:, 1:]
    B, Sx = x.shape
    Sy = y_in.shape[1]

    inputs = [x.astype(jnp.int32),                              # (B, Sx)   mask source
              x.reshape(B * Sx, 1).astype(jnp.int32),           # rows for onehot embed
              y_in.reshape(B * Sy, 1).astype(jnp.int32),
              label.reshape(B * Sy, 1).astype(jnp.int32)]
    inputs += [params[k] for k in PARAM_ORDER]

    kernel = functools.partial(_hybrid_kernel, B=B, Sx=Sx, Sy=Sy,
                               H=N_HEADS, Dh=HEAD_DIM, L=N_LAYERS, V=VOCAB)
    logits2d, loss = pl.pallas_call(
        kernel,
        out_shape=(jax.ShapeDtypeStruct((B * Sy, VOCAB), jnp.float32),
                   jax.ShapeDtypeStruct((1, 1), jnp.float32)),
        grid=(1,),
        in_specs=[_full_spec(a.shape) for a in inputs],
        out_specs=(_full_spec((B * Sy, VOCAB)), _full_spec((1, 1))),
        compiler_params=pltpu.CompilerParams(
            dimension_semantics=("arbitrary",)),
    )(*inputs)
    return logits2d.reshape(B, Sy, VOCAB), loss[0, 0]


# ------------------------- deterministic init ---------------------------------
def sinusoidal_pe(max_len, dim):
    pos = jnp.arange(max_len, dtype=jnp.float32)[:, None]
    i = jnp.arange(0, dim, 2, dtype=jnp.float32)
    div = jnp.exp(-math.log(10000.0) * i / dim)
    pe = jnp.zeros((max_len, dim), jnp.float32)
    pe = pe.at[:, 0::2].set(jnp.sin(pos * div))
    pe = pe.at[:, 1::2].set(jnp.cos(pos * div))
    return pe


def init_linear(key, fan_in, fan_out):
    kw, kb = jax.random.split(key)
    bound = 1.0 / math.sqrt(fan_in)
    w = jax.random.uniform(kw, (fan_in, fan_out), jnp.float32, -bound, bound)
    b = jax.random.uniform(kb, (1, fan_out), jnp.float32, -bound, bound)
    return w, b


def init_mha_self(key):
    ks = jax.random.split(key, 4)
    wq, bq = init_linear(ks[0], HIDDEN, HIDDEN)
    wk, bk = init_linear(ks[1], HIDDEN, HIDDEN)
    wv, bv = init_linear(ks[2], HIDDEN, HIDDEN)
    wo, bo = init_linear(ks[3], HIDDEN, HIDDEN)
    return {"wqkv": jnp.concatenate([wq, wk, wv], axis=1),
            "bqkv": jnp.concatenate([bq, bk, bv], axis=1),
            "wo": wo, "bo": bo}


def init_mha_cross(key):
    ks = jax.random.split(key, 4)
    wq, bq = init_linear(ks[0], HIDDEN, HIDDEN)
    wk, bk = init_linear(ks[1], HIDDEN, HIDDEN)
    wv, bv = init_linear(ks[2], HIDDEN, HIDDEN)
    wo, bo = init_linear(ks[3], HIDDEN, HIDDEN)
    return {"wq": wq, "bq": bq,
            "wkv": jnp.concatenate([wk, wv], axis=1),
            "bkv": jnp.concatenate([bk, bv], axis=1),
            "wo": wo, "bo": bo}


def init_enc_layer(key):
    k1, k2, k3 = jax.random.split(key, 3)
    a = init_mha_self(k1)
    w1, b1 = init_linear(k2, HIDDEN, FFN_DIM)
    w2, b2 = init_linear(k3, FFN_DIM, HIDDEN)
    return {"ln0_g": jnp.ones((1, HIDDEN)), "ln0_b": jnp.zeros((1, HIDDEN)),
            "wqkv": a["wqkv"], "bqkv": a["bqkv"], "wo": a["wo"], "bo": a["bo"],
            "ln1_g": jnp.ones((1, HIDDEN)), "ln1_b": jnp.zeros((1, HIDDEN)),
            "w1": w1, "b1": b1, "w2": w2, "b2": b2}


def init_dec_layer(key):
    k1, k2, k3, k4 = jax.random.split(key, 4)
    sa = init_mha_self(k1)
    ca = init_mha_cross(k2)
    w1, b1 = init_linear(k3, HIDDEN, FFN_DIM)
    w2, b2 = init_linear(k4, FFN_DIM, HIDDEN)
    return {"ln0_g": jnp.ones((1, HIDDEN)), "ln0_b": jnp.zeros((1, HIDDEN)),
            "s_wqkv": sa["wqkv"], "s_bqkv": sa["bqkv"],
            "s_wo": sa["wo"], "s_bo": sa["bo"],
            "ln1_g": jnp.ones((1, HIDDEN)), "ln1_b": jnp.zeros((1, HIDDEN)),
            "c_wq": ca["wq"], "c_bq": ca["bq"],
            "c_wkv": ca["wkv"], "c_bkv": ca["bkv"],
            "c_wo": ca["wo"], "c_bo": ca["bo"],
            "ln2_g": jnp.ones((1, HIDDEN)), "ln2_b": jnp.zeros((1, HIDDEN)),
            "w1": w1, "b1": b1, "w2": w2, "b2": b2}


def init_params(key):
    k_ee, k_de, k_e, k_d, k_g = jax.random.split(key, 5)
    pe = sinusoidal_pe(MAX_LEN, HIDDEN)          # precomputed once (not per forward)
    enc_layers = [init_enc_layer(k) for k in jax.random.split(k_e, N_LAYERS)]
    dec_layers = [init_dec_layer(k) for k in jax.random.split(k_d, N_LAYERS)]
    gen_w, gen_b = init_linear(k_g, HIDDEN, VOCAB)

    params = {
        "enc_table": 0.02 * jax.random.normal(k_ee, (VOCAB, HIDDEN), jnp.float32),
        "dec_table": 0.02 * jax.random.normal(k_de, (VOCAB, HIDDEN), jnp.float32),
        "pe": pe,
        "gen_w": gen_w, "gen_b": gen_b,
    }
    # Stack per-layer weights along a leading layer axis (done once at init, so
    # the fused kernel takes one ref per weight kind and slices ref[l]).
    for n in ENC_NAMES:
        params["e_" + n] = jnp.stack([lp[n] for lp in enc_layers], axis=0)
    for n in DEC_NAMES:
        params["d_" + n] = jnp.stack([lp[n] for lp in dec_layers], axis=0)
    return params


# ------------------------------- main ------------------------------------------
if __name__ == "__main__":
    key = jax.random.PRNGKey(0)
    kx, ky, kp = jax.random.split(key, 3)
    x = jax.random.randint(kx, (BATCH, SEQ_X), 1, VOCAB, dtype=jnp.int32)
    x = x.at[0, -2:].set(PAD_ID)          # exercise the encoder key-padding mask
    y = jax.random.randint(ky, (BATCH, SEQ_Y), 1, VOCAB, dtype=jnp.int32)

    params = init_params(kp)
    logit, loss = hybrid_forward(params, x, y)
    jax.block_until_ready((logit, loss))

    assert logit.shape == (BATCH, SEQ_Y - 1, VOCAB)
    assert bool(jnp.isfinite(loss))
    print("KERNEL_OK")
</pallas_src>

<mosaic_0001>
module attributes {stable_mosaic.version = 11 : i64} {
  func.func @_hybrid_kernel(%arg0: i32, %arg1: memref<2x8xi32, #tpu.memory_space<vmem>>, %arg2: memref<16x1xi32, #tpu.memory_space<vmem>>, %arg3: memref<16x1xi32, #tpu.memory_space<vmem>>, %arg4: memref<16x1xi32, #tpu.memory_space<vmem>>, %arg5: memref<64x32xf32, #tpu.memory_space<vmem>>, %arg6: memref<64x32xf32, #tpu.memory_space<vmem>>, %arg7: memref<64x32xf32, #tpu.memory_space<vmem>>, %arg8: memref<2x1x32xf32, #tpu.memory_space<vmem>>, %arg9: memref<2x1x32xf32, #tpu.memory_space<vmem>>, %arg10: memref<2x32x96xf32, #tpu.memory_space<vmem>>, %arg11: memref<2x1x96xf32, #tpu.memory_space<vmem>>, %arg12: memref<2x32x32xf32, #tpu.memory_space<vmem>>, %arg13: memref<2x1x32xf32, #tpu.memory_space<vmem>>, %arg14: memref<2x1x32xf32, #tpu.memory_space<vmem>>, %arg15: memref<2x1x32xf32, #tpu.memory_space<vmem>>, %arg16: memref<2x32x128xf32, #tpu.memory_space<vmem>>, %arg17: memref<2x1x128xf32, #tpu.memory_space<vmem>>, %arg18: memref<2x128x32xf32, #tpu.memory_space<vmem>>, %arg19: memref<2x1x32xf32, #tpu.memory_space<vmem>>, %arg20: memref<2x1x32xf32, #tpu.memory_space<vmem>>, %arg21: memref<2x1x32xf32, #tpu.memory_space<vmem>>, %arg22: memref<2x32x96xf32, #tpu.memory_space<vmem>>, %arg23: memref<2x1x96xf32, #tpu.memory_space<vmem>>, %arg24: memref<2x32x32xf32, #tpu.memory_space<vmem>>, %arg25: memref<2x1x32xf32, #tpu.memory_space<vmem>>, %arg26: memref<2x1x32xf32, #tpu.memory_space<vmem>>, %arg27: memref<2x1x32xf32, #tpu.memory_space<vmem>>, %arg28: memref<2x32x32xf32, #tpu.memory_space<vmem>>, %arg29: memref<2x1x32xf32, #tpu.memory_space<vmem>>, %arg30: memref<2x32x64xf32, #tpu.memory_space<vmem>>, %arg31: memref<2x1x64xf32, #tpu.memory_space<vmem>>, %arg32: memref<2x32x32xf32, #tpu.memory_space<vmem>>, %arg33: memref<2x1x32xf32, #tpu.memory_space<vmem>>, %arg34: memref<2x1x32xf32, #tpu.memory_space<vmem>>, %arg35: memref<2x1x32xf32, #tpu.memory_space<vmem>>, %arg36: memref<2x32x128xf32, #tpu.memory_space<vmem>>, %arg37: memref<2x1x128xf32, #tpu.memory_space<vmem>>, %arg38: memref<2x128x32xf32, #tpu.memory_space<vmem>>, %arg39: memref<2x1x32xf32, #tpu.memory_space<vmem>>, %arg40: memref<32x64xf32, #tpu.memory_space<vmem>>, %arg41: memref<1x64xf32, #tpu.memory_space<vmem>>, %arg42: memref<16x64xf32, #tpu.memory_space<vmem>>, %arg43: memref<1x1xf32, #tpu.memory_space<vmem>>) attributes {dimension_semantics = [#tpu.dimension_semantics<arbitrary>], iteration_bounds = array<i64: 1>, scalar_prefetch = 0 : i64, scratch_operands = 0 : i64, tpu.core_type = #tpu.core_type<tc>, window_params = [{pipeline_mode = #tpu.pipeline_mode<synchronous>, transform_indices = @transform_0, window_bounds = array<i64: 2, 8>}, {pipeline_mode = #tpu.pipeline_mode<synchronous>, transform_indices = @transform_1, window_bounds = array<i64: 16, 1>}, {pipeline_mode = #tpu.pipeline_mode<synchronous>, transform_indices = @transform_2, window_bounds = array<i64: 16, 1>}, {pipeline_mode = #tpu.pipeline_mode<synchronous>, transform_indices = @transform_3, window_bounds = array<i64: 16, 1>}, {pipeline_mode = #tpu.pipeline_mode<synchronous>, transform_indices = @transform_4, window_bounds = array<i64: 64, 32>}, {pipeline_mode = #tpu.pipeline_mode<synchronous>, transform_indices = @transform_5, window_bounds = array<i64: 64, 32>}, {pipeline_mode = #tpu.pipeline_mode<synchronous>, transform_indices = @transform_6, window_bounds = array<i64: 64, 32>}, {pipeline_mode = #tpu.pipeline_mode<synchronous>, transform_indices = @transform_7, window_bounds = array<i64: 2, 1, 32>}, {pipeline_mode = #tpu.pipeline_mode<synchronous>, transform_indices = @transform_8, window_bounds = array<i64: 2, 1, 32>}, {pipeline_mode = #tpu.pipeline_mode<synchronous>, transform_indices = @transform_9, window_bounds = array<i64: 2, 32, 96>}, {pipeline_mode = #tpu.pipeline_mode<synchronous>, transform_indices = @transform_10, window_bounds = array<i64: 2, 1, 96>}, {pipeline_mode = #tpu.pipeline_mode<synchronous>, transform_indices = @transform_11, window_bounds = array<i64: 2, 32, 32>}, {pipeline_mode = #tpu.pipeline_mode<synchronous>, transform_indices = @transform_12, window_bounds = array<i64: 2, 1, 32>}, {pipeline_mode = #tpu.pipeline_mode<synchronous>, transform_indices = @transform_13, window_bounds = array<i64: 2, 1, 32>}, {pipeline_mode = #tpu.pipeline_mode<synchronous>, transform_indices = @transform_14, window_bounds = array<i64: 2, 1, 32>}, {pipeline_mode = #tpu.pipeline_mode<synchronous>, transform_indices = @transform_15, window_bounds = array<i64: 2, 32, 128>}, {pipeline_mode = #tpu.pipeline_mode<synchronous>, transform_indices = @transform_16, window_bounds = array<i64: 2, 1, 128>}, {pipeline_mode = #tpu.pipeline_mode<synchronous>, transform_indices = @transform_17, window_bounds = array<i64: 2, 128, 32>}, {pipeline_mode = #tpu.pipeline_mode<synchronous>, transform_indices = @transform_18, window_bounds = array<i64: 2, 1, 32>}, {pipeline_mode = #tpu.pipeline_mode<synchronous>, transform_indices = @transform_19, window_bounds = array<i64: 2, 1, 32>}, {pipeline_mode = #tpu.pipeline_mode<synchronous>, transform_indices = @transform_20, window_bounds = array<i64: 2, 1, 32>}, {pipeline_mode = #tpu.pipeline_mode<synchronous>, transform_indices = @transform_21, window_bounds = array<i64: 2, 32, 96>}, {pipeline_mode = #tpu.pipeline_mode<synchronous>, transform_indices = @transform_22, window_bounds = array<i64: 2, 1, 96>}, {pipeline_mode = #tpu.pipeline_mode<synchronous>, transform_indices = @transform_23, window_bounds = array<i64: 2, 32, 32>}, {pipeline_mode = #tpu.pipeline_mode<synchronous>, transform_indices = @transform_24, window_bounds = array<i64: 2, 1, 32>}, {pipeline_mode = #tpu.pipeline_mode<synchronous>, transform_indices = @transform_25, window_bounds = array<i64: 2, 1, 32>}, {pipeline_mode = #tpu.pipeline_mode<synchronous>, transform_indices = @transform_26, window_bounds = array<i64: 2, 1, 32>}, {pipeline_mode = #tpu.pipeline_mode<synchronous>, transform_indices = @transform_27, window_bounds = array<i64: 2, 32, 32>}, {pipeline_mode = #tpu.pipeline_mode<synchronous>, transform_indices = @transform_28, window_bounds = array<i64: 2, 1, 32>}, {pipeline_mode = #tpu.pipeline_mode<synchronous>, transform_indices = @transform_29, window_bounds = array<i64: 2, 32, 64>}, {pipeline_mode = #tpu.pipeline_mode<synchronous>, transform_indices = @transform_30, window_bounds = array<i64: 2, 1, 64>}, {pipeline_mode = #tpu.pipeline_mode<synchronous>, transform_indices = @transform_31, window_bounds = array<i64: 2, 32, 32>}, {pipeline_mode = #tpu.pipeline_mode<synchronous>, transform_indices = @transform_32, window_bounds = array<i64: 2, 1, 32>}, {pipeline_mode = #tpu.pipeline_mode<synchronous>, transform_indices = @transform_33, window_bounds = array<i64: 2, 1, 32>}, {pipeline_mode = #tpu.pipeline_mode<synchronous>, transform_indices = @transform_34, window_bounds = array<i64: 2, 1, 32>}, {pipeline_mode = #tpu.pipeline_mode<synchronous>, transform_indices = @transform_35, window_bounds = array<i64: 2, 32, 128>}, {pipeline_mode = #tpu.pipeline_mode<synchronous>, transform_indices = @transform_36, window_bounds = array<i64: 2, 1, 128>}, {pipeline_mode = #tpu.pipeline_mode<synchronous>, transform_indices = @transform_37, window_bounds = array<i64: 2, 128, 32>}, {pipeline_mode = #tpu.pipeline_mode<synchronous>, transform_indices = @transform_38, window_bounds = array<i64: 2, 1, 32>}, {pipeline_mode = #tpu.pipeline_mode<synchronous>, transform_indices = @transform_39, window_bounds = array<i64: 32, 64>}, {pipeline_mode = #tpu.pipeline_mode<synchronous>, transform_indices = @transform_40, window_bounds = array<i64: 1, 64>}, {pipeline_mode = #tpu.pipeline_mode<synchronous>, transform_indices = @transform_41, window_bounds = array<i64: 16, 64>}, {pipeline_mode = #tpu.pipeline_mode<synchronous>, transform_indices = @transform_42, window_bounds = array<i64: 1, 1>}]} {
    %c0 = arith.constant 0 : index
    %c0_0 = arith.constant 0 : index
    %0 = vector.load %arg1[%c0, %c0_0] : memref<2x8xi32, #tpu.memory_space<vmem>>, vector<2x8xi32>
    %1 = vector.extract_strided_slice %0 {offsets = [0, 0], sizes = [1, 8], strides = [1, 1]} : vector<2x8xi32> to vector<1x8xi32>
    %c0_i32 = arith.constant 0 : i32
    %2 = vector.broadcast %c0_i32 : i32 to vector<1x8xi32>
    %3 = arith.cmpi ne, %1, %2 : vector<1x8xi32>
    %4 = vector.shape_cast %3 : vector<1x8xi1> to vector<1x8xi1>
    %5 = vector.broadcast %4 : vector<1x8xi1> to vector<8x8xi1>
    %6 = vector.extract_strided_slice %0 {offsets = [1, 0], sizes = [1, 8], strides = [1, 1]} : vector<2x8xi32> to vector<1x8xi32>
    %c0_i32_1 = arith.constant 0 : i32
    %7 = vector.broadcast %c0_i32_1 : i32 to vector<1x8xi32>
    %8 = arith.cmpi ne, %6, %7 : vector<1x8xi32>
    %9 = vector.shape_cast %8 : vector<1x8xi1> to vector<1x8xi1>
    %10 = vector.broadcast %9 : vector<1x8xi1> to vector<8x8xi1>
    %11 = vector.extract_strided_slice %0 {offsets = [0, 0], sizes = [1, 8], strides = [1, 1]} : vector<2x8xi32> to vector<1x8xi32>
    %c0_i32_2 = arith.constant 0 : i32
    %12 = vector.broadcast %c0_i32_2 : i32 to vector<1x8xi32>
    %13 = arith.cmpi ne, %11, %12 : vector<1x8xi32>
    %14 = vector.shape_cast %13 : vector<1x8xi1> to vector<1x8xi1>
    %15 = vector.broadcast %14 : vector<1x8xi1> to vector<8x8xi1>
    %16 = vector.extract_strided_slice %0 {offsets = [1, 0], sizes = [1, 8], strides = [1, 1]} : vector<2x8xi32> to vector<1x8xi32>
    %c0_i32_3 = arith.constant 0 : i32
    %17 = vector.broadcast %c0_i32_3 : i32 to vector<1x8xi32>
    %18 = arith.cmpi ne, %16, %17 : vector<1x8xi32>
    %19 = vector.shape_cast %18 : vector<1x8xi1> to vector<1x8xi1>
    %20 = vector.broadcast %19 : vector<1x8xi1> to vector<8x8xi1>
    %21 = tpu.iota {dimensions = array<i32: 0>} : vector<8x8xi32>
    %22 = tpu.iota {dimensions = array<i32: 1>} : vector<8x8xi32>
    %23 = arith.cmpi sle, %22, %21 : vector<8x8xi32>
    %c0_4 = arith.constant 0 : index
    %c0_5 = arith.constant 0 : index
    %24 = vector.load %arg2[%c0_4, %c0_5] : memref<16x1xi32, #tpu.memory_space<vmem>>, vector<16x1xi32>
    %c0_6 = arith.constant 0 : index
    %c0_7 = arith.constant 0 : index
    %25 = vector.load %arg5[%c0_6, %c0_7] : memref<64x32xf32, #tpu.memory_space<vmem>>, vector<64x32xf32>
    %c0_8 = arith.constant 0 : index
    %c0_9 = arith.constant 0 : index
    %26 = vector.load %arg7[%c0_8, %c0_9] : memref<64x32xf32, #tpu.memory_space<vmem>>, vector<64x32xf32>
    %27 = tpu.iota {dimensions = array<i32: 1>} : vector<16x64xi32>
    %28 = vector.broadcast %24 : vector<16x1xi32> to vector<16x64xi32>
    %29 = arith.cmpi eq, %27, %28 : vector<16x64xi32>
    %30 = arith.extui %29 : vector<16x64xi1> to vector<16x64xi32>
    %31 = arith.sitofp %30 : vector<16x64xi32> to vector<16x64xf32>
    %cst = arith.constant dense<0.000000e+00> : vector<16x32xf32>
    %32 = tpu.matmul %31, %25, %cst {dimension_numbers = #tpu.dot_dimension_numbers<[1], [0], [0], [1], [0, 0, 1, 1], [], []>} : vector<16x64xf32>, vector<64x32xf32>, vector<16x32xf32> -> vector<16x32xf32>
    %cst_10 = arith.constant 5.65685415 : f32
    %33 = vector.broadcast %cst_10 : f32 to vector<16x32xf32>
    %34 = arith.mulf %32, %33 : vector<16x32xf32>
    %35 = vector.extract_strided_slice %26 {offsets = [0, 0], sizes = [8, 32], strides = [1, 1]} : vector<64x32xf32> to vector<8x32xf32>
    %36 = tpu.concatenate %35, %35 in 0 : vector<8x32xf32>, vector<8x32xf32> -> vector<16x32xf32>
    %37 = arith.addf %34, %36 : vector<16x32xf32>
    %c0_11 = arith.constant 0 : index
    %c0_12 = arith.constant 0 : index
    %c0_13 = arith.constant 0 : index
    %38 = vector.load %arg8[%c0_11, %c0_12, %c0_13] : memref<2x1x32xf32, #tpu.memory_space<vmem>>, vector<1x1x32xf32>
    %39 = vector.shape_cast %38 : vector<1x1x32xf32> to vector<1x32xf32>
    %c0_14 = arith.constant 0 : index
    %c0_15 = arith.constant 0 : index
    %c0_16 = arith.constant 0 : index
    %40 = vector.load %arg9[%c0_14, %c0_15, %c0_16] : memref<2x1x32xf32, #tpu.memory_space<vmem>>, vector<1x1x32xf32>
    %41 = vector.shape_cast %40 : vector<1x1x32xf32> to vector<1x32xf32>
    %cst_17 = arith.constant dense<0.000000e+00> : vector<16xf32>
    %42 = vector.multi_reduction <add>, %37, %cst_17 [1] : vector<16x32xf32> to vector<16xf32>
    %43 = vector.shape_cast %42 : vector<16xf32> to vector<16x1xf32>
    %cst_18 = arith.constant 3.200000e+01 : f32
    %44 = vector.broadcast %cst_18 : f32 to vector<16x1xf32>
    %45 = arith.divf %43, %44 : vector<16x1xf32>
    %46 = vector.broadcast %45 : vector<16x1xf32> to vector<16x32xf32>
    %47 = arith.subf %37, %46 : vector<16x32xf32>
    %48 = arith.mulf %47, %47 : vector<16x32xf32>
    %cst_19 = arith.constant dense<0.000000e+00> : vector<16xf32>
    %49 = vector.multi_reduction <add>, %48, %cst_19 [1] : vector<16x32xf32> to vector<16xf32>
    %50 = vector.shape_cast %49 : vector<16xf32> to vector<16x1xf32>
    %cst_20 = arith.constant 3.200000e+01 : f32
    %51 = vector.broadcast %cst_20 : f32 to vector<16x1xf32>
    %52 = arith.divf %50, %51 : vector<16x1xf32>
    %53 = vector.broadcast %45 : vector<16x1xf32> to vector<16x32xf32>
    %54 = arith.subf %37, %53 : vector<16x32xf32>
    %cst_21 = arith.constant 9.99999974E-6 : f32
    %55 = vector.broadcast %cst_21 : f32 to vector<16x1xf32>
    %56 = arith.addf %52, %55 : vector<16x1xf32>
    %57 = math.rsqrt %56 : vector<16x1xf32>
    %58 = vector.broadcast %57 : vector<16x1xf32> to vector<16x32xf32>
    %59 = arith.mulf %54, %58 : vector<16x32xf32>
    %60 = vector.broadcast %39 : vector<1x32xf32> to vector<16x32xf32>
    %61 = arith.mulf %59, %60 : vector<16x32xf32>
    %62 = vector.broadcast %41 : vector<1x32xf32> to vector<16x32xf32>
    %63 = arith.addf %61, %62 : vector<16x32xf32>
    %c0_22 = arith.constant 0 : index
    %c0_23 = arith.constant 0 : index
    %c0_24 = arith.constant 0 : index
    %64 = vector.load %arg10[%c0_22, %c0_23, %c0_24] : memref<2x32x96xf32, #tpu.memory_space<vmem>>, vector<1x32x96xf32>
    %65 = vector.shape_cast %64 : vector<1x32x96xf32> to vector<32x96xf32>
    %cst_25 = arith.constant dense<0.000000e+00> : vector<16x96xf32>
    %66 = tpu.matmul %63, %65, %cst_25 {dimension_numbers = #tpu.dot_dimension_numbers<[1], [0], [0], [1], [0, 0, 1, 1], [], []>} : vector<16x32xf32>, vector<32x96xf32>, vector<16x96xf32> -> vector<16x96xf32>
    %c0_26 = arith.constant 0 : index
    %c0_27 = arith.constant 0 : index
    %c0_28 = arith.constant 0 : index
    %67 = vector.load %arg11[%c0_26, %c0_27, %c0_28] : memref<2x1x96xf32, #tpu.memory_space<vmem>>, vector<1x1x96xf32>
    %68 = vector.shape_cast %67 : vector<1x1x96xf32> to vector<1x96xf32>
    %69 = vector.broadcast %68 : vector<1x96xf32> to vector<16x96xf32>
    %70 = arith.addf %66, %69 : vector<16x96xf32>
    %71 = vector.extract_strided_slice %70 {offsets = [0, 0], sizes = [16, 32], strides = [1, 1]} : vector<16x96xf32> to vector<16x32xf32>
    %72 = vector.extract_strided_slice %70 {offsets = [0, 32], sizes = [16, 32], strides = [1, 1]} : vector<16x96xf32> to vector<16x32xf32>
    %73 = vector.extract_strided_slice %70 {offsets = [0, 64], sizes = [16, 32], strides = [1, 1]} : vector<16x96xf32> to vector<16x32xf32>
    %c0_29 = arith.constant 0 : index
    %c0_30 = arith.constant 0 : index
    %c0_31 = arith.constant 0 : index
    %74 = vector.load %arg12[%c0_29, %c0_30, %c0_31] : memref<2x32x32xf32, #tpu.memory_space<vmem>>, vector<1x32x32xf32>
    %75 = vector.shape_cast %74 : vector<1x32x32xf32> to vector<32x32xf32>
    %c0_32 = arith.constant 0 : index
    %c0_33 = arith.constant 0 : index
    %c0_34 = arith.constant 0 : index
    %76 = vector.load %arg13[%c0_32, %c0_33, %c0_34] : memref<2x1x32xf32, #tpu.memory_space<vmem>>, vector<1x1x32xf32>
    %77 = vector.shape_cast %76 : vector<1x1x32xf32> to vector<1x32xf32>
    %78 = vector.extract_strided_slice %71 {offsets = [0, 0], sizes = [8, 32], strides = [1, 1]} : vector<16x32xf32> to vector<8x32xf32>
    %79 = vector.extract_strided_slice %72 {offsets = [0, 0], sizes = [8, 32], strides = [1, 1]} : vector<16x32xf32> to vector<8x32xf32>
    %80 = vector.extract_strided_slice %73 {offsets = [0, 0], sizes = [8, 32], strides = [1, 1]} : vector<16x32xf32> to vector<8x32xf32>
    %81 = vector.extract_strided_slice %78 {offsets = [0, 0], sizes = [8, 8], strides = [1, 1]} : vector<8x32xf32> to vector<8x8xf32>
    %82 = vector.extract_strided_slice %79 {offsets = [0, 0], sizes = [8, 8], strides = [1, 1]} : vector<8x32xf32> to vector<8x8xf32>
    %83 = vector.extract_strided_slice %80 {offsets = [0, 0], sizes = [8, 8], strides = [1, 1]} : vector<8x32xf32> to vector<8x8xf32>
    %cst_35 = arith.constant dense<0.000000e+00> : vector<8x8xf32>
    %84 = tpu.matmul %81, %82, %cst_35 {dimension_numbers = #tpu.dot_dimension_numbers<[1], [1], [0], [0], [0, 0, 1, 0], [], []>} : vector<8x8xf32>, vector<8x8xf32>, vector<8x8xf32> -> vector<8x8xf32>
    %cst_36 = arith.constant 0.353553385 : f32
    %85 = vector.broadcast %cst_36 : f32 to vector<8x8xf32>
    %86 = arith.mulf %84, %85 : vector<8x8xf32>
    %cst_37 = arith.constant 0xFF800000 : f32
    %87 = vector.broadcast %cst_37 : f32 to vector<8x8xf32>
    %88 = arith.select %5, %86, %87 : vector<8x8xi1>, vector<8x8xf32>
    %cst_38 = arith.constant dense<0xFF800000> : vector<8xf32>
    %89 = vector.multi_reduction <maximumf>, %88, %cst_38 [1] : vector<8x8xf32> to vector<8xf32>
    %90 = vector.shape_cast %89 : vector<8xf32> to vector<8x1xf32>
    %91 = vector.broadcast %90 : vector<8x1xf32> to vector<8x8xf32>
    %92 = arith.subf %88, %91 : vector<8x8xf32>
    %93 = math.exp %92 : vector<8x8xf32>
    %cst_39 = arith.constant dense<0.000000e+00> : vector<8xf32>
    %94 = vector.multi_reduction <add>, %93, %cst_39 [1] : vector<8x8xf32> to vector<8xf32>
    %95 = vector.shape_cast %94 : vector<8xf32> to vector<8x1xf32>
    %cst_40 = arith.constant dense<0.000000e+00> : vector<8x8xf32>
    %96 = tpu.matmul %93, %83, %cst_40 {dimension_numbers = #tpu.dot_dimension_numbers<[1], [0], [0], [1], [0, 0, 1, 1], [], []>} : vector<8x8xf32>, vector<8x8xf32>, vector<8x8xf32> -> vector<8x8xf32>
    %97 = vector.broadcast %95 : vector<8x1xf32> to vector<8x8xf32>
    %98 = arith.divf %96, %97 : vector<8x8xf32>
    %99 = vector.extract_strided_slice %75 {offsets = [0, 0], sizes = [8, 32], strides = [1, 1]} : vector<32x32xf32> to vector<8x32xf32>
    %cst_41 = arith.constant dense<0.000000e+00> : vector<8x32xf32>
    %100 = tpu.matmul %98, %99, %cst_41 {dimension_numbers = #tpu.dot_dimension_numbers<[1], [0], [0], [1], [0, 0, 1, 1], [], []>} : vector<8x8xf32>, vector<8x32xf32>, vector<8x32xf32> -> vector<8x32xf32>
    %101 = vector.extract_strided_slice %78 {offsets = [0, 8], sizes = [8, 8], strides = [1, 1]} : vector<8x32xf32> to vector<8x8xf32>
    %102 = vector.extract_strided_slice %79 {offsets = [0, 8], sizes = [8, 8], strides = [1, 1]} : vector<8x32xf32> to vector<8x8xf32>
    %103 = vector.extract_strided_slice %80 {offsets = [0, 8], sizes = [8, 8], strides = [1, 1]} : vector<8x32xf32> to vector<8x8xf32>
    %cst_42 = arith.constant dense<0.000000e+00> : vector<8x8xf32>
    %104 = tpu.matmul %101, %102, %cst_42 {dimension_numbers = #tpu.dot_dimension_numbers<[1], [1], [0], [0], [0, 0, 1, 0], [], []>} : vector<8x8xf32>, vector<8x8xf32>, vector<8x8xf32> -> vector<8x8xf32>
    %cst_43 = arith.constant 0.353553385 : f32
    %105 = vector.broadcast %cst_43 : f32 to vector<8x8xf32>
    %106 = arith.mulf %104, %105 : vector<8x8xf32>
    %cst_44 = arith.constant 0xFF800000 : f32
    %107 = vector.broadcast %cst_44 : f32 to vector<8x8xf32>
    %108 = arith.select %5, %106, %107 : vector<8x8xi1>, vector<8x8xf32>
    %cst_45 = arith.constant dense<0xFF800000> : vector<8xf32>
    %109 = vector.multi_reduction <maximumf>, %108, %cst_45 [1] : vector<8x8xf32> to vector<8xf32>
    %110 = vector.shape_cast %109 : vector<8xf32> to vector<8x1xf32>
    %111 = vector.broadcast %110 : vector<8x1xf32> to vector<8x8xf32>
    %112 = arith.subf %108, %111 : vector<8x8xf32>
    %113 = math.exp %112 : vector<8x8xf32>
    %cst_46 = arith.constant dense<0.000000e+00> : vector<8xf32>
    %114 = vector.multi_reduction <add>, %113, %cst_46 [1] : vector<8x8xf32> to vector<8xf32>
    %115 = vector.shape_cast %114 : vector<8xf32> to vector<8x1xf32>
    %cst_47 = arith.constant dense<0.000000e+00> : vector<8x8xf32>
    %116 = tpu.matmul %113, %103, %cst_47 {dimension_numbers = #tpu.dot_dimension_numbers<[1], [0], [0], [1], [0, 0, 1, 1], [], []>} : vector<8x8xf32>, vector<8x8xf32>, vector<8x8xf32> -> vector<8x8xf32>
    %117 = vector.broadcast %115 : vector<8x1xf32> to vector<8x8xf32>
    %118 = arith.divf %116, %117 : vector<8x8xf32>
    %119 = vector.extract_strided_slice %75 {offsets = [8, 0], sizes = [8, 32], strides = [1, 1]} : vector<32x32xf32> to vector<8x32xf32>
    %cst_48 = arith.constant dense<0.000000e+00> : vector<8x32xf32>
    %120 = tpu.matmul %118, %119, %cst_48 {dimension_numbers = #tpu.dot_dimension_numbers<[1], [0], [0], [1], [0, 0, 1, 1], [], []>} : vector<8x8xf32>, vector<8x32xf32>, vector<8x32xf32> -> vector<8x32xf32>
    %121 = arith.addf %100, %120 : vector<8x32xf32>
    %122 = vector.extract_strided_slice %78 {offsets = [0, 16], sizes = [8, 8], strides = [1, 1]} : vector<8x32xf32> to vector<8x8xf32>
    %123 = vector.extract_strided_slice %79 {offsets = [0, 16], sizes = [8, 8], strides = [1, 1]} : vector<8x32xf32> to vector<8x8xf32>
    %124 = vector.extract_strided_slice %80 {offsets = [0, 16], sizes = [8, 8], strides = [1, 1]} : vector<8x32xf32> to vector<8x8xf32>
    %cst_49 = arith.constant dense<0.000000e+00> : vector<8x8xf32>
    %125 = tpu.matmul %122, %123, %cst_49 {dimension_numbers = #tpu.dot_dimension_numbers<[1], [1], [0], [0], [0, 0, 1, 0], [], []>} : vector<8x8xf32>, vector<8x8xf32>, vector<8x8xf32> -> vector<8x8xf32>
    %cst_50 = arith.constant 0.353553385 : f32
    %126 = vector.broadcast %cst_50 : f32 to vector<8x8xf32>
    %127 = arith.mulf %125, %126 : vector<8x8xf32>
    %cst_51 = arith.constant 0xFF800000 : f32
    %128 = vector.broadcast %cst_51 : f32 to vector<8x8xf32>
    %129 = arith.select %5, %127, %128 : vector<8x8xi1>, vector<8x8xf32>
    %cst_52 = arith.constant dense<0xFF800000> : vector<8xf32>
    %130 = vector.multi_reduction <maximumf>, %129, %cst_52 [1] : vector<8x8xf32> to vector<8xf32>
    %131 = vector.shape_cast %130 : vector<8xf32> to vector<8x1xf32>
    %132 = vector.broadcast %131 : vector<8x1xf32> to vector<8x8xf32>
    %133 = arith.subf %129, %132 : vector<8x8xf32>
    %134 = math.exp %133 : vector<8x8xf32>
    %cst_53 = arith.constant dense<0.000000e+00> : vector<8xf32>
    %135 = vector.multi_reduction <add>, %134, %cst_53 [1] : vector<8x8xf32> to vector<8xf32>
    %136 = vector.shape_cast %135 : vector<8xf32> to vector<8x1xf32>
    %cst_54 = arith.constant dense<0.000000e+00> : vector<8x8xf32>
    %137 = tpu.matmul %134, %124, %cst_54 {dimension_numbers = #tpu.dot_dimension_numbers<[1], [0], [0], [1], [0, 0, 1, 1], [], []>} : vector<8x8xf32>, vector<8x8xf32>, vector<8x8xf32> -> vector<8x8xf32>
    %138 = vector.broadcast %136 : vector<8x1xf32> to vector<8x8xf32>
    %139 = arith.divf %137, %138 : vector<8x8xf32>
    %140 = vector.extract_strided_slice %75 {offsets = [16, 0], sizes = [8, 32], strides = [1, 1]} : vector<32x32xf32> to vector<8x32xf32>
    %cst_55 = arith.constant dense<0.000000e+00> : vector<8x32xf32>
    %141 = tpu.matmul %139, %140, %cst_55 {dimension_numbers = #tpu.dot_dimension_numbers<[1], [0], [0], [1], [0, 0, 1, 1], [], []>} : vector<8x8xf32>, vector<8x32xf32>, vector<8x32xf32> -> vector<8x32xf32>
    %142 = arith.addf %121, %141 : vector<8x32xf32>
    %143 = vector.extract_strided_slice %78 {offsets = [0, 24], sizes = [8, 8], strides = [1, 1]} : vector<8x32xf32> to vector<8x8xf32>
    %144 = vector.extract_strided_slice %79 {offsets = [0, 24], sizes = [8, 8], strides = [1, 1]} : vector<8x32xf32> to vector<8x8xf32>
    %145 = vector.extract_strided_slice %80 {offsets = [0, 24], sizes = [8, 8], strides = [1, 1]} : vector<8x32xf32> to vector<8x8xf32>
    %cst_56 = arith.constant dense<0.000000e+00> : vector<8x8xf32>
    %146 = tpu.matmul %143, %144, %cst_56 {dimension_numbers = #tpu.dot_dimension_numbers<[1], [1], [0], [0], [0, 0, 1, 0], [], []>} : vector<8x8xf32>, vector<8x8xf32>, vector<8x8xf32> -> vector<8x8xf32>
    %cst_57 = arith.constant 0.353553385 : f32
    %147 = vector.broadcast %cst_57 : f32 to vector<8x8xf32>
    %148 = arith.mulf %146, %147 : vector<8x8xf32>
    %cst_58 = arith.constant 0xFF800000 : f32
    %149 = vector.broadcast %cst_58 : f32 to vector<8x8xf32>
    %150 = arith.select %5, %148, %149 : vector<8x8xi1>, vector<8x8xf32>
    %cst_59 = arith.constant dense<0xFF800000> : vector<8xf32>
    %151 = vector.multi_reduction <maximumf>, %150, %cst_59 [1] : vector<8x8xf32> to vector<8xf32>
    %152 = vector.shape_cast %151 : vector<8xf32> to vector<8x1xf32>
    %153 = vector.broadcast %152 : vector<8x1xf32> to vector<8x8xf32>
    %154 = arith.subf %150, %153 : vector<8x8xf32>
    %155 = math.exp %154 : vector<8x8xf32>
    %cst_60 = arith.constant dense<0.000000e+00> : vector<8xf32>
    %156 = vector.multi_reduction <add>, %155, %cst_60 [1] : vector<8x8xf32> to vector<8xf32>
    %157 = vector.shape_cast %156 : vector<8xf32> to vector<8x1xf32>
    %cst_61 = arith.constant dense<0.000000e+00> : vector<8x8xf32>
    %158 = tpu.matmul %155, %145, %cst_61 {dimension_numbers = #tpu.dot_dimension_numbers<[1], [0], [0], [1], [0, 0, 1, 1], [], []>} : vector<8x8xf32>, vector<8x8xf32>, vector<8x8xf32> -> vector<8x8xf32>
    %159 = vector.broadcast %157 : vector<8x1xf32> to vector<8x8xf32>
    %160 = arith.divf %158, %159 : vector<8x8xf32>
    %161 = vector.extract_strided_slice %75 {offsets = [24, 0], sizes = [8, 32], strides = [1, 1]} : vector<32x32xf32> to vector<8x32xf32>
    %cst_62 = arith.constant dense<0.000000e+00> : vector<8x32xf32>
    %162 = tpu.matmul %160, %161, %cst_62 {dimension_numbers = #tpu.dot_dimension_numbers<[1], [0], [0], [1], [0, 0, 1, 1], [], []>} : vector<8x8xf32>, vector<8x32xf32>, vector<8x32xf32> -> vector<8x32xf32>
    %163 = arith.addf %142, %162 : vector<8x32xf32>
    %164 = vector.extract_strided_slice %71 {offsets = [8, 0], sizes = [8, 32], strides = [1, 1]} : vector<16x32xf32> to vector<8x32xf32>
    %165 = vector.extract_strided_slice %72 {offsets = [8, 0], sizes = [8, 32], strides = [1, 1]} : vector<16x32xf32> to vector<8x32xf32>
    %166 = vector.extract_strided_slice %73 {offsets = [8, 0], sizes = [8, 32], strides = [1, 1]} : vector<16x32xf32> to vector<8x32xf32>
    %167 = vector.extract_strided_slice %164 {offsets = [0, 0], sizes = [8, 8], strides = [1, 1]} : vector<8x32xf32> to vector<8x8xf32>
    %168 = vector.extract_strided_slice %165 {offsets = [0, 0], sizes = [8, 8], strides = [1, 1]} : vector<8x32xf32> to vector<8x8xf32>
    %169 = vector.extract_strided_slice %166 {offsets = [0, 0], sizes = [8, 8], strides = [1, 1]} : vector<8x32xf32> to vector<8x8xf32>
    %cst_63 = arith.constant dense<0.000000e+00> : vector<8x8xf32>
    %170 = tpu.matmul %167, %168, %cst_63 {dimension_numbers = #tpu.dot_dimension_numbers<[1], [1], [0], [0], [0, 0, 1, 0], [], []>} : vector<8x8xf32>, vector<8x8xf32>, vector<8x8xf32> -> vector<8x8xf32>
    %cst_64 = arith.constant 0.353553385 : f32
    %171 = vector.broadcast %cst_64 : f32 to vector<8x8xf32>
    %172 = arith.mulf %170, %171 : vector<8x8xf32>
    %cst_65 = arith.constant 0xFF800000 : f32
    %173 = vector.broadcast %cst_65 : f32 to vector<8x8xf32>
    %174 = arith.select %10, %172, %173 : vector<8x8xi1>, vector<8x8xf32>
    %cst_66 = arith.constant dense<0xFF800000> : vector<8xf32>
    %175 = vector.multi_reduction <maximumf>, %174, %cst_66 [1] : vector<8x8xf32> to vector<8xf32>
    %176 = vector.shape_cast %175 : vector<8xf32> to vector<8x1xf32>
    %177 = vector.broadcast %176 : vector<8x1xf32> to vector<8x8xf32>
    %178 = arith.subf %174, %177 : vector<8x8xf32>
    %179 = math.exp %178 : vector<8x8xf32>
    %cst_67 = arith.constant dense<0.000000e+00> : vector<8xf32>
    %180 = vector.multi_reduction <add>, %179, %cst_67 [1] : vector<8x8xf32> to vector<8xf32>
    %181 = vector.shape_cast %180 : vector<8xf32> to vector<8x1xf32>
    %cst_68 = arith.constant dense<0.000000e+00> : vector<8x8xf32>
    %182 = tpu.matmul %179, %169, %cst_68 {dimension_numbers = #tpu.dot_dimension_numbers<[1], [0], [0], [1], [0, 0, 1, 1], [], []>} : vector<8x8xf32>, vector<8x8xf32>, vector<8x8xf32> -> vector<8x8xf32>
    %183 = vector.broadcast %181 : vector<8x1xf32> to vector<8x8xf32>
    %184 = arith.divf %182, %183 : vector<8x8xf32>
    %185 = vector.extract_strided_slice %75 {offsets = [0, 0], sizes = [8, 32], strides = [1, 1]} : vector<32x32xf32> to vector<8x32xf32>
    %cst_69 = arith.constant dense<0.000000e+00> : vector<8x32xf32>
    %186 = tpu.matmul %184, %185, %cst_69 {dimension_numbers = #tpu.dot_dimension_numbers<[1], [0], [0], [1], [0, 0, 1, 1], [], []>} : vector<8x8xf32>, vector<8x32xf32>, vector<8x32xf32> -> vector<8x32xf32>
    %187 = vector.extract_strided_slice %164 {offsets = [0, 8], sizes = [8, 8], strides = [1, 1]} : vector<8x32xf32> to vector<8x8xf32>
    %188 = vector.extract_strided_slice %165 {offsets = [0, 8], sizes = [8, 8], strides = [1, 1]} : vector<8x32xf32> to vector<8x8xf32>
    %189 = vector.extract_strided_slice %166 {offsets = [0, 8], sizes = [8, 8], strides = [1, 1]} : vector<8x32xf32> to vector<8x8xf32>
    %cst_70 = arith.constant dense<0.000000e+00> : vector<8x8xf32>
    %190 = tpu.matmul %187, %188, %cst_70 {dimension_numbers = #tpu.dot_dimension_numbers<[1], [1], [0], [0], [0, 0, 1, 0], [], []>} : vector<8x8xf32>, vector<8x8xf32>, vector<8x8xf32> -> vector<8x8xf32>
    %cst_71 = arith.constant 0.353553385 : f32
    %191 = vector.broadcast %cst_71 : f32 to vector<8x8xf32>
    %192 = arith.mulf %190, %191 : vector<8x8xf32>
    %cst_72 = arith.constant 0xFF800000 : f32
    %193 = vector.broadcast %cst_72 : f32 to vector<8x8xf32>
    %194 = arith.select %10, %192, %193 : vector<8x8xi1>, vector<8x8xf32>
    %cst_73 = arith.constant dense<0xFF800000> : vector<8xf32>
    %195 = vector.multi_reduction <maximumf>, %194, %cst_73 [1] : vector<8x8xf32> to vector<8xf32>
    %196 = vector.shape_cast %195 : vector<8xf32> to vector<8x1xf32>
    %197 = vector.broadcast %196 : vector<8x1xf32> to vector<8x8xf32>
    %198 = arith.subf %194, %197 : vector<8x8xf32>
    %199 = math.exp %198 : vector<8x8xf32>
    %cst_74 = arith.constant dense<0.000000e+00> : vector<8xf32>
    %200 = vector.multi_reduction <add>, %199, %cst_74 [1] : vector<8x8xf32> to vector<8xf32>
    %201 = vector.shape_cast %200 : vector<8xf32> to vector<8x1xf32>
    %cst_75 = arith.constant dense<0.000000e+00> : vector<8x8xf32>
    %202 = tpu.matmul %199, %189, %cst_75 {dimension_numbers = #tpu.dot_dimension_numbers<[1], [0], [0], [1], [0, 0, 1, 1], [], []>} : vector<8x8xf32>, vector<8x8xf32>, vector<8x8xf32> -> vector<8x8xf32>
    %203 = vector.broadcast %201 : vector<8x1xf32> to vector<8x8xf32>
    %204 = arith.divf %202, %203 : vector<8x8xf32>
    %205 = vector.extract_strided_slice %75 {offsets = [8, 0], sizes = [8, 32], strides = [1, 1]} : vector<32x32xf32> to vector<8x32xf32>
    %cst_76 = arith.constant dense<0.000000e+00> : vector<8x32xf32>
    %206 = tpu.matmul %204, %205, %cst_76 {dimension_numbers = #tpu.dot_dimension_numbers<[1], [0], [0], [1], [0, 0, 1, 1], [], []>} : vector<8x8xf32>, vector<8x32xf32>, vector<8x32xf32> -> vector<8x32xf32>
    %207 = arith.addf %186, %206 : vector<8x32xf32>
    %208 = vector.extract_strided_slice %164 {offsets = [0, 16], sizes = [8, 8], strides = [1, 1]} : vector<8x32xf32> to vector<8x8xf32>
    %209 = vector.extract_strided_slice %165 {offsets = [0, 16], sizes = [8, 8], strides = [1, 1]} : vector<8x32xf32> to vector<8x8xf32>
    %210 = vector.extract_strided_slice %166 {offsets = [0, 16], sizes = [8, 8], strides = [1, 1]} : vector<8x32xf32> to vector<8x8xf32>
    %cst_77 = arith.constant dense<0.000000e+00> : vector<8x8xf32>
    %211 = tpu.matmul %208, %209, %cst_77 {dimension_numbers = #tpu.dot_dimension_numbers<[1], [1], [0], [0], [0, 0, 1, 0], [], []>} : vector<8x8xf32>, vector<8x8xf32>, vector<8x8xf32> -> vector<8x8xf32>
    %cst_78 = arith.constant 0.353553385 : f32
    %212 = vector.broadcast %cst_78 : f32 to vector<8x8xf32>
    %213 = arith.mulf %211, %212 : vector<8x8xf32>
    %cst_79 = arith.constant 0xFF800000 : f32
    %214 = vector.broadcast %cst_79 : f32 to vector<8x8xf32>
    %215 = arith.select %10, %213, %214 : vector<8x8xi1>, vector<8x8xf32>
    %cst_80 = arith.constant dense<0xFF800000> : vector<8xf32>
    %216 = vector.multi_reduction <maximumf>, %215, %cst_80 [1] : vector<8x8xf32> to vector<8xf32>
    %217 = vector.shape_cast %216 : vector<8xf32> to vector<8x1xf32>
    %218 = vector.broadcast %217 : vector<8x1xf32> to vector<8x8xf32>
    %219 = arith.subf %215, %218 : vector<8x8xf32>
    %220 = math.exp %219 : vector<8x8xf32>
    %cst_81 = arith.constant dense<0.000000e+00> : vector<8xf32>
    %221 = vector.multi_reduction <add>, %220, %cst_81 [1] : vector<8x8xf32> to vector<8xf32>
    %222 = vector.shape_cast %221 : vector<8xf32> to vector<8x1xf32>
    %cst_82 = arith.constant dense<0.000000e+00> : vector<8x8xf32>
    %223 = tpu.matmul %220, %210, %cst_82 {dimension_numbers = #tpu.dot_dimension_numbers<[1], [0], [0], [1], [0, 0, 1, 1], [], []>} : vector<8x8xf32>, vector<8x8xf32>, vector<8x8xf32> -> vector<8x8xf32>
    %224 = vector.broadcast %222 : vector<8x1xf32> to vector<8x8xf32>
    %225 = arith.divf %223, %224 : vector<8x8xf32>
    %226 = vector.extract_strided_slice %75 {offsets = [16, 0], sizes = [8, 32], strides = [1, 1]} : vector<32x32xf32> to vector<8x32xf32>
    %cst_83 = arith.constant dense<0.000000e+00> : vector<8x32xf32>
    %227 = tpu.matmul %225, %226, %cst_83 {dimension_numbers = #tpu.dot_dimension_numbers<[1], [0], [0], [1], [0, 0, 1, 1], [], []>} : vector<8x8xf32>, vector<8x32xf32>, vector<8x32xf32> -> vector<8x32xf32>
    %228 = arith.addf %207, %227 : vector<8x32xf32>
    %229 = vector.extract_strided_slice %164 {offsets = [0, 24], sizes = [8, 8], strides = [1, 1]} : vector<8x32xf32> to vector<8x8xf32>
    %230 = vector.extract_strided_slice %165 {offsets = [0, 24], sizes = [8, 8], strides = [1, 1]} : vector<8x32xf32> to vector<8x8xf32>
    %231 = vector.extract_strided_slice %166 {offsets = [0, 24], sizes = [8, 8], strides = [1, 1]} : vector<8x32xf32> to vector<8x8xf32>
    %cst_84 = arith.constant dense<0.000000e+00> : vector<8x8xf32>
    %232 = tpu.matmul %229, %230, %cst_84 {dimension_numbers = #tpu.dot_dimension_numbers<[1], [1], [0], [0], [0, 0, 1, 0], [], []>} : vector<8x8xf32>, vector<8x8xf32>, vector<8x8xf32> -> vector<8x8xf32>
    %cst_85 = arith.constant 0.353553385 : f32
    %233 = vector.broadcast %cst_85 : f32 to vector<8x8xf32>
    %234 = arith.mulf %232, %233 : vector<8x8xf32>
    %cst_86 = arith.constant 0xFF800000 : f32
    %235 = vector.broadcast %cst_86 : f32 to vector<8x8xf32>
    %236 = arith.select %10, %234, %235 : vector<8x8xi1>, vector<8x8xf32>
    %cst_87 = arith.constant dense<0xFF800000> : vector<8xf32>
    %237 = vector.multi_reduction <maximumf>, %236, %cst_87 [1] : vector<8x8xf32> to vector<8xf32>
    %238 = vector.shape_cast %237 : vector<8xf32> to vector<8x1xf32>
    %239 = vector.broadcast %238 : vector<8x1xf32> to vector<8x8xf32>
    %240 = arith.subf %236, %239 : vector<8x8xf32>
    %241 = math.exp %240 : vector<8x8xf32>
    %cst_88 = arith.constant dense<0.000000e+00> : vector<8xf32>
    %242 = vector.multi_reduction <add>, %241, %cst_88 [1] : vector<8x8xf32> to vector<8xf32>
    %243 = vector.shape_cast %242 : vector<8xf32> to vector<8x1xf32>
    %cst_89 = arith.constant dense<0.000000e+00> : vector<8x8xf32>
    %244 = tpu.matmul %241, %231, %cst_89 {dimension_numbers = #tpu.dot_dimension_numbers<[1], [0], [0], [1], [0, 0, 1, 1], [], []>} : vector<8x8xf32>, vector<8x8xf32>, vector<8x8xf32> -> vector<8x8xf32>
    %245 = vector.broadcast %243 : vector<8x1xf32> to vector<8x8xf32>
    %246 = arith.divf %244, %245 : vector<8x8xf32>
    %247 = vector.extract_strided_slice %75 {offsets = [24, 0], sizes = [8, 32], strides = [1, 1]} : vector<32x32xf32> to vector<8x32xf32>
    %cst_90 = arith.constant dense<0.000000e+00> : vector<8x32xf32>
    %248 = tpu.matmul %246, %247, %cst_90 {dimension_numbers = #tpu.dot_dimension_numbers<[1], [0], [0], [1], [0, 0, 1, 1], [], []>} : vector<8x8xf32>, vector<8x32xf32>, vector<8x32xf32> -> vector<8x32xf32>
    %249 = arith.addf %228, %248 : vector<8x32xf32>
    %250 = tpu.concatenate %163, %249 in 0 : vector<8x32xf32>, vector<8x32xf32> -> vector<16x32xf32>
    %251 = vector.broadcast %77 : vector<1x32xf32> to vector<16x32xf32>
    %252 = arith.addf %250, %251 : vector<16x32xf32>
    %253 = arith.addf %37, %252 : vector<16x32xf32>
    %c0_91 = arith.constant 0 : index
    %c0_92 = arith.constant 0 : index
    %c0_93 = arith.constant 0 : index
    %254 = vector.load %arg14[%c0_91, %c0_92, %c0_93] : memref<2x1x32xf32, #tpu.memory_space<vmem>>, vector<1x1x32xf32>
    %255 = vector.shape_cast %254 : vector<1x1x32xf32> to vector<1x32xf32>
    %c0_94 = arith.constant 0 : index
    %c0_95 = arith.constant 0 : index
    %c0_96 = arith.constant 0 : index
    %256 = vector.load %arg15[%c0_94, %c0_95, %c0_96] : memref<2x1x32xf32, #tpu.memory_space<vmem>>, vector<1x1x32xf32>
    %257 = vector.shape_cast %256 : vector<1x1x32xf32> to vector<1x32xf32>
    %cst_97 = arith.constant dense<0.000000e+00> : vector<16xf32>
    %258 = vector.multi_reduction <add>, %253, %cst_97 [1] : vector<16x32xf32> to vector<16xf32>
    %259 = vector.shape_cast %258 : vector<16xf32> to vector<16x1xf32>
    %cst_98 = arith.constant 3.200000e+01 : f32
    %260 = vector.broadcast %cst_98 : f32 to vector<16x1xf32>
    %261 = arith.divf %259, %260 : vector<16x1xf32>
    %262 = vector.broadcast %261 : vector<16x1xf32> to vector<16x32xf32>
    %263 = arith.subf %253, %262 : vector<16x32xf32>
    %264 = arith.mulf %263, %263 : vector<16x32xf32>
    %cst_99 = arith.constant dense<0.000000e+00> : vector<16xf32>
    %265 = vector.multi_reduction <add>, %264, %cst_99 [1] : vector<16x32xf32> to vector<16xf32>
    %266 = vector.shape_cast %265 : vector<16xf32> to vector<16x1xf32>
    %cst_100 = arith.constant 3.200000e+01 : f32
    %267 = vector.broadcast %cst_100 : f32 to vector<16x1xf32>
    %268 = arith.divf %266, %267 : vector<16x1xf32>
    %269 = vector.broadcast %261 : vector<16x1xf32> to vector<16x32xf32>
    %270 = arith.subf %253, %269 : vector<16x32xf32>
    %cst_101 = arith.constant 9.99999974E-6 : f32
    %271 = vector.broadcast %cst_101 : f32 to vector<16x1xf32>
    %272 = arith.addf %268, %271 : vector<16x1xf32>
    %273 = math.rsqrt %272 : vector<16x1xf32>
    %274 = vector.broadcast %273 : vector<16x1xf32> to vector<16x32xf32>
    %275 = arith.mulf %270, %274 : vector<16x32xf32>
    %276 = vector.broadcast %255 : vector<1x32xf32> to vector<16x32xf32>
    %277 = arith.mulf %275, %276 : vector<16x32xf32>
    %278 = vector.broadcast %257 : vector<1x32xf32> to vector<16x32xf32>
    %279 = arith.addf %277, %278 : vector<16x32xf32>
    %c0_102 = arith.constant 0 : index
    %c0_103 = arith.constant 0 : index
    %c0_104 = arith.constant 0 : index
    %280 = vector.load %arg16[%c0_102, %c0_103, %c0_104] : memref<2x32x128xf32, #tpu.memory_space<vmem>>, vector<1x32x128xf32>
    %281 = vector.shape_cast %280 : vector<1x32x128xf32> to vector<32x128xf32>
    %cst_105 = arith.constant dense<0.000000e+00> : vector<16x128xf32>
    %282 = tpu.matmul %279, %281, %cst_105 {dimension_numbers = #tpu.dot_dimension_numbers<[1], [0], [0], [1], [0, 0, 1, 1], [], []>} : vector<16x32xf32>, vector<32x128xf32>, vector<16x128xf32> -> vector<16x128xf32>
    %c0_106 = arith.constant 0 : index
    %c0_107 = arith.constant 0 : index
    %c0_108 = arith.constant 0 : index
    %283 = vector.load %arg17[%c0_106, %c0_107, %c0_108] : memref<2x1x128xf32, #tpu.memory_space<vmem>>, vector<1x1x128xf32>
    %284 = vector.shape_cast %283 : vector<1x1x128xf32> to vector<1x128xf32>
    %285 = vector.broadcast %284 : vector<1x128xf32> to vector<16x128xf32>
    %286 = arith.addf %282, %285 : vector<16x128xf32>
    %cst_109 = arith.constant 0.000000e+00 : f32
    %287 = vector.broadcast %cst_109 : f32 to vector<16x128xf32>
    %288 = arith.maximumf %286, %287 : vector<16x128xf32>
    %c0_110 = arith.constant 0 : index
    %c0_111 = arith.constant 0 : index
    %c0_112 = arith.constant 0 : index
    %289 = vector.load %arg18[%c0_110, %c0_111, %c0_112] : memref<2x128x32xf32, #tpu.memory_space<vmem>>, vector<1x128x32xf32>
    %290 = vector.shape_cast %289 : vector<1x128x32xf32> to vector<128x32xf32>
    %cst_113 = arith.constant dense<0.000000e+00> : vector<16x32xf32>
    %291 = tpu.matmul %288, %290, %cst_113 {dimension_numbers = #tpu.dot_dimension_numbers<[1], [0], [0], [1], [0, 0, 1, 1], [], []>} : vector<16x128xf32>, vector<128x32xf32>, vector<16x32xf32> -> vector<16x32xf32>
    %292 = arith.addf %253, %291 : vector<16x32xf32>
    %c0_114 = arith.constant 0 : index
    %c0_115 = arith.constant 0 : index
    %c0_116 = arith.constant 0 : index
    %293 = vector.load %arg19[%c0_114, %c0_115, %c0_116] : memref<2x1x32xf32, #tpu.memory_space<vmem>>, vector<1x1x32xf32>
    %294 = vector.shape_cast %293 : vector<1x1x32xf32> to vector<1x32xf32>
    %295 = vector.broadcast %294 : vector<1x32xf32> to vector<16x32xf32>
    %296 = arith.addf %292, %295 : vector<16x32xf32>
    %c1 = arith.constant 1 : index
    %c0_117 = arith.constant 0 : index
    %c0_118 = arith.constant 0 : index
    %297 = vector.load %arg8[%c1, %c0_117, %c0_118] : memref<2x1x32xf32, #tpu.memory_space<vmem>>, vector<1x1x32xf32>
    %298 = vector.shape_cast %297 : vector<1x1x32xf32> to vector<1x32xf32>
    %c1_119 = arith.constant 1 : index
    %c0_120 = arith.constant 0 : index
    %c0_121 = arith.constant 0 : index
    %299 = vector.load %arg9[%c1_119, %c0_120, %c0_121] : memref<2x1x32xf32, #tpu.memory_space<vmem>>, vector<1x1x32xf32>
    %300 = vector.shape_cast %299 : vector<1x1x32xf32> to vector<1x32xf32>
    %cst_122 = arith.constant dense<0.000000e+00> : vector<16xf32>
    %301 = vector.multi_reduction <add>, %296, %cst_122 [1] : vector<16x32xf32> to vector<16xf32>
    %302 = vector.shape_cast %301 : vector<16xf32> to vector<16x1xf32>
    %cst_123 = arith.constant 3.200000e+01 : f32
    %303 = vector.broadcast %cst_123 : f32 to vector<16x1xf32>
    %304 = arith.divf %302, %303 : vector<16x1xf32>
    %305 = vector.broadcast %304 : vector<16x1xf32> to vector<16x32xf32>
    %306 = arith.subf %296, %305 : vector<16x32xf32>
    %307 = arith.mulf %306, %306 : vector<16x32xf32>
    %cst_124 = arith.constant dense<0.000000e+00> : vector<16xf32>
    %308 = vector.multi_reduction <add>, %307, %cst_124 [1] : vector<16x32xf32> to vector<16xf32>
    %309 = vector.shape_cast %308 : vector<16xf32> to vector<16x1xf32>
    %cst_125 = arith.constant 3.200000e+01 : f32
    %310 = vector.broadcast %cst_125 : f32 to vector<16x1xf32>
    %311 = arith.divf %309, %310 : vector<16x1xf32>
    %312 = vector.broadcast %304 : vector<16x1xf32> to vector<16x32xf32>
    %313 = arith.subf %296, %312 : vector<16x32xf32>
    %cst_126 = arith.constant 9.99999974E-6 : f32
    %314 = vector.broadcast %cst_126 : f32 to vector<16x1xf32>
    %315 = arith.addf %311, %314 : vector<16x1xf32>
    %316 = math.rsqrt %315 : vector<16x1xf32>
    %317 = vector.broadcast %316 : vector<16x1xf32> to vector<16x32xf32>
    %318 = arith.mulf %313, %317 : vector<16x32xf32>
    %319 = vector.broadcast %298 : vector<1x32xf32> to vector<16x32xf32>
    %320 = arith.mulf %318, %319 : vector<16x32xf32>
    %321 = vector.broadcast %300 : vector<1x32xf32> to vector<16x32xf32>
    %322 = arith.addf %320, %321 : vector<16x32xf32>
    %c1_127 = arith.constant 1 : index
    %c0_128 = arith.constant 0 : index
    %c0_129 = arith.constant 0 : index
    %323 = vector.load %arg10[%c1_127, %c0_128, %c0_129] : memref<2x32x96xf32, #tpu.memory_space<vmem>>, vector<1x32x96xf32>
    %324 = vector.shape_cast %323 : vector<1x32x96xf32> to vector<32x96xf32>
    %cst_130 = arith.constant dense<0.000000e+00> : vector<16x96xf32>
    %325 = tpu.matmul %322, %324, %cst_130 {dimension_numbers = #tpu.dot_dimension_numbers<[1], [0], [0], [1], [0, 0, 1, 1], [], []>} : vector<16x32xf32>, vector<32x96xf32>, vector<16x96xf32> -> vector<16x96xf32>
    %c1_131 = arith.constant 1 : index
    %c0_132 = arith.constant 0 : index
    %c0_133 = arith.constant 0 : index
    %326 = vector.load %arg11[%c1_131, %c0_132, %c0_133] : memref<2x1x96xf32, #tpu.memory_space<vmem>>, vector<1x1x96xf32>
    %327 = vector.shape_cast %326 : vector<1x1x96xf32> to vector<1x96xf32>
    %328 = vector.broadcast %327 : vector<1x96xf32> to vector<16x96xf32>
    %329 = arith.addf %325, %328 : vector<16x96xf32>
    %330 = vector.extract_strided_slice %329 {offsets = [0, 0], sizes = [16, 32], strides = [1, 1]} : vector<16x96xf32> to vector<16x32xf32>
    %331 = vector.extract_strided_slice %329 {offsets = [0, 32], sizes = [16, 32], strides = [1, 1]} : vector<16x96xf32> to vector<16x32xf32>
    %332 = vector.extract_strided_slice %329 {offsets = [0, 64], sizes = [16, 32], strides = [1, 1]} : vector<16x96xf32> to vector<16x32xf32>
    %c1_134 = arith.constant 1 : index
    %c0_135 = arith.constant 0 : index
    %c0_136 = arith.constant 0 : index
    %333 = vector.load %arg12[%c1_134, %c0_135, %c0_136] : memref<2x32x32xf32, #tpu.memory_space<vmem>>, vector<1x32x32xf32>
    %334 = vector.shape_cast %333 : vector<1x32x32xf32> to vector<32x32xf32>
    %c1_137 = arith.constant 1 : index
    %c0_138 = arith.constant 0 : index
    %c0_139 = arith.constant 0 : index
    %335 = vector.load %arg13[%c1_137, %c0_138, %c0_139] : memref<2x1x32xf32, #tpu.memory_space<vmem>>, vector<1x1x32xf32>
    %336 = vector.shape_cast %335 : vector<1x1x32xf32> to vector<1x32xf32>
    %337 = vector.extract_strided_slice %330 {offsets = [0, 0], sizes = [8, 32], strides = [1, 1]} : vector<16x32xf32> to vector<8x32xf32>
    %338 = vector.extract_strided_slice %331 {offsets = [0, 0], sizes = [8, 32], strides = [1, 1]} : vector<16x32xf32> to vector<8x32xf32>
    %339 = vector.extract_strided_slice %332 {offsets = [0, 0], sizes = [8, 32], strides = [1, 1]} : vector<16x32xf32> to vector<8x32xf32>
    %340 = vector.extract_strided_slice %337 {offsets = [0, 0], sizes = [8, 8], strides = [1, 1]} : vector<8x32xf32> to vector<8x8xf32>
    %341 = vector.extract_strided_slice %338 {offsets = [0, 0], sizes = [8, 8], strides = [1, 1]} : vector<8x32xf32> to vector<8x8xf32>
    %342 = vector.extract_strided_slice %339 {offsets = [0, 0], sizes = [8, 8], strides = [1, 1]} : vector<8x32xf32> to vector<8x8xf32>
    %cst_140 = arith.constant dense<0.000000e+00> : vector<8x8xf32>
    %343 = tpu.matmul %340, %341, %cst_140 {dimension_numbers = #tpu.dot_dimension_numbers<[1], [1], [0], [0], [0, 0, 1, 0], [], []>} : vector<8x8xf32>, vector<8x8xf32>, vector<8x8xf32> -> vector<8x8xf32>
    %cst_141 = arith.constant 0.353553385 : f32
    %344 = vector.broadcast %cst_141 : f32 to vector<8x8xf32>
    %345 = arith.mulf %343, %344 : vector<8x8xf32>
    %cst_142 = arith.constant 0xFF800000 : f32
    %346 = vector.broadcast %cst_142 : f32 to vector<8x8xf32>
    %347 = arith.select %5, %345, %346 : vector<8x8xi1>, vector<8x8xf32>
    %cst_143 = arith.constant dense<0xFF800000> : vector<8xf32>
    %348 = vector.multi_reduction <maximumf>, %347, %cst_143 [1] : vector<8x8xf32> to vector<8xf32>
    %349 = vector.shape_cast %348 : vector<8xf32> to vector<8x1xf32>
    %350 = vector.broadcast %349 : vector<8x1xf32> to vector<8x8xf32>
    %351 = arith.subf %347, %350 : vector<8x8xf32>
    %352 = math.exp %351 : vector<8x8xf32>
    %cst_144 = arith.constant dense<0.000000e+00> : vector<8xf32>
    %353 = vector.multi_reduction <add>, %352, %cst_144 [1] : vector<8x8xf32> to vector<8xf32>
    %354 = vector.shape_cast %353 : vector<8xf32> to vector<8x1xf32>
    %cst_145 = arith.constant dense<0.000000e+00> : vector<8x8xf32>
    %355 = tpu.matmul %352, %342, %cst_145 {dimension_numbers = #tpu.dot_dimension_numbers<[1], [0], [0], [1], [0, 0, 1, 1], [], []>} : vector<8x8xf32>, vector<8x8xf32>, vector<8x8xf32> -> vector<8x8xf32>
    %356 = vector.broadcast %354 : vector<8x1xf32> to vector<8x8xf32>
    %357 = arith.divf %355, %356 : vector<8x8xf32>
    %358 = vector.extract_strided_slice %334 {offsets = [0, 0], sizes = [8, 32], strides = [1, 1]} : vector<32x32xf32> to vector<8x32xf32>
    %cst_146 = arith.constant dense<0.000000e+00> : vector<8x32xf32>
    %359 = tpu.matmul %357, %358, %cst_146 {dimension_numbers = #tpu.dot_dimension_numbers<[1], [0], [0], [1], [0, 0, 1, 1], [], []>} : vector<8x8xf32>, vector<8x32xf32>, vector<8x32xf32> -> vector<8x32xf32>
    %360 = vector.extract_strided_slice %337 {offsets = [0, 8], sizes = [8, 8], strides = [1, 1]} : vector<8x32xf32> to vector<8x8xf32>
    %361 = vector.extract_strided_slice %338 {offsets = [0, 8], sizes = [8, 8], strides = [1, 1]} : vector<8x32xf32> to vector<8x8xf32>
    %362 = vector.extract_strided_slice %339 {offsets = [0, 8], sizes = [8, 8], strides = [1, 1]} : vector<8x32xf32> to vector<8x8xf32>
    %cst_147 = arith.constant dense<0.000000e+00> : vector<8x8xf32>
    %363 = tpu.matmul %360, %361, %cst_147 {dimension_numbers = #tpu.dot_dimension_numbers<[1], [1], [0], [0], [0, 0, 1, 0], [], []>} : vector<8x8xf32>, vector<8x8xf32>, vector<8x8xf32> -> vector<8x8xf32>
    %cst_148 = arith.constant 0.353553385 : f32
    %364 = vector.broadcast %cst_148 : f32 to vector<8x8xf32>
    %365 = arith.mulf %363, %364 : vector<8x8xf32>
    %cst_149 = arith.constant 0xFF800000 : f32
    %366 = vector.broadcast %cst_149 : f32 to vector<8x8xf32>
    %367 = arith.select %5, %365, %366 : vector<8x8xi1>, vector<8x8xf32>
    %cst_150 = arith.constant dense<0xFF800000> : vector<8xf32>
    %368 = vector.multi_reduction <maximumf>, %367, %cst_150 [1] : vector<8x8xf32> to vector<8xf32>
    %369 = vector.shape_cast %368 : vector<8xf32> to vector<8x1xf32>
    %370 = vector.broadcast %369 : vector<8x1xf32> to vector<8x8xf32>
    %371 = arith.subf %367, %370 : vector<8x8xf32>
    %372 = math.exp %371 : vector<8x8xf32>
    %cst_151 = arith.constant dense<0.000000e+00> : vector<8xf32>
    %373 = vector.multi_reduction <add>, %372, %cst_151 [1] : vector<8x8xf32> to vector<8xf32>
    %374 = vector.shape_cast %373 : vector<8xf32> to vector<8x1xf32>
    %cst_152 = arith.constant dense<0.000000e+00> : vector<8x8xf32>
    %375 = tpu.matmul %372, %362, %cst_152 {dimension_numbers = #tpu.dot_dimension_numbers<[1], [0], [0], [1], [0, 0, 1, 1], [], []>} : vector<8x8xf32>, vector<8x8xf32>, vector<8x8xf32> -> vector<8x8xf32>
    %376 = vector.broadcast %374 : vector<8x1xf32> to vector<8x8xf32>
    %377 = arith.divf %375, %376 : vector<8x8xf32>
    %378 = vector.extract_strided_slice %334 {offsets = [8, 0], sizes = [8, 32], strides = [1, 1]} : vector<32x32xf32> to vector<8x32xf32>
    %cst_153 = arith.constant dense<0.000000e+00> : vector<8x32xf32>
    %379 = tpu.matmul %377, %378, %cst_153 {dimension_numbers = #tpu.dot_dimension_numbers<[1], [0], [0], [1], [0, 0, 1, 1], [], []>} : vector<8x8xf32>, vector<8x32xf32>, vector<8x32xf32> -> vector<8x32xf32>
    %380 = arith.addf %359, %379 : vector<8x32xf32>
    %381 = vector.extract_strided_slice %337 {offsets = [0, 16], sizes = [8, 8], strides = [1, 1]} : vector<8x32xf32> to vector<8x8xf32>
    %382 = vector.extract_strided_slice %338 {offsets = [0, 16], sizes = [8, 8], strides = [1, 1]} : vector<8x32xf32> to vector<8x8xf32>
    %383 = vector.extract_strided_slice %339 {offsets = [0, 16], sizes = [8, 8], strides = [1, 1]} : vector<8x32xf32> to vector<8x8xf32>
    %cst_154 = arith.constant dense<0.000000e+00> : vector<8x8xf32>
    %384 = tpu.matmul %381, %382, %cst_154 {dimension_numbers = #tpu.dot_dimension_numbers<[1], [1], [0], [0], [0, 0, 1, 0], [], []>} : vector<8x8xf32>, vector<8x8xf32>, vector<8x8xf32> -> vector<8x8xf32>
    %cst_155 = arith.constant 0.353553385 : f32
    %385 = vector.broadcast %cst_155 : f32 to vector<8x8xf32>
    %386 = arith.mulf %384, %385 : vector<8x8xf32>
    %cst_156 = arith.constant 0xFF800000 : f32
    %387 = vector.broadcast %cst_156 : f32 to vector<8x8xf32>
    %388 = arith.select %5, %386, %387 : vector<8x8xi1>, vector<8x8xf32>
    %cst_157 = arith.constant dense<0xFF800000> : vector<8xf32>
    %389 = vector.multi_reduction <maximumf>, %388, %cst_157 [1] : vector<8x8xf32> to vector<8xf32>
    %390 = vector.shape_cast %389 : vector<8xf32> to vector<8x1xf32>
    %391 = vector.broadcast %390 : vector<8x1xf32> to vector<8x8xf32>
    %392 = arith.subf %388, %391 : vector<8x8xf32>
    %393 = math.exp %392 : vector<8x8xf32>
    %cst_158 = arith.constant dense<0.000000e+00> : vector<8xf32>
    %394 = vector.multi_reduction <add>, %393, %cst_158 [1] : vector<8x8xf32> to vector<8xf32>
    %395 = vector.shape_cast %394 : vector<8xf32> to vector<8x1xf32>
    %cst_159 = arith.constant dense<0.000000e+00> : vector<8x8xf32>
    %396 = tpu.matmul %393, %383, %cst_159 {dimension_numbers = #tpu.dot_dimension_numbers<[1], [0], [0], [1], [0, 0, 1, 1], [], []>} : vector<8x8xf32>, vector<8x8xf32>, vector<8x8xf32> -> vector<8x8xf32>
    %397 = vector.broadcast %395 : vector<8x1xf32> to vector<8x8xf32>
    %398 = arith.divf %396, %397 : vector<8x8xf32>
    %399 = vector.extract_strided_slice %334 {offsets = [16, 0], sizes = [8, 32], strides = [1, 1]} : vector<32x32xf32> to vector<8x32xf32>
    %cst_160 = arith.constant dense<0.000000e+00> : vector<8x32xf32>
    %400 = tpu.matmul %398, %399, %cst_160 {dimension_numbers = #tpu.dot_dimension_numbers<[1], [0], [0], [1], [0, 0, 1, 1], [], []>} : vector<8x8xf32>, vector<8x32xf32>, vector<8x32xf32> -> vector<8x32xf32>
    %401 = arith.addf %380, %400 : vector<8x32xf32>
    %402 = vector.extract_strided_slice %337 {offsets = [0, 24], sizes = [8, 8], strides = [1, 1]} : vector<8x32xf32> to vector<8x8xf32>
    %403 = vector.extract_strided_slice %338 {offsets = [0, 24], sizes = [8, 8], strides = [1, 1]} : vector<8x32xf32> to vector<8x8xf32>
    %404 = vector.extract_strided_slice %339 {offsets = [0, 24], sizes = [8, 8], strides = [1, 1]} : vector<8x32xf32> to vector<8x8xf32>
    %cst_161 = arith.constant dense<0.000000e+00> : vector<8x8xf32>
    %405 = tpu.matmul %402, %403, %cst_161 {dimension_numbers = #tpu.dot_dimension_numbers<[1], [1], [0], [0], [0, 0, 1, 0], [], []>} : vector<8x8xf32>, vector<8x8xf32>, vector<8x8xf32> -> vector<8x8xf32>
    %cst_162 = arith.constant 0.353553385 : f32
    %406 = vector.broadcast %cst_162 : f32 to vector<8x8xf32>
    %407 = arith.mulf %405, %406 : vector<8x8xf32>
    %cst_163 = arith.constant 0xFF800000 : f32
    %408 = vector.broadcast %cst_163 : f32 to vector<8x8xf32>
    %409 = arith.select %5, %407, %408 : vector<8x8xi1>, vector<8x8xf32>
    %cst_164 = arith.constant dense<0xFF800000> : vector<8xf32>
    %410 = vector.multi_reduction <maximumf>, %409, %cst_164 [1] : vector<8x8xf32> to vector<8xf32>
    %411 = vector.shape_cast %410 : vector<8xf32> to vector<8x1xf32>
    %412 = vector.broadcast %411 : vector<8x1xf32> to vector<8x8xf32>
    %413 = arith.subf %409, %412 : vector<8x8xf32>
    %414 = math.exp %413 : vector<8x8xf32>
    %cst_165 = arith.constant dense<0.000000e+00> : vector<8xf32>
    %415 = vector.multi_reduction <add>, %414, %cst_165 [1] : vector<8x8xf32> to vector<8xf32>
    %416 = vector.shape_cast %415 : vector<8xf32> to vector<8x1xf32>
    %cst_166 = arith.constant dense<0.000000e+00> : vector<8x8xf32>
    %417 = tpu.matmul %414, %404, %cst_166 {dimension_numbers = #tpu.dot_dimension_numbers<[1], [0], [0], [1], [0, 0, 1, 1], [], []>} : vector<8x8xf32>, vector<8x8xf32>, vector<8x8xf32> -> vector<8x8xf32>
    %418 = vector.broadcast %416 : vector<8x1xf32> to vector<8x8xf32>
    %419 = arith.divf %417, %418 : vector<8x8xf32>
    %420 = vector.extract_strided_slice %334 {offsets = [24, 0], sizes = [8, 32], strides = [1, 1]} : vector<32x32xf32> to vector<8x32xf32>
    %cst_167 = arith.constant dense<0.000000e+00> : vector<8x32xf32>
    %421 = tpu.matmul %419, %420, %cst_167 {dimension_numbers = #tpu.dot_dimension_numbers<[1], [0], [0], [1], [0, 0, 1, 1], [], []>} : vector<8x8xf32>, vector<8x32xf32>, vector<8x32xf32> -> vector<8x32xf32>
    %422 = arith.addf %401, %421 : vector<8x32xf32>
    %423 = vector.extract_strided_slice %330 {offsets = [8, 0], sizes = [8, 32], strides = [1, 1]} : vector<16x32xf32> to vector<8x32xf32>
    %424 = vector.extract_strided_slice %331 {offsets = [8, 0], sizes = [8, 32], strides = [1, 1]} : vector<16x32xf32> to vector<8x32xf32>
    %425 = vector.extract_strided_slice %332 {offsets = [8, 0], sizes = [8, 32], strides = [1, 1]} : vector<16x32xf32> to vector<8x32xf32>
    %426 = vector.extract_strided_slice %423 {offsets = [0, 0], sizes = [8, 8], strides = [1, 1]} : vector<8x32xf32> to vector<8x8xf32>
    %427 = vector.extract_strided_slice %424 {offsets = [0, 0], sizes = [8, 8], strides = [1, 1]} : vector<8x32xf32> to vector<8x8xf32>
    %428 = vector.extract_strided_slice %425 {offsets = [0, 0], sizes = [8, 8], strides = [1, 1]} : vector<8x32xf32> to vector<8x8xf32>
    %cst_168 = arith.constant dense<0.000000e+00> : vector<8x8xf32>
    %429 = tpu.matmul %426, %427, %cst_168 {dimension_numbers = #tpu.dot_dimension_numbers<[1], [1], [0], [0], [0, 0, 1, 0], [], []>} : vector<8x8xf32>, vector<8x8xf32>, vector<8x8xf32> -> vector<8x8xf32>
    %cst_169 = arith.constant 0.353553385 : f32
    %430 = vector.broadcast %cst_169 : f32 to vector<8x8xf32>
    %431 = arith.mulf %429, %430 : vector<8x8xf32>
    %cst_170 = arith.constant 0xFF800000 : f32
    %432 = vector.broadcast %cst_170 : f32 to vector<8x8xf32>
    %433 = arith.select %10, %431, %432 : vector<8x8xi1>, vector<8x8xf32>
    %cst_171 = arith.constant dense<0xFF800000> : vector<8xf32>
    %434 = vector.multi_reduction <maximumf>, %433, %cst_171 [1] : vector<8x8xf32> to vector<8xf32>
    %435 = vector.shape_cast %434 : vector<8xf32> to vector<8x1xf32>
    %436 = vector.broadcast %435 : vector<8x1xf32> to vector<8x8xf32>
    %437 = arith.subf %433, %436 : vector<8x8xf32>
    %438 = math.exp %437 : vector<8x8xf32>
    %cst_172 = arith.constant dense<0.000000e+00> : vector<8xf32>
    %439 = vector.multi_reduction <add>, %438, %cst_172 [1] : vector<8x8xf32> to vector<8xf32>
    %440 = vector.shape_cast %439 : vector<8xf32> to vector<8x1xf32>
    %cst_173 = arith.constant dense<0.000000e+00> : vector<8x8xf32>
    %441 = tpu.matmul %438, %428, %cst_173 {dimension_numbers = #tpu.dot_dimension_numbers<[1], [0], [0], [1], [0, 0, 1, 1], [], []>} : vector<8x8xf32>, vector<8x8xf32>, vector<8x8xf32> -> vector<8x8xf32>
    %442 = vector.broadcast %440 : vector<8x1xf32> to vector<8x8xf32>
    %443 = arith.divf %441, %442 : vector<8x8xf32>
    %444 = vector.extract_strided_slice %334 {offsets = [0, 0], sizes = [8, 32], strides = [1, 1]} : vector<32x32xf32> to vector<8x32xf32>
    %cst_174 = arith.constant dense<0.000000e+00> : vector<8x32xf32>
    %445 = tpu.matmul %443, %444, %cst_174 {dimension_numbers = #tpu.dot_dimension_numbers<[1], [0], [0], [1], [0, 0, 1, 1], [], []>} : vector<8x8xf32>, vector<8x32xf32>, vector<8x32xf32> -> vector<8x32xf32>
    %446 = vector.extract_strided_slice %423 {offsets = [0, 8], sizes = [8, 8], strides = [1, 1]} : vector<8x32xf32> to vector<8x8xf32>
    %447 = vector.extract_strided_slice %424 {offsets = [0, 8], sizes = [8, 8], strides = [1, 1]} : vector<8x32xf32> to vector<8x8xf32>
    %448 = vector.extract_strided_slice %425 {offsets = [0, 8], sizes = [8, 8], strides = [1, 1]} : vector<8x32xf32> to vector<8x8xf32>
    %cst_175 = arith.constant dense<0.000000e+00> : vector<8x8xf32>
    %449 = tpu.matmul %446, %447, %cst_175 {dimension_numbers = #tpu.dot_dimension_numbers<[1], [1], [0], [0], [0, 0, 1, 0], [], []>} : vector<8x8xf32>, vector<8x8xf32>, vector<8x8xf32> -> vector<8x8xf32>
    %cst_176 = arith.constant 0.353553385 : f32
    %450 = vector.broadcast %cst_176 : f32 to vector<8x8xf32>
    %451 = arith.mulf %449, %450 : vector<8x8xf32>
    %cst_177 = arith.constant 0xFF800000 : f32
    %452 = vector.broadcast %cst_177 : f32 to vector<8x8xf32>
    %453 = arith.select %10, %451, %452 : vector<8x8xi1>, vector<8x8xf32>
    %cst_178 = arith.constant dense<0xFF800000> : vector<8xf32>
    %454 = vector.multi_reduction <maximumf>, %453, %cst_178 [1] : vector<8x8xf32> to vector<8xf32>
    %455 = vector.shape_cast %454 : vector<8xf32> to vector<8x1xf32>
    %456 = vector.broadcast %455 : vector<8x1xf32> to vector<8x8xf32>
    %457 = arith.subf %453, %456 : vector<8x8xf32>
    %458 = math.exp %457 : vector<8x8xf32>
    %cst_179 = arith.constant dense<0.000000e+00> : vector<8xf32>
    %459 = vector.multi_reduction <add>, %458, %cst_179 [1] : vector<8x8xf32> to vector<8xf32>
    %460 = vector.shape_cast %459 : vector<8xf32> to vector<8x1xf32>
    %cst_180 = arith.constant dense<0.000000e+00> : vector<8x8xf32>
    %461 = tpu.matmul %458, %448, %cst_180 {dimension_numbers = #tpu.dot_dimension_numbers<[1], [0], [0], [1], [0, 0, 1, 1], [], []>} : vector<8x8xf32>, vector<8x8xf32>, vector<8x8xf32> -> vector<8x8xf32>
    %462 = vector.broadcast %460 : vector<8x1xf32> to vector<8x8xf32>
    %463 = arith.divf %461, %462 : vector<8x8xf32>
    %464 = vector.extract_strided_slice %334 {offsets = [8, 0], sizes = [8, 32], strides = [1, 1]} : vector<32x32xf32> to vector<8x32xf32>
    %cst_181 = arith.constant dense<0.000000e+00> : vector<8x32xf32>
    %465 = tpu.matmul %463, %464, %cst_181 {dimension_numbers = #tpu.dot_dimension_numbers<[1], [0], [0], [1], [0, 0, 1, 1], [], []>} : vector<8x8xf32>, vector<8x32xf32>, vector<8x32xf32> -> vector<8x32xf32>
    %466 = arith.addf %445, %465 : vector<8x32xf32>
    %467 = vector.extract_strided_slice %423 {offsets = [0, 16], sizes = [8, 8], strides = [1, 1]} : vector<8x32xf32> to vector<8x8xf32>
    %468 = vector.extract_strided_slice %424 {offsets = [0, 16], sizes = [8, 8], strides = [1, 1]} : vector<8x32xf32> to vector<8x8xf32>
    %469 = vector.extract_strided_slice %425 {offsets = [0, 16], sizes = [8, 8], strides = [1, 1]} : vector<8x32xf32> to vector<8x8xf32>
    %cst_182 = arith.constant dense<0.000000e+00> : vector<8x8xf32>
    %470 = tpu.matmul %467, %468, %cst_182 {dimension_numbers = #tpu.dot_dimension_numbers<[1], [1], [0], [0], [0, 0, 1, 0], [], []>} : vector<8x8xf32>, vector<8x8xf32>, vector<8x8xf32> -> vector<8x8xf32>
    %cst_183 = arith.constant 0.353553385 : f32
    %471 = vector.broadcast %cst_183 : f32 to vector<8x8xf32>
    %472 = arith.mulf %470, %471 : vector<8x8xf32>
    %cst_184 = arith.constant 0xFF800000 : f32
    %473 = vector.broadcast %cst_184 : f32 to vector<8x8xf32>
    %474 = arith.select %10, %472, %473 : vector<8x8xi1>, vector<8x8xf32>
    %cst_185 = arith.constant dense<0xFF800000> : vector<8xf32>
    %475 = vector.multi_reduction <maximumf>, %474, %cst_185 [1] : vector<8x8xf32> to vector<8xf32>
    %476 = vector.shape_cast %475 : vector<8xf32> to vector<8x1xf32>
    %477 = vector.broadcast %476 : vector<8x1xf32> to vector<8x8xf32>
    %478 = arith.subf %474, %477 : vector<8x8xf32>
    %479 = math.exp %478 : vector<8x8xf32>
    %cst_186 = arith.constant dense<0.000000e+00> : vector<8xf32>
    %480 = vector.multi_reduction <add>, %479, %cst_186 [1] : vector<8x8xf32> to vector<8xf32>
    %481 = vector.shape_cast %480 : vector<8xf32> to vector<8x1xf32>
    %cst_187 = arith.constant dense<0.000000e+00> : vector<8x8xf32>
    %482 = tpu.matmul %479, %469, %cst_187 {dimension_numbers = #tpu.dot_dimension_numbers<[1], [0], [0], [1], [0, 0, 1, 1], [], []>} : vector<8x8xf32>, vector<8x8xf32>, vector<8x8xf32> -> vector<8x8xf32>
    %483 = vector.broadcast %481 : vector<8x1xf32> to vector<8x8xf32>
    %484 = arith.divf %482, %483 : vector<8x8xf32>
    %485 = vector.extract_strided_slice %334 {offsets = [16, 0], sizes = [8, 32], strides = [1, 1]} : vector<32x32xf32> to vector<8x32xf32>
    %cst_188 = arith.constant dense<0.000000e+00> : vector<8x32xf32>
    %486 = tpu.matmul %484, %485, %cst_188 {dimension_numbers = #tpu.dot_dimension_numbers<[1], [0], [0], [1], [0, 0, 1, 1], [], []>} : vector<8x8xf32>, vector<8x32xf32>, vector<8x32xf32> -> vector<8x32xf32>
    %487 = arith.addf %466, %486 : vector<8x32xf32>
    %488 = vector.extract_strided_slice %423 {offsets = [0, 24], sizes = [8, 8], strides = [1, 1]} : vector<8x32xf32> to vector<8x8xf32>
    %489 = vector.extract_strided_slice %424 {offsets = [0, 24], sizes = [8, 8], strides = [1, 1]} : vector<8x32xf32> to vector<8x8xf32>
    %490 = vector.extract_strided_slice %425 {offsets = [0, 24], sizes = [8, 8], strides = [1, 1]} : vector<8x32xf32> to vector<8x8xf32>
    %cst_189 = arith.constant dense<0.000000e+00> : vector<8x8xf32>
    %491 = tpu.matmul %488, %489, %cst_189 {dimension_numbers = #tpu.dot_dimension_numbers<[1], [1], [0], [0], [0, 0, 1, 0], [], []>} : vector<8x8xf32>, vector<8x8xf32>, vector<8x8xf32> -> vector<8x8xf32>
    %cst_190 = arith.constant 0.353553385 : f32
    %492 = vector.broadcast %cst_190 : f32 to vector<8x8xf32>
    %493 = arith.mulf %491, %492 : vector<8x8xf32>
    %cst_191 = arith.constant 0xFF800000 : f32
    %494 = vector.broadcast %cst_191 : f32 to vector<8x8xf32>
    %495 = arith.select %10, %493, %494 : vector<8x8xi1>, vector<8x8xf32>
    %cst_192 = arith.constant dense<0xFF800000> : vector<8xf32>
    %496 = vector.multi_reduction <maximumf>, %495, %cst_192 [1] : vector<8x8xf32> to vector<8xf32>
    %497 = vector.shape_cast %496 : vector<8xf32> to vector<8x1xf32>
    %498 = vector.broadcast %497 : vector<8x1xf32> to vector<8x8xf32>
    %499 = arith.subf %495, %498 : vector<8x8xf32>
    %500 = math.exp %499 : vector<8x8xf32>
    %cst_193 = arith.constant dense<0.000000e+00> : vector<8xf32>
    %501 = vector.multi_reduction <add>, %500, %cst_193 [1] : vector<8x8xf32> to vector<8xf32>
    %502 = vector.shape_cast %501 : vector<8xf32> to vector<8x1xf32>
    %cst_194 = arith.constant dense<0.000000e+00> : vector<8x8xf32>
    %503 = tpu.matmul %500, %490, %cst_194 {dimension_numbers = #tpu.dot_dimension_numbers<[1], [0], [0], [1], [0, 0, 1, 1], [], []>} : vector<8x8xf32>, vector<8x8xf32>, vector<8x8xf32> -> vector<8x8xf32>
    %504 = vector.broadcast %502 : vector<8x1xf32> to vector<8x8xf32>
    %505 = arith.divf %503, %504 : vector<8x8xf32>
    %506 = vector.extract_strided_slice %334 {offsets = [24, 0], sizes = [8, 32], strides = [1, 1]} : vector<32x32xf32> to vector<8x32xf32>
    %cst_195 = arith.constant dense<0.000000e+00> : vector<8x32xf32>
    %507 = tpu.matmul %505, %506, %cst_195 {dimension_numbers = #tpu.dot_dimension_numbers<[1], [0], [0], [1], [0, 0, 1, 1], [], []>} : vector<8x8xf32>, vector<8x32xf32>, vector<8x32xf32> -> vector<8x32xf32>
    %508 = arith.addf %487, %507 : vector<8x32xf32>
    %509 = tpu.concatenate %422, %508 in 0 : vector<8x32xf32>, vector<8x32xf32> -> vector<16x32xf32>
    %510 = vector.broadcast %336 : vector<1x32xf32> to vector<16x32xf32>
    %511 = arith.addf %509, %510 : vector<16x32xf32>
    %512 = arith.addf %296, %511 : vector<16x32xf32>
    %c1_196 = arith.constant 1 : index
    %c0_197 = arith.constant 0 : index
    %c0_198 = arith.constant 0 : index
    %513 = vector.load %arg14[%c1_196, %c0_197, %c0_198] : memref<2x1x32xf32, #tpu.memory_space<vmem>>, vector<1x1x32xf32>
    %514 = vector.shape_cast %513 : vector<1x1x32xf32> to vector<1x32xf32>
    %c1_199 = arith.constant 1 : index
    %c0_200 = arith.constant 0 : index
    %c0_201 = arith.constant 0 : index
    %515 = vector.load %arg15[%c1_199, %c0_200, %c0_201] : memref<2x1x32xf32, #tpu.memory_space<vmem>>, vector<1x1x32xf32>
    %516 = vector.shape_cast %515 : vector<1x1x32xf32> to vector<1x32xf32>
    %cst_202 = arith.constant dense<0.000000e+00> : vector<16xf32>
    %517 = vector.multi_reduction <add>, %512, %cst_202 [1] : vector<16x32xf32> to vector<16xf32>
    %518 = vector.shape_cast %517 : vector<16xf32> to vector<16x1xf32>
    %cst_203 = arith.constant 3.200000e+01 : f32
    %519 = vector.broadcast %cst_203 : f32 to vector<16x1xf32>
    %520 = arith.divf %518, %519 : vector<16x1xf32>
    %521 = vector.broadcast %520 : vector<16x1xf32> to vector<16x32xf32>
    %522 = arith.subf %512, %521 : vector<16x32xf32>
    %523 = arith.mulf %522, %522 : vector<16x32xf32>
    %cst_204 = arith.constant dense<0.000000e+00> : vector<16xf32>
    %524 = vector.multi_reduction <add>, %523, %cst_204 [1] : vector<16x32xf32> to vector<16xf32>
    %525 = vector.shape_cast %524 : vector<16xf32> to vector<16x1xf32>
    %cst_205 = arith.constant 3.200000e+01 : f32
    %526 = vector.broadcast %cst_205 : f32 to vector<16x1xf32>
    %527 = arith.divf %525, %526 : vector<16x1xf32>
    %528 = vector.broadcast %520 : vector<16x1xf32> to vector<16x32xf32>
    %529 = arith.subf %512, %528 : vector<16x32xf32>
    %cst_206 = arith.constant 9.99999974E-6 : f32
    %530 = vector.broadcast %cst_206 : f32 to vector<16x1xf32>
    %531 = arith.addf %527, %530 : vector<16x1xf32>
    %532 = math.rsqrt %531 : vector<16x1xf32>
    %533 = vector.broadcast %532 : vector<16x1xf32> to vector<16x32xf32>
    %534 = arith.mulf %529, %533 : vector<16x32xf32>
    %535 = vector.broadcast %514 : vector<1x32xf32> to vector<16x32xf32>
    %536 = arith.mulf %534, %535 : vector<16x32xf32>
    %537 = vector.broadcast %516 : vector<1x32xf32> to vector<16x32xf32>
    %538 = arith.addf %536, %537 : vector<16x32xf32>
    %c1_207 = arith.constant 1 : index
    %c0_208 = arith.constant 0 : index
    %c0_209 = arith.constant 0 : index
    %539 = vector.load %arg16[%c1_207, %c0_208, %c0_209] : memref<2x32x128xf32, #tpu.memory_space<vmem>>, vector<1x32x128xf32>
    %540 = vector.shape_cast %539 : vector<1x32x128xf32> to vector<32x128xf32>
    %cst_210 = arith.constant dense<0.000000e+00> : vector<16x128xf32>
    %541 = tpu.matmul %538, %540, %cst_210 {dimension_numbers = #tpu.dot_dimension_numbers<[1], [0], [0], [1], [0, 0, 1, 1], [], []>} : vector<16x32xf32>, vector<32x128xf32>, vector<16x128xf32> -> vector<16x128xf32>
    %c1_211 = arith.constant 1 : index
    %c0_212 = arith.constant 0 : index
    %c0_213 = arith.constant 0 : index
    %542 = vector.load %arg17[%c1_211, %c0_212, %c0_213] : memref<2x1x128xf32, #tpu.memory_space<vmem>>, vector<1x1x128xf32>
    %543 = vector.shape_cast %542 : vector<1x1x128xf32> to vector<1x128xf32>
    %544 = vector.broadcast %543 : vector<1x128xf32> to vector<16x128xf32>
    %545 = arith.addf %541, %544 : vector<16x128xf32>
    %cst_214 = arith.constant 0.000000e+00 : f32
    %546 = vector.broadcast %cst_214 : f32 to vector<16x128xf32>
    %547 = arith.maximumf %545, %546 : vector<16x128xf32>
    %c1_215 = arith.constant 1 : index
    %c0_216 = arith.constant 0 : index
    %c0_217 = arith.constant 0 : index
    %548 = vector.load %arg18[%c1_215, %c0_216, %c0_217] : memref<2x128x32xf32, #tpu.memory_space<vmem>>, vector<1x128x32xf32>
    %549 = vector.shape_cast %548 : vector<1x128x32xf32> to vector<128x32xf32>
    %cst_218 = arith.constant dense<0.000000e+00> : vector<16x32xf32>
    %550 = tpu.matmul %547, %549, %cst_218 {dimension_numbers = #tpu.dot_dimension_numbers<[1], [0], [0], [1], [0, 0, 1, 1], [], []>} : vector<16x128xf32>, vector<128x32xf32>, vector<16x32xf32> -> vector<16x32xf32>
    %551 = arith.addf %512, %550 : vector<16x32xf32>
    %c1_219 = arith.constant 1 : index
    %c0_220 = arith.constant 0 : index
    %c0_221 = arith.constant 0 : index
    %552 = vector.load %arg19[%c1_219, %c0_220, %c0_221] : memref<2x1x32xf32, #tpu.memory_space<vmem>>, vector<1x1x32xf32>
    %553 = vector.shape_cast %552 : vector<1x1x32xf32> to vector<1x32xf32>
    %554 = vector.broadcast %553 : vector<1x32xf32> to vector<16x32xf32>
    %555 = arith.addf %551, %554 : vector<16x32xf32>
    %c0_222 = arith.constant 0 : index
    %c0_223 = arith.constant 0 : index
    %556 = vector.load %arg3[%c0_222, %c0_223] : memref<16x1xi32, #tpu.memory_space<vmem>>, vector<16x1xi32>
    %c0_224 = arith.constant 0 : index
    %c0_225 = arith.constant 0 : index
    %557 = vector.load %arg6[%c0_224, %c0_225] : memref<64x32xf32, #tpu.memory_space<vmem>>, vector<64x32xf32>
    %c0_226 = arith.constant 0 : index
    %c0_227 = arith.constant 0 : index
    %558 = vector.load %arg7[%c0_226, %c0_227] : memref<64x32xf32, #tpu.memory_space<vmem>>, vector<64x32xf32>
    %559 = tpu.iota {dimensions = array<i32: 1>} : vector<16x64xi32>
    %560 = vector.broadcast %556 : vector<16x1xi32> to vector<16x64xi32>
    %561 = arith.cmpi eq, %559, %560 : vector<16x64xi32>
    %562 = arith.extui %561 : vector<16x64xi1> to vector<16x64xi32>
    %563 = arith.sitofp %562 : vector<16x64xi32> to vector<16x64xf32>
    %cst_228 = arith.constant dense<0.000000e+00> : vector<16x32xf32>
    %564 = tpu.matmul %563, %557, %cst_228 {dimension_numbers = #tpu.dot_dimension_numbers<[1], [0], [0], [1], [0, 0, 1, 1], [], []>} : vector<16x64xf32>, vector<64x32xf32>, vector<16x32xf32> -> vector<16x32xf32>
    %cst_229 = arith.constant 5.65685415 : f32
    %565 = vector.broadcast %cst_229 : f32 to vector<16x32xf32>
    %566 = arith.mulf %564, %565 : vector<16x32xf32>
    %567 = vector.extract_strided_slice %558 {offsets = [0, 0], sizes = [8, 32], strides = [1, 1]} : vector<64x32xf32> to vector<8x32xf32>
    %568 = tpu.concatenate %567, %567 in 0 : vector<8x32xf32>, vector<8x32xf32> -> vector<16x32xf32>
    %569 = arith.addf %566, %568 : vector<16x32xf32>
    %c0_230 = arith.constant 0 : index
    %c0_231 = arith.constant 0 : index
    %c0_232 = arith.constant 0 : index
    %570 = vector.load %arg20[%c0_230, %c0_231, %c0_232] : memref<2x1x32xf32, #tpu.memory_space<vmem>>, vector<1x1x32xf32>
    %571 = vector.shape_cast %570 : vector<1x1x32xf32> to vector<1x32xf32>
    %c0_233 = arith.constant 0 : index
    %c0_234 = arith.constant 0 : index
    %c0_235 = arith.constant 0 : index
    %572 = vector.load %arg21[%c0_233, %c0_234, %c0_235] : memref<2x1x32xf32, #tpu.memory_space<vmem>>, vector<1x1x32xf32>
    %573 = vector.shape_cast %572 : vector<1x1x32xf32> to vector<1x32xf32>
    %cst_236 = arith.constant dense<0.000000e+00> : vector<16xf32>
    %574 = vector.multi_reduction <add>, %569, %cst_236 [1] : vector<16x32xf32> to vector<16xf32>
    %575 = vector.shape_cast %574 : vector<16xf32> to vector<16x1xf32>
    %cst_237 = arith.constant 3.200000e+01 : f32
    %576 = vector.broadcast %cst_237 : f32 to vector<16x1xf32>
    %577 = arith.divf %575, %576 : vector<16x1xf32>
    %578 = vector.broadcast %577 : vector<16x1xf32> to vector<16x32xf32>
    %579 = arith.subf %569, %578 : vector<16x32xf32>
    %580 = arith.mulf %579, %579 : vector<16x32xf32>
    %cst_238 = arith.constant dense<0.000000e+00> : vector<16xf32>
    %581 = vector.multi_reduction <add>, %580, %cst_238 [1] : vector<16x32xf32> to vector<16xf32>
    %582 = vector.shape_cast %581 : vector<16xf32> to vector<16x1xf32>
    %cst_239 = arith.constant 3.200000e+01 : f32
    %583 = vector.broadcast %cst_239 : f32 to vector<16x1xf32>
    %584 = arith.divf %582, %583 : vector<16x1xf32>
    %585 = vector.broadcast %577 : vector<16x1xf32> to vector<16x32xf32>
    %586 = arith.subf %569, %585 : vector<16x32xf32>
    %cst_240 = arith.constant 9.99999974E-6 : f32
    %587 = vector.broadcast %cst_240 : f32 to vector<16x1xf32>
    %588 = arith.addf %584, %587 : vector<16x1xf32>
    %589 = math.rsqrt %588 : vector<16x1xf32>
    %590 = vector.broadcast %589 : vector<16x1xf32> to vector<16x32xf32>
    %591 = arith.mulf %586, %590 : vector<16x32xf32>
    %592 = vector.broadcast %571 : vector<1x32xf32> to vector<16x32xf32>
    %593 = arith.mulf %591, %592 : vector<16x32xf32>
    %594 = vector.broadcast %573 : vector<1x32xf32> to vector<16x32xf32>
    %595 = arith.addf %593, %594 : vector<16x32xf32>
    %c0_241 = arith.constant 0 : index
    %c0_242 = arith.constant 0 : index
    %c0_243 = arith.constant 0 : index
    %596 = vector.load %arg22[%c0_241, %c0_242, %c0_243] : memref<2x32x96xf32, #tpu.memory_space<vmem>>, vector<1x32x96xf32>
    %597 = vector.shape_cast %596 : vector<1x32x96xf32> to vector<32x96xf32>
    %cst_244 = arith.constant dense<0.000000e+00> : vector<16x96xf32>
    %598 = tpu.matmul %595, %597, %cst_244 {dimension_numbers = #tpu.dot_dimension_numbers<[1], [0], [0], [1], [0, 0, 1, 1], [], []>} : vector<16x32xf32>, vector<32x96xf32>, vector<16x96xf32> -> vector<16x96xf32>
    %c0_245 = arith.constant 0 : index
    %c0_246 = arith.constant 0 : index
    %c0_247 = arith.constant 0 : index
    %599 = vector.load %arg23[%c0_245, %c0_246, %c0_247] : memref<2x1x96xf32, #tpu.memory_space<vmem>>, vector<1x1x96xf32>
    %600 = vector.shape_cast %599 : vector<1x1x96xf32> to vector<1x96xf32>
    %601 = vector.broadcast %600 : vector<1x96xf32> to vector<16x96xf32>
    %602 = arith.addf %598, %601 : vector<16x96xf32>
    %603 = vector.extract_strided_slice %602 {offsets = [0, 0], sizes = [16, 32], strides = [1, 1]} : vector<16x96xf32> to vector<16x32xf32>
    %604 = vector.extract_strided_slice %602 {offsets = [0, 32], sizes = [16, 32], strides = [1, 1]} : vector<16x96xf32> to vector<16x32xf32>
    %605 = vector.extract_strided_slice %602 {offsets = [0, 64], sizes = [16, 32], strides = [1, 1]} : vector<16x96xf32> to vector<16x32xf32>
    %c0_248 = arith.constant 0 : index
    %c0_249 = arith.constant 0 : index
    %c0_250 = arith.constant 0 : index
    %606 = vector.load %arg24[%c0_248, %c0_249, %c0_250] : memref<2x32x32xf32, #tpu.memory_space<vmem>>, vector<1x32x32xf32>
    %607 = vector.shape_cast %606 : vector<1x32x32xf32> to vector<32x32xf32>
    %c0_251 = arith.constant 0 : index
    %c0_252 = arith.constant 0 : index
    %c0_253 = arith.constant 0 : index
    %608 = vector.load %arg25[%c0_251, %c0_252, %c0_253] : memref<2x1x32xf32, #tpu.memory_space<vmem>>, vector<1x1x32xf32>
    %609 = vector.shape_cast %608 : vector<1x1x32xf32> to vector<1x32xf32>
    %610 = vector.extract_strided_slice %603 {offsets = [0, 0], sizes = [8, 32], strides = [1, 1]} : vector<16x32xf32> to vector<8x32xf32>
    %611 = vector.extract_strided_slice %604 {offsets = [0, 0], sizes = [8, 32], strides = [1, 1]} : vector<16x32xf32> to vector<8x32xf32>
    %612 = vector.extract_strided_slice %605 {offsets = [0, 0], sizes = [8, 32], strides = [1, 1]} : vector<16x32xf32> to vector<8x32xf32>
    %613 = vector.extract_strided_slice %610 {offsets = [0, 0], sizes = [8, 8], strides = [1, 1]} : vector<8x32xf32> to vector<8x8xf32>
    %614 = vector.extract_strided_slice %611 {offsets = [0, 0], sizes = [8, 8], strides = [1, 1]} : vector<8x32xf32> to vector<8x8xf32>
    %615 = vector.extract_strided_slice %612 {offsets = [0, 0], sizes = [8, 8], strides = [1, 1]} : vector<8x32xf32> to vector<8x8xf32>
    %cst_254 = arith.constant dense<0.000000e+00> : vector<8x8xf32>
    %616 = tpu.matmul %613, %614, %cst_254 {dimension_numbers = #tpu.dot_dimension_numbers<[1], [1], [0], [0], [0, 0, 1, 0], [], []>} : vector<8x8xf32>, vector<8x8xf32>, vector<8x8xf32> -> vector<8x8xf32>
    %cst_255 = arith.constant 0.353553385 : f32
    %617 = vector.broadcast %cst_255 : f32 to vector<8x8xf32>
    %618 = arith.mulf %616, %617 : vector<8x8xf32>
    %cst_256 = arith.constant 0xFF800000 : f32
    %619 = vector.broadcast %cst_256 : f32 to vector<8x8xf32>
    %620 = arith.select %23, %618, %619 : vector<8x8xi1>, vector<8x8xf32>
    %cst_257 = arith.constant dense<0xFF800000> : vector<8xf32>
    %621 = vector.multi_reduction <maximumf>, %620, %cst_257 [1] : vector<8x8xf32> to vector<8xf32>
    %622 = vector.shape_cast %621 : vector<8xf32> to vector<8x1xf32>
    %623 = vector.broadcast %622 : vector<8x1xf32> to vector<8x8xf32>
    %624 = arith.subf %620, %623 : vector<8x8xf32>
    %625 = math.exp %624 : vector<8x8xf32>
    %cst_258 = arith.constant dense<0.000000e+00> : vector<8xf32>
    %626 = vector.multi_reduction <add>, %625, %cst_258 [1] : vector<8x8xf32> to vector<8xf32>
    %627 = vector.shape_cast %626 : vector<8xf32> to vector<8x1xf32>
    %cst_259 = arith.constant dense<0.000000e+00> : vector<8x8xf32>
    %628 = tpu.matmul %625, %615, %cst_259 {dimension_numbers = #tpu.dot_dimension_numbers<[1], [0], [0], [1], [0, 0, 1, 1], [], []>} : vector<8x8xf32>, vector<8x8xf32>, vector<8x8xf32> -> vector<8x8xf32>
    %629 = vector.broadcast %627 : vector<8x1xf32> to vector<8x8xf32>
    %630 = arith.divf %628, %629 : vector<8x8xf32>
    %631 = vector.extract_strided_slice %607 {offsets = [0, 0], sizes = [8, 32], strides = [1, 1]} : vector<32x32xf32> to vector<8x32xf32>
    %cst_260 = arith.constant dense<0.000000e+00> : vector<8x32xf32>
    %632 = tpu.matmul %630, %631, %cst_260 {dimension_numbers = #tpu.dot_dimension_numbers<[1], [0], [0], [1], [0, 0, 1, 1], [], []>} : vector<8x8xf32>, vector<8x32xf32>, vector<8x32xf32> -> vector<8x32xf32>
    %633 = vector.extract_strided_slice %610 {offsets = [0, 8], sizes = [8, 8], strides = [1, 1]} : vector<8x32xf32> to vector<8x8xf32>
    %634 = vector.extract_strided_slice %611 {offsets = [0, 8], sizes = [8, 8], strides = [1, 1]} : vector<8x32xf32> to vector<8x8xf32>
    %635 = vector.extract_strided_slice %612 {offsets = [0, 8], sizes = [8, 8], strides = [1, 1]} : vector<8x32xf32> to vector<8x8xf32>
    %cst_261 = arith.constant dense<0.000000e+00> : vector<8x8xf32>
    %636 = tpu.matmul %633, %634, %cst_261 {dimension_numbers = #tpu.dot_dimension_numbers<[1], [1], [0], [0], [0, 0, 1, 0], [], []>} : vector<8x8xf32>, vector<8x8xf32>, vector<8x8xf32> -> vector<8x8xf32>
    %cst_262 = arith.constant 0.353553385 : f32
    %637 = vector.broadcast %cst_262 : f32 to vector<8x8xf32>
    %638 = arith.mulf %636, %637 : vector<8x8xf32>
    %cst_263 = arith.constant 0xFF800000 : f32
    %639 = vector.broadcast %cst_263 : f32 to vector<8x8xf32>
    %640 = arith.select %23, %638, %639 : vector<8x8xi1>, vector<8x8xf32>
    %cst_264 = arith.constant dense<0xFF800000> : vector<8xf32>
    %641 = vector.multi_reduction <maximumf>, %640, %cst_264 [1] : vector<8x8xf32> to vector<8xf32>
    %642 = vector.shape_cast %641 : vector<8xf32> to vector<8x1xf32>
    %643 = vector.broadcast %642 : vector<8x1xf32> to vector<8x8xf32>
    %644 = arith.subf %640, %643 : vector<8x8xf32>
    %645 = math.exp %644 : vector<8x8xf32>
    %cst_265 = arith.constant dense<0.000000e+00> : vector<8xf32>
    %646 = vector.multi_reduction <add>, %645, %cst_265 [1] : vector<8x8xf32> to vector<8xf32>
    %647 = vector.shape_cast %646 : vector<8xf32> to vector<8x1xf32>
    %cst_266 = arith.constant dense<0.000000e+00> : vector<8x8xf32>
    %648 = tpu.matmul %645, %635, %cst_266 {dimension_numbers = #tpu.dot_dimension_numbers<[1], [0], [0], [1], [0, 0, 1, 1], [], []>} : vector<8x8xf32>, vector<8x8xf32>, vector<8x8xf32> -> vector<8x8xf32>
    %649 = vector.broadcast %647 : vector<8x1xf32> to vector<8x8xf32>
    %650 = arith.divf %648, %649 : vector<8x8xf32>
    %651 = vector.extract_strided_slice %607 {offsets = [8, 0], sizes = [8, 32], strides = [1, 1]} : vector<32x32xf32> to vector<8x32xf32>
    %cst_267 = arith.constant dense<0.000000e+00> : vector<8x32xf32>
    %652 = tpu.matmul %650, %651, %cst_267 {dimension_numbers = #tpu.dot_dimension_numbers<[1], [0], [0], [1], [0, 0, 1, 1], [], []>} : vector<8x8xf32>, vector<8x32xf32>, vector<8x32xf32> -> vector<8x32xf32>
    %653 = arith.addf %632, %652 : vector<8x32xf32>
    %654 = vector.extract_strided_slice %610 {offsets = [0, 16], sizes = [8, 8], strides = [1, 1]} : vector<8x32xf32> to vector<8x8xf32>
    %655 = vector.extract_strided_slice %611 {offsets = [0, 16], sizes = [8, 8], strides = [1, 1]} : vector<8x32xf32> to vector<8x8xf32>
    %656 = vector.extract_strided_slice %612 {offsets = [0, 16], sizes = [8, 8], strides = [1, 1]} : vector<8x32xf32> to vector<8x8xf32>
    %cst_268 = arith.constant dense<0.000000e+00> : vector<8x8xf32>
    %657 = tpu.matmul %654, %655, %cst_268 {dimension_numbers = #tpu.dot_dimension_numbers<[1], [1], [0], [0], [0, 0, 1, 0], [], []>} : vector<8x8xf32>, vector<8x8xf32>, vector<8x8xf32> -> vector<8x8xf32>
    %cst_269 = arith.constant 0.353553385 : f32
    %658 = vector.broadcast %cst_269 : f32 to vector<8x8xf32>
    %659 = arith.mulf %657, %658 : vector<8x8xf32>
    %cst_270 = arith.constant 0xFF800000 : f32
    %660 = vector.broadcast %cst_270 : f32 to vector<8x8xf32>
    %661 = arith.select %23, %659, %660 : vector<8x8xi1>, vector<8x8xf32>
    %cst_271 = arith.constant dense<0xFF800000> : vector<8xf32>
    %662 = vector.multi_reduction <maximumf>, %661, %cst_271 [1] : vector<8x8xf32> to vector<8xf32>
    %663 = vector.shape_cast %662 : vector<8xf32> to vector<8x1xf32>
    %664 = vector.broadcast %663 : vector<8x1xf32> to vector<8x8xf32>
    %665 = arith.subf %661, %664 : vector<8x8xf32>
    %666 = math.exp %665 : vector<8x8xf32>
    %cst_272 = arith.constant dense<0.000000e+00> : vector<8xf32>
    %667 = vector.multi_reduction <add>, %666, %cst_272 [1] : vector<8x8xf32> to vector<8xf32>
    %668 = vector.shape_cast %667 : vector<8xf32> to vector<8x1xf32>
    %cst_273 = arith.constant dense<0.000000e+00> : vector<8x8xf32>
    %669 = tpu.matmul %666, %656, %cst_273 {dimension_numbers = #tpu.dot_dimension_numbers<[1], [0], [0], [1], [0, 0, 1, 1], [], []>} : vector<8x8xf32>, vector<8x8xf32>, vector<8x8xf32> -> vector<8x8xf32>
    %670 = vector.broadcast %668 : vector<8x1xf32> to vector<8x8xf32>
    %671 = arith.divf %669, %670 : vector<8x8xf32>
    %672 = vector.extract_strided_slice %607 {offsets = [16, 0], sizes = [8, 32], strides = [1, 1]} : vector<32x32xf32> to vector<8x32xf32>
    %cst_274 = arith.constant dense<0.000000e+00> : vector<8x32xf32>
    %673 = tpu.matmul %671, %672, %cst_274 {dimension_numbers = #tpu.dot_dimension_numbers<[1], [0], [0], [1], [0, 0, 1, 1], [], []>} : vector<8x8xf32>, vector<8x32xf32>, vector<8x32xf32> -> vector<8x32xf32>
    %674 = arith.addf %653, %673 : vector<8x32xf32>
    %675 = vector.extract_strided_slice %610 {offsets = [0, 24], sizes = [8, 8], strides = [1, 1]} : vector<8x32xf32> to vector<8x8xf32>
    %676 = vector.extract_strided_slice %611 {offsets = [0, 24], sizes = [8, 8], strides = [1, 1]} : vector<8x32xf32> to vector<8x8xf32>
    %677 = vector.extract_strided_slice %612 {offsets = [0, 24], sizes = [8, 8], strides = [1, 1]} : vector<8x32xf32> to vector<8x8xf32>
    %cst_275 = arith.constant dense<0.000000e+00> : vector<8x8xf32>
    %678 = tpu.matmul %675, %676, %cst_275 {dimension_numbers = #tpu.dot_dimension_numbers<[1], [1], [0], [0], [0, 0, 1, 0], [], []>} : vector<8x8xf32>, vector<8x8xf32>, vector<8x8xf32> -> vector<8x8xf32>
    %cst_276 = arith.constant 0.353553385 : f32
    %679 = vector.broadcast %cst_276 : f32 to vector<8x8xf32>
    %680 = arith.mulf %678, %679 : vector<8x8xf32>
    %cst_277 = arith.constant 0xFF800000 : f32
    %681 = vector.broadcast %cst_277 : f32 to vector<8x8xf32>
    %682 = arith.select %23, %680, %681 : vector<8x8xi1>, vector<8x8xf32>
    %cst_278 = arith.constant dense<0xFF800000> : vector<8xf32>
    %683 = vector.multi_reduction <maximumf>, %682, %cst_278 [1] : vector<8x8xf32> to vector<8xf32>
    %684 = vector.shape_cast %683 : vector<8xf32> to vector<8x1xf32>
    %685 = vector.broadcast %684 : vector<8x1xf32> to vector<8x8xf32>
    %686 = arith.subf %682, %685 : vector<8x8xf32>
    %687 = math.exp %686 : vector<8x8xf32>
    %cst_279 = arith.constant dense<0.000000e+00> : vector<8xf32>
    %688 = vector.multi_reduction <add>, %687, %cst_279 [1] : vector<8x8xf32> to vector<8xf32>
    %689 = vector.shape_cast %688 : vector<8xf32> to vector<8x1xf32>
    %cst_280 = arith.constant dense<0.000000e+00> : vector<8x8xf32>
    %690 = tpu.matmul %687, %677, %cst_280 {dimension_numbers = #tpu.dot_dimension_numbers<[1], [0], [0], [1], [0, 0, 1, 1], [], []>} : vector<8x8xf32>, vector<8x8xf32>, vector<8x8xf32> -> vector<8x8xf32>
    %691 = vector.broadcast %689 : vector<8x1xf32> to vector<8x8xf32>
    %692 = arith.divf %690, %691 : vector<8x8xf32>
    %693 = vector.extract_strided_slice %607 {offsets = [24, 0], sizes = [8, 32], strides = [1, 1]} : vector<32x32xf32> to vector<8x32xf32>
    %cst_281 = arith.constant dense<0.000000e+00> : vector<8x32xf32>
    %694 = tpu.matmul %692, %693, %cst_281 {dimension_numbers = #tpu.dot_dimension_numbers<[1], [0], [0], [1], [0, 0, 1, 1], [], []>} : vector<8x8xf32>, vector<8x32xf32>, vector<8x32xf32> -> vector<8x32xf32>
    %695 = arith.addf %674, %694 : vector<8x32xf32>
    %696 = vector.extract_strided_slice %603 {offsets = [8, 0], sizes = [8, 32], strides = [1, 1]} : vector<16x32xf32> to vector<8x32xf32>
    %697 = vector.extract_strided_slice %604 {offsets = [8, 0], sizes = [8, 32], strides = [1, 1]} : vector<16x32xf32> to vector<8x32xf32>
    %698 = vector.extract_strided_slice %605 {offsets = [8, 0], sizes = [8, 32], strides = [1, 1]} : vector<16x32xf32> to vector<8x32xf32>
    %699 = vector.extract_strided_slice %696 {offsets = [0, 0], sizes = [8, 8], strides = [1, 1]} : vector<8x32xf32> to vector<8x8xf32>
    %700 = vector.extract_strided_slice %697 {offsets = [0, 0], sizes = [8, 8], strides = [1, 1]} : vector<8x32xf32> to vector<8x8xf32>
    %701 = vector.extract_strided_slice %698 {offsets = [0, 0], sizes = [8, 8], strides = [1, 1]} : vector<8x32xf32> to vector<8x8xf32>
    %cst_282 = arith.constant dense<0.000000e+00> : vector<8x8xf32>
    %702 = tpu.matmul %699, %700, %cst_282 {dimension_numbers = #tpu.dot_dimension_numbers<[1], [1], [0], [0], [0, 0, 1, 0], [], []>} : vector<8x8xf32>, vector<8x8xf32>, vector<8x8xf32> -> vector<8x8xf32>
    %cst_283 = arith.constant 0.353553385 : f32
    %703 = vector.broadcast %cst_283 : f32 to vector<8x8xf32>
    %704 = arith.mulf %702, %703 : vector<8x8xf32>
    %cst_284 = arith.constant 0xFF800000 : f32
    %705 = vector.broadcast %cst_284 : f32 to vector<8x8xf32>
    %706 = arith.select %23, %704, %705 : vector<8x8xi1>, vector<8x8xf32>
    %cst_285 = arith.constant dense<0xFF800000> : vector<8xf32>
    %707 = vector.multi_reduction <maximumf>, %706, %cst_285 [1] : vector<8x8xf32> to vector<8xf32>
    %708 = vector.shape_cast %707 : vector<8xf32> to vector<8x1xf32>
    %709 = vector.broadcast %708 : vector<8x1xf32> to vector<8x8xf32>
    %710 = arith.subf %706, %709 : vector<8x8xf32>
    %711 = math.exp %710 : vector<8x8xf32>
    %cst_286 = arith.constant dense<0.000000e+00> : vector<8xf32>
    %712 = vector.multi_reduction <add>, %711, %cst_286 [1] : vector<8x8xf32> to vector<8xf32>
    %713 = vector.shape_cast %712 : vector<8xf32> to vector<8x1xf32>
    %cst_287 = arith.constant dense<0.000000e+00> : vector<8x8xf32>
    %714 = tpu.matmul %711, %701, %cst_287 {dimension_numbers = #tpu.dot_dimension_numbers<[1], [0], [0], [1], [0, 0, 1, 1], [], []>} : vector<8x8xf32>, vector<8x8xf32>, vector<8x8xf32> -> vector<8x8xf32>
    %715 = vector.broadcast %713 : vector<8x1xf32> to vector<8x8xf32>
    %716 = arith.divf %714, %715 : vector<8x8xf32>
    %717 = vector.extract_strided_slice %607 {offsets = [0, 0], sizes = [8, 32], strides = [1, 1]} : vector<32x32xf32> to vector<8x32xf32>
    %cst_288 = arith.constant dense<0.000000e+00> : vector<8x32xf32>
    %718 = tpu.matmul %716, %717, %cst_288 {dimension_numbers = #tpu.dot_dimension_numbers<[1], [0], [0], [1], [0, 0, 1, 1], [], []>} : vector<8x8xf32>, vector<8x32xf32>, vector<8x32xf32> -> vector<8x32xf32>
    %719 = vector.extract_strided_slice %696 {offsets = [0, 8], sizes = [8, 8], strides = [1, 1]} : vector<8x32xf32> to vector<8x8xf32>
    %720 = vector.extract_strided_slice %697 {offsets = [0, 8], sizes = [8, 8], strides = [1, 1]} : vector<8x32xf32> to vector<8x8xf32>
    %721 = vector.extract_strided_slice %698 {offsets = [0, 8], sizes = [8, 8], strides = [1, 1]} : vector<8x32xf32> to vector<8x8xf32>
    %cst_289 = arith.constant dense<0.000000e+00> : vector<8x8xf32>
    %722 = tpu.matmul %719, %720, %cst_289 {dimension_numbers = #tpu.dot_dimension_numbers<[1], [1], [0], [0], [0, 0, 1, 0], [], []>} : vector<8x8xf32>, vector<8x8xf32>, vector<8x8xf32> -> vector<8x8xf32>
    %cst_290 = arith.constant 0.353553385 : f32
    %723 = vector.broadcast %cst_290 : f32 to vector<8x8xf32>
    %724 = arith.mulf %722, %723 : vector<8x8xf32>
    %cst_291 = arith.constant 0xFF800000 : f32
    %725 = vector.broadcast %cst_291 : f32 to vector<8x8xf32>
    %726 = arith.select %23, %724, %725 : vector<8x8xi1>, vector<8x8xf32>
    %cst_292 = arith.constant dense<0xFF800000> : vector<8xf32>
    %727 = vector.multi_reduction <maximumf>, %726, %cst_292 [1] : vector<8x8xf32> to vector<8xf32>
    %728 = vector.shape_cast %727 : vector<8xf32> to vector<8x1xf32>
    %729 = vector.broadcast %728 : vector<8x1xf32> to vector<8x8xf32>
    %730 = arith.subf %726, %729 : vector<8x8xf32>
    %731 = math.exp %730 : vector<8x8xf32>
    %cst_293 = arith.constant dense<0.000000e+00> : vector<8xf32>
    %732 = vector.multi_reduction <add>, %731, %cst_293 [1] : vector<8x8xf32> to vector<8xf32>
    %733 = vector.shape_cast %732 : vector<8xf32> to vector<8x1xf32>
    %cst_294 = arith.constant dense<0.000000e+00> : vector<8x8xf32>
    %734 = tpu.matmul %731, %721, %cst_294 {dimension_numbers = #tpu.dot_dimension_numbers<[1], [0], [0], [1], [0, 0, 1, 1], [], []>} : vector<8x8xf32>, vector<8x8xf32>, vector<8x8xf32> -> vector<8x8xf32>
    %735 = vector.broadcast %733 : vector<8x1xf32> to vector<8x8xf32>
    %736 = arith.divf %734, %735 : vector<8x8xf32>
    %737 = vector.extract_strided_slice %607 {offsets = [8, 0], sizes = [8, 32], strides = [1, 1]} : vector<32x32xf32> to vector<8x32xf32>
    %cst_295 = arith.constant dense<0.000000e+00> : vector<8x32xf32>
    %738 = tpu.matmul %736, %737, %cst_295 {dimension_numbers = #tpu.dot_dimension_numbers<[1], [0], [0], [1], [0, 0, 1, 1], [], []>} : vector<8x8xf32>, vector<8x32xf32>, vector<8x32xf32> -> vector<8x32xf32>
    %739 = arith.addf %718, %738 : vector<8x32xf32>
    %740 = vector.extract_strided_slice %696 {offsets = [0, 16], sizes = [8, 8], strides = [1, 1]} : vector<8x32xf32> to vector<8x8xf32>
    %741 = vector.extract_strided_slice %697 {offsets = [0, 16], sizes = [8, 8], strides = [1, 1]} : vector<8x32xf32> to vector<8x8xf32>
    %742 = vector.extract_strided_slice %698 {offsets = [0, 16], sizes = [8, 8], strides = [1, 1]} : vector<8x32xf32> to vector<8x8xf32>
    %cst_296 = arith.constant dense<0.000000e+00> : vector<8x8xf32>
    %743 = tpu.matmul %740, %741, %cst_296 {dimension_numbers = #tpu.dot_dimension_numbers<[1], [1], [0], [0], [0, 0, 1, 0], [], []>} : vector<8x8xf32>, vector<8x8xf32>, vector<8x8xf32> -> vector<8x8xf32>
    %cst_297 = arith.constant 0.353553385 : f32
    %744 = vector.broadcast %cst_297 : f32 to vector<8x8xf32>
    %745 = arith.mulf %743, %744 : vector<8x8xf32>
    %cst_298 = arith.constant 0xFF800000 : f32
    %746 = vector.broadcast %cst_298 : f32 to vector<8x8xf32>
    %747 = arith.select %23, %745, %746 : vector<8x8xi1>, vector<8x8xf32>
    %cst_299 = arith.constant dense<0xFF800000> : vector<8xf32>
    %748 = vector.multi_reduction <maximumf>, %747, %cst_299 [1] : vector<8x8xf32> to vector<8xf32>
    %749 = vector.shape_cast %748 : vector<8xf32> to vector<8x1xf32>
    %750 = vector.broadcast %749 : vector<8x1xf32> to vector<8x8xf32>
    %751 = arith.subf %747, %750 : vector<8x8xf32>
    %752 = math.exp %751 : vector<8x8xf32>
    %cst_300 = arith.constant dense<0.000000e+00> : vector<8xf32>
    %753 = vector.multi_reduction <add>, %752, %cst_300 [1] : vector<8x8xf32> to vector<8xf32>
    %754 = vector.shape_cast %753 : vector<8xf32> to vector<8x1xf32>
    %cst_301 = arith.constant dense<0.000000e+00> : vector<8x8xf32>
    %755 = tpu.matmul %752, %742, %cst_301 {dimension_numbers = #tpu.dot_dimension_numbers<[1], [0], [0], [1], [0, 0, 1, 1], [], []>} : vector<8x8xf32>, vector<8x8xf32>, vector<8x8xf32> -> vector<8x8xf32>
    %756 = vector.broadcast %754 : vector<8x1xf32> to vector<8x8xf32>
    %757 = arith.divf %755, %756 : vector<8x8xf32>
    %758 = vector.extract_strided_slice %607 {offsets = [16, 0], sizes = [8, 32], strides = [1, 1]} : vector<32x32xf32> to vector<8x32xf32>
    %cst_302 = arith.constant dense<0.000000e+00> : vector<8x32xf32>
    %759 = tpu.matmul %757, %758, %cst_302 {dimension_numbers = #tpu.dot_dimension_numbers<[1], [0], [0], [1], [0, 0, 1, 1], [], []>} : vector<8x8xf32>, vector<8x32xf32>, vector<8x32xf32> -> vector<8x32xf32>
    %760 = arith.addf %739, %759 : vector<8x32xf32>
    %761 = vector.extract_strided_slice %696 {offsets = [0, 24], sizes = [8, 8], strides = [1, 1]} : vector<8x32xf32> to vector<8x8xf32>
    %762 = vector.extract_strided_slice %697 {offsets = [0, 24], sizes = [8, 8], strides = [1, 1]} : vector<8x32xf32> to vector<8x8xf32>
    %763 = vector.extract_strided_slice %698 {offsets = [0, 24], sizes = [8, 8], strides = [1, 1]} : vector<8x32xf32> to vector<8x8xf32>
    %cst_303 = arith.constant dense<0.000000e+00> : vector<8x8xf32>
    %764 = tpu.matmul %761, %762, %cst_303 {dimension_numbers = #tpu.dot_dimension_numbers<[1], [1], [0], [0], [0, 0, 1, 0], [], []>} : vector<8x8xf32>, vector<8x8xf32>, vector<8x8xf32> -> vector<8x8xf32>
    %cst_304 = arith.constant 0.353553385 : f32
    %765 = vector.broadcast %cst_304 : f32 to vector<8x8xf32>
    %766 = arith.mulf %764, %765 : vector<8x8xf32>
    %cst_305 = arith.constant 0xFF800000 : f32
    %767 = vector.broadcast %cst_305 : f32 to vector<8x8xf32>
    %768 = arith.select %23, %766, %767 : vector<8x8xi1>, vector<8x8xf32>
    %cst_306 = arith.constant dense<0xFF800000> : vector<8xf32>
    %769 = vector.multi_reduction <maximumf>, %768, %cst_306 [1] : vector<8x8xf32> to vector<8xf32>
    %770 = vector.shape_cast %769 : vector<8xf32> to vector<8x1xf32>
    %771 = vector.broadcast %770 : vector<8x1xf32> to vector<8x8xf32>
    %772 = arith.subf %768, %771 : vector<8x8xf32>
    %773 = math.exp %772 : vector<8x8xf32>
    %cst_307 = arith.constant dense<0.000000e+00> : vector<8xf32>
    %774 = vector.multi_reduction <add>, %773, %cst_307 [1] : vector<8x8xf32> to vector<8xf32>
    %775 = vector.shape_cast %774 : vector<8xf32> to vector<8x1xf32>
    %cst_308 = arith.constant dense<0.000000e+00> : vector<8x8xf32>
    %776 = tpu.matmul %773, %763, %cst_308 {dimension_numbers = #tpu.dot_dimension_numbers<[1], [0], [0], [1], [0, 0, 1, 1], [], []>} : vector<8x8xf32>, vector<8x8xf32>, vector<8x8xf32> -> vector<8x8xf32>
    %777 = vector.broadcast %775 : vector<8x1xf32> to vector<8x8xf32>
    %778 = arith.divf %776, %777 : vector<8x8xf32>
    %779 = vector.extract_strided_slice %607 {offsets = [24, 0], sizes = [8, 32], strides = [1, 1]} : vector<32x32xf32> to vector<8x32xf32>
    %cst_309 = arith.constant dense<0.000000e+00> : vector<8x32xf32>
    %780 = tpu.matmul %778, %779, %cst_309 {dimension_numbers = #tpu.dot_dimension_numbers<[1], [0], [0], [1], [0, 0, 1, 1], [], []>} : vector<8x8xf32>, vector<8x32xf32>, vector<8x32xf32> -> vector<8x32xf32>
    %781 = arith.addf %760, %780 : vector<8x32xf32>
    %782 = tpu.concatenate %695, %781 in 0 : vector<8x32xf32>, vector<8x32xf32> -> vector<16x32xf32>
    %783 = vector.broadcast %609 : vector<1x32xf32> to vector<16x32xf32>
    %784 = arith.addf %782, %783 : vector<16x32xf32>
    %785 = arith.addf %569, %784 : vector<16x32xf32>
    %c0_310 = arith.constant 0 : index
    %c0_311 = arith.constant 0 : index
    %c0_312 = arith.constant 0 : index
    %786 = vector.load %arg26[%c0_310, %c0_311, %c0_312] : memref<2x1x32xf32, #tpu.memory_space<vmem>>, vector<1x1x32xf32>
    %787 = vector.shape_cast %786 : vector<1x1x32xf32> to vector<1x32xf32>
    %c0_313 = arith.constant 0 : index
    %c0_314 = arith.constant 0 : index
    %c0_315 = arith.constant 0 : index
    %788 = vector.load %arg27[%c0_313, %c0_314, %c0_315] : memref<2x1x32xf32, #tpu.memory_space<vmem>>, vector<1x1x32xf32>
    %789 = vector.shape_cast %788 : vector<1x1x32xf32> to vector<1x32xf32>
    %cst_316 = arith.constant dense<0.000000e+00> : vector<16xf32>
    %790 = vector.multi_reduction <add>, %785, %cst_316 [1] : vector<16x32xf32> to vector<16xf32>
    %791 = vector.shape_cast %790 : vector<16xf32> to vector<16x1xf32>
    %cst_317 = arith.constant 3.200000e+01 : f32
    %792 = vector.broadcast %cst_317 : f32 to vector<16x1xf32>
    %793 = arith.divf %791, %792 : vector<16x1xf32>
    %794 = vector.broadcast %793 : vector<16x1xf32> to vector<16x32xf32>
    %795 = arith.subf %785, %794 : vector<16x32xf32>
    %796 = arith.mulf %795, %795 : vector<16x32xf32>
    %cst_318 = arith.constant dense<0.000000e+00> : vector<16xf32>
    %797 = vector.multi_reduction <add>, %796, %cst_318 [1] : vector<16x32xf32> to vector<16xf32>
    %798 = vector.shape_cast %797 : vector<16xf32> to vector<16x1xf32>
    %cst_319 = arith.constant 3.200000e+01 : f32
    %799 = vector.broadcast %cst_319 : f32 to vector<16x1xf32>
    %800 = arith.divf %798, %799 : vector<16x1xf32>
    %801 = vector.broadcast %793 : vector<16x1xf32> to vector<16x32xf32>
    %802 = arith.subf %785, %801 : vector<16x32xf32>
    %cst_320 = arith.constant 9.99999974E-6 : f32
    %803 = vector.broadcast %cst_320 : f32 to vector<16x1xf32>
    %804 = arith.addf %800, %803 : vector<16x1xf32>
    %805 = math.rsqrt %804 : vector<16x1xf32>
    %806 = vector.broadcast %805 : vector<16x1xf32> to vector<16x32xf32>
    %807 = arith.mulf %802, %806 : vector<16x32xf32>
    %808 = vector.broadcast %787 : vector<1x32xf32> to vector<16x32xf32>
    %809 = arith.mulf %807, %808 : vector<16x32xf32>
    %810 = vector.broadcast %789 : vector<1x32xf32> to vector<16x32xf32>
    %811 = arith.addf %809, %810 : vector<16x32xf32>
    %c0_321 = arith.constant 0 : index
    %c0_322 = arith.constant 0 : index
    %c0_323 = arith.constant 0 : index
    %812 = vector.load %arg28[%c0_321, %c0_322, %c0_323] : memref<2x32x32xf32, #tpu.memory_space<vmem>>, vector<1x32x32xf32>
    %813 = vector.shape_cast %812 : vector<1x32x32xf32> to vector<32x32xf32>
    %cst_324 = arith.constant dense<0.000000e+00> : vector<16x32xf32>
    %814 = tpu.matmul %811, %813, %cst_324 {dimension_numbers = #tpu.dot_dimension_numbers<[1], [0], [0], [1], [0, 0, 1, 1], [], []>} : vector<16x32xf32>, vector<32x32xf32>, vector<16x32xf32> -> vector<16x32xf32>
    %c0_325 = arith.constant 0 : index
    %c0_326 = arith.constant 0 : index
    %c0_327 = arith.constant 0 : index
    %815 = vector.load %arg29[%c0_325, %c0_326, %c0_327] : memref<2x1x32xf32, #tpu.memory_space<vmem>>, vector<1x1x32xf32>
    %816 = vector.shape_cast %815 : vector<1x1x32xf32> to vector<1x32xf32>
    %817 = vector.broadcast %816 : vector<1x32xf32> to vector<16x32xf32>
    %818 = arith.addf %814, %817 : vector<16x32xf32>
    %c0_328 = arith.constant 0 : index
    %c0_329 = arith.constant 0 : index
    %c0_330 = arith.constant 0 : index
    %819 = vector.load %arg30[%c0_328, %c0_329, %c0_330] : memref<2x32x64xf32, #tpu.memory_space<vmem>>, vector<1x32x64xf32>
    %820 = vector.shape_cast %819 : vector<1x32x64xf32> to vector<32x64xf32>
    %cst_331 = arith.constant dense<0.000000e+00> : vector<16x64xf32>
    %821 = tpu.matmul %555, %820, %cst_331 {dimension_numbers = #tpu.dot_dimension_numbers<[1], [0], [0], [1], [0, 0, 1, 1], [], []>} : vector<16x32xf32>, vector<32x64xf32>, vector<16x64xf32> -> vector<16x64xf32>
    %c0_332 = arith.constant 0 : index
    %c0_333 = arith.constant 0 : index
    %c0_334 = arith.constant 0 : index
    %822 = vector.load %arg31[%c0_332, %c0_333, %c0_334] : memref<2x1x64xf32, #tpu.memory_space<vmem>>, vector<1x1x64xf32>
    %823 = vector.shape_cast %822 : vector<1x1x64xf32> to vector<1x64xf32>
    %824 = vector.broadcast %823 : vector<1x64xf32> to vector<16x64xf32>
    %825 = arith.addf %821, %824 : vector<16x64xf32>
    %826 = vector.extract_strided_slice %825 {offsets = [0, 0], sizes = [16, 32], strides = [1, 1]} : vector<16x64xf32> to vector<16x32xf32>
    %827 = vector.extract_strided_slice %825 {offsets = [0, 32], sizes = [16, 32], strides = [1, 1]} : vector<16x64xf32> to vector<16x32xf32>
    %c0_335 = arith.constant 0 : index
    %c0_336 = arith.constant 0 : index
    %c0_337 = arith.constant 0 : index
    %828 = vector.load %arg32[%c0_335, %c0_336, %c0_337] : memref<2x32x32xf32, #tpu.memory_space<vmem>>, vector<1x32x32xf32>
    %829 = vector.shape_cast %828 : vector<1x32x32xf32> to vector<32x32xf32>
    %c0_338 = arith.constant 0 : index
    %c0_339 = arith.constant 0 : index
    %c0_340 = arith.constant 0 : index
    %830 = vector.load %arg33[%c0_338, %c0_339, %c0_340] : memref<2x1x32xf32, #tpu.memory_space<vmem>>, vector<1x1x32xf32>
    %831 = vector.shape_cast %830 : vector<1x1x32xf32> to vector<1x32xf32>
    %832 = vector.extract_strided_slice %818 {offsets = [0, 0], sizes = [8, 32], strides = [1, 1]} : vector<16x32xf32> to vector<8x32xf32>
    %833 = vector.extract_strided_slice %826 {offsets = [0, 0], sizes = [8, 32], strides = [1, 1]} : vector<16x32xf32> to vector<8x32xf32>
    %834 = vector.extract_strided_slice %827 {offsets = [0, 0], sizes = [8, 32], strides = [1, 1]} : vector<16x32xf32> to vector<8x32xf32>
    %835 = vector.extract_strided_slice %832 {offsets = [0, 0], sizes = [8, 8], strides = [1, 1]} : vector<8x32xf32> to vector<8x8xf32>
    %836 = vector.extract_strided_slice %833 {offsets = [0, 0], sizes = [8, 8], strides = [1, 1]} : vector<8x32xf32> to vector<8x8xf32>
    %837 = vector.extract_strided_slice %834 {offsets = [0, 0], sizes = [8, 8], strides = [1, 1]} : vector<8x32xf32> to vector<8x8xf32>
    %cst_341 = arith.constant dense<0.000000e+00> : vector<8x8xf32>
    %838 = tpu.matmul %835, %836, %cst_341 {dimension_numbers = #tpu.dot_dimension_numbers<[1], [1], [0], [0], [0, 0, 1, 0], [], []>} : vector<8x8xf32>, vector<8x8xf32>, vector<8x8xf32> -> vector<8x8xf32>
    %cst_342 = arith.constant 0.353553385 : f32
    %839 = vector.broadcast %cst_342 : f32 to vector<8x8xf32>
    %840 = arith.mulf %838, %839 : vector<8x8xf32>
    %cst_343 = arith.constant 0xFF800000 : f32
    %841 = vector.broadcast %cst_343 : f32 to vector<8x8xf32>
    %842 = arith.select %15, %840, %841 : vector<8x8xi1>, vector<8x8xf32>
    %cst_344 = arith.constant dense<0xFF800000> : vector<8xf32>
    %843 = vector.multi_reduction <maximumf>, %842, %cst_344 [1] : vector<8x8xf32> to vector<8xf32>
    %844 = vector.shape_cast %843 : vector<8xf32> to vector<8x1xf32>
    %845 = vector.broadcast %844 : vector<8x1xf32> to vector<8x8xf32>
    %846 = arith.subf %842, %845 : vector<8x8xf32>
    %847 = math.exp %846 : vector<8x8xf32>
    %cst_345 = arith.constant dense<0.000000e+00> : vector<8xf32>
    %848 = vector.multi_reduction <add>, %847, %cst_345 [1] : vector<8x8xf32> to vector<8xf32>
    %849 = vector.shape_cast %848 : vector<8xf32> to vector<8x1xf32>
    %cst_346 = arith.constant dense<0.000000e+00> : vector<8x8xf32>
    %850 = tpu.matmul %847, %837, %cst_346 {dimension_numbers = #tpu.dot_dimension_numbers<[1], [0], [0], [1], [0, 0, 1, 1], [], []>} : vector<8x8xf32>, vector<8x8xf32>, vector<8x8xf32> -> vector<8x8xf32>
    %851 = vector.broadcast %849 : vector<8x1xf32> to vector<8x8xf32>
    %852 = arith.divf %850, %851 : vector<8x8xf32>
    %853 = vector.extract_strided_slice %829 {offsets = [0, 0], sizes = [8, 32], strides = [1, 1]} : vector<32x32xf32> to vector<8x32xf32>
    %cst_347 = arith.constant dense<0.000000e+00> : vector<8x32xf32>
    %854 = tpu.matmul %852, %853, %cst_347 {dimension_numbers = #tpu.dot_dimension_numbers<[1], [0], [0], [1], [0, 0, 1, 1], [], []>} : vector<8x8xf32>, vector<8x32xf32>, vector<8x32xf32> -> vector<8x32xf32>
    %855 = vector.extract_strided_slice %832 {offsets = [0, 8], sizes = [8, 8], strides = [1, 1]} : vector<8x32xf32> to vector<8x8xf32>
    %856 = vector.extract_strided_slice %833 {offsets = [0, 8], sizes = [8, 8], strides = [1, 1]} : vector<8x32xf32> to vector<8x8xf32>
    %857 = vector.extract_strided_slice %834 {offsets = [0, 8], sizes = [8, 8], strides = [1, 1]} : vector<8x32xf32> to vector<8x8xf32>
    %cst_348 = arith.constant dense<0.000000e+00> : vector<8x8xf32>
    %858 = tpu.matmul %855, %856, %cst_348 {dimension_numbers = #tpu.dot_dimension_numbers<[1], [1], [0], [0], [0, 0, 1, 0], [], []>} : vector<8x8xf32>, vector<8x8xf32>, vector<8x8xf32> -> vector<8x8xf32>
    %cst_349 = arith.constant 0.353553385 : f32
    %859 = vector.broadcast %cst_349 : f32 to vector<8x8xf32>
    %860 = arith.mulf %858, %859 : vector<8x8xf32>
    %cst_350 = arith.constant 0xFF800000 : f32
    %861 = vector.broadcast %cst_350 : f32 to vector<8x8xf32>
    %862 = arith.select %15, %860, %861 : vector<8x8xi1>, vector<8x8xf32>
    %cst_351 = arith.constant dense<0xFF800000> : vector<8xf32>
    %863 = vector.multi_reduction <maximumf>, %862, %cst_351 [1] : vector<8x8xf32> to vector<8xf32>
    %864 = vector.shape_cast %863 : vector<8xf32> to vector<8x1xf32>
    %865 = vector.broadcast %864 : vector<8x1xf32> to vector<8x8xf32>
    %866 = arith.subf %862, %865 : vector<8x8xf32>
    %867 = math.exp %866 : vector<8x8xf32>
    %cst_352 = arith.constant dense<0.000000e+00> : vector<8xf32>
    %868 = vector.multi_reduction <add>, %867, %cst_352 [1] : vector<8x8xf32> to vector<8xf32>
    %869 = vector.shape_cast %868 : vector<8xf32> to vector<8x1xf32>
    %cst_353 = arith.constant dense<0.000000e+00> : vector<8x8xf32>
    %870 = tpu.matmul %867, %857, %cst_353 {dimension_numbers = #tpu.dot_dimension_numbers<[1], [0], [0], [1], [0, 0, 1, 1], [], []>} : vector<8x8xf32>, vector<8x8xf32>, vector<8x8xf32> -> vector<8x8xf32>
    %871 = vector.broadcast %869 : vector<8x1xf32> to vector<8x8xf32>
    %872 = arith.divf %870, %871 : vector<8x8xf32>
    %873 = vector.extract_strided_slice %829 {offsets = [8, 0], sizes = [8, 32], strides = [1, 1]} : vector<32x32xf32> to vector<8x32xf32>
    %cst_354 = arith.constant dense<0.000000e+00> : vector<8x32xf32>
    %874 = tpu.matmul %872, %873, %cst_354 {dimension_numbers = #tpu.dot_dimension_numbers<[1], [0], [0], [1], [0, 0, 1, 1], [], []>} : vector<8x8xf32>, vector<8x32xf32>, vector<8x32xf32> -> vector<8x32xf32>
    %875 = arith.addf %854, %874 : vector<8x32xf32>
    %876 = vector.extract_strided_slice %832 {offsets = [0, 16], sizes = [8, 8], strides = [1, 1]} : vector<8x32xf32> to vector<8x8xf32>
    %877 = vector.extract_strided_slice %833 {offsets = [0, 16], sizes = [8, 8], strides = [1, 1]} : vector<8x32xf32> to vector<8x8xf32>
    %878 = vector.extract_strided_slice %834 {offsets = [0, 16], sizes = [8, 8], strides = [1, 1]} : vector<8x32xf32> to vector<8x8xf32>
    %cst_355 = arith.constant dense<0.000000e+00> : vector<8x8xf32>
    %879 = tpu.matmul %876, %877, %cst_355 {dimension_numbers = #tpu.dot_dimension_numbers<[1], [1], [0], [0], [0, 0, 1, 0], [], []>} : vector<8x8xf32>, vector<8x8xf32>, vector<8x8xf32> -> vector<8x8xf32>
    %cst_356 = arith.constant 0.353553385 : f32
    %880 = vector.broadcast %cst_356 : f32 to vector<8x8xf32>
    %881 = arith.mulf %879, %880 : vector<8x8xf32>
    %cst_357 = arith.constant 0xFF800000 : f32
    %882 = vector.broadcast %cst_357 : f32 to vector<8x8xf32>
    %883 = arith.select %15, %881, %882 : vector<8x8xi1>, vector<8x8xf32>
    %cst_358 = arith.constant dense<0xFF800000> : vector<8xf32>
    %884 = vector.multi_reduction <maximumf>, %883, %cst_358 [1] : vector<8x8xf32> to vector<8xf32>
    %885 = vector.shape_cast %884 : vector<8xf32> to vector<8x1xf32>
    %886 = vector.broadcast %885 : vector<8x1xf32> to vector<8x8xf32>
    %887 = arith.subf %883, %886 : vector<8x8xf32>
    %888 = math.exp %887 : vector<8x8xf32>
    %cst_359 = arith.constant dense<0.000000e+00> : vector<8xf32>
    %889 = vector.multi_reduction <add>, %888, %cst_359 [1] : vector<8x8xf32> to vector<8xf32>
    %890 = vector.shape_cast %889 : vector<8xf32> to vector<8x1xf32>
    %cst_360 = arith.constant dense<0.000000e+00> : vector<8x8xf32>
    %891 = tpu.matmul %888, %878, %cst_360 {dimension_numbers = #tpu.dot_dimension_numbers<[1], [0], [0], [1], [0, 0, 1, 1], [], []>} : vector<8x8xf32>, vector<8x8xf32>, vector<8x8xf32> -> vector<8x8xf32>
    %892 = vector.broadcast %890 : vector<8x1xf32> to vector<8x8xf32>
    %893 = arith.divf %891, %892 : vector<8x8xf32>
    %894 = vector.extract_strided_slice %829 {offsets = [16, 0], sizes = [8, 32], strides = [1, 1]} : vector<32x32xf32> to vector<8x32xf32>
    %cst_361 = arith.constant dense<0.000000e+00> : vector<8x32xf32>
    %895 = tpu.matmul %893, %894, %cst_361 {dimension_numbers = #tpu.dot_dimension_numbers<[1], [0], [0], [1], [0, 0, 1, 1], [], []>} : vector<8x8xf32>, vector<8x32xf32>, vector<8x32xf32> -> vector<8x32xf32>
    %896 = arith.addf %875, %895 : vector<8x32xf32>
    %897 = vector.extract_strided_slice %832 {offsets = [0, 24], sizes = [8, 8], strides = [1, 1]} : vector<8x32xf32> to vector<8x8xf32>
    %898 = vector.extract_strided_slice %833 {offsets = [0, 24], sizes = [8, 8], strides = [1, 1]} : vector<8x32xf32> to vector<8x8xf32>
    %899 = vector.extract_strided_slice %834 {offsets = [0, 24], sizes = [8, 8], strides = [1, 1]} : vector<8x32xf32> to vector<8x8xf32>
    %cst_362 = arith.constant dense<0.000000e+00> : vector<8x8xf32>
    %900 = tpu.matmul %897, %898, %cst_362 {dimension_numbers = #tpu.dot_dimension_numbers<[1], [1], [0], [0], [0, 0, 1, 0], [], []>} : vector<8x8xf32>, vector<8x8xf32>, vector<8x8xf32> -> vector<8x8xf32>
    %cst_363 = arith.constant 0.353553385 : f32
    %901 = vector.broadcast %cst_363 : f32 to vector<8x8xf32>
    %902 = arith.mulf %900, %901 : vector<8x8xf32>
    %cst_364 = arith.constant 0xFF800000 : f32
    %903 = vector.broadcast %cst_364 : f32 to vector<8x8xf32>
    %904 = arith.select %15, %902, %903 : vector<8x8xi1>, vector<8x8xf32>
    %cst_365 = arith.constant dense<0xFF800000> : vector<8xf32>
    %905 = vector.multi_reduction <maximumf>, %904, %cst_365 [1] : vector<8x8xf32> to vector<8xf32>
    %906 = vector.shape_cast %905 : vector<8xf32> to vector<8x1xf32>
    %907 = vector.broadcast %906 : vector<8x1xf32> to vector<8x8xf32>
    %908 = arith.subf %904, %907 : vector<8x8xf32>
    %909 = math.exp %908 : vector<8x8xf32>
    %cst_366 = arith.constant dense<0.000000e+00> : vector<8xf32>
    %910 = vector.multi_reduction <add>, %909, %cst_366 [1] : vector<8x8xf32> to vector<8xf32>
    %911 = vector.shape_cast %910 : vector<8xf32> to vector<8x1xf32>
    %cst_367 = arith.constant dense<0.000000e+00> : vector<8x8xf32>
    %912 = tpu.matmul %909, %899, %cst_367 {dimension_numbers = #tpu.dot_dimension_numbers<[1], [0], [0], [1], [0, 0, 1, 1], [], []>} : vector<8x8xf32>, vector<8x8xf32>, vector<8x8xf32> -> vector<8x8xf32>
    %913 = vector.broadcast %911 : vector<8x1xf32> to vector<8x8xf32>
    %914 = arith.divf %912, %913 : vector<8x8xf32>
    %915 = vector.extract_strided_slice %829 {offsets = [24, 0], sizes = [8, 32], strides = [1, 1]} : vector<32x32xf32> to vector<8x32xf32>
    %cst_368 = arith.constant dense<0.000000e+00> : vector<8x32xf32>
    %916 = tpu.matmul %914, %915, %cst_368 {dimension_numbers = #tpu.dot_dimension_numbers<[1], [0], [0], [1], [0, 0, 1, 1], [], []>} : vector<8x8xf32>, vector<8x32xf32>, vector<8x32xf32> -> vector<8x32xf32>
    %917 = arith.addf %896, %916 : vector<8x32xf32>
    %918 = vector.extract_strided_slice %818 {offsets = [8, 0], sizes = [8, 32], strides = [1, 1]} : vector<16x32xf32> to vector<8x32xf32>
    %919 = vector.extract_strided_slice %826 {offsets = [8, 0], sizes = [8, 32], strides = [1, 1]} : vector<16x32xf32> to vector<8x32xf32>
    %920 = vector.extract_strided_slice %827 {offsets = [8, 0], sizes = [8, 32], strides = [1, 1]} : vector<16x32xf32> to vector<8x32xf32>
    %921 = vector.extract_strided_slice %918 {offsets = [0, 0], sizes = [8, 8], strides = [1, 1]} : vector<8x32xf32> to vector<8x8xf32>
    %922 = vector.extract_strided_slice %919 {offsets = [0, 0], sizes = [8, 8], strides = [1, 1]} : vector<8x32xf32> to vector<8x8xf32>
    %923 = vector.extract_strided_slice %920 {offsets = [0, 0], sizes = [8, 8], strides = [1, 1]} : vector<8x32xf32> to vector<8x8xf32>
    %cst_369 = arith.constant dense<0.000000e+00> : vector<8x8xf32>
    %924 = tpu.matmul %921, %922, %cst_369 {dimension_numbers = #tpu.dot_dimension_numbers<[1], [1], [0], [0], [0, 0, 1, 0], [], []>} : vector<8x8xf32>, vector<8x8xf32>, vector<8x8xf32> -> vector<8x8xf32>
    %cst_370 = arith.constant 0.353553385 : f32
    %925 = vector.broadcast %cst_370 : f32 to vector<8x8xf32>
    %926 = arith.mulf %924, %925 : vector<8x8xf32>
    %cst_371 = arith.constant 0xFF800000 : f32
    %927 = vector.broadcast %cst_371 : f32 to vector<8x8xf32>
    %928 = arith.select %20, %926, %927 : vector<8x8xi1>, vector<8x8xf32>
    %cst_372 = arith.constant dense<0xFF800000> : vector<8xf32>
    %929 = vector.multi_reduction <maximumf>, %928, %cst_372 [1] : vector<8x8xf32> to vector<8xf32>
    %930 = vector.shape_cast %929 : vector<8xf32> to vector<8x1xf32>
    %931 = vector.broadcast %930 : vector<8x1xf32> to vector<8x8xf32>
    %932 = arith.subf %928, %931 : vector<8x8xf32>
    %933 = math.exp %932 : vector<8x8xf32>
    %cst_373 = arith.constant dense<0.000000e+00> : vector<8xf32>
    %934 = vector.multi_reduction <add>, %933, %cst_373 [1] : vector<8x8xf32> to vector<8xf32>
    %935 = vector.shape_cast %934 : vector<8xf32> to vector<8x1xf32>
    %cst_374 = arith.constant dense<0.000000e+00> : vector<8x8xf32>
    %936 = tpu.matmul %933, %923, %cst_374 {dimension_numbers = #tpu.dot_dimension_numbers<[1], [0], [0], [1], [0, 0, 1, 1], [], []>} : vector<8x8xf32>, vector<8x8xf32>, vector<8x8xf32> -> vector<8x8xf32>
    %937 = vector.broadcast %935 : vector<8x1xf32> to vector<8x8xf32>
    %938 = arith.divf %936, %937 : vector<8x8xf32>
    %939 = vector.extract_strided_slice %829 {offsets = [0, 0], sizes = [8, 32], strides = [1, 1]} : vector<32x32xf32> to vector<8x32xf32>
    %cst_375 = arith.constant dense<0.000000e+00> : vector<8x32xf32>
    %940 = tpu.matmul %938, %939, %cst_375 {dimension_numbers = #tpu.dot_dimension_numbers<[1], [0], [0], [1], [0, 0, 1, 1], [], []>} : vector<8x8xf32>, vector<8x32xf32>, vector<8x32xf32> -> vector<8x32xf32>
    %941 = vector.extract_strided_slice %918 {offsets = [0, 8], sizes = [8, 8], strides = [1, 1]} : vector<8x32xf32> to vector<8x8xf32>
    %942 = vector.extract_strided_slice %919 {offsets = [0, 8], sizes = [8, 8], strides = [1, 1]} : vector<8x32xf32> to vector<8x8xf32>
    %943 = vector.extract_strided_slice %920 {offsets = [0, 8], sizes = [8, 8], strides = [1, 1]} : vector<8x32xf32> to vector<8x8xf32>
    %cst_376 = arith.constant dense<0.000000e+00> : vector<8x8xf32>
    %944 = tpu.matmul %941, %942, %cst_376 {dimension_numbers = #tpu.dot_dimension_numbers<[1], [1], [0], [0], [0, 0, 1, 0], [], []>} : vector<8x8xf32>, vector<8x8xf32>, vector<8x8xf32> -> vector<8x8xf32>
    %cst_377 = arith.constant 0.353553385 : f32
    %945 = vector.broadcast %cst_377 : f32 to vector<8x8xf32>
    %946 = arith.mulf %944, %945 : vector<8x8xf32>
    %cst_378 = arith.constant 0xFF800000 : f32
    %947 = vector.broadcast %cst_378 : f32 to vector<8x8xf32>
    %948 = arith.select %20, %946, %947 : vector<8x8xi1>, vector<8x8xf32>
    %cst_379 = arith.constant dense<0xFF800000> : vector<8xf32>
    %949 = vector.multi_reduction <maximumf>, %948, %cst_379 [1] : vector<8x8xf32> to vector<8xf32>
    %950 = vector.shape_cast %949 : vector<8xf32> to vector<8x1xf32>
    %951 = vector.broadcast %950 : vector<8x1xf32> to vector<8x8xf32>
    %952 = arith.subf %948, %951 : vector<8x8xf32>
    %953 = math.exp %952 : vector<8x8xf32>
    %cst_380 = arith.constant dense<0.000000e+00> : vector<8xf32>
    %954 = vector.multi_reduction <add>, %953, %cst_380 [1] : vector<8x8xf32> to vector<8xf32>
    %955 = vector.shape_cast %954 : vector<8xf32> to vector<8x1xf32>
    %cst_381 = arith.constant dense<0.000000e+00> : vector<8x8xf32>
    %956 = tpu.matmul %953, %943, %cst_381 {dimension_numbers = #tpu.dot_dimension_numbers<[1], [0], [0], [1], [0, 0, 1, 1], [], []>} : vector<8x8xf32>, vector<8x8xf32>, vector<8x8xf32> -> vector<8x8xf32>
    %957 = vector.broadcast %955 : vector<8x1xf32> to vector<8x8xf32>
    %958 = arith.divf %956, %957 : vector<8x8xf32>
    %959 = vector.extract_strided_slice %829 {offsets = [8, 0], sizes = [8, 32], strides = [1, 1]} : vector<32x32xf32> to vector<8x32xf32>
    %cst_382 = arith.constant dense<0.000000e+00> : vector<8x32xf32>
    %960 = tpu.matmul %958, %959, %cst_382 {dimension_numbers = #tpu.dot_dimension_numbers<[1], [0], [0], [1], [0, 0, 1, 1], [], []>} : vector<8x8xf32>, vector<8x32xf32>, vector<8x32xf32> -> vector<8x32xf32>
    %961 = arith.addf %940, %960 : vector<8x32xf32>
    %962 = vector.extract_strided_slice %918 {offsets = [0, 16], sizes = [8, 8], strides = [1, 1]} : vector<8x32xf32> to vector<8x8xf32>
    %963 = vector.extract_strided_slice %919 {offsets = [0, 16], sizes = [8, 8], strides = [1, 1]} : vector<8x32xf32> to vector<8x8xf32>
    %964 = vector.extract_strided_slice %920 {offsets = [0, 16], sizes = [8, 8], strides = [1, 1]} : vector<8x32xf32> to vector<8x8xf32>
    %cst_383 = arith.constant dense<0.000000e+00> : vector<8x8xf32>
    %965 = tpu.matmul %962, %963, %cst_383 {dimension_numbers = #tpu.dot_dimension_numbers<[1], [1], [0], [0], [0, 0, 1, 0], [], []>} : vector<8x8xf32>, vector<8x8xf32>, vector<8x8xf32> -> vector<8x8xf32>
    %cst_384 = arith.constant 0.353553385 : f32
    %966 = vector.broadcast %cst_384 : f32 to vector<8x8xf32>
    %967 = arith.mulf %965, %966 : vector<8x8xf32>
    %cst_385 = arith.constant 0xFF800000 : f32
    %968 = vector.broadcast %cst_385 : f32 to vector<8x8xf32>
    %969 = arith.select %20, %967, %968 : vector<8x8xi1>, vector<8x8xf32>
    %cst_386 = arith.constant dense<0xFF800000> : vector<8xf32>
    %970 = vector.multi_reduction <maximumf>, %969, %cst_386 [1] : vector<8x8xf32> to vector<8xf32>
    %971 = vector.shape_cast %970 : vector<8xf32> to vector<8x1xf32>
    %972 = vector.broadcast %971 : vector<8x1xf32> to vector<8x8xf32>
    %973 = arith.subf %969, %972 : vector<8x8xf32>
    %974 = math.exp %973 : vector<8x8xf32>
    %cst_387 = arith.constant dense<0.000000e+00> : vector<8xf32>
    %975 = vector.multi_reduction <add>, %974, %cst_387 [1] : vector<8x8xf32> to vector<8xf32>
    %976 = vector.shape_cast %975 : vector<8xf32> to vector<8x1xf32>
    %cst_388 = arith.constant dense<0.000000e+00> : vector<8x8xf32>
    %977 = tpu.matmul %974, %964, %cst_388 {dimension_numbers = #tpu.dot_dimension_numbers<[1], [0], [0], [1], [0, 0, 1, 1], [], []>} : vector<8x8xf32>, vector<8x8xf32>, vector<8x8xf32> -> vector<8x8xf32>
    %978 = vector.broadcast %976 : vector<8x1xf32> to vector<8x8xf32>
    %979 = arith.divf %977, %978 : vector<8x8xf32>
    %980 = vector.extract_strided_slice %829 {offsets = [16, 0], sizes = [8, 32], strides = [1, 1]} : vector<32x32xf32> to vector<8x32xf32>
    %cst_389 = arith.constant dense<0.000000e+00> : vector<8x32xf32>
    %981 = tpu.matmul %979, %980, %cst_389 {dimension_numbers = #tpu.dot_dimension_numbers<[1], [0], [0], [1], [0, 0, 1, 1], [], []>} : vector<8x8xf32>, vector<8x32xf32>, vector<8x32xf32> -> vector<8x32xf32>
    %982 = arith.addf %961, %981 : vector<8x32xf32>
    %983 = vector.extract_strided_slice %918 {offsets = [0, 24], sizes = [8, 8], strides = [1, 1]} : vector<8x32xf32> to vector<8x8xf32>
    %984 = vector.extract_strided_slice %919 {offsets = [0, 24], sizes = [8, 8], strides = [1, 1]} : vector<8x32xf32> to vector<8x8xf32>
    %985 = vector.extract_strided_slice %920 {offsets = [0, 24], sizes = [8, 8], strides = [1, 1]} : vector<8x32xf32> to vector<8x8xf32>
    %cst_390 = arith.constant dense<0.000000e+00> : vector<8x8xf32>
    %986 = tpu.matmul %983, %984, %cst_390 {dimension_numbers = #tpu.dot_dimension_numbers<[1], [1], [0], [0], [0, 0, 1, 0], [], []>} : vector<8x8xf32>, vector<8x8xf32>, vector<8x8xf32> -> vector<8x8xf32>
    %cst_391 = arith.constant 0.353553385 : f32
    %987 = vector.broadcast %cst_391 : f32 to vector<8x8xf32>
    %988 = arith.mulf %986, %987 : vector<8x8xf32>
    %cst_392 = arith.constant 0xFF800000 : f32
    %989 = vector.broadcast %cst_392 : f32 to vector<8x8xf32>
    %990 = arith.select %20, %988, %989 : vector<8x8xi1>, vector<8x8xf32>
    %cst_393 = arith.constant dense<0xFF800000> : vector<8xf32>
    %991 = vector.multi_reduction <maximumf>, %990, %cst_393 [1] : vector<8x8xf32> to vector<8xf32>
    %992 = vector.shape_cast %991 : vector<8xf32> to vector<8x1xf32>
    %993 = vector.broadcast %992 : vector<8x1xf32> to vector<8x8xf32>
    %994 = arith.subf %990, %993 : vector<8x8xf32>
    %995 = math.exp %994 : vector<8x8xf32>
    %cst_394 = arith.constant dense<0.000000e+00> : vector<8xf32>
    %996 = vector.multi_reduction <add>, %995, %cst_394 [1] : vector<8x8xf32> to vector<8xf32>
    %997 = vector.shape_cast %996 : vector<8xf32> to vector<8x1xf32>
    %cst_395 = arith.constant dense<0.000000e+00> : vector<8x8xf32>
    %998 = tpu.matmul %995, %985, %cst_395 {dimension_numbers = #tpu.dot_dimension_numbers<[1], [0], [0], [1], [0, 0, 1, 1], [], []>} : vector<8x8xf32>, vector<8x8xf32>, vector<8x8xf32> -> vector<8x8xf32>
    %999 = vector.broadcast %997 : vector<8x1xf32> to vector<8x8xf32>
    %1000 = arith.divf %998, %999 : vector<8x8xf32>
    %1001 = vector.extract_strided_slice %829 {offsets = [24, 0], sizes = [8, 32], strides = [1, 1]} : vector<32x32xf32> to vector<8x32xf32>
    %cst_396 = arith.constant dense<0.000000e+00> : vector<8x32xf32>
    %1002 = tpu.matmul %1000, %1001, %cst_396 {dimension_numbers = #tpu.dot_dimension_numbers<[1], [0], [0], [1], [0, 0, 1, 1], [], []>} : vector<8x8xf32>, vector<8x32xf32>, vector<8x32xf32> -> vector<8x32xf32>
    %1003 = arith.addf %982, %1002 : vector<8x32xf32>
    %1004 = tpu.concatenate %917, %1003 in 0 : vector<8x32xf32>, vector<8x32xf32> -> vector<16x32xf32>
    %1005 = vector.broadcast %831 : vector<1x32xf32> to vector<16x32xf32>
    %1006 = arith.addf %1004, %1005 : vector<16x32xf32>
    %1007 = arith.addf %785, %1006 : vector<16x32xf32>
    %c0_397 = arith.constant 0 : index
    %c0_398 = arith.constant 0 : index
    %c0_399 = arith.constant 0 : index
    %1008 = vector.load %arg34[%c0_397, %c0_398, %c0_399] : memref<2x1x32xf32, #tpu.memory_space<vmem>>, vector<1x1x32xf32>
    %1009 = vector.shape_cast %1008 : vector<1x1x32xf32> to vector<1x32xf32>
    %c0_400 = arith.constant 0 : index
    %c0_401 = arith.constant 0 : index
    %c0_402 = arith.constant 0 : index
    %1010 = vector.load %arg35[%c0_400, %c0_401, %c0_402] : memref<2x1x32xf32, #tpu.memory_space<vmem>>, vector<1x1x32xf32>
    %1011 = vector.shape_cast %1010 : vector<1x1x32xf32> to vector<1x32xf32>
    %cst_403 = arith.constant dense<0.000000e+00> : vector<16xf32>
    %1012 = vector.multi_reduction <add>, %1007, %cst_403 [1] : vector<16x32xf32> to vector<16xf32>
    %1013 = vector.shape_cast %1012 : vector<16xf32> to vector<16x1xf32>
    %cst_404 = arith.constant 3.200000e+01 : f32
    %1014 = vector.broadcast %cst_404 : f32 to vector<16x1xf32>
    %1015 = arith.divf %1013, %1014 : vector<16x1xf32>
    %1016 = vector.broadcast %1015 : vector<16x1xf32> to vector<16x32xf32>
    %1017 = arith.subf %1007, %1016 : vector<16x32xf32>
    %1018 = arith.mulf %1017, %1017 : vector<16x32xf32>
    %cst_405 = arith.constant dense<0.000000e+00> : vector<16xf32>
    %1019 = vector.multi_reduction <add>, %1018, %cst_405 [1] : vector<16x32xf32> to vector<16xf32>
    %1020 = vector.shape_cast %1019 : vector<16xf32> to vector<16x1xf32>
    %cst_406 = arith.constant 3.200000e+01 : f32
    %1021 = vector.broadcast %cst_406 : f32 to vector<16x1xf32>
    %1022 = arith.divf %1020, %1021 : vector<16x1xf32>
    %1023 = vector.broadcast %1015 : vector<16x1xf32> to vector<16x32xf32>
    %1024 = arith.subf %1007, %1023 : vector<16x32xf32>
    %cst_407 = arith.constant 9.99999974E-6 : f32
    %1025 = vector.broadcast %cst_407 : f32 to vector<16x1xf32>
    %1026 = arith.addf %1022, %1025 : vector<16x1xf32>
    %1027 = math.rsqrt %1026 : vector<16x1xf32>
    %1028 = vector.broadcast %1027 : vector<16x1xf32> to vector<16x32xf32>
    %1029 = arith.mulf %1024, %1028 : vector<16x32xf32>
    %1030 = vector.broadcast %1009 : vector<1x32xf32> to vector<16x32xf32>
    %1031 = arith.mulf %1029, %1030 : vector<16x32xf32>
    %1032 = vector.broadcast %1011 : vector<1x32xf32> to vector<16x32xf32>
    %1033 = arith.addf %1031, %1032 : vector<16x32xf32>
    %c0_408 = arith.constant 0 : index
    %c0_409 = arith.constant 0 : index
    %c0_410 = arith.constant 0 : index
    %1034 = vector.load %arg36[%c0_408, %c0_409, %c0_410] : memref<2x32x128xf32, #tpu.memory_space<vmem>>, vector<1x32x128xf32>
    %1035 = vector.shape_cast %1034 : vector<1x32x128xf32> to vector<32x128xf32>
    %cst_411 = arith.constant dense<0.000000e+00> : vector<16x128xf32>
    %1036 = tpu.matmul %1033, %1035, %cst_411 {dimension_numbers = #tpu.dot_dimension_numbers<[1], [0], [0], [1], [0, 0, 1, 1], [], []>} : vector<16x32xf32>, vector<32x128xf32>, vector<16x128xf32> -> vector<16x128xf32>
    %c0_412 = arith.constant 0 : index
    %c0_413 = arith.constant 0 : index
    %c0_414 = arith.constant 0 : index
    %1037 = vector.load %arg37[%c0_412, %c0_413, %c0_414] : memref<2x1x128xf32, #tpu.memory_space<vmem>>, vector<1x1x128xf32>
    %1038 = vector.shape_cast %1037 : vector<1x1x128xf32> to vector<1x128xf32>
    %1039 = vector.broadcast %1038 : vector<1x128xf32> to vector<16x128xf32>
    %1040 = arith.addf %1036, %1039 : vector<16x128xf32>
    %cst_415 = arith.constant 0.000000e+00 : f32
    %1041 = vector.broadcast %cst_415 : f32 to vector<16x128xf32>
    %1042 = arith.maximumf %1040, %1041 : vector<16x128xf32>
    %c0_416 = arith.constant 0 : index
    %c0_417 = arith.constant 0 : index
    %c0_418 = arith.constant 0 : index
    %1043 = vector.load %arg38[%c0_416, %c0_417, %c0_418] : memref<2x128x32xf32, #tpu.memory_space<vmem>>, vector<1x128x32xf32>
    %1044 = vector.shape_cast %1043 : vector<1x128x32xf32> to vector<128x32xf32>
    %cst_419 = arith.constant dense<0.000000e+00> : vector<16x32xf32>
    %1045 = tpu.matmul %1042, %1044, %cst_419 {dimension_numbers = #tpu.dot_dimension_numbers<[1], [0], [0], [1], [0, 0, 1, 1], [], []>} : vector<16x128xf32>, vector<128x32xf32>, vector<16x32xf32> -> vector<16x32xf32>
    %1046 = arith.addf %1007, %1045 : vector<16x32xf32>
    %c0_420 = arith.constant 0 : index
    %c0_421 = arith.constant 0 : index
    %c0_422 = arith.constant 0 : index
    %1047 = vector.load %arg39[%c0_420, %c0_421, %c0_422] : memref<2x1x32xf32, #tpu.memory_space<vmem>>, vector<1x1x32xf32>
    %1048 = vector.shape_cast %1047 : vector<1x1x32xf32> to vector<1x32xf32>
    %1049 = vector.broadcast %1048 : vector<1x32xf32> to vector<16x32xf32>
    %1050 = arith.addf %1046, %1049 : vector<16x32xf32>
    %c1_423 = arith.constant 1 : index
    %c0_424 = arith.constant 0 : index
    %c0_425 = arith.constant 0 : index
    %1051 = vector.load %arg20[%c1_423, %c0_424, %c0_425] : memref<2x1x32xf32, #tpu.memory_space<vmem>>, vector<1x1x32xf32>
    %1052 = vector.shape_cast %1051 : vector<1x1x32xf32> to vector<1x32xf32>
    %c1_426 = arith.constant 1 : index
    %c0_427 = arith.constant 0 : index
    %c0_428 = arith.constant 0 : index
    %1053 = vector.load %arg21[%c1_426, %c0_427, %c0_428] : memref<2x1x32xf32, #tpu.memory_space<vmem>>, vector<1x1x32xf32>
    %1054 = vector.shape_cast %1053 : vector<1x1x32xf32> to vector<1x32xf32>
    %cst_429 = arith.constant dense<0.000000e+00> : vector<16xf32>
    %1055 = vector.multi_reduction <add>, %1050, %cst_429 [1] : vector<16x32xf32> to vector<16xf32>
    %1056 = vector.shape_cast %1055 : vector<16xf32> to vector<16x1xf32>
    %cst_430 = arith.constant 3.200000e+01 : f32
    %1057 = vector.broadcast %cst_430 : f32 to vector<16x1xf32>
    %1058 = arith.divf %1056, %1057 : vector<16x1xf32>
    %1059 = vector.broadcast %1058 : vector<16x1xf32> to vector<16x32xf32>
    %1060 = arith.subf %1050, %1059 : vector<16x32xf32>
    %1061 = arith.mulf %1060, %1060 : vector<16x32xf32>
    %cst_431 = arith.constant dense<0.000000e+00> : vector<16xf32>
    %1062 = vector.multi_reduction <add>, %1061, %cst_431 [1] : vector<16x32xf32> to vector<16xf32>
    %1063 = vector.shape_cast %1062 : vector<16xf32> to vector<16x1xf32>
    %cst_432 = arith.constant 3.200000e+01 : f32
    %1064 = vector.broadcast %cst_432 : f32 to vector<16x1xf32>
    %1065 = arith.divf %1063, %1064 : vector<16x1xf32>
    %1066 = vector.broadcast %1058 : vector<16x1xf32> to vector<16x32xf32>
    %1067 = arith.subf %1050, %1066 : vector<16x32xf32>
    %cst_433 = arith.constant 9.99999974E-6 : f32
    %1068 = vector.broadcast %cst_433 : f32 to vector<16x1xf32>
    %1069 = arith.addf %1065, %1068 : vector<16x1xf32>
    %1070 = math.rsqrt %1069 : vector<16x1xf32>
    %1071 = vector.broadcast %1070 : vector<16x1xf32> to vector<16x32xf32>
    %1072 = arith.mulf %1067, %1071 : vector<16x32xf32>
    %1073 = vector.broadcast %1052 : vector<1x32xf32> to vector<16x32xf32>
    %1074 = arith.mulf %1072, %1073 : vector<16x32xf32>
    %1075 = vector.broadcast %1054 : vector<1x32xf32> to vector<16x32xf32>
    %1076 = arith.addf %1074, %1075 : vector<16x32xf32>
    %c1_434 = arith.constant 1 : index
    %c0_435 = arith.constant 0 : index
    %c0_436 = arith.constant 0 : index
    %1077 = vector.load %arg22[%c1_434, %c0_435, %c0_436] : memref<2x32x96xf32, #tpu.memory_space<vmem>>, vector<1x32x96xf32>
    %1078 = vector.shape_cast %1077 : vector<1x32x96xf32> to vector<32x96xf32>
    %cst_437 = arith.constant dense<0.000000e+00> : vector<16x96xf32>
    %1079 = tpu.matmul %1076, %1078, %cst_437 {dimension_numbers = #tpu.dot_dimension_numbers<[1], [0], [0], [1], [0, 0, 1, 1], [], []>} : vector<16x32xf32>, vector<32x96xf32>, vector<16x96xf32> -> vector<16x96xf32>
    %c1_438 = arith.constant 1 : index
    %c0_439 = arith.constant 0 : index
    %c0_440 = arith.constant 0 : index
    %1080 = vector.load %arg23[%c1_438, %c0_439, %c0_440] : memref<2x1x96xf32, #tpu.memory_space<vmem>>, vector<1x1x96xf32>
    %1081 = vector.shape_cast %1080 : vector<1x1x96xf32> to vector<1x96xf32>
    %1082 = vector.broadcast %1081 : vector<1x96xf32> to vector<16x96xf32>
    %1083 = arith.addf %1079, %1082 : vector<16x96xf32>
    %1084 = vector.extract_strided_slice %1083 {offsets = [0, 0], sizes = [16, 32], strides = [1, 1]} : vector<16x96xf32> to vector<16x32xf32>
    %1085 = vector.extract_strided_slice %1083 {offsets = [0, 32], sizes = [16, 32], strides = [1, 1]} : vector<16x96xf32> to vector<16x32xf32>
    %1086 = vector.extract_strided_slice %1083 {offsets = [0, 64], sizes = [16, 32], strides = [1, 1]} : vector<16x96xf32> to vector<16x32xf32>
    %c1_441 = arith.constant 1 : index
    %c0_442 = arith.constant 0 : index
    %c0_443 = arith.constant 0 : index
    %1087 = vector.load %arg24[%c1_441, %c0_442, %c0_443] : memref<2x32x32xf32, #tpu.memory_space<vmem>>, vector<1x32x32xf32>
    %1088 = vector.shape_cast %1087 : vector<1x32x32xf32> to vector<32x32xf32>
    %c1_444 = arith.constant 1 : index
    %c0_445 = arith.constant 0 : index
    %c0_446 = arith.constant 0 : index
    %1089 = vector.load %arg25[%c1_444, %c0_445, %c0_446] : memref<2x1x32xf32, #tpu.memory_space<vmem>>, vector<1x1x32xf32>
    %1090 = vector.shape_cast %1089 : vector<1x1x32xf32> to vector<1x32xf32>
    %1091 = vector.extract_strided_slice %1084 {offsets = [0, 0], sizes = [8, 32], strides = [1, 1]} : vector<16x32xf32> to vector<8x32xf32>
    %1092 = vector.extract_strided_slice %1085 {offsets = [0, 0], sizes = [8, 32], strides = [1, 1]} : vector<16x32xf32> to vector<8x32xf32>
    %1093 = vector.extract_strided_slice %1086 {offsets = [0, 0], sizes = [8, 32], strides = [1, 1]} : vector<16x32xf32> to vector<8x32xf32>
    %1094 = vector.extract_strided_slice %1091 {offsets = [0, 0], sizes = [8, 8], strides = [1, 1]} : vector<8x32xf32> to vector<8x8xf32>
    %1095 = vector.extract_strided_slice %1092 {offsets = [0, 0], sizes = [8, 8], strides = [1, 1]} : vector<8x32xf32> to vector<8x8xf32>
    %1096 = vector.extract_strided_slice %1093 {offsets = [0, 0], sizes = [8, 8], strides = [1, 1]} : vector<8x32xf32> to vector<8x8xf32>
    %cst_447 = arith.constant dense<0.000000e+00> : vector<8x8xf32>
    %1097 = tpu.matmul %1094, %1095, %cst_447 {dimension_numbers = #tpu.dot_dimension_numbers<[1], [1], [0], [0], [0, 0, 1, 0], [], []>} : vector<8x8xf32>, vector<8x8xf32>, vector<8x8xf32> -> vector<8x8xf32>
    %cst_448 = arith.constant 0.353553385 : f32
    %1098 = vector.broadcast %cst_448 : f32 to vector<8x8xf32>
    %1099 = arith.mulf %1097, %1098 : vector<8x8xf32>
    %cst_449 = arith.constant 0xFF800000 : f32
    %1100 = vector.broadcast %cst_449 : f32 to vector<8x8xf32>
    %1101 = arith.select %23, %1099, %1100 : vector<8x8xi1>, vector<8x8xf32>
    %cst_450 = arith.constant dense<0xFF800000> : vector<8xf32>
    %1102 = vector.multi_reduction <maximumf>, %1101, %cst_450 [1] : vector<8x8xf32> to vector<8xf32>
    %1103 = vector.shape_cast %1102 : vector<8xf32> to vector<8x1xf32>
    %1104 = vector.broadcast %1103 : vector<8x1xf32> to vector<8x8xf32>
    %1105 = arith.subf %1101, %1104 : vector<8x8xf32>
    %1106 = math.exp %1105 : vector<8x8xf32>
    %cst_451 = arith.constant dense<0.000000e+00> : vector<8xf32>
    %1107 = vector.multi_reduction <add>, %1106, %cst_451 [1] : vector<8x8xf32> to vector<8xf32>
    %1108 = vector.shape_cast %1107 : vector<8xf32> to vector<8x1xf32>
    %cst_452 = arith.constant dense<0.000000e+00> : vector<8x8xf32>
    %1109 = tpu.matmul %1106, %1096, %cst_452 {dimension_numbers = #tpu.dot_dimension_numbers<[1], [0], [0], [1], [0, 0, 1, 1], [], []>} : vector<8x8xf32>, vector<8x8xf32>, vector<8x8xf32> -> vector<8x8xf32>
    %1110 = vector.broadcast %1108 : vector<8x1xf32> to vector<8x8xf32>
    %1111 = arith.divf %1109, %1110 : vector<8x8xf32>
    %1112 = vector.extract_strided_slice %1088 {offsets = [0, 0], sizes = [8, 32], strides = [1, 1]} : vector<32x32xf32> to vector<8x32xf32>
    %cst_453 = arith.constant dense<0.000000e+00> : vector<8x32xf32>
    %1113 = tpu.matmul %1111, %1112, %cst_453 {dimension_numbers = #tpu.dot_dimension_numbers<[1], [0], [0], [1], [0, 0, 1, 1], [], []>} : vector<8x8xf32>, vector<8x32xf32>, vector<8x32xf32> -> vector<8x32xf32>
    %1114 = vector.extract_strided_slice %1091 {offsets = [0, 8], sizes = [8, 8], strides = [1, 1]} : vector<8x32xf32> to vector<8x8xf32>
    %1115 = vector.extract_strided_slice %1092 {offsets = [0, 8], sizes = [8, 8], strides = [1, 1]} : vector<8x32xf32> to vector<8x8xf32>
    %1116 = vector.extract_strided_slice %1093 {offsets = [0, 8], sizes = [8, 8], strides = [1, 1]} : vector<8x32xf32> to vector<8x8xf32>
    %cst_454 = arith.constant dense<0.000000e+00> : vector<8x8xf32>
    %1117 = tpu.matmul %1114, %1115, %cst_454 {dimension_numbers = #tpu.dot_dimension_numbers<[1], [1], [0], [0], [0, 0, 1, 0], [], []>} : vector<8x8xf32>, vector<8x8xf32>, vector<8x8xf32> -> vector<8x8xf32>
    %cst_455 = arith.constant 0.353553385 : f32
    %1118 = vector.broadcast %cst_455 : f32 to vector<8x8xf32>
    %1119 = arith.mulf %1117, %1118 : vector<8x8xf32>
    %cst_456 = arith.constant 0xFF800000 : f32
    %1120 = vector.broadcast %cst_456 : f32 to vector<8x8xf32>
    %1121 = arith.select %23, %1119, %1120 : vector<8x8xi1>, vector<8x8xf32>
    %cst_457 = arith.constant dense<0xFF800000> : vector<8xf32>
    %1122 = vector.multi_reduction <maximumf>, %1121, %cst_457 [1] : vector<8x8xf32> to vector<8xf32>
    %1123 = vector.shape_cast %1122 : vector<8xf32> to vector<8x1xf32>
    %1124 = vector.broadcast %1123 : vector<8x1xf32> to vector<8x8xf32>
    %1125 = arith.subf %1121, %1124 : vector<8x8xf32>
    %1126 = math.exp %1125 : vector<8x8xf32>
    %cst_458 = arith.constant dense<0.000000e+00> : vector<8xf32>
    %1127 = vector.multi_reduction <add>, %1126, %cst_458 [1] : vector<8x8xf32> to vector<8xf32>
    %1128 = vector.shape_cast %1127 : vector<8xf32> to vector<8x1xf32>
    %cst_459 = arith.constant dense<0.000000e+00> : vector<8x8xf32>
    %1129 = tpu.matmul %1126, %1116, %cst_459 {dimension_numbers = #tpu.dot_dimension_numbers<[1], [0], [0], [1], [0, 0, 1, 1], [], []>} : vector<8x8xf32>, vector<8x8xf32>, vector<8x8xf32> -> vector<8x8xf32>
    %1130 = vector.broadcast %1128 : vector<8x1xf32> to vector<8x8xf32>
    %1131 = arith.divf %1129, %1130 : vector<8x8xf32>
    %1132 = vector.extract_strided_slice %1088 {offsets = [8, 0], sizes = [8, 32], strides = [1, 1]} : vector<32x32xf32> to vector<8x32xf32>
    %cst_460 = arith.constant dense<0.000000e+00> : vector<8x32xf32>
    %1133 = tpu.matmul %1131, %1132, %cst_460 {dimension_numbers = #tpu.dot_dimension_numbers<[1], [0], [0], [1], [0, 0, 1, 1], [], []>} : vector<8x8xf32>, vector<8x32xf32>, vector<8x32xf32> -> vector<8x32xf32>
    %1134 = arith.addf %1113, %1133 : vector<8x32xf32>
    %1135 = vector.extract_strided_slice %1091 {offsets = [0, 16], sizes = [8, 8], strides = [1, 1]} : vector<8x32xf32> to vector<8x8xf32>
    %1136 = vector.extract_strided_slice %1092 {offsets = [0, 16], sizes = [8, 8], strides = [1, 1]} : vector<8x32xf32> to vector<8x8xf32>
    %1137 = vector.extract_strided_slice %1093 {offsets = [0, 16], sizes = [8, 8], strides = [1, 1]} : vector<8x32xf32> to vector<8x8xf32>
    %cst_461 = arith.constant dense<0.000000e+00> : vector<8x8xf32>
    %1138 = tpu.matmul %1135, %1136, %cst_461 {dimension_numbers = #tpu.dot_dimension_numbers<[1], [1], [0], [0], [0, 0, 1, 0], [], []>} : vector<8x8xf32>, vector<8x8xf32>, vector<8x8xf32> -> vector<8x8xf32>
    %cst_462 = arith.constant 0.353553385 : f32
    %1139 = vector.broadcast %cst_462 : f32 to vector<8x8xf32>
    %1140 = arith.mulf %1138, %1139 : vector<8x8xf32>
    %cst_463 = arith.constant 0xFF800000 : f32
    %1141 = vector.broadcast %cst_463 : f32 to vector<8x8xf32>
    %1142 = arith.select %23, %1140, %1141 : vector<8x8xi1>, vector<8x8xf32>
    %cst_464 = arith.constant dense<0xFF800000> : vector<8xf32>
    %1143 = vector.multi_reduction <maximumf>, %1142, %cst_464 [1] : vector<8x8xf32> to vector<8xf32>
    %1144 = vector.shape_cast %1143 : vector<8xf32> to vector<8x1xf32>
    %1145 = vector.broadcast %1144 : vector<8x1xf32> to vector<8x8xf32>
    %1146 = arith.subf %1142, %1145 : vector<8x8xf32>
    %1147 = math.exp %1146 : vector<8x8xf32>
    %cst_465 = arith.constant dense<0.000000e+00> : vector<8xf32>
    %1148 = vector.multi_reduction <add>, %1147, %cst_465 [1] : vector<8x8xf32> to vector<8xf32>
    %1149 = vector.shape_cast %1148 : vector<8xf32> to vector<8x1xf32>
    %cst_466 = arith.constant dense<0.000000e+00> : vector<8x8xf32>
    %1150 = tpu.matmul %1147, %1137, %cst_466 {dimension_numbers = #tpu.dot_dimension_numbers<[1], [0], [0], [1], [0, 0, 1, 1], [], []>} : vector<8x8xf32>, vector<8x8xf32>, vector<8x8xf32> -> vector<8x8xf32>
    %1151 = vector.broadcast %1149 : vector<8x1xf32> to vector<8x8xf32>
    %1152 = arith.divf %1150, %1151 : vector<8x8xf32>
    %1153 = vector.extract_strided_slice %1088 {offsets = [16, 0], sizes = [8, 32], strides = [1, 1]} : vector<32x32xf32> to vector<8x32xf32>
    %cst_467 = arith.constant dense<0.000000e+00> : vector<8x32xf32>
    %1154 = tpu.matmul %1152, %1153, %cst_467 {dimension_numbers = #tpu.dot_dimension_numbers<[1], [0], [0], [1], [0, 0, 1, 1], [], []>} : vector<8x8xf32>, vector<8x32xf32>, vector<8x32xf32> -> vector<8x32xf32>
    %1155 = arith.addf %1134, %1154 : vector<8x32xf32>
    %1156 = vector.extract_strided_slice %1091 {offsets = [0, 24], sizes = [8, 8], strides = [1, 1]} : vector<8x32xf32> to vector<8x8xf32>
    %1157 = vector.extract_strided_slice %1092 {offsets = [0, 24], sizes = [8, 8], strides = [1, 1]} : vector<8x32xf32> to vector<8x8xf32>
    %1158 = vector.extract_strided_slice %1093 {offsets = [0, 24], sizes = [8, 8], strides = [1, 1]} : vector<8x32xf32> to vector<8x8xf32>
    %cst_468 = arith.constant dense<0.000000e+00> : vector<8x8xf32>
    %1159 = tpu.matmul %1156, %1157, %cst_468 {dimension_numbers = #tpu.dot_dimension_numbers<[1], [1], [0], [0], [0, 0, 1, 0], [], []>} : vector<8x8xf32>, vector<8x8xf32>, vector<8x8xf32> -> vector<8x8xf32>
    %cst_469 = arith.constant 0.353553385 : f32
    %1160 = vector.broadcast %cst_469 : f32 to vector<8x8xf32>
    %1161 = arith.mulf %1159, %1160 : vector<8x8xf32>
    %cst_470 = arith.constant 0xFF800000 : f32
    %1162 = vector.broadcast %cst_470 : f32 to vector<8x8xf32>
    %1163 = arith.select %23, %1161, %1162 : vector<8x8xi1>, vector<8x8xf32>
    %cst_471 = arith.constant dense<0xFF800000> : vector<8xf32>
    %1164 = vector.multi_reduction <maximumf>, %1163, %cst_471 [1] : vector<8x8xf32> to vector<8xf32>
    %1165 = vector.shape_cast %1164 : vector<8xf32> to vector<8x1xf32>
    %1166 = vector.broadcast %1165 : vector<8x1xf32> to vector<8x8xf32>
    %1167 = arith.subf %1163, %1166 : vector<8x8xf32>
    %1168 = math.exp %1167 : vector<8x8xf32>
    %cst_472 = arith.constant dense<0.000000e+00> : vector<8xf32>
    %1169 = vector.multi_reduction <add>, %1168, %cst_472 [1] : vector<8x8xf32> to vector<8xf32>
    %1170 = vector.shape_cast %1169 : vector<8xf32> to vector<8x1xf32>
    %cst_473 = arith.constant dense<0.000000e+00> : vector<8x8xf32>
    %1171 = tpu.matmul %1168, %1158, %cst_473 {dimension_numbers = #tpu.dot_dimension_numbers<[1], [0], [0], [1], [0, 0, 1, 1], [], []>} : vector<8x8xf32>, vector<8x8xf32>, vector<8x8xf32> -> vector<8x8xf32>
    %1172 = vector.broadcast %1170 : vector<8x1xf32> to vector<8x8xf32>
    %1173 = arith.divf %1171, %1172 : vector<8x8xf32>
    %1174 = vector.extract_strided_slice %1088 {offsets = [24, 0], sizes = [8, 32], strides = [1, 1]} : vector<32x32xf32> to vector<8x32xf32>
    %cst_474 = arith.constant dense<0.000000e+00> : vector<8x32xf32>
    %1175 = tpu.matmul %1173, %1174, %cst_474 {dimension_numbers = #tpu.dot_dimension_numbers<[1], [0], [0], [1], [0, 0, 1, 1], [], []>} : vector<8x8xf32>, vector<8x32xf32>, vector<8x32xf32> -> vector<8x32xf32>
    %1176 = arith.addf %1155, %1175 : vector<8x32xf32>
    %1177 = vector.extract_strided_slice %1084 {offsets = [8, 0], sizes = [8, 32], strides = [1, 1]} : vector<16x32xf32> to vector<8x32xf32>
    %1178 = vector.extract_strided_slice %1085 {offsets = [8, 0], sizes = [8, 32], strides = [1, 1]} : vector<16x32xf32> to vector<8x32xf32>
    %1179 = vector.extract_strided_slice %1086 {offsets = [8, 0], sizes = [8, 32], strides = [1, 1]} : vector<16x32xf32> to vector<8x32xf32>
    %1180 = vector.extract_strided_slice %1177 {offsets = [0, 0], sizes = [8, 8], strides = [1, 1]} : vector<8x32xf32> to vector<8x8xf32>
    %1181 = vector.extract_strided_slice %1178 {offsets = [0, 0], sizes = [8, 8], strides = [1, 1]} : vector<8x32xf32> to vector<8x8xf32>
    %1182 = vector.extract_strided_slice %1179 {offsets = [0, 0], sizes = [8, 8], strides = [1, 1]} : vector<8x32xf32> to vector<8x8xf32>
    %cst_475 = arith.constant dense<0.000000e+00> : vector<8x8xf32>
    %1183 = tpu.matmul %1180, %1181, %cst_475 {dimension_numbers = #tpu.dot_dimension_numbers<[1], [1], [0], [0], [0, 0, 1, 0], [], []>} : vector<8x8xf32>, vector<8x8xf32>, vector<8x8xf32> -> vector<8x8xf32>
    %cst_476 = arith.constant 0.353553385 : f32
    %1184 = vector.broadcast %cst_476 : f32 to vector<8x8xf32>
    %1185 = arith.mulf %1183, %1184 : vector<8x8xf32>
    %cst_477 = arith.constant 0xFF800000 : f32
    %1186 = vector.broadcast %cst_477 : f32 to vector<8x8xf32>
    %1187 = arith.select %23, %1185, %1186 : vector<8x8xi1>, vector<8x8xf32>
    %cst_478 = arith.constant dense<0xFF800000> : vector<8xf32>
    %1188 = vector.multi_reduction <maximumf>, %1187, %cst_478 [1] : vector<8x8xf32> to vector<8xf32>
    %1189 = vector.shape_cast %1188 : vector<8xf32> to vector<8x1xf32>
    %1190 = vector.broadcast %1189 : vector<8x1xf32> to vector<8x8xf32>
    %1191 = arith.subf %1187, %1190 : vector<8x8xf32>
    %1192 = math.exp %1191 : vector<8x8xf32>
    %cst_479 = arith.constant dense<0.000000e+00> : vector<8xf32>
    %1193 = vector.multi_reduction <add>, %1192, %cst_479 [1] : vector<8x8xf32> to vector<8xf32>
    %1194 = vector.shape_cast %1193 : vector<8xf32> to vector<8x1xf32>
    %cst_480 = arith.constant dense<0.000000e+00> : vector<8x8xf32>
    %1195 = tpu.matmul %1192, %1182, %cst_480 {dimension_numbers = #tpu.dot_dimension_numbers<[1], [0], [0], [1], [0, 0, 1, 1], [], []>} : vector<8x8xf32>, vector<8x8xf32>, vector<8x8xf32> -> vector<8x8xf32>
    %1196 = vector.broadcast %1194 : vector<8x1xf32> to vector<8x8xf32>
    %1197 = arith.divf %1195, %1196 : vector<8x8xf32>
    %1198 = vector.extract_strided_slice %1088 {offsets = [0, 0], sizes = [8, 32], strides = [1, 1]} : vector<32x32xf32> to vector<8x32xf32>
    %cst_481 = arith.constant dense<0.000000e+00> : vector<8x32xf32>
    %1199 = tpu.matmul %1197, %1198, %cst_481 {dimension_numbers = #tpu.dot_dimension_numbers<[1], [0], [0], [1], [0, 0, 1, 1], [], []>} : vector<8x8xf32>, vector<8x32xf32>, vector<8x32xf32> -> vector<8x32xf32>
    %1200 = vector.extract_strided_slice %1177 {offsets = [0, 8], sizes = [8, 8], strides = [1, 1]} : vector<8x32xf32> to vector<8x8xf32>
    %1201 = vector.extract_strided_slice %1178 {offsets = [0, 8], sizes = [8, 8], strides = [1, 1]} : vector<8x32xf32> to vector<8x8xf32>
    %1202 = vector.extract_strided_slice %1179 {offsets = [0, 8], sizes = [8, 8], strides = [1, 1]} : vector<8x32xf32> to vector<8x8xf32>
    %cst_482 = arith.constant dense<0.000000e+00> : vector<8x8xf32>
    %1203 = tpu.matmul %1200, %1201, %cst_482 {dimension_numbers = #tpu.dot_dimension_numbers<[1], [1], [0], [0], [0, 0, 1, 0], [], []>} : vector<8x8xf32>, vector<8x8xf32>, vector<8x8xf32> -> vector<8x8xf32>
    %cst_483 = arith.constant 0.353553385 : f32
    %1204 = vector.broadcast %cst_483 : f32 to vector<8x8xf32>
    %1205 = arith.mulf %1203, %1204 : vector<8x8xf32>
    %cst_484 = arith.constant 0xFF800000 : f32
    %1206 = vector.broadcast %cst_484 : f32 to vector<8x8xf32>
    %1207 = arith.select %23, %1205, %1206 : vector<8x8xi1>, vector<8x8xf32>
    %cst_485 = arith.constant dense<0xFF800000> : vector<8xf32>
    %1208 = vector.multi_reduction <maximumf>, %1207, %cst_485 [1] : vector<8x8xf32> to vector<8xf32>
    %1209 = vector.shape_cast %1208 : vector<8xf32> to vector<8x1xf32>
    %1210 = vector.broadcast %1209 : vector<8x1xf32> to vector<8x8xf32>
    %1211 = arith.subf %1207, %1210 : vector<8x8xf32>
    %1212 = math.exp %1211 : vector<8x8xf32>
    %cst_486 = arith.constant dense<0.000000e+00> : vector<8xf32>
    %1213 = vector.multi_reduction <add>, %1212, %cst_486 [1] : vector<8x8xf32> to vector<8xf32>
    %1214 = vector.shape_cast %1213 : vector<8xf32> to vector<8x1xf32>
    %cst_487 = arith.constant dense<0.000000e+00> : vector<8x8xf32>
    %1215 = tpu.matmul %1212, %1202, %cst_487 {dimension_numbers = #tpu.dot_dimension_numbers<[1], [0], [0], [1], [0, 0, 1, 1], [], []>} : vector<8x8xf32>, vector<8x8xf32>, vector<8x8xf32> -> vector<8x8xf32>
    %1216 = vector.broadcast %1214 : vector<8x1xf32> to vector<8x8xf32>
    %1217 = arith.divf %1215, %1216 : vector<8x8xf32>
    %1218 = vector.extract_strided_slice %1088 {offsets = [8, 0], sizes = [8, 32], strides = [1, 1]} : vector<32x32xf32> to vector<8x32xf32>
    %cst_488 = arith.constant dense<0.000000e+00> : vector<8x32xf32>
    %1219 = tpu.matmul %1217, %1218, %cst_488 {dimension_numbers = #tpu.dot_dimension_numbers<[1], [0], [0], [1], [0, 0, 1, 1], [], []>} : vector<8x8xf32>, vector<8x32xf32>, vector<8x32xf32> -> vector<8x32xf32>
    %1220 = arith.addf %1199, %1219 : vector<8x32xf32>
    %1221 = vector.extract_strided_slice %1177 {offsets = [0, 16], sizes = [8, 8], strides = [1, 1]} : vector<8x32xf32> to vector<8x8xf32>
    %1222 = vector.extract_strided_slice %1178 {offsets = [0, 16], sizes = [8, 8], strides = [1, 1]} : vector<8x32xf32> to vector<8x8xf32>
    %1223 = vector.extract_strided_slice %1179 {offsets = [0, 16], sizes = [8, 8], strides = [1, 1]} : vector<8x32xf32> to vector<8x8xf32>
    %cst_489 = arith.constant dense<0.000000e+00> : vector<8x8xf32>
    %1224 = tpu.matmul %1221, %1222, %cst_489 {dimension_numbers = #tpu.dot_dimension_numbers<[1], [1], [0], [0], [0, 0, 1, 0], [], []>} : vector<8x8xf32>, vector<8x8xf32>, vector<8x8xf32> -> vector<8x8xf32>
    %cst_490 = arith.constant 0.353553385 : f32
    %1225 = vector.broadcast %cst_490 : f32 to vector<8x8xf32>
    %1226 = arith.mulf %1224, %1225 : vector<8x8xf32>
    %cst_491 = arith.constant 0xFF800000 : f32
    %1227 = vector.broadcast %cst_491 : f32 to vector<8x8xf32>
    %1228 = arith.select %23, %1226, %1227 : vector<8x8xi1>, vector<8x8xf32>
    %cst_492 = arith.constant dense<0xFF800000> : vector<8xf32>
    %1229 = vector.multi_reduction <maximumf>, %1228, %cst_492 [1] : vector<8x8xf32> to vector<8xf32>
    %1230 = vector.shape_cast %1229 : vector<8xf32> to vector<8x1xf32>
    %1231 = vector.broadcast %1230 : vector<8x1xf32> to vector<8x8xf32>
    %1232 = arith.subf %1228, %1231 : vector<8x8xf32>
    %1233 = math.exp %1232 : vector<8x8xf32>
    %cst_493 = arith.constant dense<0.000000e+00> : vector<8xf32>
    %1234 = vector.multi_reduction <add>, %1233, %cst_493 [1] : vector<8x8xf32> to vector<8xf32>
    %1235 = vector.shape_cast %1234 : vector<8xf32> to vector<8x1xf32>
    %cst_494 = arith.constant dense<0.000000e+00> : vector<8x8xf32>
    %1236 = tpu.matmul %1233, %1223, %cst_494 {dimension_numbers = #tpu.dot_dimension_numbers<[1], [0], [0], [1], [0, 0, 1, 1], [], []>} : vector<8x8xf32>, vector<8x8xf32>, vector<8x8xf32> -> vector<8x8xf32>
    %1237 = vector.broadcast %1235 : vector<8x1xf32> to vector<8x8xf32>
    %1238 = arith.divf %1236, %1237 : vector<8x8xf32>
    %1239 = vector.extract_strided_slice %1088 {offsets = [16, 0], sizes = [8, 32], strides = [1, 1]} : vector<32x32xf32> to vector<8x32xf32>
    %cst_495 = arith.constant dense<0.000000e+00> : vector<8x32xf32>
    %1240 = tpu.matmul %1238, %1239, %cst_495 {dimension_numbers = #tpu.dot_dimension_numbers<[1], [0], [0], [1], [0, 0, 1, 1], [], []>} : vector<8x8xf32>, vector<8x32xf32>, vector<8x32xf32> -> vector<8x32xf32>
    %1241 = arith.addf %1220, %1240 : vector<8x32xf32>
    %1242 = vector.extract_strided_slice %1177 {offsets = [0, 24], sizes = [8, 8], strides = [1, 1]} : vector<8x32xf32> to vector<8x8xf32>
    %1243 = vector.extract_strided_slice %1178 {offsets = [0, 24], sizes = [8, 8], strides = [1, 1]} : vector<8x32xf32> to vector<8x8xf32>
    %1244 = vector.extract_strided_slice %1179 {offsets = [0, 24], sizes = [8, 8], strides = [1, 1]} : vector<8x32xf32> to vector<8x8xf32>
    %cst_496 = arith.constant dense<0.000000e+00> : vector<8x8xf32>
    %1245 = tpu.matmul %1242, %1243, %cst_496 {dimension_numbers = #tpu.dot_dimension_numbers<[1], [1], [0], [0], [0, 0, 1, 0], [], []>} : vector<8x8xf32>, vector<8x8xf32>, vector<8x8xf32> -> vector<8x8xf32>
    %cst_497 = arith.constant 0.353553385 : f32
    %1246 = vector.broadcast %cst_497 : f32 to vector<8x8xf32>
    %1247 = arith.mulf %1245, %1246 : vector<8x8xf32>
    %cst_498 = arith.constant 0xFF800000 : f32
    %1248 = vector.broadcast %cst_498 : f32 to vector<8x8xf32>
    %1249 = arith.select %23, %1247, %1248 : vector<8x8xi1>, vector<8x8xf32>
    %cst_499 = arith.constant dense<0xFF800000> : vector<8xf32>
    %1250 = vector.multi_reduction <maximumf>, %1249, %cst_499 [1] : vector<8x8xf32> to vector<8xf32>
    %1251 = vector.shape_cast %1250 : vector<8xf32> to vector<8x1xf32>
    %1252 = vector.broadcast %1251 : vector<8x1xf32> to vector<8x8xf32>
    %1253 = arith.subf %1249, %1252 : vector<8x8xf32>
    %1254 = math.exp %1253 : vector<8x8xf32>
    %cst_500 = arith.constant dense<0.000000e+00> : vector<8xf32>
    %1255 = vector.multi_reduction <add>, %1254, %cst_500 [1] : vector<8x8xf32> to vector<8xf32>
    %1256 = vector.shape_cast %1255 : vector<8xf32> to vector<8x1xf32>
    %cst_501 = arith.constant dense<0.000000e+00> : vector<8x8xf32>
    %1257 = tpu.matmul %1254, %1244, %cst_501 {dimension_numbers = #tpu.dot_dimension_numbers<[1], [0], [0], [1], [0, 0, 1, 1], [], []>} : vector<8x8xf32>, vector<8x8xf32>, vector<8x8xf32> -> vector<8x8xf32>
    %1258 = vector.broadcast %1256 : vector<8x1xf32> to vector<8x8xf32>
    %1259 = arith.divf %1257, %1258 : vector<8x8xf32>
    %1260 = vector.extract_strided_slice %1088 {offsets = [24, 0], sizes = [8, 32], strides = [1, 1]} : vector<32x32xf32> to vector<8x32xf32>
    %cst_502 = arith.constant dense<0.000000e+00> : vector<8x32xf32>
    %1261 = tpu.matmul %1259, %1260, %cst_502 {dimension_numbers = #tpu.dot_dimension_numbers<[1], [0], [0], [1], [0, 0, 1, 1], [], []>} : vector<8x8xf32>, vector<8x32xf32>, vector<8x32xf32> -> vector<8x32xf32>
    %1262 = arith.addf %1241, %1261 : vector<8x32xf32>
    %1263 = tpu.concatenate %1176, %1262 in 0 : vector<8x32xf32>, vector<8x32xf32> -> vector<16x32xf32>
    %1264 = vector.broadcast %1090 : vector<1x32xf32> to vector<16x32xf32>
    %1265 = arith.addf %1263, %1264 : vector<16x32xf32>
    %1266 = arith.addf %1050, %1265 : vector<16x32xf32>
    %c1_503 = arith.constant 1 : index
    %c0_504 = arith.constant 0 : index
    %c0_505 = arith.constant 0 : index
    %1267 = vector.load %arg26[%c1_503, %c0_504, %c0_505] : memref<2x1x32xf32, #tpu.memory_space<vmem>>, vector<1x1x32xf32>
    %1268 = vector.shape_cast %1267 : vector<1x1x32xf32> to vector<1x32xf32>
    %c1_506 = arith.constant 1 : index
    %c0_507 = arith.constant 0 : index
    %c0_508 = arith.constant 0 : index
    %1269 = vector.load %arg27[%c1_506, %c0_507, %c0_508] : memref<2x1x32xf32, #tpu.memory_space<vmem>>, vector<1x1x32xf32>
    %1270 = vector.shape_cast %1269 : vector<1x1x32xf32> to vector<1x32xf32>
    %cst_509 = arith.constant dense<0.000000e+00> : vector<16xf32>
    %1271 = vector.multi_reduction <add>, %1266, %cst_509 [1] : vector<16x32xf32> to vector<16xf32>
    %1272 = vector.shape_cast %1271 : vector<16xf32> to vector<16x1xf32>
    %cst_510 = arith.constant 3.200000e+01 : f32
    %1273 = vector.broadcast %cst_510 : f32 to vector<16x1xf32>
    %1274 = arith.divf %1272, %1273 : vector<16x1xf32>
    %1275 = vector.broadcast %1274 : vector<16x1xf32> to vector<16x32xf32>
    %1276 = arith.subf %1266, %1275 : vector<16x32xf32>
    %1277 = arith.mulf %1276, %1276 : vector<16x32xf32>
    %cst_511 = arith.constant dense<0.000000e+00> : vector<16xf32>
    %1278 = vector.multi_reduction <add>, %1277, %cst_511 [1] : vector<16x32xf32> to vector<16xf32>
    %1279 = vector.shape_cast %1278 : vector<16xf32> to vector<16x1xf32>
    %cst_512 = arith.constant 3.200000e+01 : f32
    %1280 = vector.broadcast %cst_512 : f32 to vector<16x1xf32>
    %1281 = arith.divf %1279, %1280 : vector<16x1xf32>
    %1282 = vector.broadcast %1274 : vector<16x1xf32> to vector<16x32xf32>
    %1283 = arith.subf %1266, %1282 : vector<16x32xf32>
    %cst_513 = arith.constant 9.99999974E-6 : f32
    %1284 = vector.broadcast %cst_513 : f32 to vector<16x1xf32>
    %1285 = arith.addf %1281, %1284 : vector<16x1xf32>
    %1286 = math.rsqrt %1285 : vector<16x1xf32>
    %1287 = vector.broadcast %1286 : vector<16x1xf32> to vector<16x32xf32>
    %1288 = arith.mulf %1283, %1287 : vector<16x32xf32>
    %1289 = vector.broadcast %1268 : vector<1x32xf32> to vector<16x32xf32>
    %1290 = arith.mulf %1288, %1289 : vector<16x32xf32>
    %1291 = vector.broadcast %1270 : vector<1x32xf32> to vector<16x32xf32>
    %1292 = arith.addf %1290, %1291 : vector<16x32xf32>
    %c1_514 = arith.constant 1 : index
    %c0_515 = arith.constant 0 : index
    %c0_516 = arith.constant 0 : index
    %1293 = vector.load %arg28[%c1_514, %c0_515, %c0_516] : memref<2x32x32xf32, #tpu.memory_space<vmem>>, vector<1x32x32xf32>
    %1294 = vector.shape_cast %1293 : vector<1x32x32xf32> to vector<32x32xf32>
    %cst_517 = arith.constant dense<0.000000e+00> : vector<16x32xf32>
    %1295 = tpu.matmul %1292, %1294, %cst_517 {dimension_numbers = #tpu.dot_dimension_numbers<[1], [0], [0], [1], [0, 0, 1, 1], [], []>} : vector<16x32xf32>, vector<32x32xf32>, vector<16x32xf32> -> vector<16x32xf32>
    %c1_518 = arith.constant 1 : index
    %c0_519 = arith.constant 0 : index
    %c0_520 = arith.constant 0 : index
    %1296 = vector.load %arg29[%c1_518, %c0_519, %c0_520] : memref<2x1x32xf32, #tpu.memory_space<vmem>>, vector<1x1x32xf32>
    %1297 = vector.shape_cast %1296 : vector<1x1x32xf32> to vector<1x32xf32>
    %1298 = vector.broadcast %1297 : vector<1x32xf32> to vector<16x32xf32>
    %1299 = arith.addf %1295, %1298 : vector<16x32xf32>
    %c1_521 = arith.constant 1 : index
    %c0_522 = arith.constant 0 : index
    %c0_523 = arith.constant 0 : index
    %1300 = vector.load %arg30[%c1_521, %c0_522, %c0_523] : memref<2x32x64xf32, #tpu.memory_space<vmem>>, vector<1x32x64xf32>
    %1301 = vector.shape_cast %1300 : vector<1x32x64xf32> to vector<32x64xf32>
    %cst_524 = arith.constant dense<0.000000e+00> : vector<16x64xf32>
    %1302 = tpu.matmul %555, %1301, %cst_524 {dimension_numbers = #tpu.dot_dimension_numbers<[1], [0], [0], [1], [0, 0, 1, 1], [], []>} : vector<16x32xf32>, vector<32x64xf32>, vector<16x64xf32> -> vector<16x64xf32>
    %c1_525 = arith.constant 1 : index
    %c0_526 = arith.constant 0 : index
    %c0_527 = arith.constant 0 : index
    %1303 = vector.load %arg31[%c1_525, %c0_526, %c0_527] : memref<2x1x64xf32, #tpu.memory_space<vmem>>, vector<1x1x64xf32>
    %1304 = vector.shape_cast %1303 : vector<1x1x64xf32> to vector<1x64xf32>
    %1305 = vector.broadcast %1304 : vector<1x64xf32> to vector<16x64xf32>
    %1306 = arith.addf %1302, %1305 : vector<16x64xf32>
    %1307 = vector.extract_strided_slice %1306 {offsets = [0, 0], sizes = [16, 32], strides = [1, 1]} : vector<16x64xf32> to vector<16x32xf32>
    %1308 = vector.extract_strided_slice %1306 {offsets = [0, 32], sizes = [16, 32], strides = [1, 1]} : vector<16x64xf32> to vector<16x32xf32>
    %c1_528 = arith.constant 1 : index
    %c0_529 = arith.constant 0 : index
    %c0_530 = arith.constant 0 : index
    %1309 = vector.load %arg32[%c1_528, %c0_529, %c0_530] : memref<2x32x32xf32, #tpu.memory_space<vmem>>, vector<1x32x32xf32>
    %1310 = vector.shape_cast %1309 : vector<1x32x32xf32> to vector<32x32xf32>
    %c1_531 = arith.constant 1 : index
    %c0_532 = arith.constant 0 : index
    %c0_533 = arith.constant 0 : index
    %1311 = vector.load %arg33[%c1_531, %c0_532, %c0_533] : memref<2x1x32xf32, #tpu.memory_space<vmem>>, vector<1x1x32xf32>
    %1312 = vector.shape_cast %1311 : vector<1x1x32xf32> to vector<1x32xf32>
    %1313 = vector.extract_strided_slice %1299 {offsets = [0, 0], sizes = [8, 32], strides = [1, 1]} : vector<16x32xf32> to vector<8x32xf32>
    %1314 = vector.extract_strided_slice %1307 {offsets = [0, 0], sizes = [8, 32], strides = [1, 1]} : vector<16x32xf32> to vector<8x32xf32>
    %1315 = vector.extract_strided_slice %1308 {offsets = [0, 0], sizes = [8, 32], strides = [1, 1]} : vector<16x32xf32> to vector<8x32xf32>
    %1316 = vector.extract_strided_slice %1313 {offsets = [0, 0], sizes = [8, 8], strides = [1, 1]} : vector<8x32xf32> to vector<8x8xf32>
    %1317 = vector.extract_strided_slice %1314 {offsets = [0, 0], sizes = [8, 8], strides = [1, 1]} : vector<8x32xf32> to vector<8x8xf32>
    %1318 = vector.extract_strided_slice %1315 {offsets = [0, 0], sizes = [8, 8], strides = [1, 1]} : vector<8x32xf32> to vector<8x8xf32>
    %cst_534 = arith.constant dense<0.000000e+00> : vector<8x8xf32>
    %1319 = tpu.matmul %1316, %1317, %cst_534 {dimension_numbers = #tpu.dot_dimension_numbers<[1], [1], [0], [0], [0, 0, 1, 0], [], []>} : vector<8x8xf32>, vector<8x8xf32>, vector<8x8xf32> -> vector<8x8xf32>
    %cst_535 = arith.constant 0.353553385 : f32
    %1320 = vector.broadcast %cst_535 : f32 to vector<8x8xf32>
    %1321 = arith.mulf %1319, %1320 : vector<8x8xf32>
    %cst_536 = arith.constant 0xFF800000 : f32
    %1322 = vector.broadcast %cst_536 : f32 to vector<8x8xf32>
    %1323 = arith.select %15, %1321, %1322 : vector<8x8xi1>, vector<8x8xf32>
    %cst_537 = arith.constant dense<0xFF800000> : vector<8xf32>
    %1324 = vector.multi_reduction <maximumf>, %1323, %cst_537 [1] : vector<8x8xf32> to vector<8xf32>
    %1325 = vector.shape_cast %1324 : vector<8xf32> to vector<8x1xf32>
    %1326 = vector.broadcast %1325 : vector<8x1xf32> to vector<8x8xf32>
    %1327 = arith.subf %1323, %1326 : vector<8x8xf32>
    %1328 = math.exp %1327 : vector<8x8xf32>
    %cst_538 = arith.constant dense<0.000000e+00> : vector<8xf32>
    %1329 = vector.multi_reduction <add>, %1328, %cst_538 [1] : vector<8x8xf32> to vector<8xf32>
    %1330 = vector.shape_cast %1329 : vector<8xf32> to vector<8x1xf32>
    %cst_539 = arith.constant dense<0.000000e+00> : vector<8x8xf32>
    %1331 = tpu.matmul %1328, %1318, %cst_539 {dimension_numbers = #tpu.dot_dimension_numbers<[1], [0], [0], [1], [0, 0, 1, 1], [], []>} : vector<8x8xf32>, vector<8x8xf32>, vector<8x8xf32> -> vector<8x8xf32>
    %1332 = vector.broadcast %1330 : vector<8x1xf32> to vector<8x8xf32>
    %1333 = arith.divf %1331, %1332 : vector<8x8xf32>
    %1334 = vector.extract_strided_slice %1310 {offsets = [0, 0], sizes = [8, 32], strides = [1, 1]} : vector<32x32xf32> to vector<8x32xf32>
    %cst_540 = arith.constant dense<0.000000e+00> : vector<8x32xf32>
    %1335 = tpu.matmul %1333, %1334, %cst_540 {dimension_numbers = #tpu.dot_dimension_numbers<[1], [0], [0], [1], [0, 0, 1, 1], [], []>} : vector<8x8xf32>, vector<8x32xf32>, vector<8x32xf32> -> vector<8x32xf32>
    %1336 = vector.extract_strided_slice %1313 {offsets = [0, 8], sizes = [8, 8], strides = [1, 1]} : vector<8x32xf32> to vector<8x8xf32>
    %1337 = vector.extract_strided_slice %1314 {offsets = [0, 8], sizes = [8, 8], strides = [1, 1]} : vector<8x32xf32> to vector<8x8xf32>
    %1338 = vector.extract_strided_slice %1315 {offsets = [0, 8], sizes = [8, 8], strides = [1, 1]} : vector<8x32xf32> to vector<8x8xf32>
    %cst_541 = arith.constant dense<0.000000e+00> : vector<8x8xf32>
    %1339 = tpu.matmul %1336, %1337, %cst_541 {dimension_numbers = #tpu.dot_dimension_numbers<[1], [1], [0], [0], [0, 0, 1, 0], [], []>} : vector<8x8xf32>, vector<8x8xf32>, vector<8x8xf32> -> vector<8x8xf32>
    %cst_542 = arith.constant 0.353553385 : f32
    %1340 = vector.broadcast %cst_542 : f32 to vector<8x8xf32>
    %1341 = arith.mulf %1339, %1340 : vector<8x8xf32>
    %cst_543 = arith.constant 0xFF800000 : f32
    %1342 = vector.broadcast %cst_543 : f32 to vector<8x8xf32>
    %1343 = arith.select %15, %1341, %1342 : vector<8x8xi1>, vector<8x8xf32>
    %cst_544 = arith.constant dense<0xFF800000> : vector<8xf32>
    %1344 = vector.multi_reduction <maximumf>, %1343, %cst_544 [1] : vector<8x8xf32> to vector<8xf32>
    %1345 = vector.shape_cast %1344 : vector<8xf32> to vector<8x1xf32>
    %1346 = vector.broadcast %1345 : vector<8x1xf32> to vector<8x8xf32>
    %1347 = arith.subf %1343, %1346 : vector<8x8xf32>
    %1348 = math.exp %1347 : vector<8x8xf32>
    %cst_545 = arith.constant dense<0.000000e+00> : vector<8xf32>
    %1349 = vector.multi_reduction <add>, %1348, %cst_545 [1] : vector<8x8xf32> to vector<8xf32>
    %1350 = vector.shape_cast %1349 : vector<8xf32> to vector<8x1xf32>
    %cst_546 = arith.constant dense<0.000000e+00> : vector<8x8xf32>
    %1351 = tpu.matmul %1348, %1338, %cst_546 {dimension_numbers = #tpu.dot_dimension_numbers<[1], [0], [0], [1], [0, 0, 1, 1], [], []>} : vector<8x8xf32>, vector<8x8xf32>, vector<8x8xf32> -> vector<8x8xf32>
    %1352 = vector.broadcast %1350 : vector<8x1xf32> to vector<8x8xf32>
    %1353 = arith.divf %1351, %1352 : vector<8x8xf32>
    %1354 = vector.extract_strided_slice %1310 {offsets = [8, 0], sizes = [8, 32], strides = [1, 1]} : vector<32x32xf32> to vector<8x32xf32>
    %cst_547 = arith.constant dense<0.000000e+00> : vector<8x32xf32>
    %1355 = tpu.matmul %1353, %1354, %cst_547 {dimension_numbers = #tpu.dot_dimension_numbers<[1], [0], [0], [1], [0, 0, 1, 1], [], []>} : vector<8x8xf32>, vector<8x32xf32>, vector<8x32xf32> -> vector<8x32xf32>
    %1356 = arith.addf %1335, %1355 : vector<8x32xf32>
    %1357 = vector.extract_strided_slice %1313 {offsets = [0, 16], sizes = [8, 8], strides = [1, 1]} : vector<8x32xf32> to vector<8x8xf32>
    %1358 = vector.extract_strided_slice %1314 {offsets = [0, 16], sizes = [8, 8], strides = [1, 1]} : vector<8x32xf32> to vector<8x8xf32>
    %1359 = vector.extract_strided_slice %1315 {offsets = [0, 16], sizes = [8, 8], strides = [1, 1]} : vector<8x32xf32> to vector<8x8xf32>
    %cst_548 = arith.constant dense<0.000000e+00> : vector<8x8xf32>
    %1360 = tpu.matmul %1357, %1358, %cst_548 {dimension_numbers = #tpu.dot_dimension_numbers<[1], [1], [0], [0], [0, 0, 1, 0], [], []>} : vector<8x8xf32>, vector<8x8xf32>, vector<8x8xf32> -> vector<8x8xf32>
    %cst_549 = arith.constant 0.353553385 : f32
    %1361 = vector.broadcast %cst_549 : f32 to vector<8x8xf32>
    %1362 = arith.mulf %1360, %1361 : vector<8x8xf32>
    %cst_550 = arith.constant 0xFF800000 : f32
    %1363 = vector.broadcast %cst_550 : f32 to vector<8x8xf32>
    %1364 = arith.select %15, %1362, %1363 : vector<8x8xi1>, vector<8x8xf32>
    %cst_551 = arith.constant dense<0xFF800000> : vector<8xf32>
    %1365 = vector.multi_reduction <maximumf>, %1364, %cst_551 [1] : vector<8x8xf32> to vector<8xf32>
    %1366 = vector.shape_cast %1365 : vector<8xf32> to vector<8x1xf32>
    %1367 = vector.broadcast %1366 : vector<8x1xf32> to vector<8x8xf32>
    %1368 = arith.subf %1364, %1367 : vector<8x8xf32>
    %1369 = math.exp %1368 : vector<8x8xf32>
    %cst_552 = arith.constant dense<0.000000e+00> : vector<8xf32>
    %1370 = vector.multi_reduction <add>, %1369, %cst_552 [1] : vector<8x8xf32> to vector<8xf32>
    %1371 = vector.shape_cast %1370 : vector<8xf32> to vector<8x1xf32>
    %cst_553 = arith.constant dense<0.000000e+00> : vector<8x8xf32>
    %1372 = tpu.matmul %1369, %1359, %cst_553 {dimension_numbers = #tpu.dot_dimension_numbers<[1], [0], [0], [1], [0, 0, 1, 1], [], []>} : vector<8x8xf32>, vector<8x8xf32>, vector<8x8xf32> -> vector<8x8xf32>
    %1373 = vector.broadcast %1371 : vector<8x1xf32> to vector<8x8xf32>
    %1374 = arith.divf %1372, %1373 : vector<8x8xf32>
    %1375 = vector.extract_strided_slice %1310 {offsets = [16, 0], sizes = [8, 32], strides = [1, 1]} : vector<32x32xf32> to vector<8x32xf32>
    %cst_554 = arith.constant dense<0.000000e+00> : vector<8x32xf32>
    %1376 = tpu.matmul %1374, %1375, %cst_554 {dimension_numbers = #tpu.dot_dimension_numbers<[1], [0], [0], [1], [0, 0, 1, 1], [], []>} : vector<8x8xf32>, vector<8x32xf32>, vector<8x32xf32> -> vector<8x32xf32>
    %1377 = arith.addf %1356, %1376 : vector<8x32xf32>
    %1378 = vector.extract_strided_slice %1313 {offsets = [0, 24], sizes = [8, 8], strides = [1, 1]} : vector<8x32xf32> to vector<8x8xf32>
    %1379 = vector.extract_strided_slice %1314 {offsets = [0, 24], sizes = [8, 8], strides = [1, 1]} : vector<8x32xf32> to vector<8x8xf32>
    %1380 = vector.extract_strided_slice %1315 {offsets = [0, 24], sizes = [8, 8], strides = [1, 1]} : vector<8x32xf32> to vector<8x8xf32>
    %cst_555 = arith.constant dense<0.000000e+00> : vector<8x8xf32>
    %1381 = tpu.matmul %1378, %1379, %cst_555 {dimension_numbers = #tpu.dot_dimension_numbers<[1], [1], [0], [0], [0, 0, 1, 0], [], []>} : vector<8x8xf32>, vector<8x8xf32>, vector<8x8xf32> -> vector<8x8xf32>
    %cst_556 = arith.constant 0.353553385 : f32
    %1382 = vector.broadcast %cst_556 : f32 to vector<8x8xf32>
    %1383 = arith.mulf %1381, %1382 : vector<8x8xf32>
    %cst_557 = arith.constant 0xFF800000 : f32
    %1384 = vector.broadcast %cst_557 : f32 to vector<8x8xf32>
    %1385 = arith.select %15, %1383, %1384 : vector<8x8xi1>, vector<8x8xf32>
    %cst_558 = arith.constant dense<0xFF800000> : vector<8xf32>
    %1386 = vector.multi_reduction <maximumf>, %1385, %cst_558 [1] : vector<8x8xf32> to vector<8xf32>
    %1387 = vector.shape_cast %1386 : vector<8xf32> to vector<8x1xf32>
    %1388 = vector.broadcast %1387 : vector<8x1xf32> to vector<8x8xf32>
    %1389 = arith.subf %1385, %1388 : vector<8x8xf32>
    %1390 = math.exp %1389 : vector<8x8xf32>
    %cst_559 = arith.constant dense<0.000000e+00> : vector<8xf32>
    %1391 = vector.multi_reduction <add>, %1390, %cst_559 [1] : vector<8x8xf32> to vector<8xf32>
    %1392 = vector.shape_cast %1391 : vector<8xf32> to vector<8x1xf32>
    %cst_560 = arith.constant dense<0.000000e+00> : vector<8x8xf32>
    %1393 = tpu.matmul %1390, %1380, %cst_560 {dimension_numbers = #tpu.dot_dimension_numbers<[1], [0], [0], [1], [0, 0, 1, 1], [], []>} : vector<8x8xf32>, vector<8x8xf32>, vector<8x8xf32> -> vector<8x8xf32>
    %1394 = vector.broadcast %1392 : vector<8x1xf32> to vector<8x8xf32>
    %1395 = arith.divf %1393, %1394 : vector<8x8xf32>
    %1396 = vector.extract_strided_slice %1310 {offsets = [24, 0], sizes = [8, 32], strides = [1, 1]} : vector<32x32xf32> to vector<8x32xf32>
    %cst_561 = arith.constant dense<0.000000e+00> : vector<8x32xf32>
    %1397 = tpu.matmul %1395, %1396, %cst_561 {dimension_numbers = #tpu.dot_dimension_numbers<[1], [0], [0], [1], [0, 0, 1, 1], [], []>} : vector<8x8xf32>, vector<8x32xf32>, vector<8x32xf32> -> vector<8x32xf32>
    %1398 = arith.addf %1377, %1397 : vector<8x32xf32>
    %1399 = vector.extract_strided_slice %1299 {offsets = [8, 0], sizes = [8, 32], strides = [1, 1]} : vector<16x32xf32> to vector<8x32xf32>
    %1400 = vector.extract_strided_slice %1307 {offsets = [8, 0], sizes = [8, 32], strides = [1, 1]} : vector<16x32xf32> to vector<8x32xf32>
    %1401 = vector.extract_strided_slice %1308 {offsets = [8, 0], sizes = [8, 32], strides = [1, 1]} : vector<16x32xf32> to vector<8x32xf32>
    %1402 = vector.extract_strided_slice %1399 {offsets = [0, 0], sizes = [8, 8], strides = [1, 1]} : vector<8x32xf32> to vector<8x8xf32>
    %1403 = vector.extract_strided_slice %1400 {offsets = [0, 0], sizes = [8, 8], strides = [1, 1]} : vector<8x32xf32> to vector<8x8xf32>
    %1404 = vector.extract_strided_slice %1401 {offsets = [0, 0], sizes = [8, 8], strides = [1, 1]} : vector<8x32xf32> to vector<8x8xf32>
    %cst_562 = arith.constant dense<0.000000e+00> : vector<8x8xf32>
    %1405 = tpu.matmul %1402, %1403, %cst_562 {dimension_numbers = #tpu.dot_dimension_numbers<[1], [1], [0], [0], [0, 0, 1, 0], [], []>} : vector<8x8xf32>, vector<8x8xf32>, vector<8x8xf32> -> vector<8x8xf32>
    %cst_563 = arith.constant 0.353553385 : f32
    %1406 = vector.broadcast %cst_563 : f32 to vector<8x8xf32>
    %1407 = arith.mulf %1405, %1406 : vector<8x8xf32>
    %cst_564 = arith.constant 0xFF800000 : f32
    %1408 = vector.broadcast %cst_564 : f32 to vector<8x8xf32>
    %1409 = arith.select %20, %1407, %1408 : vector<8x8xi1>, vector<8x8xf32>
    %cst_565 = arith.constant dense<0xFF800000> : vector<8xf32>
    %1410 = vector.multi_reduction <maximumf>, %1409, %cst_565 [1] : vector<8x8xf32> to vector<8xf32>
    %1411 = vector.shape_cast %1410 : vector<8xf32> to vector<8x1xf32>
    %1412 = vector.broadcast %1411 : vector<8x1xf32> to vector<8x8xf32>
    %1413 = arith.subf %1409, %1412 : vector<8x8xf32>
    %1414 = math.exp %1413 : vector<8x8xf32>
    %cst_566 = arith.constant dense<0.000000e+00> : vector<8xf32>
    %1415 = vector.multi_reduction <add>, %1414, %cst_566 [1] : vector<8x8xf32> to vector<8xf32>
    %1416 = vector.shape_cast %1415 : vector<8xf32> to vector<8x1xf32>
    %cst_567 = arith.constant dense<0.000000e+00> : vector<8x8xf32>
    %1417 = tpu.matmul %1414, %1404, %cst_567 {dimension_numbers = #tpu.dot_dimension_numbers<[1], [0], [0], [1], [0, 0, 1, 1], [], []>} : vector<8x8xf32>, vector<8x8xf32>, vector<8x8xf32> -> vector<8x8xf32>
    %1418 = vector.broadcast %1416 : vector<8x1xf32> to vector<8x8xf32>
    %1419 = arith.divf %1417, %1418 : vector<8x8xf32>
    %1420 = vector.extract_strided_slice %1310 {offsets = [0, 0], sizes = [8, 32], strides = [1, 1]} : vector<32x32xf32> to vector<8x32xf32>
    %cst_568 = arith.constant dense<0.000000e+00> : vector<8x32xf32>
    %1421 = tpu.matmul %1419, %1420, %cst_568 {dimension_numbers = #tpu.dot_dimension_numbers<[1], [0], [0], [1], [0, 0, 1, 1], [], []>} : vector<8x8xf32>, vector<8x32xf32>, vector<8x32xf32> -> vector<8x32xf32>
    %1422 = vector.extract_strided_slice %1399 {offsets = [0, 8], sizes = [8, 8], strides = [1, 1]} : vector<8x32xf32> to vector<8x8xf32>
    %1423 = vector.extract_strided_slice %1400 {offsets = [0, 8], sizes = [8, 8], strides = [1, 1]} : vector<8x32xf32> to vector<8x8xf32>
    %1424 = vector.extract_strided_slice %1401 {offsets = [0, 8], sizes = [8, 8], strides = [1, 1]} : vector<8x32xf32> to vector<8x8xf32>
    %cst_569 = arith.constant dense<0.000000e+00> : vector<8x8xf32>
    %1425 = tpu.matmul %1422, %1423, %cst_569 {dimension_numbers = #tpu.dot_dimension_numbers<[1], [1], [0], [0], [0, 0, 1, 0], [], []>} : vector<8x8xf32>, vector<8x8xf32>, vector<8x8xf32> -> vector<8x8xf32>
    %cst_570 = arith.constant 0.353553385 : f32
    %1426 = vector.broadcast %cst_570 : f32 to vector<8x8xf32>
    %1427 = arith.mulf %1425, %1426 : vector<8x8xf32>
    %cst_571 = arith.constant 0xFF800000 : f32
    %1428 = vector.broadcast %cst_571 : f32 to vector<8x8xf32>
    %1429 = arith.select %20, %1427, %1428 : vector<8x8xi1>, vector<8x8xf32>
    %cst_572 = arith.constant dense<0xFF800000> : vector<8xf32>
    %1430 = vector.multi_reduction <maximumf>, %1429, %cst_572 [1] : vector<8x8xf32> to vector<8xf32>
    %1431 = vector.shape_cast %1430 : vector<8xf32> to vector<8x1xf32>
    %1432 = vector.broadcast %1431 : vector<8x1xf32> to vector<8x8xf32>
    %1433 = arith.subf %1429, %1432 : vector<8x8xf32>
    %1434 = math.exp %1433 : vector<8x8xf32>
    %cst_573 = arith.constant dense<0.000000e+00> : vector<8xf32>
    %1435 = vector.multi_reduction <add>, %1434, %cst_573 [1] : vector<8x8xf32> to vector<8xf32>
    %1436 = vector.shape_cast %1435 : vector<8xf32> to vector<8x1xf32>
    %cst_574 = arith.constant dense<0.000000e+00> : vector<8x8xf32>
    %1437 = tpu.matmul %1434, %1424, %cst_574 {dimension_numbers = #tpu.dot_dimension_numbers<[1], [0], [0], [1], [0, 0, 1, 1], [], []>} : vector<8x8xf32>, vector<8x8xf32>, vector<8x8xf32> -> vector<8x8xf32>
    %1438 = vector.broadcast %1436 : vector<8x1xf32> to vector<8x8xf32>
    %1439 = arith.divf %1437, %1438 : vector<8x8xf32>
    %1440 = vector.extract_strided_slice %1310 {offsets = [8, 0], sizes = [8, 32], strides = [1, 1]} : vector<32x32xf32> to vector<8x32xf32>
    %cst_575 = arith.constant dense<0.000000e+00> : vector<8x32xf32>
    %1441 = tpu.matmul %1439, %1440, %cst_575 {dimension_numbers = #tpu.dot_dimension_numbers<[1], [0], [0], [1], [0, 0, 1, 1], [], []>} : vector<8x8xf32>, vector<8x32xf32>, vector<8x32xf32> -> vector<8x32xf32>
    %1442 = arith.addf %1421, %1441 : vector<8x32xf32>
    %1443 = vector.extract_strided_slice %1399 {offsets = [0, 16], sizes = [8, 8], strides = [1, 1]} : vector<8x32xf32> to vector<8x8xf32>
    %1444 = vector.extract_strided_slice %1400 {offsets = [0, 16], sizes = [8, 8], strides = [1, 1]} : vector<8x32xf32> to vector<8x8xf32>
    %1445 = vector.extract_strided_slice %1401 {offsets = [0, 16], sizes = [8, 8], strides = [1, 1]} : vector<8x32xf32> to vector<8x8xf32>
    %cst_576 = arith.constant dense<0.000000e+00> : vector<8x8xf32>
    %1446 = tpu.matmul %1443, %1444, %cst_576 {dimension_numbers = #tpu.dot_dimension_numbers<[1], [1], [0], [0], [0, 0, 1, 0], [], []>} : vector<8x8xf32>, vector<8x8xf32>, vector<8x8xf32> -> vector<8x8xf32>
    %cst_577 = arith.constant 0.353553385 : f32
    %1447 = vector.broadcast %cst_577 : f32 to vector<8x8xf32>
    %1448 = arith.mulf %1446, %1447 : vector<8x8xf32>
    %cst_578 = arith.constant 0xFF800000 : f32
    %1449 = vector.broadcast %cst_578 : f32 to vector<8x8xf32>
    %1450 = arith.select %20, %1448, %1449 : vector<8x8xi1>, vector<8x8xf32>
    %cst_579 = arith.constant dense<0xFF800000> : vector<8xf32>
    %1451 = vector.multi_reduction <maximumf>, %1450, %cst_579 [1] : vector<8x8xf32> to vector<8xf32>
    %1452 = vector.shape_cast %1451 : vector<8xf32> to vector<8x1xf32>
    %1453 = vector.broadcast %1452 : vector<8x1xf32> to vector<8x8xf32>
    %1454 = arith.subf %1450, %1453 : vector<8x8xf32>
    %1455 = math.exp %1454 : vector<8x8xf32>
    %cst_580 = arith.constant dense<0.000000e+00> : vector<8xf32>
    %1456 = vector.multi_reduction <add>, %1455, %cst_580 [1] : vector<8x8xf32> to vector<8xf32>
    %1457 = vector.shape_cast %1456 : vector<8xf32> to vector<8x1xf32>
    %cst_581 = arith.constant dense<0.000000e+00> : vector<8x8xf32>
    %1458 = tpu.matmul %1455, %1445, %cst_581 {dimension_numbers = #tpu.dot_dimension_numbers<[1], [0], [0], [1], [0, 0, 1, 1], [], []>} : vector<8x8xf32>, vector<8x8xf32>, vector<8x8xf32> -> vector<8x8xf32>
    %1459 = vector.broadcast %1457 : vector<8x1xf32> to vector<8x8xf32>
    %1460 = arith.divf %1458, %1459 : vector<8x8xf32>
    %1461 = vector.extract_strided_slice %1310 {offsets = [16, 0], sizes = [8, 32], strides = [1, 1]} : vector<32x32xf32> to vector<8x32xf32>
    %cst_582 = arith.constant dense<0.000000e+00> : vector<8x32xf32>
    %1462 = tpu.matmul %1460, %1461, %cst_582 {dimension_numbers = #tpu.dot_dimension_numbers<[1], [0], [0], [1], [0, 0, 1, 1], [], []>} : vector<8x8xf32>, vector<8x32xf32>, vector<8x32xf32> -> vector<8x32xf32>
    %1463 = arith.addf %1442, %1462 : vector<8x32xf32>
    %1464 = vector.extract_strided_slice %1399 {offsets = [0, 24], sizes = [8, 8], strides = [1, 1]} : vector<8x32xf32> to vector<8x8xf32>
    %1465 = vector.extract_strided_slice %1400 {offsets = [0, 24], sizes = [8, 8], strides = [1, 1]} : vector<8x32xf32> to vector<8x8xf32>
    %1466 = vector.extract_strided_slice %1401 {offsets = [0, 24], sizes = [8, 8], strides = [1, 1]} : vector<8x32xf32> to vector<8x8xf32>
    %cst_583 = arith.constant dense<0.000000e+00> : vector<8x8xf32>
    %1467 = tpu.matmul %1464, %1465, %cst_583 {dimension_numbers = #tpu.dot_dimension_numbers<[1], [1], [0], [0], [0, 0, 1, 0], [], []>} : vector<8x8xf32>, vector<8x8xf32>, vector<8x8xf32> -> vector<8x8xf32>
    %cst_584 = arith.constant 0.353553385 : f32
    %1468 = vector.broadcast %cst_584 : f32 to vector<8x8xf32>
    %1469 = arith.mulf %1467, %1468 : vector<8x8xf32>
    %cst_585 = arith.constant 0xFF800000 : f32
    %1470 = vector.broadcast %cst_585 : f32 to vector<8x8xf32>
    %1471 = arith.select %20, %1469, %1470 : vector<8x8xi1>, vector<8x8xf32>
    %cst_586 = arith.constant dense<0xFF800000> : vector<8xf32>
    %1472 = vector.multi_reduction <maximumf>, %1471, %cst_586 [1] : vector<8x8xf32> to vector<8xf32>
    %1473 = vector.shape_cast %1472 : vector<8xf32> to vector<8x1xf32>
    %1474 = vector.broadcast %1473 : vector<8x1xf32> to vector<8x8xf32>
    %1475 = arith.subf %1471, %1474 : vector<8x8xf32>
    %1476 = math.exp %1475 : vector<8x8xf32>
    %cst_587 = arith.constant dense<0.000000e+00> : vector<8xf32>
    %1477 = vector.multi_reduction <add>, %1476, %cst_587 [1] : vector<8x8xf32> to vector<8xf32>
    %1478 = vector.shape_cast %1477 : vector<8xf32> to vector<8x1xf32>
    %cst_588 = arith.constant dense<0.000000e+00> : vector<8x8xf32>
    %1479 = tpu.matmul %1476, %1466, %cst_588 {dimension_numbers = #tpu.dot_dimension_numbers<[1], [0], [0], [1], [0, 0, 1, 1], [], []>} : vector<8x8xf32>, vector<8x8xf32>, vector<8x8xf32> -> vector<8x8xf32>
    %1480 = vector.broadcast %1478 : vector<8x1xf32> to vector<8x8xf32>
    %1481 = arith.divf %1479, %1480 : vector<8x8xf32>
    %1482 = vector.extract_strided_slice %1310 {offsets = [24, 0], sizes = [8, 32], strides = [1, 1]} : vector<32x32xf32> to vector<8x32xf32>
    %cst_589 = arith.constant dense<0.000000e+00> : vector<8x32xf32>
    %1483 = tpu.matmul %1481, %1482, %cst_589 {dimension_numbers = #tpu.dot_dimension_numbers<[1], [0], [0], [1], [0, 0, 1, 1], [], []>} : vector<8x8xf32>, vector<8x32xf32>, vector<8x32xf32> -> vector<8x32xf32>
    %1484 = arith.addf %1463, %1483 : vector<8x32xf32>
    %1485 = tpu.concatenate %1398, %1484 in 0 : vector<8x32xf32>, vector<8x32xf32> -> vector<16x32xf32>
    %1486 = vector.broadcast %1312 : vector<1x32xf32> to vector<16x32xf32>
    %1487 = arith.addf %1485, %1486 : vector<16x32xf32>
    %1488 = arith.addf %1266, %1487 : vector<16x32xf32>
    %c1_590 = arith.constant 1 : index
    %c0_591 = arith.constant 0 : index
    %c0_592 = arith.constant 0 : index
    %1489 = vector.load %arg34[%c1_590, %c0_591, %c0_592] : memref<2x1x32xf32, #tpu.memory_space<vmem>>, vector<1x1x32xf32>
    %1490 = vector.shape_cast %1489 : vector<1x1x32xf32> to vector<1x32xf32>
    %c1_593 = arith.constant 1 : index
    %c0_594 = arith.constant 0 : index
    %c0_595 = arith.constant 0 : index
    %1491 = vector.load %arg35[%c1_593, %c0_594, %c0_595] : memref<2x1x32xf32, #tpu.memory_space<vmem>>, vector<1x1x32xf32>
    %1492 = vector.shape_cast %1491 : vector<1x1x32xf32> to vector<1x32xf32>
    %cst_596 = arith.constant dense<0.000000e+00> : vector<16xf32>
    %1493 = vector.multi_reduction <add>, %1488, %cst_596 [1] : vector<16x32xf32> to vector<16xf32>
    %1494 = vector.shape_cast %1493 : vector<16xf32> to vector<16x1xf32>
    %cst_597 = arith.constant 3.200000e+01 : f32
    %1495 = vector.broadcast %cst_597 : f32 to vector<16x1xf32>
    %1496 = arith.divf %1494, %1495 : vector<16x1xf32>
    %1497 = vector.broadcast %1496 : vector<16x1xf32> to vector<16x32xf32>
    %1498 = arith.subf %1488, %1497 : vector<16x32xf32>
    %1499 = arith.mulf %1498, %1498 : vector<16x32xf32>
    %cst_598 = arith.constant dense<0.000000e+00> : vector<16xf32>
    %1500 = vector.multi_reduction <add>, %1499, %cst_598 [1] : vector<16x32xf32> to vector<16xf32>
    %1501 = vector.shape_cast %1500 : vector<16xf32> to vector<16x1xf32>
    %cst_599 = arith.constant 3.200000e+01 : f32
    %1502 = vector.broadcast %cst_599 : f32 to vector<16x1xf32>
    %1503 = arith.divf %1501, %1502 : vector<16x1xf32>
    %1504 = vector.broadcast %1496 : vector<16x1xf32> to vector<16x32xf32>
    %1505 = arith.subf %1488, %1504 : vector<16x32xf32>
    %cst_600 = arith.constant 9.99999974E-6 : f32
    %1506 = vector.broadcast %cst_600 : f32 to vector<16x1xf32>
    %1507 = arith.addf %1503, %1506 : vector<16x1xf32>
    %1508 = math.rsqrt %1507 : vector<16x1xf32>
    %1509 = vector.broadcast %1508 : vector<16x1xf32> to vector<16x32xf32>
    %1510 = arith.mulf %1505, %1509 : vector<16x32xf32>
    %1511 = vector.broadcast %1490 : vector<1x32xf32> to vector<16x32xf32>
    %1512 = arith.mulf %1510, %1511 : vector<16x32xf32>
    %1513 = vector.broadcast %1492 : vector<1x32xf32> to vector<16x32xf32>
    %1514 = arith.addf %1512, %1513 : vector<16x32xf32>
    %c1_601 = arith.constant 1 : index
    %c0_602 = arith.constant 0 : index
    %c0_603 = arith.constant 0 : index
    %1515 = vector.load %arg36[%c1_601, %c0_602, %c0_603] : memref<2x32x128xf32, #tpu.memory_space<vmem>>, vector<1x32x128xf32>
    %1516 = vector.shape_cast %1515 : vector<1x32x128xf32> to vector<32x128xf32>
    %cst_604 = arith.constant dense<0.000000e+00> : vector<16x128xf32>
    %1517 = tpu.matmul %1514, %1516, %cst_604 {dimension_numbers = #tpu.dot_dimension_numbers<[1], [0], [0], [1], [0, 0, 1, 1], [], []>} : vector<16x32xf32>, vector<32x128xf32>, vector<16x128xf32> -> vector<16x128xf32>
    %c1_605 = arith.constant 1 : index
    %c0_606 = arith.constant 0 : index
    %c0_607 = arith.constant 0 : index
    %1518 = vector.load %arg37[%c1_605, %c0_606, %c0_607] : memref<2x1x128xf32, #tpu.memory_space<vmem>>, vector<1x1x128xf32>
    %1519 = vector.shape_cast %1518 : vector<1x1x128xf32> to vector<1x128xf32>
    %1520 = vector.broadcast %1519 : vector<1x128xf32> to vector<16x128xf32>
    %1521 = arith.addf %1517, %1520 : vector<16x128xf32>
    %cst_608 = arith.constant 0.000000e+00 : f32
    %1522 = vector.broadcast %cst_608 : f32 to vector<16x128xf32>
    %1523 = arith.maximumf %1521, %1522 : vector<16x128xf32>
    %c1_609 = arith.constant 1 : index
    %c0_610 = arith.constant 0 : index
    %c0_611 = arith.constant 0 : index
    %1524 = vector.load %arg38[%c1_609, %c0_610, %c0_611] : memref<2x128x32xf32, #tpu.memory_space<vmem>>, vector<1x128x32xf32>
    %1525 = vector.shape_cast %1524 : vector<1x128x32xf32> to vector<128x32xf32>
    %cst_612 = arith.constant dense<0.000000e+00> : vector<16x32xf32>
    %1526 = tpu.matmul %1523, %1525, %cst_612 {dimension_numbers = #tpu.dot_dimension_numbers<[1], [0], [0], [1], [0, 0, 1, 1], [], []>} : vector<16x128xf32>, vector<128x32xf32>, vector<16x32xf32> -> vector<16x32xf32>
    %1527 = arith.addf %1488, %1526 : vector<16x32xf32>
    %c1_613 = arith.constant 1 : index
    %c0_614 = arith.constant 0 : index
    %c0_615 = arith.constant 0 : index
    %1528 = vector.load %arg39[%c1_613, %c0_614, %c0_615] : memref<2x1x32xf32, #tpu.memory_space<vmem>>, vector<1x1x32xf32>
    %1529 = vector.shape_cast %1528 : vector<1x1x32xf32> to vector<1x32xf32>
    %1530 = vector.broadcast %1529 : vector<1x32xf32> to vector<16x32xf32>
    %1531 = arith.addf %1527, %1530 : vector<16x32xf32>
    %c0_616 = arith.constant 0 : index
    %c0_617 = arith.constant 0 : index
    %1532 = vector.load %arg40[%c0_616, %c0_617] : memref<32x64xf32, #tpu.memory_space<vmem>>, vector<32x64xf32>
    %cst_618 = arith.constant dense<0.000000e+00> : vector<16x64xf32>
    %1533 = tpu.matmul %1531, %1532, %cst_618 {dimension_numbers = #tpu.dot_dimension_numbers<[1], [0], [0], [1], [0, 0, 1, 1], [], []>} : vector<16x32xf32>, vector<32x64xf32>, vector<16x64xf32> -> vector<16x64xf32>
    %c0_619 = arith.constant 0 : index
    %c0_620 = arith.constant 0 : index
    %1534 = vector.load %arg41[%c0_619, %c0_620] : memref<1x64xf32, #tpu.memory_space<vmem>>, vector<1x64xf32>
    %1535 = vector.broadcast %1534 : vector<1x64xf32> to vector<16x64xf32>
    %1536 = arith.addf %1533, %1535 : vector<16x64xf32>
    %c0_621 = arith.constant 0 : index
    %c0_622 = arith.constant 0 : index
    %1537 = vector.load %arg42[%c0_621, %c0_622] : memref<16x64xf32, #tpu.memory_space<vmem>>, vector<16x64xf32>
    tpu.vector_store %arg42[%c0_621, %c0_622], %1536 {strides = array<i32>} : memref<16x64xf32, #tpu.memory_space<vmem>>, vector<16x64xf32>,
    %cst_623 = arith.constant dense<0xFF800000> : vector<16xf32>
    %1538 = vector.multi_reduction <maximumf>, %1536, %cst_623 [1] : vector<16x64xf32> to vector<16xf32>
    %1539 = vector.shape_cast %1538 : vector<16xf32> to vector<16x1xf32>
    %1540 = vector.broadcast %1539 : vector<16x1xf32> to vector<16x64xf32>
    %1541 = arith.subf %1536, %1540 : vector<16x64xf32>
    %1542 = math.exp %1541 : vector<16x64xf32>
    %cst_624 = arith.constant dense<0.000000e+00> : vector<16xf32>
    %1543 = vector.multi_reduction <add>, %1542, %cst_624 [1] : vector<16x64xf32> to vector<16xf32>
    %1544 = vector.shape_cast %1543 : vector<16xf32> to vector<16x1xf32>
    %1545 = math.log %1544 : vector<16x1xf32>
    %1546 = vector.broadcast %1545 : vector<16x1xf32> to vector<16x64xf32>
    %1547 = arith.subf %1541, %1546 : vector<16x64xf32>
    %1548 = tpu.iota {dimensions = array<i32: 1>} : vector<16x64xi32>
    %c0_625 = arith.constant 0 : index
    %c0_626 = arith.constant 0 : index
    %1549 = vector.load %arg4[%c0_625, %c0_626] : memref<16x1xi32, #tpu.memory_space<vmem>>, vector<16x1xi32>
    %1550 = vector.broadcast %1549 : vector<16x1xi32> to vector<16x64xi32>
    %1551 = arith.cmpi eq, %1548, %1550 : vector<16x64xi32>
    %1552 = arith.extui %1551 : vector<16x64xi1> to vector<16x64xi32>
    %1553 = arith.sitofp %1552 : vector<16x64xi32> to vector<16x64xf32>
    %1554 = arith.mulf %1547, %1553 : vector<16x64xf32>
    %cst_627 = arith.constant dense<0.000000e+00> : vector<16xf32>
    %1555 = vector.multi_reduction <add>, %1554, %cst_627 [1] : vector<16x64xf32> to vector<16xf32>
    %1556 = vector.shape_cast %1555 : vector<16xf32> to vector<16x1xf32>
    %cst_628 = arith.constant 0.000000e+00 : f32
    %1557 = vector.broadcast %cst_628 : f32 to vector<16x1xf32>
    %1558 = arith.subf %1557, %1556 : vector<16x1xf32>
    %cst_629 = arith.constant 1.000000e+00 : f32
    %1559 = vector.broadcast %cst_629 : f32 to vector<1x16xf32>
    %cst_630 = arith.constant dense<0.000000e+00> : vector<1x1xf32>
    %1560 = tpu.matmul %1559, %1558, %cst_630 {dimension_numbers = #tpu.dot_dimension_numbers<[1], [0], [0], [1], [0, 0, 1, 1], [], []>} : vector<1x16xf32>, vector<16x1xf32>, vector<1x1xf32> -> vector<1x1xf32>
    %cst_631 = arith.constant 6.250000e-02 : f32
    %1561 = vector.broadcast %cst_631 : f32 to vector<1x1xf32>
    %1562 = arith.mulf %1560, %1561 : vector<1x1xf32>
    %c0_632 = arith.constant 0 : index
    %c0_633 = arith.constant 0 : index
    %1563 = vector.load %arg43[%c0_632, %c0_633] : memref<1x1xf32, #tpu.memory_space<vmem>>, vector<1x1xf32>
    tpu.vector_store %arg43[%c0_632, %c0_633], %1562 {strides = array<i32>} : memref<1x1xf32, #tpu.memory_space<vmem>>, vector<1x1xf32>,
    return
  }
  func.func @transform_0(%arg0: i32) -> (i32, i32) {
    %c0_i32 = arith.constant 0 : i32
    %c0_i32_0 = arith.constant 0 : i32
    %c0_i32_1 = arith.constant 0 : i32
    return %c0_i32, %c0_i32_0 : i32, i32
  }
  func.func @transform_1(%arg0: i32) -> (i32, i32) {
    %c0_i32 = arith.constant 0 : i32
    %c0_i32_0 = arith.constant 0 : i32
    %c0_i32_1 = arith.constant 0 : i32
    return %c0_i32, %c0_i32_0 : i32, i32
  }
  func.func @transform_2(%arg0: i32) -> (i32, i32) {
    %c0_i32 = arith.constant 0 : i32
    %c0_i32_0 = arith.constant 0 : i32
    %c0_i32_1 = arith.constant 0 : i32
    return %c0_i32, %c0_i32_0 : i32, i32
  }
  func.func @transform_3(%arg0: i32) -> (i32, i32) {
    %c0_i32 = arith.constant 0 : i32
    %c0_i32_0 = arith.constant 0 : i32
    %c0_i32_1 = arith.constant 0 : i32
    return %c0_i32, %c0_i32_0 : i32, i32
  }
  func.func @transform_4(%arg0: i32) -> (i32, i32) {
    %c0_i32 = arith.constant 0 : i32
    %c0_i32_0 = arith.constant 0 : i32
    %c0_i32_1 = arith.constant 0 : i32
    return %c0_i32, %c0_i32_0 : i32, i32
  }
  func.func @transform_5(%arg0: i32) -> (i32, i32) {
    %c0_i32 = arith.constant 0 : i32
    %c0_i32_0 = arith.constant 0 : i32
    %c0_i32_1 = arith.constant 0 : i32
    return %c0_i32, %c0_i32_0 : i32, i32
  }
  func.func @transform_6(%arg0: i32) -> (i32, i32) {
    %c0_i32 = arith.constant 0 : i32
    %c0_i32_0 = arith.constant 0 : i32
    %c0_i32_1 = arith.constant 0 : i32
    return %c0_i32, %c0_i32_0 : i32, i32
  }
  func.func @transform_7(%arg0: i32) -> (i32, i32, i32) {
    %c0_i32 = arith.constant 0 : i32
    %c0_i32_0 = arith.constant 0 : i32
    %c0_i32_1 = arith.constant 0 : i32
    %c0_i32_2 = arith.constant 0 : i32
    return %c0_i32, %c0_i32_0, %c0_i32_1 : i32, i32, i32
  }
  func.func @transform_8(%arg0: i32) -> (i32, i32, i32) {
    %c0_i32 = arith.constant 0 : i32
    %c0_i32_0 = arith.constant 0 : i32
    %c0_i32_1 = arith.constant 0 : i32
    %c0_i32_2 = arith.constant 0 : i32
    return %c0_i32, %c0_i32_0, %c0_i32_1 : i32, i32, i32
  }
  func.func @transform_9(%arg0: i32) -> (i32, i32, i32) {
    %c0_i32 = arith.constant 0 : i32
    %c0_i32_0 = arith.constant 0 : i32
    %c0_i32_1 = arith.constant 0 : i32
    %c0_i32_2 = arith.constant 0 : i32
    return %c0_i32, %c0_i32_0, %c0_i32_1 : i32, i32, i32
  }
  func.func @transform_10(%arg0: i32) -> (i32, i32, i32) {
    %c0_i32 = arith.constant 0 : i32
    %c0_i32_0 = arith.constant 0 : i32
    %c0_i32_1 = arith.constant 0 : i32
    %c0_i32_2 = arith.constant 0 : i32
    return %c0_i32, %c0_i32_0, %c0_i32_1 : i32, i32, i32
  }
  func.func @transform_11(%arg0: i32) -> (i32, i32, i32) {
    %c0_i32 = arith.constant 0 : i32
    %c0_i32_0 = arith.constant 0 : i32
    %c0_i32_1 = arith.constant 0 : i32
    %c0_i32_2 = arith.constant 0 : i32
    return %c0_i32, %c0_i32_0, %c0_i32_1 : i32, i32, i32
  }
  func.func @transform_12(%arg0: i32) -> (i32, i32, i32) {
    %c0_i32 = arith.constant 0 : i32
    %c0_i32_0 = arith.constant 0 : i32
    %c0_i32_1 = arith.constant 0 : i32
    %c0_i32_2 = arith.constant 0 : i32
    return %c0_i32, %c0_i32_0, %c0_i32_1 : i32, i32, i32
  }
  func.func @transform_13(%arg0: i32) -> (i32, i32, i32) {
    %c0_i32 = arith.constant 0 : i32
    %c0_i32_0 = arith.constant 0 : i32
    %c0_i32_1 = arith.constant 0 : i32
    %c0_i32_2 = arith.constant 0 : i32
    return %c0_i32, %c0_i32_0, %c0_i32_1 : i32, i32, i32
  }
  func.func @transform_14(%arg0: i32) -> (i32, i32, i32) {
    %c0_i32 = arith.constant 0 : i32
    %c0_i32_0 = arith.constant 0 : i32
    %c0_i32_1 = arith.constant 0 : i32
    %c0_i32_2 = arith.constant 0 : i32
    return %c0_i32, %c0_i32_0, %c0_i32_1 : i32, i32, i32
  }
  func.func @transform_15(%arg0: i32) -> (i32, i32, i32) {
    %c0_i32 = arith.constant 0 : i32
    %c0_i32_0 = arith.constant 0 : i32
    %c0_i32_1 = arith.constant 0 : i32
    %c0_i32_2 = arith.constant 0 : i32
    return %c0_i32, %c0_i32_0, %c0_i32_1 : i32, i32, i32
  }
  func.func @transform_16(%arg0: i32) -> (i32, i32, i32) {
    %c0_i32 = arith.constant 0 : i32
    %c0_i32_0 = arith.constant 0 : i32
    %c0_i32_1 = arith.constant 0 : i32
    %c0_i32_2 = arith.constant 0 : i32
    return %c0_i32, %c0_i32_0, %c0_i32_1 : i32, i32, i32
  }
  func.func @transform_17(%arg0: i32) -> (i32, i32, i32) {
    %c0_i32 = arith.constant 0 : i32
    %c0_i32_0 = arith.constant 0 : i32
    %c0_i32_1 = arith.constant 0 : i32
    %c0_i32_2 = arith.constant 0 : i32
    return %c0_i32, %c0_i32_0, %c0_i32_1 : i32, i32, i32
  }
  func.func @transform_18(%arg0: i32) -> (i32, i32, i32) {
    %c0_i32 = arith.constant 0 : i32
    %c0_i32_0 = arith.constant 0 : i32
    %c0_i32_1 = arith.constant 0 : i32
    %c0_i32_2 = arith.constant 0 : i32
    return %c0_i32, %c0_i32_0, %c0_i32_1 : i32, i32, i32
  }
  func.func @transform_19(%arg0: i32) -> (i32, i32, i32) {
    %c0_i32 = arith.constant 0 : i32
    %c0_i32_0 = arith.constant 0 : i32
    %c0_i32_1 = arith.constant 0 : i32
    %c0_i32_2 = arith.constant 0 : i32
    return %c0_i32, %c0_i32_0, %c0_i32_1 : i32, i32, i32
  }
  func.func @transform_20(%arg0: i32) -> (i32, i32, i32) {
    %c0_i32 = arith.constant 0 : i32
    %c0_i32_0 = arith.constant 0 : i32
    %c0_i32_1 = arith.constant 0 : i32
    %c0_i32_2 = arith.constant 0 : i32
    return %c0_i32, %c0_i32_0, %c0_i32_1 : i32, i32, i32
  }
  func.func @transform_21(%arg0: i32) -> (i32, i32, i32) {
    %c0_i32 = arith.constant 0 : i32
    %c0_i32_0 = arith.constant 0 : i32
    %c0_i32_1 = arith.constant 0 : i32
    %c0_i32_2 = arith.constant 0 : i32
    return %c0_i32, %c0_i32_0, %c0_i32_1 : i32, i32, i32
  }
  func.func @transform_22(%arg0: i32) -> (i32, i32, i32) {
    %c0_i32 = arith.constant 0 : i32
    %c0_i32_0 = arith.constant 0 : i32
    %c0_i32_1 = arith.constant 0 : i32
    %c0_i32_2 = arith.constant 0 : i32
    return %c0_i32, %c0_i32_0, %c0_i32_1 : i32, i32, i32
  }
  func.func @transform_23(%arg0: i32) -> (i32, i32, i32) {
    %c0_i32 = arith.constant 0 : i32
    %c0_i32_0 = arith.constant 0 : i32
    %c0_i32_1 = arith.constant 0 : i32
    %c0_i32_2 = arith.constant 0 : i32
    return %c0_i32, %c0_i32_0, %c0_i32_1 : i32, i32, i32
  }
  func.func @transform_24(%arg0: i32) -> (i32, i32, i32) {
    %c0_i32 = arith.constant 0 : i32
    %c0_i32_0 = arith.constant 0 : i32
    %c0_i32_1 = arith.constant 0 : i32
    %c0_i32_2 = arith.constant 0 : i32
    return %c0_i32, %c0_i32_0, %c0_i32_1 : i32, i32, i32
  }
  func.func @transform_25(%arg0: i32) -> (i32, i32, i32) {
    %c0_i32 = arith.constant 0 : i32
    %c0_i32_0 = arith.constant 0 : i32
    %c0_i32_1 = arith.constant 0 : i32
    %c0_i32_2 = arith.constant 0 : i32
    return %c0_i32, %c0_i32_0, %c0_i32_1 : i32, i32, i32
  }
  func.func @transform_26(%arg0: i32) -> (i32, i32, i32) {
    %c0_i32 = arith.constant 0 : i32
    %c0_i32_0 = arith.constant 0 : i32
    %c0_i32_1 = arith.constant 0 : i32
    %c0_i32_2 = arith.constant 0 : i32
    return %c0_i32, %c0_i32_0, %c0_i32_1 : i32, i32, i32
  }
  func.func @transform_27(%arg0: i32) -> (i32, i32, i32) {
    %c0_i32 = arith.constant 0 : i32
    %c0_i32_0 = arith.constant 0 : i32
    %c0_i32_1 = arith.constant 0 : i32
    %c0_i32_2 = arith.constant 0 : i32
    return %c0_i32, %c0_i32_0, %c0_i32_1 : i32, i32, i32
  }
  func.func @transform_28(%arg0: i32) -> (i32, i32, i32) {
    %c0_i32 = arith.constant 0 : i32
    %c0_i32_0 = arith.constant 0 : i32
    %c0_i32_1 = arith.constant 0 : i32
    %c0_i32_2 = arith.constant 0 : i32
    return %c0_i32, %c0_i32_0, %c0_i32_1 : i32, i32, i32
  }
  func.func @transform_29(%arg0: i32) -> (i32, i32, i32) {
    %c0_i32 = arith.constant 0 : i32
    %c0_i32_0 = arith.constant 0 : i32
    %c0_i32_1 = arith.constant 0 : i32
    %c0_i32_2 = arith.constant 0 : i32
    return %c0_i32, %c0_i32_0, %c0_i32_1 : i32, i32, i32
  }
  func.func @transform_30(%arg0: i32) -> (i32, i32, i32) {
    %c0_i32 = arith.constant 0 : i32
    %c0_i32_0 = arith.constant 0 : i32
    %c0_i32_1 = arith.constant 0 : i32
    %c0_i32_2 = arith.constant 0 : i32
    return %c0_i32, %c0_i32_0, %c0_i32_1 : i32, i32, i32
  }
  func.func @transform_31(%arg0: i32) -> (i32, i32, i32) {
    %c0_i32 = arith.constant 0 : i32
    %c0_i32_0 = arith.constant 0 : i32
    %c0_i32_1 = arith.constant 0 : i32
    %c0_i32_2 = arith.constant 0 : i32
    return %c0_i32, %c0_i32_0, %c0_i32_1 : i32, i32, i32
  }
  func.func @transform_32(%arg0: i32) -> (i32, i32, i32) {
    %c0_i32 = arith.constant 0 : i32
    %c0_i32_0 = arith.constant 0 : i32
    %c0_i32_1 = arith.constant 0 : i32
    %c0_i32_2 = arith.constant 0 : i32
    return %c0_i32, %c0_i32_0, %c0_i32_1 : i32, i32, i32
  }
  func.func @transform_33(%arg0: i32) -> (i32, i32, i32) {
    %c0_i32 = arith.constant 0 : i32
    %c0_i32_0 = arith.constant 0 : i32
    %c0_i32_1 = arith.constant 0 : i32
    %c0_i32_2 = arith.constant 0 : i32
    return %c0_i32, %c0_i32_0, %c0_i32_1 : i32, i32, i32
  }
  func.func @transform_34(%arg0: i32) -> (i32, i32, i32) {
    %c0_i32 = arith.constant 0 : i32
    %c0_i32_0 = arith.constant 0 : i32
    %c0_i32_1 = arith.constant 0 : i32
    %c0_i32_2 = arith.constant 0 : i32
    return %c0_i32, %c0_i32_0, %c0_i32_1 : i32, i32, i32
  }
  func.func @transform_35(%arg0: i32) -> (i32, i32, i32) {
    %c0_i32 = arith.constant 0 : i32
    %c0_i32_0 = arith.constant 0 : i32
    %c0_i32_1 = arith.constant 0 : i32
    %c0_i32_2 = arith.constant 0 : i32
    return %c0_i32, %c0_i32_0, %c0_i32_1 : i32, i32, i32
  }
  func.func @transform_36(%arg0: i32) -> (i32, i32, i32) {
    %c0_i32 = arith.constant 0 : i32
    %c0_i32_0 = arith.constant 0 : i32
    %c0_i32_1 = arith.constant 0 : i32
    %c0_i32_2 = arith.constant 0 : i32
    return %c0_i32, %c0_i32_0, %c0_i32_1 : i32, i32, i32
  }
  func.func @transform_37(%arg0: i32) -> (i32, i32, i32) {
    %c0_i32 = arith.constant 0 : i32
    %c0_i32_0 = arith.constant 0 : i32
    %c0_i32_1 = arith.constant 0 : i32
    %c0_i32_2 = arith.constant 0 : i32
    return %c0_i32, %c0_i32_0, %c0_i32_1 : i32, i32, i32
  }
  func.func @transform_38(%arg0: i32) -> (i32, i32, i32) {
    %c0_i32 = arith.constant 0 : i32
    %c0_i32_0 = arith.constant 0 : i32
    %c0_i32_1 = arith.constant 0 : i32
    %c0_i32_2 = arith.constant 0 : i32
    return %c0_i32, %c0_i32_0, %c0_i32_1 : i32, i32, i32
  }
  func.func @transform_39(%arg0: i32) -> (i32, i32) {
    %c0_i32 = arith.constant 0 : i32
    %c0_i32_0 = arith.constant 0 : i32
    %c0_i32_1 = arith.constant 0 : i32
    return %c0_i32, %c0_i32_0 : i32, i32
  }
  func.func @transform_40(%arg0: i32) -> (i32, i32) {
    %c0_i32 = arith.constant 0 : i32
    %c0_i32_0 = arith.constant 0 : i32
    %c0_i32_1 = arith.constant 0 : i32
    return %c0_i32, %c0_i32_0 : i32, i32
  }
  func.func @transform_41(%arg0: i32) -> (i32, i32) {
    %c0_i32 = arith.constant 0 : i32
    %c0_i32_0 = arith.constant 0 : i32
    %c0_i32_1 = arith.constant 0 : i32
    return %c0_i32, %c0_i32_0 : i32, i32
  }
  func.func @transform_42(%arg0: i32) -> (i32, i32) {
    %c0_i32 = arith.constant 0 : i32
    %c0_i32_0 = arith.constant 0 : i32
    %c0_i32_1 = arith.constant 0 : i32
    return %c0_i32, %c0_i32_0 : i32, i32
  }
}

</mosaic_0001>

<bundles_post_ra>
// kernel: hybrid_forward.1
= control target key start
LH: loop header
LB: loop body
LE: loop exit
PB: predicated region body
PF: predicated region fallthrough
CT: control target
= control target key end

     0   :  { %s16525_s6 = smov 1   ;;  %s16526_s10 = smov 2   ;;  %s18518_s0 = inlined_call_operand.smem [shape: u32[43], index: -1, kind: input, shape index: {}] }
   0x1   :  { %s16594_s5 = sld [smem:[%s18518_s0]]   ;;  %s16527_s14 = smov 3  }
   0x2   :  { %s16599_s9 = sld [smem:[%s18518_s0 + %s16525_s6]]   ;;  %s16528_s18 = smov 4  }
   0x3   :  { %s16604_s13 = sld [smem:[%s18518_s0 + %s16526_s10]]   ;;  %s16529_s22 = smov 5  }
   0x4   :  { %s16609_s17 = sld [smem:[%s18518_s0 + %s16527_s14]]   ;;  %s16530_s26 = smov 6  }
   0x5   :  { %s16614_s21 = sld [smem:[%s18518_s0 + %s16528_s18]]   ;;  %s16531_s30 = smov 7  }
   0x6   :  { %s16619_s25 = sld [smem:[%s18518_s0 + %s16529_s22]]   ;;  %s16532_s4 = smov 8  }
   0x7   :  { %s16624_s29 = sld [smem:[%s18518_s0 + %s16530_s26]]   ;;  %s16533_s10 = smov 9  }
   0x8   :  { %s16629_s3 = sld [smem:[%s18518_s0 + %s16531_s30]]   ;;  %s16534_s15 = smov 10  }
   0x9   :  { %18552 = sst [smem:[#allocation8_spill]] %s16604_s13  ;;  %s16535_s20 = smov 11  }
   0xa   :  { %18553 = sst [smem:[#allocation9_spill]] %s16609_s17  ;;  %s16536_s26 = smov 12  }
   0xb   :  { %s16634_s8 = sld [smem:[%s18518_s0 + %s16532_s4]]   ;;  %s16537_s1 = smov 13  }
   0xc   :  { %18554 = sst [smem:[#allocation10_spill]] %s16619_s25  ;;  %s16538_s7 = smov 14  }
   0xd   :  { %s16639_s14 = sld [smem:[%s18518_s0 + %s16533_s10]]   ;;  %s16540_s22 = smov 16  }
   0xe   :  { %s16644_s19 = sld [smem:[%s18518_s0 + %s16534_s15]]   ;;  %s16539_s15 = smov 15  }
   0xf   :  { %s16649_s24 = sld [smem:[%s18518_s0 + %s16535_s20]]   ;;  %s16541_s28 = smov 17  }
  0x10   :  { %s16654_s30 = sld [smem:[%s18518_s0 + %s16536_s26]]  }
  0x11   :  { %s16659_s6 = sld [smem:[%s18518_s0 + %s16537_s1]]  }
  0x12   :  { %s16664_s12 = sld [smem:[%s18518_s0 + %s16538_s7]]   ;;  %s16542_s7 = smov 18  }
  0x13   :  { %s16669_s20 = sld [smem:[%s18518_s0 + %s16539_s15]]   ;;  %s16543_s15 = smov 19  }
  0x14   :  { %s16674_s27 = sld [smem:[%s18518_s0 + %s16540_s22]]   ;;  %s16544_s22 = smov 20  }
  0x15   :  { %s16679_s4 = sld [smem:[%s18518_s0 + %s16541_s28]]   ;;  %s16545_s28 = smov 21  }
  0x16   :  { %s16684_s17 = sld [smem:[%s18518_s0 + %s16542_s7]]   ;;  %s16546_s7 = smov 22  }
  0x17   :  { %s16689_s25 = sld [smem:[%s18518_s0 + %s16543_s15]]   ;;  %s16547_s15 = smov 23  }
  0x18   :  { %s16694_s13 = sld [smem:[%s18518_s0 + %s16544_s22]]   ;;  %s16548_s22 = smov 24  }
  0x1a   :  { %18555 = sst [smem:[#allocation11_spill]] %s16674_s27 }
  0x1b   :  { %s16699_s27 = sld [smem:[%s18518_s0 + %s16545_s28]]   ;;  %s16549_s28 = smov 25  }
  0x1c   :  { %18556 = sst [smem:[#allocation12_spill]] %s16684_s17 }
  0x1d   :  { %18557 = sst [smem:[#allocation13_spill]] %s16689_s25 }
  0x1e   :  { %18558 = sst [smem:[#allocation14_spill]] %s16694_s13 }
  0x1f   :  { %s16704_s17 = sld [smem:[%s18518_s0 + %s16546_s7]]   ;;  %s16550_s7 = smov 26  }
  0x20   :  { %s16709_s25 = sld [smem:[%s18518_s0 + %s16547_s15]]   ;;  %s16551_s15 = smov 27  }
  0x21   :  { %18559 = sst [smem:[#allocation15_spill]] %s16699_s27 }
  0x22   :  { %s16714_s13 = sld [smem:[%s18518_s0 + %s16548_s22]]   ;;  %s16552_s22 = smov 28  }
  0x23   :  { %s16719_s27 = sld [smem:[%s18518_s0 + %s16549_s28]]   ;;  %s16553_s28 = smov 29  }
  0x25   :  { %18560 = sst [smem:[#allocation16_spill]] %s16704_s17 }
  0x26   :  { %18561 = sst [smem:[#allocation17_spill]] %s16709_s25 }
  0x27   :  { %s16724_s17 = sld [smem:[%s18518_s0 + %s16550_s7]]   ;;  %s16554_s7 = smov 30  }
  0x28   :  { %18562 = sst [smem:[#allocation18_spill]] %s16714_s13 }
  0x29   :  { %18563 = sst [smem:[#allocation19_spill]] %s16719_s27 }
  0x2a   :  { %s16729_s25 = sld [smem:[%s18518_s0 + %s16551_s15]]   ;;  %s16555_s15 = smov 31  }
  0x2b   :  { %s16734_s13 = sld [smem:[%s18518_s0 + %s16552_s22]]   ;;  %s16556_s22 = smov 32  }
  0x2c   :  { %s16739_s27 = sld [smem:[%s18518_s0 + %s16553_s28]]   ;;  %s16557_s28 = smov 33  }
  0x2d   :  { %18564 = sst [smem:[#allocation20_spill]] %s16724_s17 }
  0x2e   :  { %s16744_s17 = sld [smem:[%s18518_s0 + %s16554_s7]]   ;;  %s16558_s7 = smov 34  }
  0x30   :  { %18565 = sst [smem:[#allocation21_spill]] %s16729_s25 }
  0x31   :  { %18566 = sst [smem:[#allocation22_spill]] %s16734_s13 }
  0x32   :  { %18567 = sst [smem:[#allocation23_spill]] %s16739_s27 }
  0x33   :  { %s16749_s25 = sld [smem:[%s18518_s0 + %s16555_s15]]   ;;  %s16559_s15 = smov 35  }
  0x34   :  { %18568 = sst [smem:[#allocation24_spill]] %s16744_s17 }
  0x35   :  { %s16754_s13 = sld [smem:[%s18518_s0 + %s16556_s22]]   ;;  %s16560_s22 = smov 36  }
  0x36   :  { %s16759_s27 = sld [smem:[%s18518_s0 + %s16557_s28]]   ;;  %s16561_s28 = smov 37  }
  0x37   :  { %s16764_s17 = sld [smem:[%s18518_s0 + %s16558_s7]]   ;;  %s16562_s7 = smov 38  }
  0x39   :  { %18569 = sst [smem:[#allocation25_spill]] %s16749_s25 }
  0x3a   :  { %s16769_s25 = sld [smem:[%s18518_s0 + %s16559_s15]]   ;;  %s16563_s15 = smov 39  }
  0x3b   :  { %18570 = sst [smem:[#allocation26_spill]] %s16754_s13 }
  0x3c   :  { %18571 = sst [smem:[#allocation27_spill]] %s16759_s27 }
  0x3d   :  { %18572 = sst [smem:[#allocation28_spill]] %s16764_s17 }
  0x3e   :  { %s16774_s13 = sld [smem:[%s18518_s0 + %s16560_s22]]   ;;  %s16564_s22 = smov 40  }
  0x3f   :  { %s16779_s27 = sld [smem:[%s18518_s0 + %s16561_s28]]   ;;  %s16565_s28 = smov 41  }
  0x40   :  { %18573 = sst [smem:[#allocation29_spill]] %s16769_s25 }
  0x41   :  { %s16784_s17 = sld [smem:[%s18518_s0 + %s16562_s7]]   ;;  %s16566_s7 = smov 42  }
  0x42   :  { %s16789_s25 = sld [smem:[%s18518_s0 + %s16563_s15]]  }
  0x44   :  { %18574 = sst [smem:[#allocation30_spill]] %s16774_s13 }
  0x45   :  { %18575 = sst [smem:[#allocation31_spill]] %s16779_s27 }
  0x46   :  { %s16794_s13 = sld [smem:[%s18518_s0 + %s16564_s22]]  }
  0x47   :  { %18576 = sst [smem:[#allocation32_spill]] %s16784_s17 }
  0x48   :  { %s16799_s27 = sld [smem:[%s18518_s0 + %s16565_s28]]  }
  0x49   :  { %s16804_s17 = sld [smem:[%s18518_s0 + %s16566_s7]]  }
  0x4a   :  { %91 = vsyncpa [#allocation3], 0  ;;  %v178_v0 = vlaneseq  ;;  %v175_v1 = vld [vmem:[%s16594_s5] sm:$0x3]  ;;  %v16567_v3 = vmov 0   ;;  %v202_v4 = vld [vmem:[%s16614_s21 + $0x38] sm:$0xff] }
  0x4b   :  { %v193_v2 = vld [vmem:[%s16599_s9] sm:$0xff]  ;;  %16238 = vset.pattern.permute.xlu0 %v16567_v3  ;;  %vm176_vm0 = vcmp.ne.s32.totalorder %v175_v1, 0  ;;  %v201_v5 = vld [vmem:[%s16614_s21 + $0x30] sm:$0xff]  ;;  %v16568_v6 = vmov 0.0   ;;  %15129 = vmatprep.subr.mxu0 %v202_v4  ;;  %v194_v9 = vld [vmem:[%s16599_s9 + $0x8] sm:$0xff] }
  0x4c   :  { %15159 = vmatprep.subr.mxu1 %v16568_v6  ;;  %v16811_v7 = vshrl.u32 %v178_v0, 7  ;;  %205 = vperm.xlu0 %16238, %v193_v2   ;;  %v177_v8 = vsel %vm176_vm0, 1, %v16567_v3  ;;  %v200_v10 = vld [vmem:[%s16614_s21 + $0x28] sm:$0xff] }
  0x4d   :  { %15130 = vmatpush3.msra.mxu0 %v202_v4  ;;  %16239 = vset.pattern.permute.xlu1 %v16567_v3 }
  0x4e   :  { %92 = vsyncpa [#allocation5], 0  ;;  %v180_v11 = vsub.s32 0, %v16811_v7  ;;  %v185_v12 = vsub.s32 1, %v16811_v7  ;;  %15131 = vmatprep.subr.mxu0 %v201_v5  ;;  %v199_v13 = vld [vmem:[%s16614_s21 + $0x20] sm:$0xff]  ;;  %v198_v16 = vld [vmem:[%s16614_s21 + $0x18] sm:$0xff] }
  0x4f   :  { %15132 = vmatpush3.msra.mxu0 %v201_v5  ;;  %v197_v17 = vld [vmem:[%s16614_s21 + $0x10] sm:$0xff]  ;;  %v196_v18 = vld [vmem:[%s16614_s21 + $0x8] sm:$0xff]  ;;  %v195_v19 = vld [vmem:[%s16614_s21] sm:$0xff]  ;;  %v16826_v20 = vand.u32 127, %v178_v0  ;;  %vm216_vm1 = vcmask 523264   ;;  %vm304_vm4 = vcmask 261120  }
  0x50   :  { %v16818_v14 = vrot.slane %v177_v8, %v180_v11  ;;  %v16820_v15 = vrot.slane %v177_v8, %v185_v12  ;;  %208 = vperm.xlu0 %16238, %v194_v9   ;;  %15133 = vmatprep.subr.mxu0 %v200_v10  ;;  %v203_v29 = vld [vmem:[%s16624_s29] sm:$0xff]  ;;  %v351_v44 = vld [vmem:[%s16639_s14 + $0x18] sm:$0xff]  ;;  %v350_v45 = vld [vmem:[%s16639_s14 + $0x10] sm:$0xff]  ;;  %vm16569_vm5 = vmmov 0   ;;  %s16570_s0 = smov 64   ;;  %s16571_s5 = smov 96  }
  0x51   :  { %15134 = vmatpush3.msra.mxu0 %v200_v10  ;;  %v349_v46 = vld [vmem:[%s16639_s14 + $0x8] sm:$0xff]  ;;  %v348_v47 = vld [vmem:[%s16639_s14] sm:$0xff]  ;;  %15161 = vmatprep.mubr.msk.f32.mxu1 %vm16569_vm5, %v16568_v6  ;;  %s16572_s9 = smov 88   ;;  %s16573_s21 = smov 120   ;;  %vm448_vm6 = vcmask 64512   ;;  %vm17466_vm11 = vcmp.le.s32.totalorder %v16826_v20, %v16811_v7  ;;  %vm14158_vm14 = vcmask 130048  }
  0x52   :  { %15135 = vmatprep.subr.mxu0 %v199_v13  ;;  %v14311_v55 = vld [vmem:[%s16629_s3] ss:$0 sm:$0xff]  ;;  %vm182_vm7 = vcmp.eq.s32.totalorder %v16818_v14, 1  ;;  %s16574_s15 = smov 80   ;;  %s18548_s16 = smov 112   ;;  %vm187_vm8 = vcmp.eq.s32.totalorder %v16820_v15, 1 }
  0x53   :  { %15136 = vmatpush3.msra.mxu0 %v199_v13  ;;  %v14312_v57 = vld [vmem:[%s16634_s8] ss:$0 sm:$0xff]  ;;  %s16576_s18 = smov 56   ;;  %s16577_s22 = smov 48  }
  0x54   :  { %15137 = vmatprep.subr.mxu0 %v198_v16  ;;  %v14313_v0 = vld [vmem:[%s16644_s19] ss:$0 sm:$0xff]  ;;  %s18546_s23 = smov 72   ;;  %s18550_s26 = smov 104  }
  0x55   :  { %15138 = vmatpush3.msra.mxu0 %v198_v16  ;;  %s18544_s28 = smov 40   ;;  %s18577_s1 = sld [smem:[#allocation11_spill]] }
  0x56   :  { %15139 = vmatprep.subr.mxu0 %v197_v17  ;;  %s18578_s2 = sld [smem:[#allocation12_spill]] }
  0x57   :  { %15140 = vmatpush3.msra.mxu0 %v197_v17  ;;  %s18592_s7 = sld [smem:[#allocation21_spill]] }
  0x58   :  { %15141 = vmatprep.subr.mxu0 %v196_v18  ;;  %s18593_s10 = sld [smem:[#allocation20_spill]] }
  0x59   :  { %15142 = vmatpush3.msra.mxu0 %v196_v18  ;;  %s18594_s11 = sld [smem:[#allocation22_spill]] }
  0x5a   :  { %15143 = vmatprep.subr.mxu0 %v195_v19 }
  0x5b   :  { %15144 = vmatpush3.msra.mxu0 %v195_v19 }
  0x5c   :  { %15148 = vmatprep.subr.mxu0 %v351_v44 }
  0xc7   :  { %v206_v21 = vpop.permute.xlu0 %205 }
  0xc8   :  { %vm210_vm2 = vcmp.eq.s32.totalorder %v16826_v20, %v206_v21 }
  0xc9   :  { %v14307_v22 = vsel %vm210_vm2, 1.0, %v16568_v6 }
  0xca   :  { %15145 = vmatprep.mubr.msk.f32.mxu0 %vm216_vm1, %v14307_v22 }
  0xcb   :  { %v209_v23 = vpop.permute.xlu0 %208 }
  0xcc   :  { %vm211_vm3 = vcmp.eq.s32.totalorder %v16826_v20, %v209_v23 }
  0xcd   :  { %v14308_v24 = vsel %vm211_vm3, 1.0, %v16568_v6 }
  0xce   :  { %15146 = vmatmul.mubr.msk.f32.vlgmr.msra.gmra.mxu0 %vm216_vm1, %v14308_v24 }
  0xcf   :  { %15149 = vmatpush3.msra.mxu0 %v351_v44 }
  0xd0   :  { %15150 = vmatprep.subr.mxu0 %v350_v45 }
  0xd1   :  { %15151 = vmatpush3.msra.mxu0 %v350_v45 }
  0xd2   :  { %15152 = vmatprep.subr.mxu0 %v349_v46 }
  0xd3   :  { %15153 = vmatpush3.msra.mxu0 %v349_v46 }
  0xd4   :  { %15154 = vmatprep.subr.mxu0 %v348_v47 }
  0xd5   :  { %15155 = vmatpush3.msra.mxu0 %v348_v47 }
  0xd6   :  { %15169 = vmatprep.subr.mxu0 %v16568_v6 }
 0x18e   :  { %v15147_v25 = vpop.f32.mrf.mxu0 }
 0x18f   :  { %v299_v27 = vmul.f32 5.656854, %v15147_v25 }
 0x190   :  { %v289_v26 = vpop.f32.mrf.mxu0 }
 0x191   :  { %v298_v28 = vmul.f32 5.656854, %v289_v26  ;;  %v16837_v31 = vadd.f32 %v299_v27, %v203_v29 }
 0x193   :  { %v16835_v30 = vadd.f32 %v298_v28, %v203_v29  ;;  %v308_v33 = vsel %vm304_vm4, %v16837_v31, 0.0 }
 0x195   :  { %v305_v32 = vsel %vm304_vm4, %v16835_v30, 0.0 }
 0x196   :  { %306 = vadd.xlane.f32.xlu1 %v305_v32 }
 0x19a   :  { %309 = vadd.xlane.f32.xlu1 %v308_v33 }
 0x21f   :  { %v307_v34 = vpop.xlane.xlu1 %306 }
 0x220   :  { %v312_v35 = vmul.f32 0.03125, %v307_v34 }
 0x222   :  { %v314_v36 = vsub.f32 %v16835_v30, %v312_v35 }
 0x223   :  { %v310_v37 = vpop.xlane.xlu1 %309 }
 0x224   :  { %v313_v38 = vmul.f32 0.03125, %v310_v37  ;;  %v316_v39 = vmul.f32 %v314_v36, %v314_v36  ;;  %v16910_v37 = vld [vmem:[%s16649_s24] sm:$0xff] }
 0x226   :  { %v315_v40 = vsub.f32 %v16837_v31, %v313_v38  ;;  %v318_v41 = vsel %vm304_vm4, %v316_v39, 0.0  ;;  %v16915_v38 = vld [vmem:[%s16649_s24 + $0x8] sm:$0xff] }
 0x227   :  { %319 = vadd.xlane.f32.xlu0 %v318_v41 }
 0x228   :  { %v317_v42 = vmul.f32 %v315_v40, %v315_v40 }
 0x22a   :  { %v321_v43 = vsel %vm304_vm4, %v317_v42, 0.0 }
 0x22b   :  { %322 = vadd.xlane.f32.xlu1 %v321_v43 }
 0x2b0   :  { %v320_v48 = vpop.xlane.xlu0 %319 }
 0x2b1   :  { %v324_v49 = vmul.f32 0.03125, %v320_v48 }
 0x2b3   :  { %v326_v50 = vadd.f32 1e-05, %v324_v49 }
 0x2b4   :  { %v323_v51 = vpop.xlane.xlu1 %322 }
 0x2b5   :  { %16240 = vrsqrt.f32 %v326_v50  ;;  %v325_v52 = vmul.f32 0.03125, %v323_v51 }
 0x2b7   :  { %v327_v53 = vadd.f32 1e-05, %v325_v52 }
 0x2b9   :  { %16242 = vrsqrt.f32 %v327_v53 }
 0x2c2   :  { %v16241_v54 = vpop.eup %16240 }
 0x2c3   :  { %v330_v56 = vmul.f32 %v16241_v54, %v314_v36 }
 0x2c5   :  { %v338_v58 = vmul.f32 %v14311_v55, %v330_v56 }
 0x2c6   :  { %v16243_v59 = vpop.eup %16242 }
 0x2c7   :  { %v331_v60 = vmul.f32 %v16243_v59, %v315_v40  ;;  %v346_v61 = vadd.f32 %v14312_v57, %v338_v58 }
 0x2c9   :  { %v339_v62 = vmul.f32 %v14311_v55, %v331_v60  ;;  %15156 = vmatprep.mubr.msk.f32.mxu0 %vm304_vm4, %v346_v61 }
 0x2cb   :  { %v347_v63 = vadd.f32 %v14312_v57, %v339_v62 }
 0x2cd   :  { %15157 = vmatmul.mubr.msk.f32.vlgmr.msra.gmra.mxu0 %vm304_vm4, %v347_v63 }
 0x2ce   :  { %15171 = vmatprep.mubr.msk.f32.mxu0 %vm16569_vm5, %v16568_v6 }
 0x38d   :  { %v15158_v1 = vpop.f32.mrf.mxu0 }
 0x38e   :  { %v16861_v2 = vadd.f32 %v15158_v1, %v14313_v0 }
 0x38f   :  { %v431_v3 = vpop.f32.mrf.mxu0 }
 0x390   :  { %v16863_v4 = vadd.f32 %v14313_v0, %v431_v3 }
 0x392   :  { %534 = vrot.lane.b32.xlu0 %v16863_v4, %s16570_s0  ;;  %446 = vrot.lane.b32.xlu1 %v16863_v4, %s16571_s5 }
 0x396   :  { %614 = vrot.lane.b32.xlu1 %v16863_v4, %s16572_s9 }
 0x39a   :  { %612 = vrot.lane.b32.xlu1 %v16863_v4, %s16573_s21 }
 0x404   :  { %v447_v5 = vpop.permute.xlu1 %446  ;;  %v535_v8 = vpop.permute.xlu0 %534 }
 0x405   :  { %15160 = vmatpush3.xpose.msk.msra.mxu1 %vm448_vm6, %v447_v5 }
 0x406   :  { %15164 = vmatprep.subr.mxu1 %v16568_v6 }
 0x408   :  { %15162 = vmatmul.mubr.msk.f32.vlgmr.msra.gmra.mxu1 %vm448_vm6, %v16863_v4  ;;  %v615_v9 = vpop.permute.xlu1 %614 }
 0x409   :  { %15165 = vmatpush3.msra.mxu1 %v535_v8  ;;  %15170 = vmatpush3.xpose.msk.msra.mxu0 %vm448_vm6, %v615_v9  ;;  %v16958_v9 = vld [vmem:[%s16649_s24 + $0x10] sm:$0xff] }
 0x40a   :  { %15166 = vmatprep.mubr.msk.f32.mxu1 %vm16569_vm5, %v16568_v6  ;;  %15174 = vmatprep.subr.mxu1 %v16568_v6 }
 0x40b   :  { %15179 = vmatprep.subr.mxu0 %v16568_v6 }
 0x40c   :  { %v613_v10 = vpop.permute.xlu1 %612 }
 0x40d   :  { %15172 = vmatmul.mubr.msk.f32.vlgmr.msra.gmra.mxu0 %vm448_vm6, %v613_v10 }
 0x40e   :  { %15181 = vmatprep.mubr.msk.f32.mxu0 %vm16569_vm5, %v16568_v6  ;;  %15180 = vmatpush3.msra.mxu0 %v16915_v38 }
 0x40f   :  { %15189 = vmatprep.subr.mxu0 %v16568_v6 }
 0x4c8   :  { %v519_v11 = vpop.f32.mrf.mxu1 }
 0x4c9   :  { %v523_v12 = vmul.f32 0.35355338, %v519_v11 }
 0x4ca   :  { %v15163_v13 = vpop.f32.mrf.mxu1 }
 0x4cb   :  { %v524_v16 = vsel %vm182_vm7, %v523_v12, -inf }
 0x4cc   :  { %v525_v17 = vsel %vm448_vm6, %v524_v16, -inf }
 0x4cd   :  { %v686_v18 = vpop.f32.mrf.mxu0  ;;  %526 = vmax.xlane.f32.xlu1 %v525_v17 }
 0x4ce   :  { %v690_v19 = vmul.f32 0.35355338, %v686_v18 }
 0x4cf   :  { %v15173_v21 = vpop.f32.mrf.mxu0 }
 0x4d0   :  { %v691_v22 = vsel %vm182_vm7, %v690_v19, -inf }
 0x4d1   :  { %v692_v23 = vsel %vm448_vm6, %v691_v22, -inf }
 0x4d2   :  { %693 = vmax.xlane.f32.xlu0 %v692_v23 }
 0x4de   :  { %927 = vrot.lane.b32.xlu1 %v16863_v4, %s16574_s15 }
 0x4e2   :  { %925 = vrot.lane.b32.xlu1 %v16863_v4, %s18548_s16 }
 0x4e8   :  { %701 = vrot.lane.b32.xlu0 %v16863_v4, %s16576_s18 }
 0x556   :  { %v527_v24 = vpop.xlane.xlu1 %526 }
 0x557   :  { %v528_v25 = vsub.f32 %v524_v16, %v527_v24 }
 0x559   :  { %v529_v26 = vmul.f32 1.442695, %v528_v25 }
 0x55a   :  { %v928_v39 = vpop.permute.xlu1 %927 }
 0x55b   :  { %16244 = vpow2.f32 %v529_v26  ;;  %v694_v27 = vpop.xlane.xlu0 %693 }
 0x55c   :  { %v695_v28 = vsub.f32 %v691_v22, %v694_v27 }
 0x55e   :  { %v696_v29 = vmul.f32 1.442695, %v695_v28  ;;  %v926_v40 = vpop.permute.xlu1 %925 }
 0x55f   :  { %v702_v33 = vpop.permute.xlu0 %701 }
 0x560   :  { %16246 = vpow2.f32 %v696_v29 }
 0x568   :  { %v16245_v32 = vpop.eup %16244 }
 0x569   :  { %15167 = vmatmul.mubr.msk.f32.vlgmr.msra.gmra.mxu1 %vm448_vm6, %v16245_v32  ;;  %v531_v34 = vsel %vm448_vm6, %v16245_v32, 0.0 }
 0x56a   :  { %15175 = vmatpush3.msra.mxu1 %v702_v33  ;;  %532 = vadd.xlane.f32.xlu1 %v531_v34 }
 0x56b   :  { %15176 = vmatprep.mubr.msk.f32.mxu1 %vm16569_vm5, %v16568_v6  ;;  %15184 = vmatprep.subr.mxu1 %v16568_v6 }
 0x56d   :  { %v16247_v35 = vpop.eup %16246 }
 0x56e   :  { %15177 = vmatmul.mubr.msk.f32.vlgmr.msra.gmra.mxu1 %vm448_vm6, %v16247_v35  ;;  %v698_v36 = vsel %vm448_vm6, %v16247_v35, 0.0 }
 0x56f   :  { %699 = vadd.xlane.f32.xlu0 %v698_v36  ;;  %15186 = vmatprep.mubr.msk.f32.mxu1 %vm16569_vm5, %v16568_v6  ;;  %v16994_v36 = vld [vmem:[%s16649_s24 + $0x18] sm:$0xff] }
 0x570   :  { %15185 = vmatpush3.msra.mxu1 %v16910_v37 }
 0x571   :  { %15194 = vmatprep.subr.mxu1 %v16568_v6 }
 0x585   :  { %1014 = vrot.lane.b32.xlu0 %v16863_v4, %s16577_s22 }
 0x5f3   :  { %v533_v41 = vpop.xlane.xlu1 %532 }
 0x5f4   :  { %16248 = vrcp.f32 %v533_v41 }
 0x5f8   :  { %v700_v42 = vpop.xlane.xlu0 %699 }
 0x5f9   :  { %16250 = vrcp.f32 %v700_v42 }
 0x5fc   :  { %v1015_v47 = vpop.permute.xlu0 %1014 }
 0x601   :  { %v16249_v43 = vpop.eup %16248 }
 0x606   :  { %v16251_v48 = vpop.eup %16250 }
 0x629   :  { %v606_v44 = vpop.f32.mrf.mxu1 }
 0x62a   :  { %v611_v45 = vmul.f32 %v16249_v43, %v606_v44 }
 0x62b   :  { %v15168_v46 = vpop.f32.mrf.mxu1 }
 0x62c   :  { %15187 = vmatmul.mubr.msk.f32.vlgmr.msra.gmra.mxu1 %vm448_vm6, %v611_v45 }
 0x62d   :  { %15195 = vmatpush3.msra.mxu1 %v1015_v47  ;;  %15196 = vmatprep.mubr.msk.f32.mxu1 %vm16569_vm5, %v16568_v6 }
 0x62e   :  { %v773_v49 = vpop.f32.mrf.mxu1  ;;  %15204 = vmatprep.subr.mxu1 %v16568_v6 }
 0x62f   :  { %v778_v50 = vmul.f32 %v16251_v48, %v773_v49 }
 0x630   :  { %v15178_v51 = vpop.f32.mrf.mxu1 }
 0x631   :  { %15182 = vmatmul.mubr.msk.f32.vlgmr.msra.gmra.mxu0 %vm448_vm6, %v778_v50 }
 0x632   :  { %15190 = vmatpush3.xpose.msk.msra.mxu0 %vm448_vm6, %v928_v39  ;;  %15191 = vmatprep.mubr.msk.f32.mxu0 %vm16569_vm5, %v16568_v6 }
 0x633   :  { %15199 = vmatprep.subr.mxu0 %v16568_v6 }
 0x635   :  { %15192 = vmatmul.mubr.msk.f32.vlgmr.msra.gmra.mxu0 %vm448_vm6, %v926_v40 }
 0x636   :  { %15201 = vmatprep.mubr.msk.f32.mxu0 %vm16569_vm5, %v16568_v6  ;;  %15200 = vmatpush3.msra.mxu0 %v16958_v9 }
 0x637   :  { %15209 = vmatprep.subr.mxu0 %v16568_v6 }
 0x6ec   :  { %v921_v52 = vpop.f32.mrf.mxu1 }
 0x6ee   :  { %v15188_v53 = vpop.f32.mrf.mxu1 }
 0x6f1   :  { %v848_v54 = vpop.f32.mrf.mxu0 }
 0x6f2   :  { %v16931_v55 = vadd.f32 %v921_v52, %v848_v54 }
 0x6f3   :  { %v15183_v56 = vpop.f32.mrf.mxu0 }
 0x6f5   :  { %v999_v57 = vpop.f32.mrf.mxu0 }
 0x6f6   :  { %v1003_v58 = vmul.f32 0.35355338, %v999_v57 }
 0x6f7   :  { %v15193_v59 = vpop.f32.mrf.mxu0 }
 0x6f8   :  { %v1004_v60 = vsel %vm182_vm7, %v1003_v58, -inf }
 0x6f9   :  { %v1005_v61 = vsel %vm448_vm6, %v1004_v60, -inf }
 0x6fa   :  { %1006 = vmax.xlane.f32.xlu0 %v1005_v61 }
 0x710   :  { %1168 = vrot.lane.b32.xlu0 %v16863_v4, %s18546_s23 }
 0x714   :  { %1166 = vrot.lane.b32.xlu0 %v16863_v4, %s18550_s26 }
 0x783   :  { %v1007_v62 = vpop.xlane.xlu0 %1006 }
 0x784   :  { %v1008_v63 = vsub.f32 %v1004_v60, %v1007_v62 }
 0x786   :  { %v1009_v0 = vmul.f32 1.442695, %v1008_v63 }
 0x787   :  { %v1169_v1 = vpop.permute.xlu0 %1168 }
 0x788   :  { %16252 = vpow2.f32 %v1009_v0 }
 0x78b   :  { %v1167_v8 = vpop.permute.xlu0 %1166 }
 0x795   :  { %v16253_v3 = vpop.eup %16252 }
 0x796   :  { %15197 = vmatmul.mubr.msk.f32.vlgmr.msra.gmra.mxu1 %vm448_vm6, %v16253_v3  ;;  %v1011_v5 = vsel %vm448_vm6, %v16253_v3, 0.0 }
 0x797   :  { %15205 = vmatpush3.xpose.msk.msra.mxu1 %vm448_vm6, %v1169_v1  ;;  %1012 = vadd.xlane.f32.xlu1 %v1011_v5 }
 0x798   :  { %15206 = vmatprep.mubr.msk.f32.mxu1 %vm16569_vm5, %v16568_v6  ;;  %15214 = vmatprep.subr.mxu1 %v16568_v6 }
 0x79a   :  { %15207 = vmatmul.mubr.msk.f32.vlgmr.msra.gmra.mxu1 %vm448_vm6, %v1167_v8 }
 0x79b   :  { %15216 = vmatprep.mubr.msk.f32.mxu1 %vm16569_vm5, %v16568_v6  ;;  %15215 = vmatpush3.msra.mxu1 %v16994_v36 }
 0x79c   :  { %15224 = vmatprep.subr.mxu1 %v16568_v6 }
 0x7a8   :  { %1255 = vrot.lane.b32.xlu1 %v16863_v4, %s18544_s28 }
 0x7ac   :  { %1408 = vrot.lane.b32.xlu1 %v16861_v2, %s16571_s5 }
 0x7b0   :  { %1575 = vrot.lane.b32.xlu1 %v16861_v2, %s16572_s9 }
 0x7b4   :  { %1573 = vrot.lane.b32.xlu1 %v16861_v2, %s16573_s21 }
 0x820   :  { %v1013_v10 = vpop.xlane.xlu1 %1012 }
 0x821   :  { %16254 = vrcp.f32 %v1013_v10 }
 0x824   :  { %v1256_v16 = vpop.permute.xlu1 %1255 }
 0x828   :  { %v1409_v26 = vpop.permute.xlu1 %1408 }
 0x82c   :  { %v1576_v29 = vpop.permute.xlu1 %1575 }
 0x82e   :  { %v16255_v11 = vpop.eup %16254 }
 0x830   :  { %v1574_v32 = vpop.permute.xlu1 %1573 }
 0x856   :  { %v1086_v12 = vpop.f32.mrf.mxu1 }
 0x857   :  { %v1091_v4 = vmul.f32 %v16255_v11, %v1086_v12 }
 0x858   :  { %v15198_v13 = vpop.f32.mrf.mxu1 }
 0x859   :  { %15202 = vmatmul.mubr.msk.f32.vlgmr.msra.gmra.mxu0 %vm448_vm6, %v1091_v4 }
 0x85a   :  { %15210 = vmatpush3.msra.mxu0 %v1256_v16  ;;  %v1240_v17 = vpop.f32.mrf.mxu1  ;;  %15211 = vmatprep.mubr.msk.f32.mxu0 %vm16569_vm5, %v16568_v6 }
 0x85b   :  { %v1244_v18 = vmul.f32 0.35355338, %v1240_v17  ;;  %15219 = vmatprep.subr.mxu0 %v16568_v6 }
 0x85c   :  { %v15208_v19 = vpop.f32.mrf.mxu1 }
 0x85d   :  { %v1245_v21 = vsel %vm182_vm7, %v1244_v18, -inf }
 0x85e   :  { %v1246_v22 = vsel %vm448_vm6, %v1245_v21, -inf }
 0x85f   :  { %1247 = vmax.xlane.f32.xlu0 %v1246_v22 }
 0x875   :  { %1495 = vrot.lane.b32.xlu0 %v16861_v2, %s16570_s0 }
 0x8e8   :  { %v1248_v23 = vpop.xlane.xlu0 %1247 }
 0x8e9   :  { %v1249_v24 = vsub.f32 %v1245_v21, %v1248_v23 }
 0x8eb   :  { %v1250_v25 = vmul.f32 1.442695, %v1249_v24 }
 0x8ec   :  { %v1496_v43 = vpop.permute.xlu0 %1495 }
 0x8ed   :  { %16256 = vpow2.f32 %v1250_v25 }
 0x8fa   :  { %v16257_v27 = vpop.eup %16256 }
 0x8fb   :  { %15212 = vmatmul.mubr.msk.f32.vlgmr.msra.gmra.mxu0 %vm448_vm6, %v16257_v27  ;;  %v1252_v28 = vsel %vm448_vm6, %v16257_v27, 0.0 }
 0x8fc   :  { %15220 = vmatpush3.xpose.msk.msra.mxu0 %vm448_vm6, %v1409_v26  ;;  %1253 = vadd.xlane.f32.xlu1 %v1252_v28 }
 0x8fd   :  { %15221 = vmatprep.mubr.msk.f32.mxu0 %vm16569_vm5, %v16568_v6  ;;  %15229 = vmatprep.subr.mxu0 %v16568_v6 }
 0x8ff   :  { %15222 = vmatmul.mubr.msk.f32.vlgmr.msra.gmra.mxu0 %vm448_vm6, %v16861_v2 }
 0x900   :  { %15230 = vmatpush3.xpose.msk.msra.mxu0 %vm448_vm6, %v1576_v29  ;;  %15231 = vmatprep.mubr.msk.f32.mxu0 %vm16569_vm5, %v16568_v6 }
 0x901   :  { %15239 = vmatprep.subr.mxu0 %v16568_v6 }
 0x903   :  { %15232 = vmatmul.mubr.msk.f32.vlgmr.msra.gmra.mxu0 %vm448_vm6, %v1574_v32 }
 0x904   :  { %15240 = vmatpush3.msra.mxu0 %v16915_v38  ;;  %15241 = vmatprep.mubr.msk.f32.mxu0 %vm16569_vm5, %v16568_v6 }
 0x905   :  { %15249 = vmatprep.subr.mxu0 %v16568_v6 }
 0x90d   :  { %1888 = vrot.lane.b32.xlu1 %v16861_v2, %s16574_s15 }
 0x911   :  { %1886 = vrot.lane.b32.xlu1 %v16861_v2, %s18548_s16 }
 0x919   :  { %v1161_v33 = vpop.f32.mrf.mxu0 }
 0x91a   :  { %v1165_v34 = vadd.f32 %v1161_v33, %v16931_v55 }
 0x91b   :  { %v15203_v35 = vpop.f32.mrf.mxu0 }
 0x985   :  { %v1254_v38 = vpop.xlane.xlu1 %1253 }
 0x986   :  { %16258 = vrcp.f32 %v1254_v38 }
 0x989   :  { %v1889_v8 = vpop.permute.xlu1 %1888 }
 0x98d   :  { %v1887_v10 = vpop.permute.xlu1 %1886 }
 0x993   :  { %v16259_v39 = vpop.eup %16258 }
 0x9bb   :  { %v1327_v40 = vpop.f32.mrf.mxu0 }
 0x9bc   :  { %v1332_v41 = vmul.f32 %v16259_v39, %v1327_v40 }
 0x9bd   :  { %v15213_v42 = vpop.f32.mrf.mxu0 }
 0x9be   :  { %15217 = vmatmul.mubr.msk.f32.vlgmr.msra.gmra.mxu1 %vm448_vm6, %v1332_v41 }
 0x9bf   :  { %15225 = vmatpush3.msra.mxu1 %v1496_v43  ;;  %v1480_v44 = vpop.f32.mrf.mxu0  ;;  %15226 = vmatprep.mubr.msk.f32.mxu1 %vm16569_vm5, %v16568_v6  ;;  %v14348_v43 = vld [vmem:[%s16654_s30] ss:$0 sm:$0xff] }
 0x9c0   :  { %v1484_v45 = vmul.f32 0.35355338, %v1480_v44  ;;  %15234 = vmatprep.subr.mxu1 %v16568_v6 }
 0x9c1   :  { %v15223_v46 = vpop.f32.mrf.mxu0 }
 0x9c2   :  { %v1485_v47 = vsel %vm187_vm8, %v1484_v45, -inf }
 0x9c3   :  { %v1647_v48 = vpop.f32.mrf.mxu0  ;;  %v1486_v49 = vsel %vm448_vm6, %v1485_v47, -inf }
 0x9c4   :  { %v1651_v50 = vmul.f32 0.35355338, %v1647_v48  ;;  %1487 = vmax.xlane.f32.xlu0 %v1486_v49 }
 0x9c5   :  { %v15233_v51 = vpop.f32.mrf.mxu0 }
 0x9c6   :  { %v1652_v52 = vsel %vm187_vm8, %v1651_v50, -inf }
 0x9c7   :  { %v1653_v53 = vsel %vm448_vm6, %v1652_v52, -inf }
 0x9c8   :  { %1654 = vmax.xlane.f32.xlu0 %v1653_v53 }
 0x9de   :  { %1662 = vrot.lane.b32.xlu0 %v16861_v2, %s16576_s18 }
 0xa4d   :  { %v1488_v54 = vpop.xlane.xlu0 %1487 }
 0xa4e   :  { %v1489_v55 = vsub.f32 %v1485_v47, %v1488_v54 }
 0xa50   :  { %v1490_v56 = vmul.f32 1.442695, %v1489_v55 }
 0xa51   :  { %v1655_v57 = vpop.xlane.xlu0 %1654 }
 0xa52   :  { %16260 = vpow2.f32 %v1490_v56  ;;  %v1656_v58 = vsub.f32 %v1652_v52, %v1655_v57 }
 0xa54   :  { %v1657_v59 = vmul.f32 1.442695, %v1656_v58 }
 0xa55   :  { %v1663_v61 = vpop.permute.xlu0 %1662 }
 0xa56   :  { %16262 = vpow2.f32 %v1657_v59 }
 0xa5f   :  { %v16261_v60 = vpop.eup %16260 }
 0xa60   :  { %15227 = vmatmul.mubr.msk.f32.vlgmr.msra.gmra.mxu1 %vm448_vm6, %v16261_v60  ;;  %v1492_v62 = vsel %vm448_vm6, %v16261_v60, 0.0 }
 0xa61   :  { %15235 = vmatpush3.msra.mxu1 %v1663_v61  ;;  %1493 = vadd.xlane.f32.xlu1 %v1492_v62 }
 0xa62   :  { %15236 = vmatprep.mubr.msk.f32.mxu1 %vm16569_vm5, %v16568_v6  ;;  %15244 = vmatprep.subr.mxu1 %v16568_v6 }
 0xa63   :  { %v16263_v63 = vpop.eup %16262 }
 0xa64   :  { %15237 = vmatmul.mubr.msk.f32.vlgmr.msra.gmra.mxu1 %vm448_vm6, %v16263_v63  ;;  %v1659_v0 = vsel %vm448_vm6, %v16263_v63, 0.0 }
 0xa65   :  { %1660 = vadd.xlane.f32.xlu0 %v1659_v0  ;;  %15245 = vmatpush3.msra.mxu1 %v16910_v37 }
 0xa66   :  { %15246 = vmatprep.mubr.msk.f32.mxu1 %vm16569_vm5, %v16568_v6  ;;  %15254 = vmatprep.subr.mxu1 %v16568_v6 }
 0xa72   :  { %2127 = vrot.lane.b32.xlu1 %v16861_v2, %s18550_s26 }
 0xa7b   :  { %1975 = vrot.lane.b32.xlu0 %v16861_v2, %s16577_s22 }
 0xa7e   :  { %v1402_v1 = vpop.f32.mrf.mxu1 }
 0xa7f   :  { %v1406_v3 = vadd.f32 %v1402_v1, %v1165_v34 }
 0xa80   :  { %v15218_v5 = vpop.f32.mrf.mxu1 }
 0xa81   :  { %v2374_v44 = vadd.f32 %v14348_v43, %v1406_v3 }
 0xa83   :  { %v17059_v45 = vadd.f32 %v2374_v44, %v16835_v30  ;;  %v2528_v44 = vld [vmem:[%s16679_s4 + $0x60] sm:$0xff] }
 0xa85   :  { %v2380_v46 = vsel %vm304_vm4, %v17059_v45, 0.0 }
 0xaea   :  { %v1494_v11 = vpop.xlane.xlu1 %1493 }
 0xaeb   :  { %16264 = vrcp.f32 %v1494_v11 }
 0xaee   :  { %v1661_v12 = vpop.xlane.xlu0 %1660  ;;  %v2128_v42 = vpop.permute.xlu1 %2127 }
 0xaef   :  { %16266 = vrcp.f32 %v1661_v12 }
 0xaf2   :  { %v1976_v17 = vpop.permute.xlu0 %1975 }
 0xaf8   :  { %v16265_v37 = vpop.eup %16264 }
 0xafc   :  { %v16267_v18 = vpop.eup %16266 }
 0xb20   :  { %v1567_v4 = vpop.f32.mrf.mxu1 }
 0xb21   :  { %v1572_v13 = vmul.f32 %v16265_v37, %v1567_v4 }
 0xb22   :  { %v15228_v16 = vpop.f32.mrf.mxu1 }
 0xb23   :  { %15247 = vmatmul.mubr.msk.f32.vlgmr.msra.gmra.mxu1 %vm448_vm6, %v1572_v13 }
 0xb24   :  { %15255 = vmatpush3.msra.mxu1 %v1976_v17  ;;  %v1734_v19 = vpop.f32.mrf.mxu1  ;;  %15256 = vmatprep.mubr.msk.f32.mxu1 %vm16569_vm5, %v16568_v6 }
 0xb25   :  { %v1739_v21 = vmul.f32 %v16267_v18, %v1734_v19  ;;  %15264 = vmatprep.subr.mxu1 %v16568_v6 }
 0xb26   :  { %v15238_v22 = vpop.f32.mrf.mxu1 }
 0xb27   :  { %15242 = vmatmul.mubr.msk.f32.vlgmr.msra.gmra.mxu0 %vm448_vm6, %v1739_v21 }
 0xb28   :  { %15250 = vmatpush3.xpose.msk.msra.mxu0 %vm448_vm6, %v1889_v8  ;;  %15251 = vmatprep.mubr.msk.f32.mxu0 %vm16569_vm5, %v16568_v6 }
 0xb29   :  { %15259 = vmatprep.subr.mxu0 %v16568_v6 }
 0xb2b   :  { %15252 = vmatmul.mubr.msk.f32.vlgmr.msra.gmra.mxu0 %vm448_vm6, %v1887_v10 }
 0xb2c   :  { %15260 = vmatpush3.msra.mxu0 %v16958_v9  ;;  %15261 = vmatprep.mubr.msk.f32.mxu0 %vm16569_vm5, %v16568_v6 }
 0xb2d   :  { %15269 = vmatprep.subr.mxu0 %v16568_v6 }
 0xbe3   :  { %v1882_v23 = vpop.f32.mrf.mxu1 }
 0xbe5   :  { %v15248_v24 = vpop.f32.mrf.mxu1 }
 0xbe7   :  { %v1809_v25 = vpop.f32.mrf.mxu0 }
 0xbe8   :  { %v1883_v26 = vadd.f32 %v1882_v23, %v1809_v25 }
 0xbe9   :  { %v15243_v27 = vpop.f32.mrf.mxu0 }
 0xbeb   :  { %v1960_v28 = vpop.f32.mrf.mxu0 }
 0xbec   :  { %v1964_v29 = vmul.f32 0.35355338, %v1960_v28 }
 0xbed   :  { %v15253_v32 = vpop.f32.mrf.mxu0 }
 0xbee   :  { %v1965_v33 = vsel %vm187_vm8, %v1964_v29, -inf  ;;  %v14349_v29 = vld [vmem:[%s16659_s6] ss:$0 sm:$0xff]  ;;  %v2425_v32 = vld [vmem:[%s16669_s20 + $0x18] sm:$0xff] }
 0xbef   :  { %v1966_v34 = vsel %vm448_vm6, %v1965_v33, -inf }
 0xbf0   :  { %1967 = vmax.xlane.f32.xlu0 %v1966_v34 }
 0xc06   :  { %2129 = vrot.lane.b32.xlu0 %v16861_v2, %s18546_s23 }
 0xc79   :  { %v1968_v9 = vpop.xlane.xlu0 %1967 }
 0xc7a   :  { %v1969_v35 = vsub.f32 %v1965_v33, %v1968_v9  ;;  %v2424_v33 = vld [vmem:[%s16669_s20 + $0x10] sm:$0xff]  ;;  %v14350_v9 = vld [vmem:[%s16664_s12] ss:$0 sm:$0xff] }
 0xc7c   :  { %v1970_v38 = vmul.f32 1.442695, %v1969_v35  ;;  %v2423_v35 = vld [vmem:[%s16669_s20 + $0x8] sm:$0xff] }
 0xc7d   :  { %v2130_v40 = vpop.permute.xlu0 %2129 }
 0xc7e   :  { %16268 = vpow2.f32 %v1970_v38 }
 0xc8b   :  { %v16269_v39 = vpop.eup %16268 }
 0xc8c   :  { %15257 = vmatmul.mubr.msk.f32.vlgmr.msra.gmra.mxu1 %vm448_vm6, %v16269_v39  ;;  %v1972_v41 = vsel %vm448_vm6, %v16269_v39, 0.0  ;;  %v2422_v39 = vld [vmem:[%s16669_s20] sm:$0xff] }
 0xc8d   :  { %15265 = vmatpush3.xpose.msk.msra.mxu1 %vm448_vm6, %v2130_v40  ;;  %1973 = vadd.xlane.f32.xlu0 %v1972_v41  ;;  %v2531_v41 = vld [vmem:[%s16679_s4 + $0x78] sm:$0xff] }
 0xc8e   :  { %15266 = vmatprep.mubr.msk.f32.mxu1 %vm16569_vm5, %v16568_v6  ;;  %15274 = vmatprep.subr.mxu1 %v16568_v6 }
 0xc90   :  { %15267 = vmatmul.mubr.msk.f32.vlgmr.msra.gmra.mxu1 %vm448_vm6, %v2128_v42  ;;  %v2530_v42 = vld [vmem:[%s16679_s4 + $0x70] sm:$0xff] }
 0xc91   :  { %15275 = vmatpush3.msra.mxu1 %v16994_v36  ;;  %15276 = vmatprep.mubr.msk.f32.mxu1 %vm16569_vm5, %v16568_v6 }
 0xc92   :  { %15290 = vmatprep.subr.mxu1 %v2531_v41 }
 0xca3   :  { %2216 = vrot.lane.b32.xlu0 %v16861_v2, %s18544_s28 }
 0xcc2   :  { %2381 = vadd.xlane.f32.xlu0 %v2380_v46  ;;  %v2527_v46 = vld [vmem:[%s16679_s4 + $0x58] sm:$0xff] }
 0xd16   :  { %v1974_v47 = vpop.xlane.xlu0 %1973 }
 0xd17   :  { %16270 = vrcp.f32 %v1974_v47  ;;  %v2526_v47 = vld [vmem:[%s16679_s4 + $0x50] sm:$0xff] }
 0xd1a   :  { %v2217_v51 = vpop.permute.xlu0 %2216 }
 0xd24   :  { %v16271_v48 = vpop.eup %16270 }
 0xd4b   :  { %v2382_v8 = vpop.xlane.xlu0 %2381 }
 0xd4c   :  { %v2047_v49 = vpop.f32.mrf.mxu1  ;;  %v2386_v10 = vmul.f32 0.03125, %v2382_v8 }
 0xd4d   :  { %v2052_v36 = vmul.f32 %v16271_v48, %v2047_v49  ;;  %v2525_v48 = vld [vmem:[%s16679_s4 + $0x48] sm:$0xff]  ;;  %v2524_v49 = vld [vmem:[%s16679_s4 + $0x40] sm:$0xff] }
 0xd4e   :  { %v15258_v50 = vpop.f32.mrf.mxu1  ;;  %v2388_v4 = vsub.f32 %v17059_v45, %v2386_v10 }
 0xd4f   :  { %15262 = vmatmul.mubr.msk.f32.vlgmr.msra.gmra.mxu0 %vm448_vm6, %v2052_v36  ;;  %v2523_v36 = vld [vmem:[%s16679_s4 + $0x38] sm:$0xff]  ;;  %v2522_v50 = vld [vmem:[%s16679_s4 + $0x30] sm:$0xff] }
 0xd50   :  { %15270 = vmatpush3.msra.mxu0 %v2217_v51  ;;  %v2201_v2 = vpop.f32.mrf.mxu1  ;;  %15271 = vmatprep.mubr.msk.f32.mxu0 %vm16569_vm5, %v16568_v6  ;;  %v2390_v18 = vmul.f32 %v2388_v4, %v2388_v4  ;;  %v2521_v51 = vld [vmem:[%s16679_s4 + $0x28] sm:$0xff] }
 0xd51   :  { %v2205_v30 = vmul.f32 0.35355338, %v2201_v2  ;;  %15279 = vmatprep.subr.mxu0 %v2425_v32  ;;  %v2520_v2 = vld [vmem:[%s16679_s4 + $0x20] sm:$0xff] }
 0xd52   :  { %v15268_v52 = vpop.f32.mrf.mxu1  ;;  %v2392_v19 = vsel %vm304_vm4, %v2390_v18, 0.0 }
 0xd53   :  { %v2206_v53 = vsel %vm187_vm8, %v2205_v30, -inf }
 0xd54   :  { %v2207_v54 = vsel %vm448_vm6, %v2206_v53, -inf }
 0xd55   :  { %2208 = vmax.xlane.f32.xlu1 %v2207_v54 }
 0xdde   :  { %v2209_v55 = vpop.xlane.xlu1 %2208 }
 0xddf   :  { %v2210_v56 = vsub.f32 %v2206_v53, %v2209_v55 }
 0xde1   :  { %v2211_v57 = vmul.f32 1.442695, %v2210_v56 }
 0xde3   :  { %16272 = vpow2.f32 %v2211_v57 }
 0xdf0   :  { %v16273_v58 = vpop.eup %16272 }
 0xdf1   :  { %15272 = vmatmul.mubr.msk.f32.vlgmr.msra.gmra.mxu0 %vm448_vm6, %v16273_v58  ;;  %v2213_v59 = vsel %vm448_vm6, %v16273_v58, 0.0  ;;  %v2519_v58 = vld [vmem:[%s16679_s4 + $0x18] sm:$0xff] }
 0xdf2   :  { %2214 = vadd.xlane.f32.xlu1 %v2213_v59  ;;  %15280 = vmatpush3.msra.mxu0 %v2425_v32  ;;  %v2518_v59 = vld [vmem:[%s16679_s4 + $0x10] sm:$0xff]  ;;  %v14360_v32 = vld [vmem:[%s16639_s14 + $0x28] sm:$0xff] }
 0xdf3   :  { %15281 = vmatprep.subr.mxu0 %v2424_v33 }
 0xdf4   :  { %15282 = vmatpush3.msra.mxu0 %v2424_v33  ;;  %v14359_v33 = vld [vmem:[%s16639_s14 + $0x20] sm:$0xff] }
 0xdf5   :  { %15283 = vmatprep.subr.mxu0 %v2423_v35 }
 0xdf6   :  { %15284 = vmatpush3.msra.mxu0 %v2423_v35 }
 0xdf7   :  { %15285 = vmatprep.subr.mxu0 %v2422_v39 }
 0xdf8   :  { %15286 = vmatpush3.msra.mxu0 %v2422_v39 }
 0xe0f   :  { %v2122_v60 = vpop.f32.mrf.mxu0 }
 0xe10   :  { %v2126_v61 = vadd.f32 %v2122_v60, %v1883_v26  ;;  %v2517_v60 = vld [vmem:[%s16679_s4 + $0x8] sm:$0xff] }
 0xe11   :  { %v15263_v62 = vpop.f32.mrf.mxu0 }
 0xe12   :  { %v14351_v62 = vld [vmem:[%s18577_s1] ss:$0 sm:$0xff] }
 0xe7b   :  { %v2215_v63 = vpop.xlane.xlu1 %2214 }
 0xe7c   :  { %16274 = vrcp.f32 %v2215_v63 }
 0xe89   :  { %v16275_v0 = vpop.eup %16274 }
 0xeb1   :  { %v2288_v1 = vpop.f32.mrf.mxu0 }
 0xeb2   :  { %v2293_v3 = vmul.f32 %v16275_v0, %v2288_v1 }
 0xeb3   :  { %v15273_v5 = vpop.f32.mrf.mxu0 }
 0xeb4   :  { %15277 = vmatmul.mubr.msk.f32.vlgmr.msra.gmra.mxu1 %vm448_vm6, %v2293_v3 }
 0xeb5   :  { %15291 = vmatpush3.msra.mxu1 %v2531_v41 }
 0xeb6   :  { %15292 = vmatprep.subr.mxu1 %v2530_v42 }
 0xeb7   :  { %15293 = vmatpush3.msra.mxu1 %v2530_v42  ;;  %v14357_v42 = vld [vmem:[%s16629_s3 + $0x1] ss:$0 sm:$0xff]  ;;  %s18579_s3 = sld [smem:[#allocation8_spill]] }
 0xf74   :  { %v2363_v11 = vpop.f32.mrf.mxu1 }
 0xf75   :  { %v2367_v12 = vadd.f32 %v2363_v11, %v2126_v61  ;;  %v2516_v61 = vld [vmem:[%s16679_s4] sm:$0xff] }
 0xf76   :  { %v15278_v37 = vpop.f32.mrf.mxu1 }
 0xf77   :  { %v2375_v13 = vadd.f32 %v14348_v43, %v2367_v12  ;;  %v2529_v43 = vld [vmem:[%s16679_s4 + $0x68] sm:$0xff] }
 0xf78   :  { %15294 = vmatprep.subr.mxu1 %v2529_v43 }
 0xf79   :  { %v17074_v16 = vadd.f32 %v2375_v13, %v16837_v31  ;;  %15295 = vmatpush3.msra.mxu1 %v2529_v43 }
 0xf7a   :  { %15296 = vmatprep.subr.mxu1 %v2528_v44 }
 0xf7b   :  { %v2383_v17 = vsel %vm304_vm4, %v17074_v16, 0.0  ;;  %15297 = vmatpush3.msra.mxu1 %v2528_v44  ;;  %v14358_v44 = vld [vmem:[%s16634_s8 + $0x1] ss:$0 sm:$0xff]  ;;  %s18580_s8 = sld [smem:[#allocation10_spill]] }
 0xf7c   :  { %2384 = vadd.xlane.f32.xlu1 %v2383_v17  ;;  %15298 = vmatprep.subr.mxu1 %v2527_v46 }
 0xf7d   :  { %15299 = vmatpush3.msra.mxu1 %v2527_v46 }
 0xf7e   :  { %15300 = vmatprep.subr.mxu1 %v2526_v47 }
 0xf7f   :  { %15301 = vmatpush3.msra.mxu1 %v2526_v47 }
 0xf80   :  { %2393 = vadd.xlane.f32.xlu1 %v2392_v19  ;;  %15302 = vmatprep.subr.mxu1 %v2525_v48 }
 0xf81   :  { %15303 = vmatpush3.msra.mxu1 %v2525_v48 }
 0xf82   :  { %15304 = vmatprep.subr.mxu1 %v2524_v49 }
 0xf83   :  { %15305 = vmatpush3.msra.mxu1 %v2524_v49 }
 0xf84   :  { %15306 = vmatprep.subr.mxu1 %v2523_v36 }
 0xf85   :  { %15307 = vmatpush3.msra.mxu1 %v2523_v36 }
 0xf86   :  { %15308 = vmatprep.subr.mxu1 %v2522_v50 }
 0xf87   :  { %15309 = vmatpush3.msra.mxu1 %v2522_v50 }
 0xf88   :  { %15310 = vmatprep.subr.mxu1 %v2521_v51 }
 0xf89   :  { %15311 = vmatpush3.msra.mxu1 %v2521_v51  ;;  %v14364_v51 = vld [vmem:[%s16644_s19 + $0x1] ss:$0 sm:$0xff]  ;;  %s18583_s19 = sld [smem:[#allocation14_spill]] }
 0xf8a   :  { %15312 = vmatprep.subr.mxu1 %v2520_v2 }
 0xf8b   :  { %15313 = vmatpush3.msra.mxu1 %v2520_v2 }
 0xf8c   :  { %15314 = vmatprep.subr.mxu1 %v2519_v58 }
 0xf8d   :  { %15315 = vmatpush3.msra.mxu1 %v2519_v58 }
 0xf8e   :  { %15316 = vmatprep.subr.mxu1 %v2518_v59 }
 0xf8f   :  { %15317 = vmatpush3.msra.mxu1 %v2518_v59 }
 0xf90   :  { %15318 = vmatprep.subr.mxu1 %v2517_v60 }
 0xf91   :  { %15319 = vmatpush3.msra.mxu1 %v2517_v60 }
 0xf92   :  { %15320 = vmatprep.subr.mxu1 %v2516_v61 }
 0xf93   :  { %15321 = vmatpush3.msra.mxu1 %v2516_v61 }
 0xf94   :  { %15361 = vmatprep.subr.mxu1 %v16568_v6 }
0x1005   :  { %v2385_v21 = vpop.xlane.xlu1 %2384 }
0x1006   :  { %v2387_v22 = vmul.f32 0.03125, %v2385_v21 }
0x1008   :  { %v17080_v23 = vsub.f32 %v17074_v16, %v2387_v22 }
0x1009   :  { %v2394_v31 = vpop.xlane.xlu1 %2393 }
0x100a   :  { %v2398_v24 = vmul.f32 0.03125, %v2394_v31  ;;  %v2391_v25 = vmul.f32 %v17080_v23, %v17080_v23 }
0x100c   :  { %v2400_v26 = vadd.f32 1e-05, %v2398_v24  ;;  %v2395_v27 = vsel %vm304_vm4, %v2391_v25, 0.0 }
0x100d   :  { %2396 = vadd.xlane.f32.xlu1 %v2395_v27 }
0x100e   :  { %16276 = vrsqrt.f32 %v2400_v26 }
0x101b   :  { %v16277_v28 = vpop.eup %16276 }
0x101c   :  { %v2404_v34 = vmul.f32 %v16277_v28, %v2388_v4  ;;  %v14354_v4 = vld [vmem:[%s18578_s2] ss:$0 sm:$0xff]  ;;  %v14362_v28 = vld [vmem:[%s16639_s14 + $0x38] sm:$0xff] }
0x101d   :  { %15325 = vmatprep.subr.mxu0 %v14362_v28 }
0x101e   :  { %v2412_v38 = vmul.f32 %v14349_v29, %v2404_v34 }
0x1020   :  { %v2420_v40 = vadd.f32 %v14350_v9, %v2412_v38 }
0x1022   :  { %15287 = vmatprep.mubr.msk.f32.mxu0 %vm304_vm4, %v2420_v40 }
0x1096   :  { %v2397_v30 = vpop.xlane.xlu1 %2396 }
0x1097   :  { %v2399_v52 = vmul.f32 0.03125, %v2397_v30 }
0x1099   :  { %v2401_v53 = vadd.f32 1e-05, %v2399_v52 }
0x109b   :  { %16278 = vrsqrt.f32 %v2401_v53 }
0x10a8   :  { %v16279_v54 = vpop.eup %16278 }
0x10a9   :  { %v2405_v55 = vmul.f32 %v16279_v54, %v17080_v23 }
0x10ab   :  { %v2413_v56 = vmul.f32 %v14349_v29, %v2405_v55  ;;  %v14361_v29 = vld [vmem:[%s16639_s14 + $0x30] sm:$0xff]  ;;  %s18581_s14 = sld [smem:[#allocation15_spill]] }
0x10ad   :  { %v2421_v57 = vadd.f32 %v14350_v9, %v2413_v56 }
0x10af   :  { %15288 = vmatmul.mubr.msk.f32.vlgmr.msra.gmra.mxu0 %vm304_vm4, %v2421_v57 }
0x10b0   :  { %15326 = vmatpush3.msra.mxu0 %v14362_v28 }
0x10b1   :  { %15327 = vmatprep.subr.mxu0 %v14361_v29 }
0x10b2   :  { %15328 = vmatpush3.msra.mxu0 %v14361_v29  ;;  %v17200_v29 = vld [vmem:[%s16649_s24 + $0x28] sm:$0xff] }
0x10b3   :  { %15329 = vmatprep.subr.mxu0 %v14360_v32 }
0x10b4   :  { %15330 = vmatpush3.msra.mxu0 %v14360_v32 }
0x10b5   :  { %15331 = vmatprep.subr.mxu0 %v14359_v33 }
0x10b6   :  { %15332 = vmatpush3.msra.mxu0 %v14359_v33 }
0x10b7   :  { %15336 = vmatprep.subr.mxu0 %v16568_v6 }
0x116f   :  { %v15289_v63 = vpop.f32.mrf.mxu0 }
0x1170   :  { %v2511_v0 = vadd.f32 %v15289_v63, %v14351_v62 }
0x1171   :  { %v2505_v1 = vpop.f32.mrf.mxu0 }
0x1172   :  { %v2506_v3 = vadd.f32 %v14351_v62, %v2505_v1  ;;  %v2515_v8 = vmax.f32 %v2511_v0, 0.0 }
0x1174   :  { %v2514_v5 = vmax.f32 %v2506_v3, 0.0 }
0x1176   :  { %15322 = vmatprep.mubr.f32.mxu1 %v2514_v5 }
0x1177   :  { %15323 = vmatmul.mubr.f32.vlgmr.msra.gmra.mxu1 %v2515_v8 }
0x1178   :  { %15363 = vmatprep.mubr.msk.f32.mxu1 %vm16569_vm5, %v16568_v6 }
0x1237   :  { %v15324_v10 = vpop.f32.mrf.mxu1 }
0x1238   :  { %v2608_v12 = vadd.f32 %v15324_v10, %v17074_v16 }
0x1239   :  { %v2598_v11 = vpop.f32.mrf.mxu1 }
0x123a   :  { %v2607_v37 = vadd.f32 %v2598_v11, %v17059_v45  ;;  %v17119_v17 = vadd.f32 %v14354_v4, %v2608_v12 }
0x123c   :  { %v17117_v13 = vadd.f32 %v14354_v4, %v2607_v37  ;;  %v2625_v19 = vsel %vm304_vm4, %v17119_v17, 0.0 }
0x123e   :  { %v2622_v18 = vsel %vm304_vm4, %v17117_v13, 0.0 }
0x123f   :  { %2623 = vadd.xlane.f32.xlu1 %v2622_v18 }
0x1243   :  { %2626 = vadd.xlane.f32.xlu1 %v2625_v19 }
0x12c8   :  { %v2624_v21 = vpop.xlane.xlu1 %2623 }
0x12c9   :  { %v2628_v16 = vmul.f32 0.03125, %v2624_v21  ;;  %v17183_v21 = vld [vmem:[%s16649_s24 + $0x20] sm:$0xff] }
0x12ca   :  { %15362 = vmatpush3.msra.mxu1 %v17183_v21 }
0x12cb   :  { %v2630_v45 = vsub.f32 %v17117_v13, %v2628_v16  ;;  %15371 = vmatprep.subr.mxu1 %v16568_v6 }
0x12cc   :  { %v2627_v22 = vpop.xlane.xlu1 %2626 }
0x12cd   :  { %v2629_v23 = vmul.f32 0.03125, %v2627_v22  ;;  %v2632_v31 = vmul.f32 %v2630_v45, %v2630_v45 }
0x12cf   :  { %v2631_v24 = vsub.f32 %v17119_v17, %v2629_v23  ;;  %v2634_v25 = vsel %vm304_vm4, %v2632_v31, 0.0 }
0x12d0   :  { %2635 = vadd.xlane.f32.xlu1 %v2634_v25 }
0x12d1   :  { %v2633_v26 = vmul.f32 %v2631_v24, %v2631_v24 }
0x12d3   :  { %v2637_v27 = vsel %vm304_vm4, %v2633_v26, 0.0 }
0x12d4   :  { %2638 = vadd.xlane.f32.xlu1 %v2637_v27 }
0x1359   :  { %v2636_v34 = vpop.xlane.xlu1 %2635 }
0x135a   :  { %v2640_v9 = vmul.f32 0.03125, %v2636_v34 }
0x135c   :  { %v2642_v35 = vadd.f32 1e-05, %v2640_v9 }
0x135d   :  { %v2639_v38 = vpop.xlane.xlu1 %2638 }
0x135e   :  { %16280 = vrsqrt.f32 %v2642_v35  ;;  %v2641_v39 = vmul.f32 0.03125, %v2639_v38 }
0x1360   :  { %v2643_v40 = vadd.f32 1e-05, %v2641_v39 }
0x1362   :  { %16282 = vrsqrt.f32 %v2643_v40 }
0x136b   :  { %v16281_v41 = vpop.eup %16280 }
0x136c   :  { %v2646_v43 = vmul.f32 %v16281_v41, %v2630_v45 }
0x136e   :  { %v2654_v46 = vmul.f32 %v14357_v42, %v2646_v43 }
0x136f   :  { %v16283_v47 = vpop.eup %16282 }
0x1370   :  { %v2647_v48 = vmul.f32 %v16283_v47, %v2631_v24  ;;  %v2662_v49 = vadd.f32 %v14358_v44, %v2654_v46 }
0x1372   :  { %v2655_v36 = vmul.f32 %v14357_v42, %v2647_v48  ;;  %15333 = vmatprep.mubr.msk.f32.mxu0 %vm304_vm4, %v2662_v49 }
0x1374   :  { %v2663_v50 = vadd.f32 %v14358_v44, %v2655_v36 }
0x1376   :  { %15334 = vmatmul.mubr.msk.f32.vlgmr.msra.gmra.mxu0 %vm304_vm4, %v2663_v50 }
0x1377   :  { %15338 = vmatprep.mubr.msk.f32.mxu0 %vm16569_vm5, %v16568_v6 }
0x1436   :  { %v15335_v2 = vpop.f32.mrf.mxu0 }
0x1437   :  { %v17141_v30 = vadd.f32 %v15335_v2, %v14364_v51 }
0x1438   :  { %v2749_v52 = vpop.f32.mrf.mxu0 }
0x1439   :  { %v17143_v53 = vadd.f32 %v14364_v51, %v2749_v52 }
0x143b   :  { %2766 = vrot.lane.b32.xlu1 %v17143_v53, %s16571_s5 }
0x143f   :  { %2933 = vrot.lane.b32.xlu1 %v17143_v53, %s16572_s9 }
0x1443   :  { %2931 = vrot.lane.b32.xlu1 %v17143_v53, %s16573_s21 }
0x14ad   :  { %v2767_v54 = vpop.permute.xlu1 %2766 }
0x14ae   :  { %15337 = vmatpush3.xpose.msk.msra.mxu0 %vm448_vm6, %v2767_v54 }
0x14af   :  { %15341 = vmatprep.subr.mxu0 %v16568_v6 }
0x14b1   :  { %15339 = vmatmul.mubr.msk.f32.vlgmr.msra.gmra.mxu0 %vm448_vm6, %v17143_v53  ;;  %v2934_v0 = vpop.permute.xlu1 %2933 }
0x14b2   :  { %15343 = vmatprep.mubr.msk.f32.mxu0 %vm16569_vm5, %v16568_v6 }
0x14b5   :  { %v2932_v3 = vpop.permute.xlu1 %2931 }
0x1571   :  { %v2838_v55 = vpop.f32.mrf.mxu0 }
0x1572   :  { %v2842_v56 = vmul.f32 0.35355338, %v2838_v55  ;;  %v17235_v55 = vld [vmem:[%s16649_s24 + $0x30] sm:$0xff] }
0x1573   :  { %v15340_v57 = vpop.f32.mrf.mxu0 }
0x1574   :  { %v2843_v58 = vsel %vm182_vm7, %v2842_v56, -inf }
0x1575   :  { %v2844_v59 = vsel %vm448_vm6, %v2843_v58, -inf }
0x1576   :  { %2845 = vmax.xlane.f32.xlu0 %v2844_v59 }
0x158c   :  { %2853 = vrot.lane.b32.xlu0 %v17143_v53, %s16570_s0 }
0x1590   :  { %3020 = vrot.lane.b32.xlu0 %v17143_v53, %s16576_s18 }
0x15ff   :  { %v2846_v60 = vpop.xlane.xlu0 %2845 }
0x1600   :  { %v2847_v61 = vsub.f32 %v2843_v58, %v2846_v60 }
0x1602   :  { %v2848_v62 = vmul.f32 1.442695, %v2847_v61 }
0x1603   :  { %v2854_v63 = vpop.permute.xlu0 %2853 }
0x1604   :  { %16284 = vpow2.f32 %v2848_v62  ;;  %15342 = vmatpush3.msra.mxu0 %v2854_v63 }
0x1605   :  { %15346 = vmatprep.subr.mxu0 %v16568_v6 }
0x1607   :  { %v3021_v5 = vpop.permute.xlu0 %3020 }
0x1611   :  { %v16285_v1 = vpop.eup %16284 }
0x1612   :  { %15344 = vmatmul.mubr.msk.f32.vlgmr.msra.gmra.mxu0 %vm448_vm6, %v16285_v1  ;;  %v2850_v19 = vsel %vm448_vm6, %v16285_v1, 0.0 }
0x1613   :  { %15347 = vmatpush3.xpose.msk.msra.mxu0 %vm448_vm6, %v2934_v0  ;;  %15348 = vmatprep.mubr.msk.f32.mxu0 %vm16569_vm5, %v16568_v6 }
0x1614   :  { %15351 = vmatprep.subr.mxu0 %v16568_v6 }
0x1616   :  { %15349 = vmatmul.mubr.msk.f32.vlgmr.msra.gmra.mxu0 %vm448_vm6, %v2932_v3 }
0x1617   :  { %15352 = vmatpush3.msra.mxu0 %v3021_v5  ;;  %15353 = vmatprep.mubr.msk.f32.mxu0 %vm16569_vm5, %v16568_v6 }
0x1618   :  { %15356 = vmatprep.subr.mxu0 %v16568_v6 }
0x16d2   :  { %v2925_v8 = vpop.f32.mrf.mxu0 }
0x16d4   :  { %v15345_v10 = vpop.f32.mrf.mxu0 }
0x16d6   :  { %v3005_v11 = vpop.f32.mrf.mxu0 }
0x16d7   :  { %v3009_v12 = vmul.f32 0.35355338, %v3005_v11 }
0x16d8   :  { %v15350_v37 = vpop.f32.mrf.mxu0 }
0x16d9   :  { %v3010_v4 = vsel %vm182_vm7, %v3009_v12, -inf }
0x16da   :  { %v3011_v18 = vsel %vm448_vm6, %v3010_v4, -inf }
0x16db   :  { %3012 = vmax.xlane.f32.xlu1 %v3011_v18 }
0x16ec   :  { %3246 = vrot.lane.b32.xlu1 %v17143_v53, %s16574_s15 }
0x1710   :  { %2851 = vadd.xlane.f32.xlu1 %v2850_v19 }
0x1721   :  { %3333 = vrot.lane.b32.xlu1 %v17143_v53, %s16577_s22 }
0x1725   :  { %3485 = vrot.lane.b32.xlu1 %v17143_v53, %s18550_s26 }
0x1764   :  { %v3013_v16 = vpop.xlane.xlu1 %3012 }
0x1765   :  { %v3014_v45 = vsub.f32 %v3010_v4, %v3013_v16 }
0x1767   :  { %v3015_v22 = vmul.f32 1.442695, %v3014_v45 }
0x1768   :  { %v3247_v24 = vpop.permute.xlu1 %3246 }
0x1769   :  { %16286 = vpow2.f32 %v3015_v22  ;;  %v17272_v22 = vld [vmem:[%s16649_s24 + $0x38] sm:$0xff]  ;;  %s18584_s24 = sld [smem:[#allocation16_spill]] }
0x1776   :  { %v16287_v23 = vpop.eup %16286 }
0x1777   :  { %15354 = vmatmul.mubr.msk.f32.vlgmr.msra.gmra.mxu0 %vm448_vm6, %v16287_v23  ;;  %v3017_v31 = vsel %vm448_vm6, %v16287_v23, 0.0 }
0x1778   :  { %3018 = vadd.xlane.f32.xlu0 %v3017_v31  ;;  %15358 = vmatprep.mubr.msk.f32.mxu0 %vm16569_vm5, %v16568_v6 }
0x1779   :  { %15357 = vmatpush3.msra.mxu0 %v17200_v29 }
0x177a   :  { %15366 = vmatprep.subr.mxu0 %v16568_v6 }
0x178e   :  { %3244 = vrot.lane.b32.xlu0 %v17143_v53, %s18548_s16 }
0x1799   :  { %v2852_v25 = vpop.xlane.xlu1 %2851 }
0x179a   :  { %16288 = vrcp.f32 %v2852_v25 }
0x179d   :  { %v3334_v28 = vpop.permute.xlu1 %3333 }
0x17a1   :  { %v3486_v54 = vpop.permute.xlu1 %3485 }
0x17a7   :  { %v16289_v26 = vpop.eup %16288 }
0x17a8   :  { %v2930_v27 = vmul.f32 %v16289_v26, %v2925_v8 }
0x17aa   :  { %15364 = vmatmul.mubr.msk.f32.vlgmr.msra.gmra.mxu1 %vm448_vm6, %v2930_v27 }
0x17ab   :  { %15372 = vmatpush3.msra.mxu1 %v3334_v28  ;;  %15373 = vmatprep.mubr.msk.f32.mxu1 %vm16569_vm5, %v16568_v6 }
0x17ac   :  { %15381 = vmatprep.subr.mxu1 %v16568_v6 }
0x1801   :  { %v3019_v32 = vpop.xlane.xlu0 %3018 }
0x1802   :  { %16290 = vrcp.f32 %v3019_v32 }
0x1805   :  { %v3245_v38 = vpop.permute.xlu0 %3244 }
0x180f   :  { %v16291_v33 = vpop.eup %16290 }
0x1837   :  { %v3092_v34 = vpop.f32.mrf.mxu0 }
0x1838   :  { %v3097_v9 = vmul.f32 %v16291_v33, %v3092_v34 }
0x1839   :  { %v15355_v35 = vpop.f32.mrf.mxu0 }
0x183a   :  { %15359 = vmatmul.mubr.msk.f32.vlgmr.msra.gmra.mxu0 %vm448_vm6, %v3097_v9 }
0x183b   :  { %15367 = vmatpush3.xpose.msk.msra.mxu0 %vm448_vm6, %v3247_v24  ;;  %15368 = vmatprep.mubr.msk.f32.mxu0 %vm16569_vm5, %v16568_v6 }
0x183c   :  { %15376 = vmatprep.subr.mxu0 %v16568_v6 }
0x183e   :  { %15369 = vmatmul.mubr.msk.f32.vlgmr.msra.gmra.mxu0 %vm448_vm6, %v3245_v38 }
0x183f   :  { %15378 = vmatprep.mubr.msk.f32.mxu0 %vm16569_vm5, %v16568_v6  ;;  %15377 = vmatpush3.msra.mxu0 %v17235_v55 }
0x1840   :  { %15386 = vmatprep.subr.mxu0 %v16568_v6 }
0x186a   :  { %v17212_v39 = vpop.f32.mrf.mxu1 }
0x186c   :  { %v15365_v40 = vpop.f32.mrf.mxu1 }
0x18fa   :  { %v17214_v41 = vpop.f32.mrf.mxu0 }
0x18fb   :  { %v3241_v18 = vadd.f32 %v17212_v39, %v17214_v41 }
0x18fc   :  { %v15360_v42 = vpop.f32.mrf.mxu0 }
0x18fe   :  { %v3318_v43 = vpop.f32.mrf.mxu0 }
0x18ff   :  { %v3322_v44 = vmul.f32 0.35355338, %v3318_v43 }
0x1900   :  { %v15370_v46 = vpop.f32.mrf.mxu0 }
0x1901   :  { %v3323_v47 = vsel %vm182_vm7, %v3322_v44, -inf }
0x1902   :  { %v3324_v48 = vsel %vm448_vm6, %v3323_v47, -inf }
0x1903   :  { %3325 = vmax.xlane.f32.xlu0 %v3324_v48 }
0x1919   :  { %3487 = vrot.lane.b32.xlu0 %v17143_v53, %s18546_s23 }
0x198c   :  { %v3326_v49 = vpop.xlane.xlu0 %3325 }
0x198d   :  { %v3327_v36 = vsub.f32 %v3323_v47, %v3326_v49 }
0x198f   :  { %v3328_v50 = vmul.f32 1.442695, %v3327_v36 }
0x1990   :  { %v3488_v2 = vpop.permute.xlu0 %3487 }
0x1991   :  { %16292 = vpow2.f32 %v3328_v50 }
0x199e   :  { %v16293_v51 = vpop.eup %16292 }
0x199f   :  { %15374 = vmatmul.mubr.msk.f32.vlgmr.msra.gmra.mxu1 %vm448_vm6, %v16293_v51  ;;  %v3330_v52 = vsel %vm448_vm6, %v16293_v51, 0.0 }
0x19a0   :  { %15382 = vmatpush3.xpose.msk.msra.mxu1 %vm448_vm6, %v3488_v2  ;;  %3331 = vadd.xlane.f32.xlu1 %v3330_v52 }
0x19a1   :  { %15383 = vmatprep.mubr.msk.f32.mxu1 %vm16569_vm5, %v16568_v6  ;;  %15391 = vmatprep.subr.mxu1 %v16568_v6 }
0x19a3   :  { %15384 = vmatmul.mubr.msk.f32.vlgmr.msra.gmra.mxu1 %vm448_vm6, %v3486_v54 }
0x19a4   :  { %15393 = vmatprep.mubr.msk.f32.mxu1 %vm16569_vm5, %v16568_v6  ;;  %15392 = vmatpush3.msra.mxu1 %v17272_v22 }
0x19a5   :  { %15401 = vmatprep.subr.mxu1 %v16568_v6 }
0x19b1   :  { %3727 = vrot.lane.b32.xlu1 %v17141_v30, %s16571_s5 }
0x19b5   :  { %3894 = vrot.lane.b32.xlu1 %v17141_v30, %s16572_s9 }
0x1a29   :  { %v3332_v56 = vpop.xlane.xlu1 %3331 }
0x1a2a   :  { %16294 = vrcp.f32 %v3332_v56 }
0x1a2d   :  { %v3728_v11 = vpop.permute.xlu1 %3727 }
0x1a37   :  { %v16295_v57 = vpop.eup %16294 }
0x1a5f   :  { %v3405_v58 = vpop.f32.mrf.mxu1 }
0x1a60   :  { %v3410_v59 = vmul.f32 %v16295_v57, %v3405_v58 }
0x1a61   :  { %v15375_v60 = vpop.f32.mrf.mxu1 }
0x1a62   :  { %15379 = vmatmul.mubr.msk.f32.vlgmr.msra.gmra.mxu0 %vm448_vm6, %v3410_v59 }
0x1a63   :  { %v3559_v61 = vpop.f32.mrf.mxu1  ;;  %15388 = vmatprep.mubr.msk.f32.mxu0 %vm16569_vm5, %v16568_v6 }
0x1a64   :  { %v3563_v62 = vmul.f32 0.35355338, %v3559_v61 }
0x1a65   :  { %v15385_v63 = vpop.f32.mrf.mxu1 }
0x1a66   :  { %v3564_v0 = vsel %vm182_vm7, %v3563_v62, -inf }
0x1a67   :  { %v3565_v1 = vsel %vm448_vm6, %v3564_v0, -inf }
0x1a68   :  { %3566 = vmax.xlane.f32.xlu0 %v3565_v1 }
0x1a7e   :  { %3574 = vrot.lane.b32.xlu0 %v17143_v53, %s18544_s28  ;;  %v3895_v53 = vpop.permute.xlu1 %3894 }
0x1a82   :  { %3892 = vrot.lane.b32.xlu0 %v17141_v30, %s16573_s21 }
0x1af1   :  { %v3567_v3 = vpop.xlane.xlu0 %3566 }
0x1af2   :  { %v3568_v5 = vsub.f32 %v3564_v0, %v3567_v3 }
0x1af4   :  { %v3569_v8 = vmul.f32 1.442695, %v3568_v5 }
0x1af5   :  { %v3575_v10 = vpop.permute.xlu0 %3574 }
0x1af6   :  { %16296 = vpow2.f32 %v3569_v8  ;;  %15387 = vmatpush3.msra.mxu0 %v3575_v10 }
0x1af7   :  { %15396 = vmatprep.subr.mxu0 %v16568_v6 }
0x1af9   :  { %v3893_v4 = vpop.permute.xlu0 %3892 }
0x1b03   :  { %v16297_v12 = vpop.eup %16296 }
0x1b04   :  { %15389 = vmatmul.mubr.msk.f32.vlgmr.msra.gmra.mxu0 %vm448_vm6, %v16297_v12  ;;  %v3571_v37 = vsel %vm448_vm6, %v16297_v12, 0.0 }
0x1b05   :  { %15397 = vmatpush3.xpose.msk.msra.mxu0 %vm448_vm6, %v3728_v11  ;;  %3572 = vadd.xlane.f32.xlu1 %v3571_v37 }
0x1b06   :  { %15398 = vmatprep.mubr.msk.f32.mxu0 %vm16569_vm5, %v16568_v6  ;;  %15406 = vmatprep.subr.mxu0 %v16568_v6 }
0x1b08   :  { %15399 = vmatmul.mubr.msk.f32.vlgmr.msra.gmra.mxu0 %vm448_vm6, %v17141_v30 }
0x1b09   :  { %15407 = vmatpush3.xpose.msk.msra.mxu0 %vm448_vm6, %v3895_v53  ;;  %15408 = vmatprep.mubr.msk.f32.mxu0 %vm16569_vm5, %v16568_v6 }
0x1b0a   :  { %15416 = vmatprep.subr.mxu0 %v16568_v6 }
0x1b0c   :  { %15409 = vmatmul.mubr.msk.f32.vlgmr.msra.gmra.mxu0 %vm448_vm6, %v3893_v4 }
0x1b0d   :  { %15417 = vmatpush3.msra.mxu0 %v17200_v29  ;;  %15418 = vmatprep.mubr.msk.f32.mxu0 %vm16569_vm5, %v16568_v6 }
0x1b0e   :  { %15426 = vmatprep.subr.mxu0 %v16568_v6 }
0x1b16   :  { %3814 = vrot.lane.b32.xlu1 %v17141_v30, %s16570_s0 }
0x1b22   :  { %v3480_v19 = vpop.f32.mrf.mxu0 }
0x1b23   :  { %v3484_v16 = vadd.f32 %v3480_v19, %v3241_v18 }
0x1b24   :  { %v15380_v45 = vpop.f32.mrf.mxu0 }
0x1b8e   :  { %v3573_v23 = vpop.xlane.xlu1 %3572 }
0x1b8f   :  { %16298 = vrcp.f32 %v3573_v23 }
0x1b92   :  { %v3815_v27 = vpop.permute.xlu1 %3814 }
0x1b9c   :  { %v16299_v31 = vpop.eup %16298 }
0x1bc4   :  { %v3646_v24 = vpop.f32.mrf.mxu0 }
0x1bc5   :  { %v3651_v25 = vmul.f32 %v16299_v31, %v3646_v24 }
0x1bc6   :  { %v15390_v26 = vpop.f32.mrf.mxu0 }
0x1bc7   :  { %15394 = vmatmul.mubr.msk.f32.vlgmr.msra.gmra.mxu1 %vm448_vm6, %v3651_v25 }
0x1bc8   :  { %15402 = vmatpush3.msra.mxu1 %v3815_v27  ;;  %v3799_v28 = vpop.f32.mrf.mxu0  ;;  %15403 = vmatprep.mubr.msk.f32.mxu1 %vm16569_vm5, %v16568_v6 }
0x1bc9   :  { %v3803_v29 = vmul.f32 0.35355338, %v3799_v28  ;;  %15411 = vmatprep.subr.mxu1 %v16568_v6 }
0x1bca   :  { %v15400_v32 = vpop.f32.mrf.mxu0 }
0x1bcb   :  { %v3804_v33 = vsel %vm187_vm8, %v3803_v29, -inf }
0x1bcc   :  { %v3966_v34 = vpop.f32.mrf.mxu0  ;;  %v3805_v9 = vsel %vm448_vm6, %v3804_v33, -inf }
0x1bcd   :  { %v3970_v35 = vmul.f32 0.35355338, %v3966_v34  ;;  %3806 = vmax.xlane.f32.xlu0 %v3805_v9 }
0x1bce   :  { %v15410_v38 = vpop.f32.mrf.mxu0 }
0x1bcf   :  { %v3971_v39 = vsel %vm187_vm8, %v3970_v35, -inf }
0x1bd0   :  { %v3972_v40 = vsel %vm448_vm6, %v3971_v39, -inf }
0x1bd1   :  { %3973 = vmax.xlane.f32.xlu0 %v3972_v40 }
0x1be7   :  { %3981 = vrot.lane.b32.xlu0 %v17141_v30, %s16576_s18 }
0x1beb   :  { %4207 = vrot.lane.b32.xlu0 %v17141_v30, %s16574_s15 }
0x1bef   :  { %4205 = vrot.lane.b32.xlu0 %v17141_v30, %s18548_s16 }
0x1c56   :  { %v3807_v41 = vpop.xlane.xlu0 %3806 }
0x1c57   :  { %v3808_v42 = vsub.f32 %v3804_v33, %v3807_v41 }
0x1c59   :  { %v3809_v43 = vmul.f32 1.442695, %v3808_v42  ;;  %v14404_v42 = vld [vmem:[%s16654_s30 + $0x1] ss:$0 sm:$0xff]  ;;  %s18587_s30 = sld [smem:[#allocation17_spill]] }
0x1c5a   :  { %v3974_v44 = vpop.xlane.xlu0 %3973 }
0x1c5b   :  { %16300 = vpow2.f32 %v3809_v43  ;;  %v3975_v46 = vsub.f32 %v3971_v39, %v3974_v44 }
0x1c5d   :  { %v3976_v47 = vmul.f32 1.442695, %v3975_v46 }
0x1c5e   :  { %v3982_v49 = vpop.permute.xlu0 %3981 }
0x1c5f   :  { %16302 = vpow2.f32 %v3976_v47 }
0x1c62   :  { %v4208_v56 = vpop.permute.xlu0 %4207 }
0x1c66   :  { %v4206_v57 = vpop.permute.xlu0 %4205 }
0x1c68   :  { %v16301_v48 = vpop.eup %16300 }
0x1c69   :  { %15404 = vmatmul.mubr.msk.f32.vlgmr.msra.gmra.mxu1 %vm448_vm6, %v16301_v48  ;;  %v3811_v36 = vsel %vm448_vm6, %v16301_v48, 0.0 }
0x1c6a   :  { %15412 = vmatpush3.msra.mxu1 %v3982_v49  ;;  %3812 = vadd.xlane.f32.xlu0 %v3811_v36 }
0x1c6b   :  { %15413 = vmatprep.mubr.msk.f32.mxu1 %vm16569_vm5, %v16568_v6  ;;  %15421 = vmatprep.subr.mxu1 %v16568_v6 }
0x1c6c   :  { %v16303_v50 = vpop.eup %16302 }
0x1c6d   :  { %15414 = vmatmul.mubr.msk.f32.vlgmr.msra.gmra.mxu1 %vm448_vm6, %v16303_v50  ;;  %v3978_v51 = vsel %vm448_vm6, %v16303_v50, 0.0 }
0x1c6e   :  { %3979 = vadd.xlane.f32.xlu1 %v3978_v51  ;;  %15422 = vmatpush3.msra.mxu1 %v17183_v21 }
0x1c6f   :  { %15423 = vmatprep.mubr.msk.f32.mxu1 %vm16569_vm5, %v16568_v6  ;;  %15431 = vmatprep.subr.mxu1 %v16568_v6 }
0x1c7f   :  { %4294 = vrot.lane.b32.xlu1 %v17141_v30, %s16577_s22 }
0x1c80   :  { %4448 = vrot.lane.b32.xlu0 %v17141_v30, %s18546_s23 }
0x1c87   :  { %v3721_v2 = vpop.f32.mrf.mxu1 }
0x1c88   :  { %v17307_v52 = vadd.f32 %v3721_v2, %v3484_v16 }
0x1c89   :  { %v15395_v54 = vpop.f32.mrf.mxu1 }
0x1c8a   :  { %v4693_v43 = vadd.f32 %v14404_v42, %v17307_v52 }
0x1c8c   :  { %v17349_v46 = vadd.f32 %v4693_v43, %v17117_v13 }
0x1c8e   :  { %v4701_v48 = vsel %vm304_vm4, %v17349_v46, 0.0 }
0x1cf3   :  { %v3813_v58 = vpop.xlane.xlu0 %3812 }
0x1cf4   :  { %16304 = vrcp.f32 %v3813_v58 }
0x1cf7   :  { %v3980_v21 = vpop.xlane.xlu1 %3979  ;;  %v4449_v24 = vpop.permute.xlu0 %4448 }
0x1cf8   :  { %16306 = vrcp.f32 %v3980_v21 }
0x1cfb   :  { %v4295_v63 = vpop.permute.xlu1 %4294 }
0x1d01   :  { %v16305_v59 = vpop.eup %16304 }
0x1d05   :  { %v16307_v0 = vpop.eup %16306 }
0x1d29   :  { %v3886_v60 = vpop.f32.mrf.mxu1 }
0x1d2a   :  { %v3891_v61 = vmul.f32 %v16305_v59, %v3886_v60 }
0x1d2b   :  { %v15405_v62 = vpop.f32.mrf.mxu1 }
0x1d2c   :  { %15424 = vmatmul.mubr.msk.f32.vlgmr.msra.gmra.mxu1 %vm448_vm6, %v3891_v61 }
0x1d2d   :  { %15432 = vmatpush3.msra.mxu1 %v4295_v63  ;;  %v4053_v1 = vpop.f32.mrf.mxu1  ;;  %15433 = vmatprep.mubr.msk.f32.mxu1 %vm16569_vm5, %v16568_v6 }
0x1d2e   :  { %v4058_v3 = vmul.f32 %v16307_v0, %v4053_v1  ;;  %15441 = vmatprep.subr.mxu1 %v16568_v6 }
0x1d2f   :  { %v15415_v5 = vpop.f32.mrf.mxu1 }
0x1d30   :  { %15419 = vmatmul.mubr.msk.f32.vlgmr.msra.gmra.mxu0 %vm448_vm6, %v4058_v3  ;;  %v4943_v3 = vld [vmem:[%s18579_s3] sm:$0xff]  ;;  %v4944_v5 = vld [vmem:[%s18579_s3 + $0x8] sm:$0xff]  ;;  %s18597_s3 = sld [smem:[#allocation27_spill]] }
0x1d31   :  { %15427 = vmatpush3.xpose.msk.msra.mxu0 %vm448_vm6, %v4208_v56  ;;  %15428 = vmatprep.mubr.msk.f32.mxu0 %vm16569_vm5, %v16568_v6 }
0x1d32   :  { %15436 = vmatprep.subr.mxu0 %v16568_v6 }
0x1d34   :  { %15429 = vmatmul.mubr.msk.f32.vlgmr.msra.gmra.mxu0 %vm448_vm6, %v4206_v57 }
0x1d35   :  { %15437 = vmatpush3.msra.mxu0 %v17235_v55  ;;  %15438 = vmatprep.mubr.msk.f32.mxu0 %vm16569_vm5, %v16568_v6 }
0x1d36   :  { %15446 = vmatprep.subr.mxu0 %v16568_v6 }
0x1dec   :  { %v4201_v8 = vpop.f32.mrf.mxu1 }
0x1dee   :  { %v15425_v10 = vpop.f32.mrf.mxu1 }
0x1df0   :  { %v4128_v11 = vpop.f32.mrf.mxu0 }
0x1df1   :  { %v4202_v12 = vadd.f32 %v4201_v8, %v4128_v11 }
0x1df2   :  { %v15420_v37 = vpop.f32.mrf.mxu0 }
0x1df4   :  { %v4279_v53 = vpop.f32.mrf.mxu0 }
0x1df5   :  { %v4283_v4 = vmul.f32 0.35355338, %v4279_v53 }
0x1df6   :  { %v15430_v18 = vpop.f32.mrf.mxu0 }
0x1df7   :  { %v4284_v19 = vsel %vm187_vm8, %v4283_v4, -inf }
0x1df8   :  { %v4285_v16 = vsel %vm448_vm6, %v4284_v19, -inf }
0x1df9   :  { %4286 = vmax.xlane.f32.xlu1 %v4285_v16  ;;  %v14412_v16 = vld [vmem:[%s16669_s20 + $0x38] sm:$0xff] }
0x1e0a   :  { %4446 = vrot.lane.b32.xlu1 %v17141_v30, %s18550_s26 }
0x1e82   :  { %v4287_v55 = vpop.xlane.xlu1 %4286 }
0x1e83   :  { %v4288_v45 = vsub.f32 %v4284_v19, %v4287_v55  ;;  %v17372_v19 = vld [vmem:[%s16659_s6 + $0x1] ss:$0 sm:$0xff]  ;;  %v14411_v55 = vld [vmem:[%s16669_s20 + $0x30] sm:$0xff]  ;;  %s18588_s6 = sld [smem:[#allocation18_spill]] }
0x1e85   :  { %v4289_v23 = vmul.f32 1.442695, %v4288_v45 }
0x1e86   :  { %v4447_v26 = vpop.permute.xlu1 %4446 }
0x1e87   :  { %16308 = vpow2.f32 %v4289_v23  ;;  %v14408_v23 = vld [vmem:[%s16664_s12 + $0x1] ss:$0 sm:$0xff]  ;;  %s18589_s12 = sld [smem:[#allocation23_spill]] }
0x1e94   :  { %v16309_v31 = vpop.eup %16308 }
0x1e95   :  { %15434 = vmatmul.mubr.msk.f32.vlgmr.msra.gmra.mxu1 %vm448_vm6, %v16309_v31  ;;  %v4291_v25 = vsel %vm448_vm6, %v16309_v31, 0.0  ;;  %v14410_v31 = vld [vmem:[%s16669_s20 + $0x28] sm:$0xff] }
0x1e96   :  { %15442 = vmatpush3.xpose.msk.msra.mxu1 %vm448_vm6, %v4449_v24  ;;  %4292 = vadd.xlane.f32.xlu1 %v4291_v25  ;;  %v14409_v25 = vld [vmem:[%s16669_s20 + $0x20] sm:$0xff]  ;;  %s18590_s20 = sld [smem:[#allocation24_spill]] }
0x1e97   :  { %15443 = vmatprep.mubr.msk.f32.mxu1 %vm16569_vm5, %v16568_v6  ;;  %15451 = vmatprep.subr.mxu1 %v16568_v6 }
0x1e99   :  { %15444 = vmatmul.mubr.msk.f32.vlgmr.msra.gmra.mxu1 %vm448_vm6, %v4447_v26 }
0x1e9a   :  { %15452 = vmatpush3.msra.mxu1 %v17272_v22  ;;  %15453 = vmatprep.mubr.msk.f32.mxu1 %vm16569_vm5, %v16568_v6 }
0x1ea7   :  { %4535 = vrot.lane.b32.xlu1 %v17141_v30, %s18544_s28 }
0x1f1f   :  { %v4293_v27 = vpop.xlane.xlu1 %4292 }
0x1f20   :  { %16310 = vrcp.f32 %v4293_v27  ;;  %v4952_v27 = vld [vmem:[%s18580_s8 + $0x38] sm:$0xff] }
0x1f23   :  { %v4536_v34 = vpop.permute.xlu1 %4535 }
0x1f2d   :  { %v16311_v28 = vpop.eup %16310 }
0x1f55   :  { %v4366_v29 = vpop.f32.mrf.mxu1 }
0x1f56   :  { %v4371_v32 = vmul.f32 %v16311_v28, %v4366_v29  ;;  %v14432_v28 = vld [vmem:[%s16679_s4 + $0xf8] sm:$0xff]  ;;  %v14431_v29 = vld [vmem:[%s16679_s4 + $0xf0] sm:$0xff] }
0x1f57   :  { %v15435_v33 = vpop.f32.mrf.mxu1  ;;  %15467 = vmatprep.subr.mxu1 %v14432_v28 }
0x1f58   :  { %15439 = vmatmul.mubr.msk.f32.vlgmr.msra.gmra.mxu0 %vm448_vm6, %v4371_v32  ;;  %v14430_v32 = vld [vmem:[%s16679_s4 + $0xe8] sm:$0xff]  ;;  %v14429_v33 = vld [vmem:[%s16679_s4 + $0xe0] sm:$0xff] }
0x1f59   :  { %15447 = vmatpush3.msra.mxu0 %v4536_v34  ;;  %v4520_v9 = vpop.f32.mrf.mxu1  ;;  %15448 = vmatprep.mubr.msk.f32.mxu0 %vm16569_vm5, %v16568_v6  ;;  %v14428_v34 = vld [vmem:[%s16679_s4 + $0xd8] sm:$0xff] }
0x1f5a   :  { %v4524_v22 = vmul.f32 0.35355338, %v4520_v9  ;;  %15456 = vmatprep.subr.mxu0 %v14412_v16  ;;  %v14427_v9 = vld [vmem:[%s16679_s4 + $0xd0] sm:$0xff] }
0x1f5b   :  { %v15445_v35 = vpop.f32.mrf.mxu1 }
0x1f5c   :  { %v4525_v30 = vsel %vm187_vm8, %v4524_v22, -inf  ;;  %v14426_v22 = vld [vmem:[%s16679_s4 + $0xc8] sm:$0xff]  ;;  %v14425_v35 = vld [vmem:[%s16679_s4 + $0xc0] sm:$0xff] }
0x1f5d   :  { %v4526_v38 = vsel %vm448_vm6, %v4525_v30, -inf }
0x1f5e   :  { %4527 = vmax.xlane.f32.xlu0 %v4526_v38  ;;  %v14423_v38 = vld [vmem:[%s16679_s4 + $0xb0] sm:$0xff] }
0x1fe7   :  { %v4528_v39 = vpop.xlane.xlu0 %4527 }
0x1fe8   :  { %v4529_v40 = vsub.f32 %v4525_v30, %v4528_v39  ;;  %v14424_v30 = vld [vmem:[%s16679_s4 + $0xb8] sm:$0xff]  ;;  %v14422_v39 = vld [vmem:[%s16679_s4 + $0xa8] sm:$0xff] }
0x1fea   :  { %v4530_v41 = vmul.f32 1.442695, %v4529_v40  ;;  %v14421_v40 = vld [vmem:[%s16679_s4 + $0xa0] sm:$0xff] }
0x1fec   :  { %16312 = vpow2.f32 %v4530_v41 }
0x1ff9   :  { %v16313_v44 = vpop.eup %16312 }
0x1ffa   :  { %15449 = vmatmul.mubr.msk.f32.vlgmr.msra.gmra.mxu0 %vm448_vm6, %v16313_v44  ;;  %v4532_v47 = vsel %vm448_vm6, %v16313_v44, 0.0 }
0x1ffb   :  { %4533 = vadd.xlane.f32.xlu0 %v4532_v47  ;;  %15457 = vmatpush3.msra.mxu0 %v14412_v16 }
0x1ffc   :  { %15458 = vmatprep.subr.mxu0 %v14411_v55 }
0x1ffd   :  { %15459 = vmatpush3.msra.mxu0 %v14411_v55 }
0x1ffe   :  { %15460 = vmatprep.subr.mxu0 %v14410_v31 }
0x1fff   :  { %4702 = vadd.xlane.f32.xlu0 %v4701_v48  ;;  %15461 = vmatpush3.msra.mxu0 %v14410_v31 }
0x2000   :  { %15462 = vmatprep.subr.mxu0 %v14409_v25 }
0x2001   :  { %15463 = vmatpush3.msra.mxu0 %v14409_v25 }
0x2002   :  { %15502 = vmatprep.subr.mxu0 %v4952_v27 }
0x2018   :  { %v4441_v49 = vpop.f32.mrf.mxu0 }
0x2019   :  { %v4445_v36 = vadd.f32 %v4441_v49, %v4202_v12 }
0x201a   :  { %v15440_v50 = vpop.f32.mrf.mxu0 }
0x201b   :  { %v4951_v50 = vld [vmem:[%s18580_s8 + $0x30] sm:$0xff] }
0x2084   :  { %v4534_v51 = vpop.xlane.xlu0 %4533 }
0x2085   :  { %16314 = vrcp.f32 %v4534_v51 }
0x2088   :  { %v4703_v56 = vpop.xlane.xlu0 %4702 }
0x2089   :  { %v4707_v57 = vmul.f32 0.03125, %v4703_v56 }
0x208b   :  { %v4709_v60 = vsub.f32 %v17349_v46, %v4707_v57  ;;  %v4946_v57 = vld [vmem:[%s18580_s8 + $0x8] sm:$0xff] }
0x208d   :  { %v4711_v0 = vmul.f32 %v4709_v60, %v4709_v60 }
0x208f   :  { %v4713_v1 = vsel %vm304_vm4, %v4711_v0, 0.0  ;;  %v14414_v0 = vld [vmem:[%s18577_s1 + $0x1] ss:$0 sm:$0xff]  ;;  %s18595_s1 = sld [smem:[#allocation25_spill]] }
0x2092   :  { %v16315_v2 = vpop.eup %16314 }
0x20ba   :  { %v4607_v52 = vpop.f32.mrf.mxu0 }
0x20bb   :  { %v4612_v54 = vmul.f32 %v16315_v2, %v4607_v52  ;;  %v4950_v2 = vld [vmem:[%s18580_s8 + $0x28] sm:$0xff]  ;;  %v4949_v52 = vld [vmem:[%s18580_s8 + $0x20] sm:$0xff] }
0x20bc   :  { %v15450_v13 = vpop.f32.mrf.mxu0 }
0x20bd   :  { %15454 = vmatmul.mubr.msk.f32.vlgmr.msra.gmra.mxu1 %vm448_vm6, %v4612_v54  ;;  %v4948_v54 = vld [vmem:[%s18580_s8 + $0x18] sm:$0xff]  ;;  %v4947_v13 = vld [vmem:[%s18580_s8 + $0x10] sm:$0xff] }
0x20be   :  { %15468 = vmatpush3.msra.mxu1 %v14432_v28 }
0x20bf   :  { %15469 = vmatprep.subr.mxu1 %v14431_v29 }
0x20c0   :  { %15470 = vmatpush3.msra.mxu1 %v14431_v29 }
0x20c1   :  { %15471 = vmatprep.subr.mxu1 %v14430_v32 }
0x20c2   :  { %15472 = vmatpush3.msra.mxu1 %v14430_v32 }
0x20c3   :  { %15473 = vmatprep.subr.mxu1 %v14429_v33 }
0x20c4   :  { %15474 = vmatpush3.msra.mxu1 %v14429_v33  ;;  %v5097_v33 = vld [vmem:[%s18581_s14 + $0x18] sm:$0xff] }
0x20c5   :  { %15475 = vmatprep.subr.mxu1 %v14428_v34 }
0x20c6   :  { %15476 = vmatpush3.msra.mxu1 %v14428_v34  ;;  %v5096_v34 = vld [vmem:[%s18581_s14 + $0x10] sm:$0xff] }
0x20c7   :  { %15477 = vmatprep.subr.mxu1 %v14427_v9 }
0x20c8   :  { %15478 = vmatpush3.msra.mxu1 %v14427_v9  ;;  %v5095_v9 = vld [vmem:[%s18581_s14 + $0x8] sm:$0xff] }
0x20c9   :  { %15479 = vmatprep.subr.mxu1 %v14426_v22 }
0x20ca   :  { %15480 = vmatpush3.msra.mxu1 %v14426_v22  ;;  %v5094_v22 = vld [vmem:[%s18581_s14] sm:$0xff] }
0x20cb   :  { %15481 = vmatprep.subr.mxu1 %v14425_v35 }
0x20cc   :  { %15482 = vmatpush3.msra.mxu1 %v14425_v35 }
0x20cd   :  { %15483 = vmatprep.subr.mxu1 %v14424_v30 }
0x20ce   :  { %15484 = vmatpush3.msra.mxu1 %v14424_v30 }
0x20cf   :  { %15485 = vmatprep.subr.mxu1 %v14423_v38 }
0x20d0   :  { %15486 = vmatpush3.msra.mxu1 %v14423_v38 }
0x20d1   :  { %15487 = vmatprep.subr.mxu1 %v14422_v39 }
0x20d2   :  { %15488 = vmatpush3.msra.mxu1 %v14422_v39 }
0x20d3   :  { %15489 = vmatprep.subr.mxu1 %v14421_v40 }
0x20d4   :  { %15490 = vmatpush3.msra.mxu1 %v14421_v40 }
0x217d   :  { %v4682_v58 = vpop.f32.mrf.mxu1 }
0x217e   :  { %v4686_v21 = vadd.f32 %v4682_v58, %v4445_v36  ;;  %v4945_v58 = vld [vmem:[%s18580_s8] sm:$0xff]  ;;  %s18598_s8 = sld [smem:[#allocation28_spill]] }
0x217f   :  { %v15455_v59 = vpop.f32.mrf.mxu1 }
0x2180   :  { %v4694_v61 = vadd.f32 %v14404_v42, %v4686_v21  ;;  %v14420_v59 = vld [vmem:[%s16679_s4 + $0x98] sm:$0xff] }
0x2181   :  { %15491 = vmatprep.subr.mxu1 %v14420_v59 }
0x2182   :  { %v17358_v62 = vadd.f32 %v4694_v61, %v17119_v17  ;;  %15492 = vmatpush3.msra.mxu1 %v14420_v59  ;;  %v14418_v61 = vld [vmem:[%s16679_s4 + $0x88] sm:$0xff] }
0x2184   :  { %v4704_v63 = vsel %vm304_vm4, %v17358_v62, 0.0 }
0x2185   :  { %4705 = vadd.xlane.f32.xlu0 %v4704_v63  ;;  %v14417_v63 = vld [vmem:[%s16679_s4 + $0x80] sm:$0xff] }
0x2189   :  { %4714 = vadd.xlane.f32.xlu0 %v4713_v1 }
0x219f   :  { %4954 = vperm.xlu0 %16238, %v4943_v3  }
0x21a3   :  { %4957 = vperm.xlu0 %16238, %v4944_v5  }
0x220e   :  { %v4706_v8 = vpop.xlane.xlu0 %4705 }
0x220f   :  { %v4708_v10 = vmul.f32 0.03125, %v4706_v8 }
0x2211   :  { %v17366_v17 = vsub.f32 %v17358_v62, %v4708_v10 }
0x2212   :  { %v4715_v11 = vpop.xlane.xlu0 %4714 }
0x2213   :  { %v4719_v12 = vmul.f32 0.03125, %v4715_v11  ;;  %v4712_v37 = vmul.f32 %v17366_v17, %v17366_v17 }
0x2215   :  { %v4721_v53 = vadd.f32 1e-05, %v4719_v12  ;;  %v4716_v4 = vsel %vm304_vm4, %v4712_v37, 0.0 }
0x2216   :  { %4717 = vadd.xlane.f32.xlu1 %v4716_v4 }
0x2217   :  { %16316 = vrsqrt.f32 %v4721_v53  ;;  %v16480_v53 = vld [vmem:[%s16624_s29] sm:$0xff]  ;;  %s18582_s29 = sld [smem:[#allocation13_spill]] }
0x221a   :  { %v4955_v47 = vpop.permute.xlu0 %4954 }
0x221b   :  { %vm4959_vm9 = vcmp.eq.s32.totalorder %v16826_v20, %v4955_v47  ;;  %v14440_v47 = vld [vmem:[%s18583_s19] ss:$0 sm:$0xff] }
0x221c   :  { %v14435_v51 = vsel %vm4959_vm9, 1.0, %v16568_v6 }
0x221e   :  { %v4958_v56 = vpop.permute.xlu0 %4957 }
0x221f   :  { %vm4960_vm10 = vcmp.eq.s32.totalorder %v16826_v20, %v4958_v56 }
0x2220   :  { %v14436_v21 = vsel %vm4960_vm10, 1.0, %v16568_v6 }
0x2224   :  { %v16317_v18 = vpop.eup %16316 }
0x2225   :  { %v4725_v45 = vmul.f32 %v16317_v18, %v4709_v60  ;;  %v14419_v60 = vld [vmem:[%s16679_s4 + $0x90] sm:$0xff]  ;;  %s18591_s4 = sld [smem:[#allocation19_spill]] }
0x2226   :  { %15493 = vmatprep.subr.mxu1 %v14419_v60 }
0x2227   :  { %v4733_v24 = vmul.f32 %v17372_v19, %v4725_v45  ;;  %15494 = vmatpush3.msra.mxu1 %v14419_v60 }
0x2228   :  { %15495 = vmatprep.subr.mxu1 %v14418_v61 }
0x2229   :  { %v4741_v26 = vadd.f32 %v14408_v23, %v4733_v24  ;;  %15496 = vmatpush3.msra.mxu1 %v14418_v61 }
0x222a   :  { %15497 = vmatprep.subr.mxu1 %v14417_v63 }
0x222b   :  { %15464 = vmatprep.mubr.msk.f32.mxu0 %vm304_vm4, %v4741_v26  ;;  %15498 = vmatpush3.msra.mxu1 %v14417_v63 }
0x222c   :  { %15537 = vmatprep.subr.mxu1 %v16568_v6 }
0x229f   :  { %v4718_v41 = vpop.xlane.xlu1 %4717 }
0x22a0   :  { %v4720_v42 = vmul.f32 0.03125, %v4718_v41 }
0x22a2   :  { %v4722_v43 = vadd.f32 1e-05, %v4720_v42 }
0x22a4   :  { %16318 = vrsqrt.f32 %v4722_v43  ;;  %v14439_v43 = vld [vmem:[%s18582_s29] ss:$0 sm:$0xff] }
0x22b1   :  { %v16319_v44 = vpop.eup %16318 }
0x22b2   :  { %v4726_v48 = vmul.f32 %v16319_v44, %v17366_v17 }
0x22b4   :  { %v4734_v49 = vmul.f32 %v17372_v19, %v4726_v48 }
0x22b6   :  { %v4742_v36 = vadd.f32 %v14408_v23, %v4734_v49 }
0x22b8   :  { %15465 = vmatmul.mubr.msk.f32.vlgmr.msra.gmra.mxu0 %vm304_vm4, %v4742_v36 }
0x22b9   :  { %15503 = vmatpush3.msra.mxu0 %v4952_v27  ;;  %15518 = vmatprep.mubr.msk.f32.mxu0 %vm216_vm1, %v14435_v51 }
0x22ba   :  { %15504 = vmatprep.subr.mxu0 %v4951_v50 }
0x22bb   :  { %15505 = vmatpush3.msra.mxu0 %v4951_v50 }
0x22bc   :  { %15506 = vmatprep.subr.mxu0 %v4950_v2 }
0x22bd   :  { %15507 = vmatpush3.msra.mxu0 %v4950_v2 }
0x22be   :  { %15508 = vmatprep.subr.mxu0 %v4949_v52 }
0x22bf   :  { %15509 = vmatpush3.msra.mxu0 %v4949_v52  ;;  %v14441_v52 = vld [vmem:[%s18584_s24] ss:$0 sm:$0xff] }
0x22c0   :  { %15510 = vmatprep.subr.mxu0 %v4948_v54 }
0x22c1   :  { %15511 = vmatpush3.msra.mxu0 %v4948_v54 }
0x22c2   :  { %15512 = vmatprep.subr.mxu0 %v4947_v13 }
0x22c3   :  { %15513 = vmatpush3.msra.mxu0 %v4947_v13 }
0x22c4   :  { %15514 = vmatprep.subr.mxu0 %v4946_v57 }
0x22c5   :  { %15515 = vmatpush3.msra.mxu0 %v4946_v57 }
0x22c6   :  { %15516 = vmatprep.subr.mxu0 %v4945_v58 }
0x22c7   :  { %15517 = vmatpush3.msra.mxu0 %v4945_v58 }
0x22c8   :  { %15519 = vmatmul.mubr.msk.f32.vlgmr.msra.gmra.mxu0 %vm216_vm1, %v14436_v21  ;;  %15521 = vmatprep.subr.mxu0 %v5097_v33 }
0x22c9   :  { %15522 = vmatpush3.msra.mxu0 %v5097_v33 }
0x22ca   :  { %15523 = vmatprep.subr.mxu0 %v5096_v34 }
0x22cb   :  { %15524 = vmatpush3.msra.mxu0 %v5096_v34 }
0x22cc   :  { %15525 = vmatprep.subr.mxu0 %v5095_v9 }
0x22cd   :  { %15526 = vmatpush3.msra.mxu0 %v5095_v9 }
0x22ce   :  { %15527 = vmatprep.subr.mxu0 %v5094_v22 }
0x22cf   :  { %15528 = vmatpush3.msra.mxu0 %v5094_v22 }
0x22d0   :  { %15532 = vmatprep.subr.mxu0 %v16568_v6 }
0x2378   :  { %v15466_v1 = vpop.f32.mrf.mxu0 }
0x2379   :  { %v4834_v3 = vadd.f32 %v15466_v1, %v14414_v0 }
0x237a   :  { %v4828_v5 = vpop.f32.mrf.mxu0 }
0x237b   :  { %v4829_v8 = vadd.f32 %v14414_v0, %v4828_v5  ;;  %v4838_v17 = vmax.f32 %v4834_v3, 0.0 }
0x237d   :  { %v4837_v10 = vmax.f32 %v4829_v8, 0.0 }
0x237f   :  { %15499 = vmatprep.mubr.f32.mxu1 %v4837_v10 }
0x2380   :  { %15500 = vmatmul.mubr.f32.vlgmr.msra.gmra.mxu1 %v4838_v17 }
0x2381   :  { %15539 = vmatprep.mubr.msk.f32.mxu1 %vm16569_vm5, %v16568_v6 }
0x2388   :  { %v15520_v11 = vpop.f32.mrf.mxu0 }
0x2389   :  { %v5047_v12 = vmul.f32 5.656854, %v15520_v11 }
0x238a   :  { %v5037_v37 = vpop.f32.mrf.mxu0 }
0x238b   :  { %v17419_v4 = vadd.f32 %v16480_v53, %v5047_v12  ;;  %v5046_v18 = vmul.f32 5.656854, %v5037_v37 }
0x238d   :  { %v17421_v19 = vadd.f32 %v16480_v53, %v5046_v18  ;;  %v5055_v16 = vsel %vm304_vm4, %v17419_v4, 0.0 }
0x238e   :  { %5056 = vadd.xlane.f32.xlu1 %v5055_v16 }
0x238f   :  { %v5052_v55 = vsel %vm304_vm4, %v17421_v19, 0.0 }
0x2390   :  { %5053 = vadd.xlane.f32.xlu0 %v5052_v55 }
0x2417   :  { %v5057_v45 = vpop.xlane.xlu1 %5056 }
0x2418   :  { %v5059_v23 = vmul.f32 0.03125, %v5057_v45 }
0x2419   :  { %v5054_v31 = vpop.xlane.xlu0 %5053 }
0x241a   :  { %v5058_v24 = vmul.f32 0.03125, %v5054_v31  ;;  %v5061_v25 = vsub.f32 %v17419_v4, %v5059_v23 }
0x241c   :  { %v5060_v26 = vsub.f32 %v17421_v19, %v5058_v24  ;;  %v5063_v29 = vmul.f32 %v5061_v25, %v5061_v25 }
0x241e   :  { %v5062_v27 = vmul.f32 %v5060_v26, %v5060_v26  ;;  %v5067_v32 = vsel %vm304_vm4, %v5063_v29, 0.0 }
0x2420   :  { %v5064_v28 = vsel %vm304_vm4, %v5062_v27, 0.0  ;;  %v17504_v27 = vld [vmem:[%s18587_s30 + $0x8] sm:$0xff] }
0x2421   :  { %5065 = vadd.xlane.f32.xlu1 %v5064_v28 }
0x2425   :  { %5068 = vadd.xlane.f32.xlu1 %v5067_v32 }
0x2440   :  { %v17508_v34 = vpop.f32.mrf.mxu1 }
0x2442   :  { %v17510_v9 = vpop.f32.mrf.mxu1 }
0x24aa   :  { %v5066_v35 = vpop.xlane.xlu1 %5065 }
0x24ab   :  { %v5070_v30 = vmul.f32 0.03125, %v5066_v35 }
0x24ad   :  { %v5072_v38 = vadd.f32 1e-05, %v5070_v30 }
0x24ae   :  { %v5069_v39 = vpop.xlane.xlu1 %5068 }
0x24af   :  { %16320 = vrsqrt.f32 %v5072_v38  ;;  %v5071_v40 = vmul.f32 0.03125, %v5069_v39 }
0x24b1   :  { %v5073_v41 = vadd.f32 1e-05, %v5071_v40 }
0x24b3   :  { %16322 = vrsqrt.f32 %v5073_v41 }
0x24bc   :  { %v16321_v42 = vpop.eup %16320 }
0x24bd   :  { %v5076_v44 = vmul.f32 %v16321_v42, %v5060_v26  ;;  %v17499_v26 = vld [vmem:[%s18587_s30] sm:$0xff] }
0x24bf   :  { %v5084_v48 = vmul.f32 %v14439_v43, %v5076_v44 }
0x24c0   :  { %v16323_v49 = vpop.eup %16322 }
0x24c1   :  { %v5077_v36 = vmul.f32 %v16323_v49, %v5061_v25  ;;  %v5092_v50 = vadd.f32 %v14440_v47, %v5084_v48 }
0x24c3   :  { %v5085_v51 = vmul.f32 %v14439_v43, %v5077_v36  ;;  %15529 = vmatprep.mubr.msk.f32.mxu0 %vm304_vm4, %v5092_v50 }
0x24c5   :  { %v5093_v2 = vadd.f32 %v14440_v47, %v5085_v51 }
0x24c7   :  { %15530 = vmatmul.mubr.msk.f32.vlgmr.msra.gmra.mxu0 %vm304_vm4, %v5093_v2 }
0x24c8   :  { %15534 = vmatprep.mubr.msk.f32.mxu0 %vm16569_vm5, %v16568_v6 }
0x2587   :  { %v15531_v54 = vpop.f32.mrf.mxu0 }
0x2588   :  { %v17443_v13 = vadd.f32 %v15531_v54, %v14441_v52 }
0x2589   :  { %v5177_v56 = vpop.f32.mrf.mxu0 }
0x258a   :  { %v17445_v57 = vadd.f32 %v14441_v52, %v5177_v56 }
0x258c   :  { %5359 = vrot.lane.b32.xlu0 %v17445_v57, %s16572_s9  ;;  %5192 = vrot.lane.b32.xlu1 %v17445_v57, %s16571_s5 }
0x2590   :  { %5357 = vrot.lane.b32.xlu1 %v17445_v57, %s16573_s21 }
0x25fe   :  { %v5193_v58 = vpop.permute.xlu1 %5192  ;;  %v5360_v21 = vpop.permute.xlu0 %5359 }
0x25ff   :  { %15533 = vmatpush3.xpose.msk.msra.mxu0 %vm448_vm6, %v5193_v58 }
0x2600   :  { %15542 = vmatprep.subr.mxu0 %v16568_v6 }
0x2602   :  { %15535 = vmatmul.mubr.msk.f32.vlgmr.msra.gmra.mxu0 %vm448_vm6, %v17445_v57  ;;  %v5358_v59 = vpop.permute.xlu1 %5357 }
0x2603   :  { %15543 = vmatpush3.xpose.msk.msra.mxu0 %vm448_vm6, %v5360_v21  ;;  %15544 = vmatprep.mubr.msk.f32.mxu0 %vm16569_vm5, %v16568_v6 }
0x2604   :  { %15552 = vmatprep.subr.mxu0 %v16568_v6 }
0x2606   :  { %15545 = vmatmul.mubr.msk.f32.vlgmr.msra.gmra.mxu0 %vm448_vm6, %v5358_v59 }
0x2607   :  { %15554 = vmatprep.mubr.msk.f32.mxu0 %vm16569_vm5, %v16568_v6  ;;  %15553 = vmatpush3.msra.mxu0 %v17504_v27 }
0x2608   :  { %15562 = vmatprep.subr.mxu0 %v16568_v6 }
0x26c2   :  { %v5264_v61 = vpop.f32.mrf.mxu0 }
0x26c3   :  { %v5268_v63 = vmul.f32 0.35355338, %v5264_v61 }
0x26c4   :  { %v15536_v0 = vpop.f32.mrf.mxu0 }
0x26c5   :  { %v5269_v1 = vsel %vm17466_vm11, %v5268_v63, -inf  ;;  %v17547_v0 = vld [vmem:[%s18587_s30 + $0x10] sm:$0xff] }
0x26c6   :  { %v5431_v3 = vpop.f32.mrf.mxu0  ;;  %v5270_v5 = vsel %vm448_vm6, %v5269_v1, -inf }
0x26c7   :  { %v5435_v8 = vmul.f32 0.35355338, %v5431_v3  ;;  %5271 = vmax.xlane.f32.xlu1 %v5270_v5 }
0x26c8   :  { %v15546_v10 = vpop.f32.mrf.mxu0 }
0x26c9   :  { %v5436_v17 = vsel %vm17466_vm11, %v5435_v8, -inf }
0x26ca   :  { %v5437_v7 = vsel %vm448_vm6, %v5436_v17, -inf }
0x26cb   :  { %5438 = vmax.xlane.f32.xlu0 %v5437_v7 }
0x26d8   :  { %5279 = vrot.lane.b32.xlu1 %v17445_v57, %s16570_s0 }
0x26e1   :  { %5446 = vrot.lane.b32.xlu0 %v17445_v57, %s16576_s18 }
0x26e5   :  { %5672 = vrot.lane.b32.xlu0 %v17445_v57, %s16574_s15 }
0x26e9   :  { %5670 = vrot.lane.b32.xlu0 %v17445_v57, %s18548_s16 }
0x2750   :  { %v5272_v11 = vpop.xlane.xlu1 %5271 }
0x2751   :  { %v5273_v12 = vsub.f32 %v5269_v1, %v5272_v11 }
0x2753   :  { %v5274_v37 = vmul.f32 1.442695, %v5273_v12 }
0x2754   :  { %v5439_v53 = vpop.xlane.xlu0 %5438  ;;  %v5280_v18 = vpop.permute.xlu1 %5279 }
0x2755   :  { %16324 = vpow2.f32 %v5274_v37  ;;  %v5440_v16 = vsub.f32 %v5436_v17, %v5439_v53  ;;  %15538 = vmatpush3.msra.mxu1 %v5280_v18 }
0x2756   :  { %15547 = vmatprep.subr.mxu1 %v16568_v6 }
0x2757   :  { %v5441_v55 = vmul.f32 1.442695, %v5440_v16 }
0x2758   :  { %v5447_v23 = vpop.permute.xlu0 %5446 }
0x2759   :  { %16326 = vpow2.f32 %v5441_v55 }
0x275c   :  { %v5673_v28 = vpop.permute.xlu0 %5672 }
0x2760   :  { %v5671_v29 = vpop.permute.xlu0 %5670 }
0x2762   :  { %v16325_v45 = vpop.eup %16324 }
0x2763   :  { %15540 = vmatmul.mubr.msk.f32.vlgmr.msra.gmra.mxu1 %vm448_vm6, %v16325_v45  ;;  %v5276_v31 = vsel %vm448_vm6, %v16325_v45, 0.0 }
0x2764   :  { %15548 = vmatpush3.msra.mxu1 %v5447_v23  ;;  %5277 = vadd.xlane.f32.xlu0 %v5276_v31 }
0x2765   :  { %15549 = vmatprep.mubr.msk.f32.mxu1 %vm16569_vm5, %v16568_v6  ;;  %15557 = vmatprep.subr.mxu1 %v16568_v6 }
0x2766   :  { %v16327_v24 = vpop.eup %16326 }
0x2767   :  { %15550 = vmatmul.mubr.msk.f32.vlgmr.msra.gmra.mxu1 %vm448_vm6, %v16327_v24  ;;  %v5443_v25 = vsel %vm448_vm6, %v16327_v24, 0.0 }
0x2768   :  { %5444 = vadd.xlane.f32.xlu1 %v5443_v25  ;;  %15559 = vmatprep.mubr.msk.f32.mxu1 %vm16569_vm5, %v16568_v6 }
0x2769   :  { %15558 = vmatpush3.msra.mxu1 %v17499_v26 }
0x276a   :  { %15567 = vmatprep.subr.mxu1 %v16568_v6 }
0x2779   :  { %5759 = vrot.lane.b32.xlu1 %v17445_v57, %s16577_s22 }
0x277a   :  { %5913 = vrot.lane.b32.xlu0 %v17445_v57, %s18546_s23 }
0x27ed   :  { %v5278_v32 = vpop.xlane.xlu0 %5277 }
0x27ee   :  { %16328 = vrcp.f32 %v5278_v32 }
0x27f1   :  { %v5445_v33 = vpop.xlane.xlu1 %5444  ;;  %v5914_v61 = vpop.permute.xlu0 %5913 }
0x27f2   :  { %16330 = vrcp.f32 %v5445_v33  ;;  %v17581_v33 = vld [vmem:[%s18587_s30 + $0x18] sm:$0xff] }
0x27f5   :  { %v5760_v39 = vpop.permute.xlu1 %5759 }
0x27fb   :  { %v16329_v22 = vpop.eup %16328 }
0x27ff   :  { %v16331_v40 = vpop.eup %16330 }
0x2823   :  { %v5351_v35 = vpop.f32.mrf.mxu1 }
0x2824   :  { %v5356_v30 = vmul.f32 %v16329_v22, %v5351_v35 }
0x2825   :  { %v15541_v38 = vpop.f32.mrf.mxu1 }
0x2826   :  { %15560 = vmatmul.mubr.msk.f32.vlgmr.msra.gmra.mxu1 %vm448_vm6, %v5356_v30 }
0x2827   :  { %15568 = vmatpush3.msra.mxu1 %v5760_v39  ;;  %v5518_v41 = vpop.f32.mrf.mxu1  ;;  %15569 = vmatprep.mubr.msk.f32.mxu1 %vm16569_vm5, %v16568_v6 }
0x2828   :  { %v5523_v42 = vmul.f32 %v16331_v40, %v5518_v41  ;;  %15577 = vmatprep.subr.mxu1 %v16568_v6 }
0x2829   :  { %v15551_v43 = vpop.f32.mrf.mxu1 }
0x282a   :  { %15555 = vmatmul.mubr.msk.f32.vlgmr.msra.gmra.mxu0 %vm448_vm6, %v5523_v42 }
0x282b   :  { %15563 = vmatpush3.xpose.msk.msra.mxu0 %vm448_vm6, %v5673_v28  ;;  %15564 = vmatprep.mubr.msk.f32.mxu0 %vm16569_vm5, %v16568_v6 }
0x282c   :  { %15572 = vmatprep.subr.mxu0 %v16568_v6 }
0x282e   :  { %15565 = vmatmul.mubr.msk.f32.vlgmr.msra.gmra.mxu0 %vm448_vm6, %v5671_v29 }
0x282f   :  { %15574 = vmatprep.mubr.msk.f32.mxu0 %vm16569_vm5, %v16568_v6  ;;  %15573 = vmatpush3.msra.mxu0 %v17547_v0 }
0x2830   :  { %15582 = vmatprep.subr.mxu0 %v16568_v6 }
0x28e6   :  { %v5666_v44 = vpop.f32.mrf.mxu1 }
0x28e8   :  { %v15561_v47 = vpop.f32.mrf.mxu1 }
0x28ea   :  { %v5593_v48 = vpop.f32.mrf.mxu0 }
0x28eb   :  { %v17524_v49 = vadd.f32 %v5666_v44, %v5593_v48 }
0x28ec   :  { %v15556_v36 = vpop.f32.mrf.mxu0 }
0x28ee   :  { %v5744_v50 = vpop.f32.mrf.mxu0 }
0x28ef   :  { %v5748_v51 = vmul.f32 0.35355338, %v5744_v50 }
0x28f0   :  { %v15566_v2 = vpop.f32.mrf.mxu0 }
0x28f1   :  { %v5749_v52 = vsel %vm17466_vm11, %v5748_v51, -inf }
0x28f2   :  { %v5750_v54 = vsel %vm448_vm6, %v5749_v52, -inf }
0x28f3   :  { %5751 = vmax.xlane.f32.xlu1 %v5750_v54 }
0x2904   :  { %5911 = vrot.lane.b32.xlu1 %v17445_v57, %s18550_s26 }
0x2908   :  { %6000 = vrot.lane.b32.xlu1 %v17445_v57, %s18544_s28 }
0x297c   :  { %v5752_v56 = vpop.xlane.xlu1 %5751 }
0x297d   :  { %v5753_v58 = vsub.f32 %v5749_v52, %v5752_v56 }
0x297f   :  { %v5754_v21 = vmul.f32 1.442695, %v5753_v58 }
0x2980   :  { %v5912_v57 = vpop.permute.xlu1 %5911 }
0x2981   :  { %16332 = vpow2.f32 %v5754_v21 }
0x2984   :  { %v6001_v1 = vpop.permute.xlu1 %6000 }
0x298e   :  { %v16333_v59 = vpop.eup %16332 }
0x298f   :  { %15570 = vmatmul.mubr.msk.f32.vlgmr.msra.gmra.mxu1 %vm448_vm6, %v16333_v59  ;;  %v5756_v63 = vsel %vm448_vm6, %v16333_v59, 0.0 }
0x2990   :  { %15578 = vmatpush3.xpose.msk.msra.mxu1 %vm448_vm6, %v5914_v61  ;;  %5757 = vadd.xlane.f32.xlu1 %v5756_v63 }
0x2991   :  { %15579 = vmatprep.mubr.msk.f32.mxu1 %vm16569_vm5, %v16568_v6  ;;  %15587 = vmatprep.subr.mxu1 %v16568_v6 }
0x2993   :  { %15580 = vmatmul.mubr.msk.f32.vlgmr.msra.gmra.mxu1 %vm448_vm6, %v5912_v57 }
0x2994   :  { %15589 = vmatprep.mubr.msk.f32.mxu1 %vm16569_vm5, %v16568_v6  ;;  %15588 = vmatpush3.msra.mxu1 %v17581_v33 }
0x2995   :  { %15597 = vmatprep.subr.mxu1 %v16568_v6 }
0x29a1   :  { %6320 = vrot.lane.b32.xlu1 %v17443_v13, %s16572_s9 }
0x29a5   :  { %6318 = vrot.lane.b32.xlu1 %v17443_v13, %s16573_s21 }
0x2a19   :  { %v5758_v3 = vpop.xlane.xlu1 %5757 }
0x2a1a   :  { %16334 = vrcp.f32 %v5758_v3 }
0x2a1d   :  { %v6321_v24 = vpop.permute.xlu1 %6320 }
0x2a21   :  { %v6319_v25 = vpop.permute.xlu1 %6318 }
0x2a27   :  { %v16335_v5 = vpop.eup %16334 }
0x2a4f   :  { %v5831_v8 = vpop.f32.mrf.mxu1 }
0x2a50   :  { %v5836_v10 = vmul.f32 %v16335_v5, %v5831_v8 }
0x2a51   :  { %v15571_v17 = vpop.f32.mrf.mxu1 }
0x2a52   :  { %15575 = vmatmul.mubr.msk.f32.vlgmr.msra.gmra.mxu0 %vm448_vm6, %v5836_v10 }
0x2a53   :  { %15583 = vmatpush3.msra.mxu0 %v6001_v1  ;;  %v5985_v7 = vpop.f32.mrf.mxu1  ;;  %15584 = vmatprep.mubr.msk.f32.mxu0 %vm16569_vm5, %v16568_v6 }
0x2a54   :  { %v5989_v11 = vmul.f32 0.35355338, %v5985_v7  ;;  %15592 = vmatprep.subr.mxu0 %v16568_v6 }
0x2a55   :  { %v15581_v12 = vpop.f32.mrf.mxu1 }
0x2a56   :  { %v5990_v37 = vsel %vm17466_vm11, %v5989_v11, -inf }
0x2a57   :  { %v5991_v53 = vsel %vm448_vm6, %v5990_v37, -inf }
0x2a58   :  { %5992 = vmax.xlane.f32.xlu0 %v5991_v53 }
0x2a6e   :  { %6153 = vrot.lane.b32.xlu0 %v17443_v13, %s16571_s5 }
0x2ae1   :  { %v5993_v18 = vpop.xlane.xlu0 %5992 }
0x2ae2   :  { %v5994_v16 = vsub.f32 %v5990_v37, %v5993_v18 }
0x2ae4   :  { %v5995_v55 = vmul.f32 1.442695, %v5994_v16 }
0x2ae5   :  { %v6154_v23 = vpop.permute.xlu0 %6153 }
0x2ae6   :  { %16336 = vpow2.f32 %v5995_v55 }
0x2af3   :  { %v16337_v45 = vpop.eup %16336 }
0x2af4   :  { %15585 = vmatmul.mubr.msk.f32.vlgmr.msra.gmra.mxu0 %vm448_vm6, %v16337_v45  ;;  %v5997_v31 = vsel %vm448_vm6, %v16337_v45, 0.0 }
0x2af5   :  { %15593 = vmatpush3.xpose.msk.msra.mxu0 %vm448_vm6, %v6154_v23  ;;  %5998 = vadd.xlane.f32.xlu1 %v5997_v31 }
0x2af6   :  { %15594 = vmatprep.mubr.msk.f32.mxu0 %vm16569_vm5, %v16568_v6  ;;  %15602 = vmatprep.subr.mxu0 %v16568_v6 }
0x2af8   :  { %15595 = vmatmul.mubr.msk.f32.vlgmr.msra.gmra.mxu0 %vm448_vm6, %v17443_v13 }
0x2af9   :  { %15603 = vmatpush3.xpose.msk.msra.mxu0 %vm448_vm6, %v6321_v24  ;;  %15604 = vmatprep.mubr.msk.f32.mxu0 %vm16569_vm5, %v16568_v6 }
0x2afa   :  { %15612 = vmatprep.subr.mxu0 %v16568_v6 }
0x2afc   :  { %15605 = vmatmul.mubr.msk.f32.vlgmr.msra.gmra.mxu0 %vm448_vm6, %v6319_v25 }
0x2afd   :  { %15613 = vmatpush3.msra.mxu0 %v17504_v27  ;;  %15614 = vmatprep.mubr.msk.f32.mxu0 %vm16569_vm5, %v16568_v6 }
0x2afe   :  { %15622 = vmatprep.subr.mxu0 %v16568_v6 }
0x2b06   :  { %6240 = vrot.lane.b32.xlu1 %v17443_v13, %s16570_s0 }
0x2b12   :  { %v5906_v28 = vpop.f32.mrf.mxu0 }
0x2b13   :  { %v5910_v29 = vadd.f32 %v5906_v28, %v17524_v49 }
0x2b14   :  { %v15576_v32 = vpop.f32.mrf.mxu0 }
0x2b7e   :  { %v5999_v22 = vpop.xlane.xlu1 %5998 }
0x2b7f   :  { %16338 = vrcp.f32 %v5999_v22 }
0x2b82   :  { %v6241_v39 = vpop.permute.xlu1 %6240 }
0x2b8c   :  { %v16339_v27 = vpop.eup %16338 }
0x2bb4   :  { %v6072_v35 = vpop.f32.mrf.mxu0 }
0x2bb5   :  { %v6077_v30 = vmul.f32 %v16339_v27, %v6072_v35 }
0x2bb6   :  { %v15586_v38 = vpop.f32.mrf.mxu0 }
0x2bb7   :  { %15590 = vmatmul.mubr.msk.f32.vlgmr.msra.gmra.mxu1 %vm448_vm6, %v6077_v30 }
0x2bb8   :  { %15598 = vmatpush3.msra.mxu1 %v6241_v39  ;;  %v6225_v40 = vpop.f32.mrf.mxu0  ;;  %15599 = vmatprep.mubr.msk.f32.mxu1 %vm16569_vm5, %v16568_v6 }
0x2bb9   :  { %v6229_v41 = vmul.f32 0.35355338, %v6225_v40  ;;  %15607 = vmatprep.subr.mxu1 %v16568_v6 }
0x2bba   :  { %v15596_v42 = vpop.f32.mrf.mxu0 }
0x2bbb   :  { %v6230_v43 = vsel %vm17466_vm11, %v6229_v41, -inf }
0x2bbc   :  { %v6392_v44 = vpop.f32.mrf.mxu0  ;;  %v6231_v47 = vsel %vm448_vm6, %v6230_v43, -inf }
0x2bbd   :  { %v6396_v48 = vmul.f32 0.35355338, %v6392_v44  ;;  %6232 = vmax.xlane.f32.xlu0 %v6231_v47 }
0x2bbe   :  { %v15606_v49 = vpop.f32.mrf.mxu0 }
0x2bbf   :  { %v6397_v36 = vsel %vm17466_vm11, %v6396_v48, -inf }
0x2bc0   :  { %v6398_v50 = vsel %vm448_vm6, %v6397_v36, -inf }
0x2bc1   :  { %6399 = vmax.xlane.f32.xlu0 %v6398_v50 }
0x2bd7   :  { %6407 = vrot.lane.b32.xlu0 %v17443_v13, %s16576_s18 }
0x2bdb   :  { %6633 = vrot.lane.b32.xlu0 %v17443_v13, %s16574_s15 }
0x2bdf   :  { %6631 = vrot.lane.b32.xlu0 %v17443_v13, %s18548_s16 }
0x2c46   :  { %v6233_v51 = vpop.xlane.xlu0 %6232 }
0x2c47   :  { %v6234_v2 = vsub.f32 %v6230_v43, %v6233_v51 }
0x2c49   :  { %v6235_v52 = vmul.f32 1.442695, %v6234_v2 }
0x2c4a   :  { %v6400_v54 = vpop.xlane.xlu0 %6399 }
0x2c4b   :  { %16340 = vpow2.f32 %v6235_v52  ;;  %v6401_v56 = vsub.f32 %v6397_v36, %v6400_v54 }
0x2c4d   :  { %v6402_v58 = vmul.f32 1.442695, %v6401_v56 }
0x2c4e   :  { %v6408_v59 = vpop.permute.xlu0 %6407 }
0x2c4f   :  { %16342 = vpow2.f32 %v6402_v58  ;;  %v14476_v58 = vld [vmem:[%s18588_s6] ss:$0 sm:$0xff] }
0x2c52   :  { %v6634_v8 = vpop.permute.xlu0 %6633 }
0x2c56   :  { %v6632_v10 = vpop.permute.xlu0 %6631 }
0x2c58   :  { %v16341_v21 = vpop.eup %16340 }
0x2c59   :  { %15600 = vmatmul.mubr.msk.f32.vlgmr.msra.gmra.mxu1 %vm448_vm6, %v16341_v21  ;;  %v6237_v61 = vsel %vm448_vm6, %v16341_v21, 0.0 }
0x2c5a   :  { %15608 = vmatpush3.msra.mxu1 %v6408_v59  ;;  %6238 = vadd.xlane.f32.xlu0 %v6237_v61 }
0x2c5b   :  { %15609 = vmatprep.mubr.msk.f32.mxu1 %vm16569_vm5, %v16568_v6  ;;  %15617 = vmatprep.subr.mxu1 %v16568_v6 }
0x2c5c   :  { %v16343_v63 = vpop.eup %16342 }
0x2c5d   :  { %15610 = vmatmul.mubr.msk.f32.vlgmr.msra.gmra.mxu1 %vm448_vm6, %v16343_v63  ;;  %v6404_v57 = vsel %vm448_vm6, %v16343_v63, 0.0 }
0x2c5e   :  { %6405 = vadd.xlane.f32.xlu1 %v6404_v57  ;;  %15618 = vmatpush3.msra.mxu1 %v17499_v26 }
0x2c5f   :  { %15619 = vmatprep.mubr.msk.f32.mxu1 %vm16569_vm5, %v16568_v6  ;;  %15627 = vmatprep.subr.mxu1 %v16568_v6 }
0x2c6f   :  { %6720 = vrot.lane.b32.xlu1 %v17443_v13, %s16577_s22 }
0x2c70   :  { %6874 = vrot.lane.b32.xlu0 %v17443_v13, %s18546_s23 }
0x2c77   :  { %v6147_v1 = vpop.f32.mrf.mxu1 }
0x2c78   :  { %v17616_v3 = vadd.f32 %v6147_v1, %v5910_v29 }
0x2c79   :  { %v15591_v5 = vpop.f32.mrf.mxu1 }
0x2c7a   :  { %v7119_v21 = vadd.f32 %v14476_v58, %v17616_v3  ;;  %v7262_v3 = vld [vmem:[%s18589_s12 + $0x18] sm:$0xff] }
0x2c7c   :  { %v17658_v61 = vadd.f32 %v7119_v21, %v17421_v19  ;;  %v4931_v19 = vadd.f32 %v17510_v9, %v17349_v46  ;;  %v7259_v46 = vld [vmem:[%s18589_s12] sm:$0xff] }
0x2c7e   :  { %v7125_v57 = vsel %vm304_vm4, %v17658_v61, 0.0 }
0x2ce3   :  { %v6239_v17 = vpop.xlane.xlu0 %6238 }
0x2ce4   :  { %16344 = vrcp.f32 %v6239_v17 }
0x2ce7   :  { %v6406_v26 = vpop.xlane.xlu1 %6405  ;;  %v6875_v40 = vpop.permute.xlu0 %6874 }
0x2ce8   :  { %16346 = vrcp.f32 %v6406_v26 }
0x2ceb   :  { %v6721_v53 = vpop.permute.xlu1 %6720 }
0x2cf1   :  { %v16345_v7 = vpop.eup %16344 }
0x2cf5   :  { %v16347_v18 = vpop.eup %16346 }
0x2d19   :  { %v6312_v11 = vpop.f32.mrf.mxu1 }
0x2d1a   :  { %v6317_v12 = vmul.f32 %v16345_v7, %v6312_v11  ;;  %v14434_v7 = vld [vmem:[%s18578_s2 + $0x1] ss:$0 sm:$0xff]  ;;  %s18596_s2 = sld [smem:[#allocation26_spill]] }
0x2d1b   :  { %v15601_v37 = vpop.f32.mrf.mxu1 }
0x2d1c   :  { %15620 = vmatmul.mubr.msk.f32.vlgmr.msra.gmra.mxu1 %vm448_vm6, %v6317_v12  ;;  %v17668_v12 = vadd.f32 %v14434_v7, %v4931_v19 }
0x2d1d   :  { %15628 = vmatpush3.msra.mxu1 %v6721_v53  ;;  %v6479_v16 = vpop.f32.mrf.mxu1  ;;  %15629 = vmatprep.mubr.msk.f32.mxu1 %vm16569_vm5, %v16568_v6  ;;  %v7261_v53 = vld [vmem:[%s18589_s12 + $0x10] sm:$0xff] }
0x2d1e   :  { %v6484_v55 = vmul.f32 %v16347_v18, %v6479_v16  ;;  %15637 = vmatprep.subr.mxu1 %v16568_v6  ;;  %v7260_v18 = vld [vmem:[%s18589_s12 + $0x8] sm:$0xff]  ;;  %v4932_v16 = vadd.f32 %v17508_v34, %v17358_v62 }
0x2d1f   :  { %v15611_v45 = vpop.f32.mrf.mxu1 }
0x2d20   :  { %15615 = vmatmul.mubr.msk.f32.vlgmr.msra.gmra.mxu0 %vm448_vm6, %v6484_v55  ;;  %v17678_v9 = vadd.f32 %v14434_v7, %v4932_v16 }
0x2d21   :  { %15623 = vmatpush3.xpose.msk.msra.mxu0 %vm448_vm6, %v6634_v8  ;;  %15624 = vmatprep.mubr.msk.f32.mxu0 %vm16569_vm5, %v16568_v6 }
0x2d22   :  { %15632 = vmatprep.subr.mxu0 %v16568_v6 }
0x2d24   :  { %15625 = vmatmul.mubr.msk.f32.vlgmr.msra.gmra.mxu0 %vm448_vm6, %v6632_v10 }
0x2d25   :  { %15633 = vmatpush3.msra.mxu0 %v17547_v0  ;;  %15634 = vmatprep.mubr.msk.f32.mxu0 %vm16569_vm5, %v16568_v6 }
0x2d26   :  { %15642 = vmatprep.subr.mxu0 %v16568_v6 }
0x2ddc   :  { %v6627_v23 = vpop.f32.mrf.mxu1 }
0x2dde   :  { %v15621_v31 = vpop.f32.mrf.mxu1 }
0x2de0   :  { %v6554_v24 = vpop.f32.mrf.mxu0 }
0x2de1   :  { %v6628_v25 = vadd.f32 %v6627_v23, %v6554_v24 }
0x2de2   :  { %v15616_v28 = vpop.f32.mrf.mxu0 }
0x2de3   :  { %v14482_v28 = vld [vmem:[%s18590_s20] ss:$0 sm:$0xff] }
0x2de4   :  { %v6705_v29 = vpop.f32.mrf.mxu0 }
0x2de5   :  { %v6709_v32 = vmul.f32 0.35355338, %v6705_v29 }
0x2de6   :  { %v15626_v22 = vpop.f32.mrf.mxu0 }
0x2de7   :  { %v6710_v27 = vsel %vm17466_vm11, %v6709_v32, -inf }
0x2de8   :  { %v6711_v35 = vsel %vm448_vm6, %v6710_v27, -inf }
0x2de9   :  { %6712 = vmax.xlane.f32.xlu1 %v6711_v35 }
0x2dfa   :  { %6872 = vrot.lane.b32.xlu1 %v17443_v13, %s18550_s26 }
0x2e72   :  { %v6713_v0 = vpop.xlane.xlu1 %6712 }
0x2e73   :  { %v6714_v30 = vsub.f32 %v6710_v27, %v6713_v0 }
0x2e75   :  { %v6715_v38 = vmul.f32 1.442695, %v6714_v30 }
0x2e76   :  { %v6873_v42 = vpop.permute.xlu1 %6872 }
0x2e77   :  { %16348 = vpow2.f32 %v6715_v38 }
0x2e84   :  { %v16349_v39 = vpop.eup %16348 }
0x2e85   :  { %15630 = vmatmul.mubr.msk.f32.vlgmr.msra.gmra.mxu1 %vm448_vm6, %v16349_v39  ;;  %v6717_v41 = vsel %vm448_vm6, %v16349_v39, 0.0 }
0x2e86   :  { %15638 = vmatpush3.xpose.msk.msra.mxu1 %vm448_vm6, %v6875_v40  ;;  %6718 = vadd.xlane.f32.xlu1 %v6717_v41 }
0x2e87   :  { %15639 = vmatprep.mubr.msk.f32.mxu1 %vm16569_vm5, %v16568_v6  ;;  %15647 = vmatprep.subr.mxu1 %v16568_v6 }
0x2e89   :  { %15640 = vmatmul.mubr.msk.f32.vlgmr.msra.gmra.mxu1 %vm448_vm6, %v6873_v42 }
0x2e8a   :  { %15648 = vmatpush3.msra.mxu1 %v17581_v33  ;;  %15649 = vmatprep.mubr.msk.f32.mxu1 %vm16569_vm5, %v16568_v6 }
0x2e8b   :  { %15663 = vmatprep.subr.mxu1 %v7262_v3 }
0x2e97   :  { %6961 = vrot.lane.b32.xlu1 %v17443_v13, %s18544_s28  ;;  %s18599_s28 = sld [smem:[#allocation29_spill]] }
0x2f0f   :  { %v6719_v43 = vpop.xlane.xlu1 %6718 }
0x2f10   :  { %16350 = vrcp.f32 %v6719_v43 }
0x2f13   :  { %v6962_v36 = vpop.permute.xlu1 %6961 }
0x2f1d   :  { %v16351_v44 = vpop.eup %16350 }
0x2f45   :  { %v6792_v47 = vpop.f32.mrf.mxu1 }
0x2f46   :  { %v6797_v48 = vmul.f32 %v16351_v44, %v6792_v47 }
0x2f47   :  { %v15631_v49 = vpop.f32.mrf.mxu1 }
0x2f48   :  { %15635 = vmatmul.mubr.msk.f32.vlgmr.msra.gmra.mxu0 %vm448_vm6, %v6797_v48  ;;  %v14477_v48 = vld [vmem:[%s18591_s4] ss:$0 sm:$0xff]  ;;  %v7170_v49 = vld [vmem:[%s18592_s7 + $0x18] sm:$0xff] }
0x2f49   :  { %15643 = vmatpush3.msra.mxu0 %v6962_v36  ;;  %v6946_v50 = vpop.f32.mrf.mxu1  ;;  %15644 = vmatprep.mubr.msk.f32.mxu0 %vm16569_vm5, %v16568_v6  ;;  %v7169_v36 = vld [vmem:[%s18592_s7 + $0x10] sm:$0xff] }
0x2f4a   :  { %v6950_v33 = vmul.f32 0.35355338, %v6946_v50  ;;  %15652 = vmatprep.subr.mxu0 %v7170_v49 }
0x2f4b   :  { %v15641_v51 = vpop.f32.mrf.mxu1 }
0x2f4c   :  { %v6951_v13 = vsel %vm17466_vm11, %v6950_v33, -inf  ;;  %v14478_v33 = vld [vmem:[%s18593_s10] ss:$0 sm:$0xff]  ;;  %v7168_v51 = vld [vmem:[%s18592_s7 + $0x8] sm:$0xff] }
0x2f4d   :  { %v6952_v2 = vsel %vm448_vm6, %v6951_v13, -inf }
0x2f4e   :  { %6953 = vmax.xlane.f32.xlu0 %v6952_v2  ;;  %v7167_v2 = vld [vmem:[%s18592_s7] sm:$0xff] }
0x2fd7   :  { %v6954_v52 = vpop.xlane.xlu0 %6953 }
0x2fd8   :  { %v6955_v54 = vsub.f32 %v6951_v13, %v6954_v52 }
0x2fda   :  { %v6956_v56 = vmul.f32 1.442695, %v6955_v54 }
0x2fdc   :  { %16352 = vpow2.f32 %v6956_v56 }
0x2fe9   :  { %v16353_v59 = vpop.eup %16352 }
0x2fea   :  { %15645 = vmatmul.mubr.msk.f32.vlgmr.msra.gmra.mxu0 %vm448_vm6, %v16353_v59  ;;  %v6958_v63 = vsel %vm448_vm6, %v16353_v59, 0.0 }
0x2feb   :  { %6959 = vadd.xlane.f32.xlu0 %v6958_v63  ;;  %15653 = vmatpush3.msra.mxu0 %v7170_v49 }
0x2fec   :  { %15654 = vmatprep.subr.mxu0 %v7169_v36 }
0x2fed   :  { %15655 = vmatpush3.msra.mxu0 %v7169_v36 }
0x2fee   :  { %15656 = vmatprep.subr.mxu0 %v7168_v51 }
0x2fef   :  { %7126 = vadd.xlane.f32.xlu0 %v7125_v57  ;;  %15657 = vmatpush3.msra.mxu0 %v7168_v51 }
0x2ff0   :  { %15658 = vmatprep.subr.mxu0 %v7167_v2 }
0x2ff1   :  { %15659 = vmatpush3.msra.mxu0 %v7167_v2 }
0x2ff2   :  { %15674 = vmatprep.subr.mxu0 %v16568_v6 }
0x3008   :  { %v6867_v1 = vpop.f32.mrf.mxu0 }
0x3009   :  { %v6871_v5 = vadd.f32 %v6867_v1, %v6628_v25 }
0x300a   :  { %v15636_v8 = vpop.f32.mrf.mxu0 }
0x3074   :  { %v6960_v10 = vpop.xlane.xlu0 %6959 }
0x3075   :  { %16354 = vrcp.f32 %v6960_v10 }
0x3078   :  { %v7127_v55 = vpop.xlane.xlu0 %7126 }
0x3079   :  { %v7131_v62 = vmul.f32 0.03125, %v7127_v55 }
0x307b   :  { %v7133_v31 = vsub.f32 %v17658_v61, %v7131_v62 }
0x307d   :  { %v7135_v32 = vmul.f32 %v7133_v31, %v7133_v31 }
0x307f   :  { %v7137_v35 = vsel %vm304_vm4, %v7135_v32, 0.0 }
0x3082   :  { %v16355_v17 = vpop.eup %16354 }
0x30aa   :  { %v7033_v26 = vpop.f32.mrf.mxu0 }
0x30ab   :  { %v7038_v11 = vmul.f32 %v16355_v17, %v7033_v26 }
0x30ac   :  { %v15646_v37 = vpop.f32.mrf.mxu0 }
0x30ad   :  { %15650 = vmatmul.mubr.msk.f32.vlgmr.msra.gmra.mxu1 %vm448_vm6, %v7038_v11 }
0x30ae   :  { %15664 = vmatpush3.msra.mxu1 %v7262_v3  ;;  %15671 = vmatprep.mubr.msk.f32.mxu1 %vm304_vm4, %v17668_v12 }
0x30af   :  { %15665 = vmatprep.subr.mxu1 %v7261_v53 }
0x30b0   :  { %15666 = vmatpush3.msra.mxu1 %v7261_v53 }
0x30b1   :  { %15667 = vmatprep.subr.mxu1 %v7260_v18 }
0x30b2   :  { %15668 = vmatpush3.msra.mxu1 %v7260_v18 }
0x30b3   :  { %15669 = vmatprep.subr.mxu1 %v7259_v46 }
0x30b4   :  { %15670 = vmatpush3.msra.mxu1 %v7259_v46 }
0x30b5   :  { %15672 = vmatmul.mubr.msk.f32.vlgmr.msra.gmra.mxu1 %vm304_vm4, %v17678_v9  ;;  %15679 = vmatprep.subr.mxu1 %v16568_v6 }
0x30b6   :  { %15681 = vmatprep.mubr.msk.f32.mxu1 %vm16569_vm5, %v16568_v6 }
0x316d   :  { %v7108_v34 = vpop.f32.mrf.mxu1 }
0x316e   :  { %v7112_v45 = vadd.f32 %v7108_v34, %v6871_v5  ;;  %v14479_v5 = vld [vmem:[%s18594_s11] ss:$0 sm:$0xff] }
0x316f   :  { %v15651_v23 = vpop.f32.mrf.mxu1 }
0x3170   :  { %v7120_v24 = vadd.f32 %v14476_v58, %v7112_v45 }
0x3172   :  { %v17687_v25 = vadd.f32 %v7120_v24, %v17419_v4 }
0x3174   :  { %v7128_v29 = vsel %vm304_vm4, %v17687_v25, 0.0 }
0x3175   :  { %v15673_v22 = vpop.f32.mrf.mxu1  ;;  %7129 = vadd.xlane.f32.xlu0 %v7128_v29 }
0x3176   :  { %v17692_v27 = vadd.f32 %v15673_v22, %v14482_v28 }
0x3177   :  { %v7342_v0 = vpop.f32.mrf.mxu1 }
0x3178   :  { %v17695_v30 = vadd.f32 %v14482_v28, %v7342_v0  ;;  %v17749_v0 = vld [vmem:[%s18595_s1] sm:$0xff] }
0x3179   :  { %7138 = vadd.xlane.f32.xlu0 %v7137_v35 }
0x318f   :  { %7523 = vrot.lane.b32.xlu0 %v17695_v30, %s16573_s21 }
0x31fe   :  { %v7130_v4 = vpop.xlane.xlu0 %7129 }
0x31ff   :  { %v7132_v38 = vmul.f32 0.03125, %v7130_v4 }
0x3201   :  { %v7134_v39 = vsub.f32 %v17687_v25, %v7132_v38 }
0x3202   :  { %v7139_v40 = vpop.xlane.xlu0 %7138 }
0x3203   :  { %v7143_v41 = vmul.f32 0.03125, %v7139_v40  ;;  %v7136_v42 = vmul.f32 %v7134_v39, %v7134_v39 }
0x3205   :  { %v7145_v43 = vadd.f32 1e-05, %v7143_v41  ;;  %v7140_v44 = vsel %vm304_vm4, %v7136_v42, 0.0  ;;  %v17759_v41 = vld [vmem:[%s18595_s1 + $0x8] sm:$0xff] }
0x3206   :  { %7141 = vadd.xlane.f32.xlu1 %v7140_v44  ;;  %v7524_v17 = vpop.permute.xlu0 %7523 }
0x3207   :  { %16356 = vrsqrt.f32 %v7145_v43 }
0x3214   :  { %v16357_v47 = vpop.eup %16356 }
0x3215   :  { %v7149_v50 = vmul.f32 %v16357_v47, %v7133_v31 }
0x3217   :  { %7443 = vrot.lane.b32.xlu1 %v17695_v30, %s16571_s5  ;;  %v7157_v13 = vmul.f32 %v14477_v48, %v7149_v50 }
0x3219   :  { %v7165_v52 = vadd.f32 %v14478_v33, %v7157_v13 }
0x321b   :  { %15660 = vmatprep.mubr.msk.f32.mxu0 %vm304_vm4, %v7165_v52 }
0x328f   :  { %v7142_v54 = vpop.xlane.xlu1 %7141 }
0x3290   :  { %v7144_v56 = vmul.f32 0.03125, %v7142_v54 }
0x3292   :  { %v7146_v58 = vadd.f32 1e-05, %v7144_v56 }
0x3293   :  { %v7444_v21 = vpop.permute.xlu1 %7443 }
0x3294   :  { %16358 = vrsqrt.f32 %v7146_v58  ;;  %15680 = vmatpush3.msra.mxu1 %v7444_v21 }
0x3295   :  { %15689 = vmatprep.subr.mxu1 %v16568_v6 }
0x32a1   :  { %v16359_v59 = vpop.eup %16358 }
0x32a2   :  { %v7150_v63 = vmul.f32 %v16359_v59, %v7134_v39 }
0x32a4   :  { %v7158_v57 = vmul.f32 %v14477_v48, %v7150_v63 }
0x32a6   :  { %v7166_v1 = vadd.f32 %v14478_v33, %v7158_v57 }
0x32a8   :  { %15661 = vmatmul.mubr.msk.f32.vlgmr.msra.gmra.mxu0 %vm304_vm4, %v7166_v1 }
0x32a9   :  { %15675 = vmatpush3.xpose.msk.msra.mxu0 %vm448_vm6, %v17695_v30  ;;  %15676 = vmatprep.mubr.msk.f32.mxu0 %vm16569_vm5, %v16568_v6 }
0x32aa   :  { %15684 = vmatprep.subr.mxu0 %v16568_v6 }
0x3368   :  { %v15662_v8 = vpop.f32.mrf.mxu0 }
0x3369   :  { %v17719_v3 = vadd.f32 %v15662_v8, %v14479_v5 }
0x336a   :  { %v7250_v10 = vpop.f32.mrf.mxu0 }
0x336b   :  { %v7251_v19 = vadd.f32 %v14479_v5, %v7250_v10 }
0x336d   :  { %7521 = vrot.lane.b32.xlu0 %v7251_v19, %s16573_s21  ;;  %15677 = vmatmul.mubr.msk.f32.vlgmr.msra.gmra.mxu0 %vm448_vm6, %v7251_v19 }
0x336e   :  { %15685 = vmatpush3.xpose.msk.msra.mxu0 %vm448_vm6, %v7524_v17  ;;  %15686 = vmatprep.mubr.msk.f32.mxu0 %vm16569_vm5, %v16568_v6 }
0x336f   :  { %15694 = vmatprep.subr.mxu0 %v16568_v6 }
0x33df   :  { %v7522_v26 = vpop.permute.xlu0 %7521 }
0x33e0   :  { %15687 = vmatmul.mubr.msk.f32.vlgmr.msra.gmra.mxu0 %vm448_vm6, %v7522_v26 }
0x33e1   :  { %15696 = vmatprep.mubr.msk.f32.mxu0 %vm16569_vm5, %v16568_v6  ;;  %15695 = vmatpush3.msra.mxu0 %v17759_v41 }
0x33e2   :  { %15704 = vmatprep.subr.mxu0 %v16568_v6 }
0x342d   :  { %v7428_v7 = vpop.f32.mrf.mxu0 }
0x342e   :  { %v7432_v11 = vmul.f32 0.35355338, %v7428_v7  ;;  %v17798_v7 = vld [vmem:[%s18595_s1 + $0x10] sm:$0xff] }
0x342f   :  { %v15678_v37 = vpop.f32.mrf.mxu0 }
0x3430   :  { %v7433_v53 = vsel %vm182_vm7, %v7432_v11, -inf }
0x3431   :  { %v7434_v18 = vsel %vm448_vm6, %v7433_v53, -inf }
0x3432   :  { %7435 = vmax.xlane.f32.xlu0 %v7434_v18 }
0x34a0   :  { %v7595_v16 = vpop.f32.mrf.mxu0 }
0x34a1   :  { %v7599_v46 = vmul.f32 0.35355338, %v7595_v16 }
0x34a2   :  { %v15688_v55 = vpop.f32.mrf.mxu0 }
0x34a3   :  { %v7600_v62 = vsel %vm182_vm7, %v7599_v46, -inf }
0x34a4   :  { %v7601_v34 = vsel %vm448_vm6, %v7600_v62, -inf }
0x34a5   :  { %7602 = vmax.xlane.f32.xlu1 %v7601_v34 }
0x34b6   :  { %7610 = vrot.lane.b32.xlu1 %v17695_v30, %s16572_s9 }
0x34ba   :  { %7836 = vrot.lane.b32.xlu1 %v17695_v30, %s18548_s16 }
0x34bb   :  { %v7436_v45 = vpop.xlane.xlu0 %7435 }
0x34bc   :  { %v7437_v23 = vsub.f32 %v7433_v53, %v7436_v45 }
0x34be   :  { %v7438_v31 = vmul.f32 1.442695, %v7437_v23 }
0x34c0   :  { %16360 = vpow2.f32 %v7438_v31 }
0x34cd   :  { %v16361_v24 = vpop.eup %16360 }
0x34ce   :  { %15682 = vmatmul.mubr.msk.f32.vlgmr.msra.gmra.mxu1 %vm448_vm6, %v16361_v24  ;;  %v7440_v28 = vsel %vm448_vm6, %v16361_v24, 0.0 }
0x34cf   :  { %15691 = vmatprep.mubr.msk.f32.mxu1 %vm16569_vm5, %v16568_v6 }
0x34de   :  { %7441 = vadd.xlane.f32.xlu1 %v7440_v28 }
0x34ef   :  { %7923 = vrot.lane.b32.xlu1 %v17695_v30, %s16574_s15 }
0x34f3   :  { %8075 = vrot.lane.b32.xlu1 %v7251_v19, %s18550_s26 }
0x352e   :  { %v7603_v29 = vpop.xlane.xlu1 %7602 }
0x352f   :  { %v7604_v32 = vsub.f32 %v7600_v62, %v7603_v29 }
0x3531   :  { %v7605_v22 = vmul.f32 1.442695, %v7604_v32 }
0x3532   :  { %v7611_v35 = vpop.permute.xlu1 %7610 }
0x3533   :  { %16362 = vpow2.f32 %v7605_v22  ;;  %15690 = vmatpush3.msra.mxu1 %v7611_v35 }
0x3534   :  { %15699 = vmatprep.subr.mxu1 %v16568_v6 }
0x3536   :  { %v7837_v39 = vpop.permute.xlu1 %7836 }
0x3540   :  { %v16363_v4 = vpop.eup %16362 }
0x3541   :  { %15692 = vmatmul.mubr.msk.f32.vlgmr.msra.gmra.mxu1 %vm448_vm6, %v16363_v4  ;;  %v7607_v38 = vsel %vm448_vm6, %v16363_v4, 0.0 }
0x3542   :  { %7608 = vadd.xlane.f32.xlu0 %v7607_v38  ;;  %15700 = vmatpush3.msra.mxu1 %v17749_v0 }
0x3543   :  { %15701 = vmatprep.mubr.msk.f32.mxu1 %vm16569_vm5, %v16568_v6  ;;  %15709 = vmatprep.subr.mxu1 %v16568_v6 }
0x3558   :  { %7834 = vrot.lane.b32.xlu0 %v7251_v19, %s18548_s16 }
0x3567   :  { %v7442_v40 = vpop.xlane.xlu1 %7441 }
0x3568   :  { %16364 = vrcp.f32 %v7442_v40  ;;  %v17832_v40 = vld [vmem:[%s18595_s1 + $0x18] sm:$0xff] }
0x356b   :  { %v7924_v48 = vpop.permute.xlu1 %7923 }
0x356f   :  { %v8076_v26 = vpop.permute.xlu1 %8075 }
0x3575   :  { %v16365_v42 = vpop.eup %16364 }
0x358e   :  { %v7515_v43 = vpop.f32.mrf.mxu1 }
0x358f   :  { %v7520_v44 = vmul.f32 %v16365_v42, %v7515_v43 }
0x3590   :  { %v15683_v47 = vpop.f32.mrf.mxu1 }
0x3591   :  { %15702 = vmatmul.mubr.msk.f32.vlgmr.msra.gmra.mxu1 %vm448_vm6, %v7520_v44 }
0x3592   :  { %15710 = vmatpush3.msra.mxu1 %v7924_v48  ;;  %15711 = vmatprep.mubr.msk.f32.mxu1 %vm16569_vm5, %v16568_v6 }
0x3593   :  { %15719 = vmatprep.subr.mxu1 %v16568_v6 }
0x35cb   :  { %v7609_v49 = vpop.xlane.xlu0 %7608 }
0x35cc   :  { %16366 = vrcp.f32 %v7609_v49 }
0x35cf   :  { %v7835_v13 = vpop.permute.xlu0 %7834 }
0x35d9   :  { %v16367_v36 = vpop.eup %16366 }
0x3601   :  { %v7682_v50 = vpop.f32.mrf.mxu1 }
0x3602   :  { %v7687_v33 = vmul.f32 %v16367_v36, %v7682_v50 }
0x3603   :  { %v15693_v51 = vpop.f32.mrf.mxu1 }
0x3604   :  { %15697 = vmatmul.mubr.msk.f32.vlgmr.msra.gmra.mxu0 %vm448_vm6, %v7687_v33 }
0x3605   :  { %15705 = vmatpush3.xpose.msk.msra.mxu0 %vm448_vm6, %v7837_v39  ;;  %15706 = vmatprep.mubr.msk.f32.mxu0 %vm16569_vm5, %v16568_v6 }
0x3606   :  { %15714 = vmatprep.subr.mxu0 %v16568_v6 }
0x3608   :  { %15707 = vmatmul.mubr.msk.f32.vlgmr.msra.gmra.mxu0 %vm448_vm6, %v7835_v13 }
0x3609   :  { %15716 = vmatprep.mubr.msk.f32.mxu0 %vm16569_vm5, %v16568_v6  ;;  %15715 = vmatpush3.msra.mxu0 %v17798_v7 }
0x360a   :  { %15724 = vmatprep.subr.mxu0 %v16568_v6 }
0x3651   :  { %v17775_v2 = vpop.f32.mrf.mxu1 }
0x3653   :  { %v15703_v52 = vpop.f32.mrf.mxu1 }
0x36c4   :  { %v17777_v54 = vpop.f32.mrf.mxu0 }
0x36c5   :  { %v7831_v35 = vadd.f32 %v17775_v2, %v17777_v54 }
0x36c6   :  { %v15698_v56 = vpop.f32.mrf.mxu0 }
0x36c8   :  { %v7908_v58 = vpop.f32.mrf.mxu0 }
0x36c9   :  { %v7912_v21 = vmul.f32 0.35355338, %v7908_v58 }
0x36ca   :  { %v15708_v59 = vpop.f32.mrf.mxu0 }
0x36cb   :  { %v7913_v63 = vsel %vm182_vm7, %v7912_v21, -inf }
0x36cc   :  { %v7914_v57 = vsel %vm448_vm6, %v7913_v63, -inf }
0x36cd   :  { %7915 = vmax.xlane.f32.xlu0 %v7914_v57 }
0x36e3   :  { %8077 = vrot.lane.b32.xlu0 %v17695_v30, %s18550_s26 }
0x3756   :  { %v7916_v1 = vpop.xlane.xlu0 %7915 }
0x3757   :  { %v7917_v5 = vsub.f32 %v7913_v63, %v7916_v1 }
0x3759   :  { %v7918_v8 = vmul.f32 1.442695, %v7917_v5 }
0x375a   :  { %v8078_v19 = vpop.permute.xlu0 %8077 }
0x375b   :  { %16368 = vpow2.f32 %v7918_v8 }
0x3768   :  { %v16369_v10 = vpop.eup %16368 }
0x3769   :  { %15712 = vmatmul.mubr.msk.f32.vlgmr.msra.gmra.mxu1 %vm448_vm6, %v16369_v10  ;;  %v7920_v17 = vsel %vm448_vm6, %v16369_v10, 0.0 }
0x376a   :  { %15720 = vmatpush3.xpose.msk.msra.mxu1 %vm448_vm6, %v8078_v19  ;;  %7921 = vadd.xlane.f32.xlu1 %v7920_v17 }
0x376b   :  { %15721 = vmatprep.mubr.msk.f32.mxu1 %vm16569_vm5, %v16568_v6  ;;  %15729 = vmatprep.subr.mxu1 %v16568_v6 }
0x376d   :  { %15722 = vmatmul.mubr.msk.f32.vlgmr.msra.gmra.mxu1 %vm448_vm6, %v8076_v26 }
0x376e   :  { %15731 = vmatprep.mubr.msk.f32.mxu1 %vm16569_vm5, %v16568_v6  ;;  %15730 = vmatpush3.msra.mxu1 %v17832_v40 }
0x376f   :  { %15739 = vmatprep.subr.mxu1 %v16568_v6 }
0x377b   :  { %8164 = vrot.lane.b32.xlu1 %v17695_v30, %s18546_s23 }
0x377f   :  { %8481 = vrot.lane.b32.xlu1 %v17719_v3, %s16573_s21 }
0x37f3   :  { %v7922_v11 = vpop.xlane.xlu1 %7921 }
0x37f4   :  { %16370 = vrcp.f32 %v7922_v11 }
0x37f7   :  { %v8165_v46 = vpop.permute.xlu1 %8164 }
0x37fb   :  { %v8482_v22 = vpop.permute.xlu1 %8481 }
0x3801   :  { %v16371_v37 = vpop.eup %16370 }
0x3829   :  { %v7995_v53 = vpop.f32.mrf.mxu1 }
0x382a   :  { %v8000_v18 = vmul.f32 %v16371_v37, %v7995_v53 }
0x382b   :  { %v15713_v16 = vpop.f32.mrf.mxu1 }
0x382c   :  { %15717 = vmatmul.mubr.msk.f32.vlgmr.msra.gmra.mxu0 %vm448_vm6, %v8000_v18 }
0x382d   :  { %15725 = vmatpush3.msra.mxu0 %v8165_v46  ;;  %v8149_v30 = vpop.f32.mrf.mxu1  ;;  %15726 = vmatprep.mubr.msk.f32.mxu0 %vm16569_vm5, %v16568_v6 }
0x382e   :  { %v8153_v55 = vmul.f32 0.35355338, %v8149_v30  ;;  %15734 = vmatprep.subr.mxu0 %v16568_v6 }
0x382f   :  { %v15723_v62 = vpop.f32.mrf.mxu1 }
0x3830   :  { %v8154_v34 = vsel %vm182_vm7, %v8153_v55, -inf }
0x3831   :  { %v8155_v45 = vsel %vm448_vm6, %v8154_v34, -inf }
0x3832   :  { %8156 = vmax.xlane.f32.xlu0 %v8155_v45 }
0x3848   :  { %8483 = vrot.lane.b32.xlu0 %v17692_v27, %s16573_s21 }
0x38bb   :  { %v8157_v23 = vpop.xlane.xlu0 %8156 }
0x38bc   :  { %v8158_v31 = vsub.f32 %v8154_v34, %v8157_v23 }
0x38be   :  { %v8159_v24 = vmul.f32 1.442695, %v8158_v31 }
0x38bf   :  { %v8484_v32 = vpop.permute.xlu0 %8483 }
0x38c0   :  { %16372 = vpow2.f32 %v8159_v24 }
0x38cd   :  { %v16373_v28 = vpop.eup %16372 }
0x38ce   :  { %15727 = vmatmul.mubr.msk.f32.vlgmr.msra.gmra.mxu0 %vm448_vm6, %v16373_v28  ;;  %v8161_v29 = vsel %vm448_vm6, %v16373_v28, 0.0 }
0x38cf   :  { %15735 = vmatpush3.xpose.msk.msra.mxu0 %vm448_vm6, %v17692_v27  ;;  %8162 = vadd.xlane.f32.xlu1 %v8161_v29 }
0x38d0   :  { %15736 = vmatprep.mubr.msk.f32.mxu0 %vm16569_vm5, %v16568_v6  ;;  %15744 = vmatprep.subr.mxu0 %v16568_v6 }
0x38d2   :  { %15737 = vmatmul.mubr.msk.f32.vlgmr.msra.gmra.mxu0 %vm448_vm6, %v17719_v3 }
0x38d3   :  { %15745 = vmatpush3.xpose.msk.msra.mxu0 %vm448_vm6, %v8484_v32  ;;  %15746 = vmatprep.mubr.msk.f32.mxu0 %vm16569_vm5, %v16568_v6 }
0x38d4   :  { %15754 = vmatprep.subr.mxu0 %v16568_v6 }
0x38d6   :  { %15747 = vmatmul.mubr.msk.f32.vlgmr.msra.gmra.mxu0 %vm448_vm6, %v8482_v22 }
0x38d7   :  { %15755 = vmatpush3.msra.mxu0 %v17759_v41  ;;  %15756 = vmatprep.mubr.msk.f32.mxu0 %vm16569_vm5, %v16568_v6 }
0x38d8   :  { %15764 = vmatprep.subr.mxu0 %v16568_v6 }
0x38ec   :  { %v8070_v4 = vpop.f32.mrf.mxu0 }
0x38ed   :  { %v8074_v38 = vadd.f32 %v8070_v4, %v7831_v35 }
0x38ee   :  { %v15718_v39 = vpop.f32.mrf.mxu0 }
0x3958   :  { %v8163_v42 = vpop.xlane.xlu1 %8162 }
0x3959   :  { %16374 = vrcp.f32 %v8163_v42 }
0x3966   :  { %v16375_v41 = vpop.eup %16374 }
0x398e   :  { %v8236_v43 = vpop.f32.mrf.mxu0 }
0x398f   :  { %v8241_v44 = vmul.f32 %v16375_v41, %v8236_v43 }
0x3990   :  { %v15728_v47 = vpop.f32.mrf.mxu0 }
0x3991   :  { %15732 = vmatmul.mubr.msk.f32.vlgmr.msra.gmra.mxu1 %vm448_vm6, %v8241_v44 }
0x3992   :  { %v8388_v48 = vpop.f32.mrf.mxu0  ;;  %15741 = vmatprep.mubr.msk.f32.mxu1 %vm16569_vm5, %v16568_v6 }
0x3993   :  { %v8392_v49 = vmul.f32 0.35355338, %v8388_v48 }
0x3994   :  { %v15738_v36 = vpop.f32.mrf.mxu0 }
0x3995   :  { %v8393_v50 = vsel %vm187_vm8, %v8392_v49, -inf }
0x3996   :  { %v8555_v33 = vpop.f32.mrf.mxu0  ;;  %v8394_v51 = vsel %vm448_vm6, %v8393_v50, -inf }
0x3997   :  { %v8559_v13 = vmul.f32 0.35355338, %v8555_v33  ;;  %8395 = vmax.xlane.f32.xlu0 %v8394_v51 }
0x3998   :  { %v15748_v2 = vpop.f32.mrf.mxu0 }
0x3999   :  { %v8560_v52 = vsel %vm187_vm8, %v8559_v13, -inf }
0x399a   :  { %v8561_v54 = vsel %vm448_vm6, %v8560_v52, -inf }
0x399b   :  { %8562 = vmax.xlane.f32.xlu1 %v8561_v54 }
0x39ac   :  { %8403 = vrot.lane.b32.xlu1 %v17692_v27, %s16571_s5 }
0x39ad   :  { %8570 = vrot.lane.b32.xlu0 %v17692_v27, %s16572_s9 }
0x39b1   :  { %8796 = vrot.lane.b32.xlu0 %v17692_v27, %s18548_s16 }
0x39b5   :  { %8794 = vrot.lane.b32.xlu0 %v17719_v3, %s18548_s16  ;;  %s18601_s16 = sld [smem:[#allocation30_spill]] }
0x3a20   :  { %v8396_v56 = vpop.xlane.xlu0 %8395 }
0x3a21   :  { %v8397_v58 = vsub.f32 %v8393_v50, %v8396_v56 }
0x3a23   :  { %v8398_v21 = vmul.f32 1.442695, %v8397_v58 }
0x3a24   :  { %v8563_v59 = vpop.xlane.xlu1 %8562  ;;  %v8571_v8 = vpop.permute.xlu0 %8570 }
0x3a25   :  { %16376 = vpow2.f32 %v8398_v21  ;;  %v8564_v63 = vsub.f32 %v8560_v52, %v8563_v59 }
0x3a27   :  { %v8565_v57 = vmul.f32 1.442695, %v8564_v63  ;;  %v14517_v63 = vld [vmem:[%s18596_s2] ss:$0 sm:$0xff] }
0x3a28   :  { %v8404_v1 = vpop.permute.xlu1 %8403  ;;  %v8797_v53 = vpop.permute.xlu0 %8796 }
0x3a29   :  { %16378 = vpow2.f32 %v8565_v57  ;;  %15740 = vmatpush3.msra.mxu1 %v8404_v1 }
0x3a2a   :  { %15749 = vmatprep.subr.mxu1 %v16568_v6 }
0x3a2c   :  { %v8795_v18 = vpop.permute.xlu0 %8794 }
0x3a32   :  { %v16377_v5 = vpop.eup %16376 }
0x3a33   :  { %15742 = vmatmul.mubr.msk.f32.vlgmr.msra.gmra.mxu1 %vm448_vm6, %v16377_v5  ;;  %v8400_v10 = vsel %vm448_vm6, %v16377_v5, 0.0 }
0x3a34   :  { %15750 = vmatpush3.msra.mxu1 %v8571_v8  ;;  %8401 = vadd.xlane.f32.xlu0 %v8400_v10 }
0x3a35   :  { %15751 = vmatprep.mubr.msk.f32.mxu1 %vm16569_vm5, %v16568_v6  ;;  %15759 = vmatprep.subr.mxu1 %v16568_v6 }
0x3a36   :  { %v16379_v19 = vpop.eup %16378 }
0x3a37   :  { %15752 = vmatmul.mubr.msk.f32.vlgmr.msra.gmra.mxu1 %vm448_vm6, %v16379_v19  ;;  %v8567_v17 = vsel %vm448_vm6, %v16379_v19, 0.0 }
0x3a38   :  { %8568 = vadd.xlane.f32.xlu1 %v8567_v17  ;;  %15760 = vmatpush3.msra.mxu1 %v17749_v0 }
0x3a39   :  { %15761 = vmatprep.mubr.msk.f32.mxu1 %vm16569_vm5, %v16568_v6  ;;  %15769 = vmatprep.subr.mxu1 %v16568_v6 }
0x3a49   :  { %8883 = vrot.lane.b32.xlu1 %v17692_v27, %s16574_s15 }
0x3a4a   :  { %9037 = vrot.lane.b32.xlu0 %v17692_v27, %s18550_s26 }
0x3a51   :  { %v8311_v26 = vpop.f32.mrf.mxu1 }
0x3a52   :  { %v17869_v11 = vadd.f32 %v8311_v26, %v8074_v38 }
0x3a53   :  { %v15733_v37 = vpop.f32.mrf.mxu1 }
0x3a54   :  { %v9282_v57 = vadd.f32 %v14517_v63, %v17869_v11 }
0x3a56   :  { %v17911_v5 = vadd.f32 %v9282_v57, %v17658_v61 }
0x3a58   :  { %v9288_v10 = vsel %vm304_vm4, %v17911_v5, 0.0 }
0x3abd   :  { %v8402_v16 = vpop.xlane.xlu0 %8401 }
0x3abe   :  { %16380 = vrcp.f32 %v8402_v16 }
0x3ac1   :  { %v8569_v0 = vpop.xlane.xlu1 %8568  ;;  %v9038_v48 = vpop.permute.xlu0 %9037 }
0x3ac2   :  { %16382 = vrcp.f32 %v8569_v0 }
0x3ac5   :  { %v8884_v34 = vpop.permute.xlu1 %8883 }
0x3acb   :  { %v16381_v46 = vpop.eup %16380 }
0x3acf   :  { %v16383_v45 = vpop.eup %16382 }
0x3af3   :  { %v8475_v30 = vpop.f32.mrf.mxu1 }
0x3af4   :  { %v8480_v55 = vmul.f32 %v16381_v46, %v8475_v30 }
0x3af5   :  { %v15743_v62 = vpop.f32.mrf.mxu1 }
0x3af6   :  { %15762 = vmatmul.mubr.msk.f32.vlgmr.msra.gmra.mxu1 %vm448_vm6, %v8480_v55 }
0x3af7   :  { %15770 = vmatpush3.msra.mxu1 %v8884_v34  ;;  %v8642_v23 = vpop.f32.mrf.mxu1  ;;  %15771 = vmatprep.mubr.msk.f32.mxu1 %vm16569_vm5, %v16568_v6 }
0x3af8   :  { %v8647_v31 = vmul.f32 %v16383_v45, %v8642_v23  ;;  %15779 = vmatprep.subr.mxu1 %v16568_v6 }
0x3af9   :  { %v15753_v24 = vpop.f32.mrf.mxu1 }
0x3afa   :  { %15757 = vmatmul.mubr.msk.f32.vlgmr.msra.gmra.mxu0 %vm448_vm6, %v8647_v31 }
0x3afb   :  { %15765 = vmatpush3.xpose.msk.msra.mxu0 %vm448_vm6, %v8797_v53  ;;  %15766 = vmatprep.mubr.msk.f32.mxu0 %vm16569_vm5, %v16568_v6 }
0x3afc   :  { %15774 = vmatprep.subr.mxu0 %v16568_v6 }
0x3afe   :  { %15767 = vmatmul.mubr.msk.f32.vlgmr.msra.gmra.mxu0 %vm448_vm6, %v8795_v18 }
0x3aff   :  { %15775 = vmatpush3.msra.mxu0 %v17798_v7  ;;  %15776 = vmatprep.mubr.msk.f32.mxu0 %vm16569_vm5, %v16568_v6 }
0x3b00   :  { %15784 = vmatprep.subr.mxu0 %v16568_v6 }
0x3bb6   :  { %v8790_v28 = vpop.f32.mrf.mxu1 }
0x3bb8   :  { %v15763_v29 = vpop.f32.mrf.mxu1 }
0x3bba   :  { %v8717_v32 = vpop.f32.mrf.mxu0 }
0x3bbb   :  { %v8791_v22 = vadd.f32 %v8790_v28, %v8717_v32 }
0x3bbc   :  { %v15758_v35 = vpop.f32.mrf.mxu0 }
0x3bbe   :  { %v8868_v4 = vpop.f32.mrf.mxu0 }
0x3bbf   :  { %v8872_v38 = vmul.f32 0.35355338, %v8868_v4 }
0x3bc0   :  { %v15768_v39 = vpop.f32.mrf.mxu0 }
0x3bc1   :  { %v8873_v42 = vsel %vm187_vm8, %v8872_v38, -inf }
0x3bc2   :  { %v8874_v41 = vsel %vm448_vm6, %v8873_v42, -inf }
0x3bc3   :  { %8875 = vmax.xlane.f32.xlu1 %v8874_v41 }
0x3bd4   :  { %9035 = vrot.lane.b32.xlu1 %v17719_v3, %s18550_s26  ;;  %s18602_s26 = sld [smem:[#allocation32_spill]] }
0x3c4c   :  { %v8876_v7 = vpop.xlane.xlu1 %8875 }
0x3c4d   :  { %v8877_v43 = vsub.f32 %v8873_v42, %v8876_v7  ;;  %v14518_v42 = vld [vmem:[%s18597_s3] ss:$0 sm:$0xff] }
0x3c4e   :  { %v14519_v7 = vld [vmem:[%s18598_s8] ss:$0 sm:$0xff] }
0x3c4f   :  { %v8878_v44 = vmul.f32 1.442695, %v8877_v43 }
0x3c50   :  { %v9036_v36 = vpop.permute.xlu1 %9035 }
0x3c51   :  { %16384 = vpow2.f32 %v8878_v44 }
0x3c5e   :  { %v16385_v47 = vpop.eup %16384 }
0x3c5f   :  { %15772 = vmatmul.mubr.msk.f32.vlgmr.msra.gmra.mxu1 %vm448_vm6, %v16385_v47  ;;  %v8880_v49 = vsel %vm448_vm6, %v16385_v47, 0.0  ;;  %v9333_v47 = vld [vmem:[%s18599_s28 + $0x18] sm:$0xff] }
0x3c60   :  { %15780 = vmatpush3.xpose.msk.msra.mxu1 %vm448_vm6, %v9038_v48  ;;  %8881 = vadd.xlane.f32.xlu1 %v8880_v49  ;;  %v9332_v48 = vld [vmem:[%s18599_s28 + $0x10] sm:$0xff]  ;;  %v9331_v49 = vld [vmem:[%s18599_s28 + $0x8] sm:$0xff] }
0x3c61   :  { %15781 = vmatprep.mubr.msk.f32.mxu1 %vm16569_vm5, %v16568_v6  ;;  %15789 = vmatprep.subr.mxu1 %v16568_v6 }
0x3c63   :  { %15782 = vmatmul.mubr.msk.f32.vlgmr.msra.gmra.mxu1 %vm448_vm6, %v9036_v36  ;;  %v9330_v36 = vld [vmem:[%s18599_s28] sm:$0xff] }
0x3c64   :  { %15790 = vmatpush3.msra.mxu1 %v17832_v40  ;;  %15791 = vmatprep.mubr.msk.f32.mxu1 %vm16569_vm5, %v16568_v6 }
0x3c71   :  { %9124 = vrot.lane.b32.xlu1 %v17692_v27, %s18546_s23  ;;  %s18600_s23 = sld [smem:[#allocation31_spill]] }
0x3ce9   :  { %v8882_v3 = vpop.xlane.xlu1 %8881 }
0x3cea   :  { %16386 = vrcp.f32 %v8882_v3  ;;  %v9439_v3 = vld [vmem:[%s18600_s23 + $0x78] sm:$0xff] }
0x3ceb   :  { %15805 = vmatprep.subr.mxu1 %v9439_v3 }
0x3ced   :  { %v9125_v2 = vpop.permute.xlu1 %9124 }
0x3cf7   :  { %v16387_v50 = vpop.eup %16386 }
0x3d1f   :  { %v8955_v33 = vpop.f32.mrf.mxu1 }
0x3d20   :  { %v8960_v51 = vmul.f32 %v16387_v50, %v8955_v33  ;;  %v9438_v50 = vld [vmem:[%s18600_s23 + $0x70] sm:$0xff]  ;;  %v9437_v33 = vld [vmem:[%s18600_s23 + $0x68] sm:$0xff] }
0x3d21   :  { %v15773_v13 = vpop.f32.mrf.mxu1 }
0x3d22   :  { %15777 = vmatmul.mubr.msk.f32.vlgmr.msra.gmra.mxu0 %vm448_vm6, %v8960_v51  ;;  %v9436_v51 = vld [vmem:[%s18600_s23 + $0x60] sm:$0xff]  ;;  %v9435_v13 = vld [vmem:[%s18600_s23 + $0x58] sm:$0xff] }
0x3d23   :  { %15785 = vmatpush3.msra.mxu0 %v9125_v2  ;;  %v9109_v52 = vpop.f32.mrf.mxu1  ;;  %15786 = vmatprep.mubr.msk.f32.mxu0 %vm16569_vm5, %v16568_v6  ;;  %v9434_v2 = vld [vmem:[%s18600_s23 + $0x50] sm:$0xff] }
0x3d24   :  { %v9113_v40 = vmul.f32 0.35355338, %v9109_v52  ;;  %15794 = vmatprep.subr.mxu0 %v9333_v47  ;;  %v9433_v52 = vld [vmem:[%s18600_s23 + $0x48] sm:$0xff] }
0x3d25   :  { %v15783_v54 = vpop.f32.mrf.mxu1 }
0x3d26   :  { %v9114_v27 = vsel %vm187_vm8, %v9113_v40, -inf  ;;  %v9432_v40 = vld [vmem:[%s18600_s23 + $0x40] sm:$0xff]  ;;  %v9431_v54 = vld [vmem:[%s18600_s23 + $0x38] sm:$0xff] }
0x3d27   :  { %v9115_v56 = vsel %vm448_vm6, %v9114_v27, -inf }
0x3d28   :  { %9116 = vmax.xlane.f32.xlu0 %v9115_v56  ;;  %v9429_v56 = vld [vmem:[%s18600_s23 + $0x28] sm:$0xff] }
0x3db1   :  { %v9117_v58 = vpop.xlane.xlu0 %9116 }
0x3db2   :  { %v9118_v21 = vsub.f32 %v9114_v27, %v9117_v58  ;;  %v9430_v27 = vld [vmem:[%s18600_s23 + $0x30] sm:$0xff]  ;;  %v9428_v58 = vld [vmem:[%s18600_s23 + $0x20] sm:$0xff] }
0x3db4   :  { %v9119_v59 = vmul.f32 1.442695, %v9118_v21 }
0x3db6   :  { %16388 = vpow2.f32 %v9119_v59 }
0x3dc3   :  { %v16389_v1 = vpop.eup %16388 }
0x3dc4   :  { %15787 = vmatmul.mubr.msk.f32.vlgmr.msra.gmra.mxu0 %vm448_vm6, %v16389_v1  ;;  %v9121_v8 = vsel %vm448_vm6, %v16389_v1, 0.0 }
0x3dc5   :  { %9122 = vadd.xlane.f32.xlu0 %v9121_v8  ;;  %15795 = vmatpush3.msra.mxu0 %v9333_v47 }
0x3dc6   :  { %15796 = vmatprep.subr.mxu0 %v9332_v48 }
0x3dc7   :  { %15797 = vmatpush3.msra.mxu0 %v9332_v48 }
0x3dc8   :  { %15798 = vmatprep.subr.mxu0 %v9331_v49 }
0x3dc9   :  { %9289 = vadd.xlane.f32.xlu0 %v9288_v10  ;;  %15799 = vmatpush3.msra.mxu0 %v9331_v49 }
0x3dca   :  { %15800 = vmatprep.subr.mxu0 %v9330_v36 }
0x3dcb   :  { %15801 = vmatpush3.msra.mxu0 %v9330_v36 }
0x3de2   :  { %v9030_v19 = vpop.f32.mrf.mxu0 }
0x3de3   :  { %v9034_v17 = vadd.f32 %v9030_v19, %v8791_v22  ;;  %v9427_v19 = vld [vmem:[%s18600_s23 + $0x18] sm:$0xff] }
0x3de4   :  { %v15778_v26 = vpop.f32.mrf.mxu0 }
0x3de5   :  { %v9425_v26 = vld [vmem:[%s18600_s23 + $0x8] sm:$0xff] }
0x3e4e   :  { %v9123_v37 = vpop.xlane.xlu0 %9122 }
0x3e4f   :  { %16390 = vrcp.f32 %v9123_v37  ;;  %v9424_v37 = vld [vmem:[%s18600_s23] sm:$0xff] }
0x3e52   :  { %v9290_v61 = vpop.xlane.xlu0 %9289 }
0x3e53   :  { %v9294_v0 = vmul.f32 0.03125, %v9290_v61 }
0x3e55   :  { %v9296_v62 = vsub.f32 %v17911_v5, %v9294_v0 }
0x3e57   :  { %v9298_v31 = vmul.f32 %v9296_v62, %v9296_v62 }
0x3e59   :  { %v9300_v24 = vsel %vm304_vm4, %v9298_v31, 0.0 }
0x3e5c   :  { %v16391_v53 = vpop.eup %16390 }
0x3e84   :  { %v9196_v11 = vpop.f32.mrf.mxu0 }
0x3e85   :  { %v9201_v18 = vmul.f32 %v16391_v53, %v9196_v11  ;;  %v14520_v53 = vld [vmem:[%s18601_s16] ss:$0 sm:$0xff] }
0x3e86   :  { %v15788_v16 = vpop.f32.mrf.mxu0 }
0x3e87   :  { %15792 = vmatmul.mubr.msk.f32.vlgmr.msra.gmra.mxu1 %vm448_vm6, %v9201_v18 }
0x3e88   :  { %15806 = vmatpush3.msra.mxu1 %v9439_v3 }
0x3e89   :  { %15807 = vmatprep.subr.mxu1 %v9438_v50 }
0x3e8a   :  { %15808 = vmatpush3.msra.mxu1 %v9438_v50 }
0x3e8b   :  { %15809 = vmatprep.subr.mxu1 %v9437_v33 }
0x3e8c   :  { %15810 = vmatpush3.msra.mxu1 %v9437_v33 }
0x3e8d   :  { %15811 = vmatprep.subr.mxu1 %v9436_v51 }
0x3e8e   :  { %15812 = vmatpush3.msra.mxu1 %v9436_v51  ;;  %v14526_v51 = vld [vmem:[%s18582_s29 + $0x1] ss:$0 sm:$0xff]  ;;  %s18604_s29 = smov 112  }
0x3e8f   :  { %15813 = vmatprep.subr.mxu1 %v9435_v13 }
0x3e90   :  { %15814 = vmatpush3.msra.mxu1 %v9435_v13 }
0x3e91   :  { %15815 = vmatprep.subr.mxu1 %v9434_v2 }
0x3e92   :  { %15816 = vmatpush3.msra.mxu1 %v9434_v2  ;;  %v14527_v2 = vld [vmem:[%s18583_s19 + $0x1] ss:$0 sm:$0xff]  ;;  %s18605_s19 = smov 72  }
0x3e93   :  { %15817 = vmatprep.subr.mxu1 %v9433_v52 }
0x3e94   :  { %15818 = vmatpush3.msra.mxu1 %v9433_v52 }
0x3e95   :  { %15819 = vmatprep.subr.mxu1 %v9432_v40 }
0x3e96   :  { %15820 = vmatpush3.msra.mxu1 %v9432_v40 }
0x3e97   :  { %15821 = vmatprep.subr.mxu1 %v9431_v54 }
0x3e98   :  { %15822 = vmatpush3.msra.mxu1 %v9431_v54 }
0x3e99   :  { %15823 = vmatprep.subr.mxu1 %v9430_v27 }
0x3e9a   :  { %15824 = vmatpush3.msra.mxu1 %v9430_v27 }
0x3e9b   :  { %15825 = vmatprep.subr.mxu1 %v9429_v56 }
0x3e9c   :  { %15826 = vmatpush3.msra.mxu1 %v9429_v56 }
0x3e9d   :  { %15827 = vmatprep.subr.mxu1 %v9428_v58 }
0x3e9e   :  { %15828 = vmatpush3.msra.mxu1 %v9428_v58 }
0x3e9f   :  { %15829 = vmatprep.subr.mxu1 %v9427_v19 }
0x3ea0   :  { %15830 = vmatpush3.msra.mxu1 %v9427_v19 }
0x3f47   :  { %v9271_v46 = vpop.f32.mrf.mxu1 }
0x3f48   :  { %v9275_v30 = vadd.f32 %v9271_v46, %v9034_v17  ;;  %v9426_v17 = vld [vmem:[%s18600_s23 + $0x10] sm:$0xff] }
0x3f49   :  { %v15793_v55 = vpop.f32.mrf.mxu1  ;;  %15831 = vmatprep.subr.mxu1 %v9426_v17 }
0x3f4a   :  { %v9283_v34 = vadd.f32 %v14517_v63, %v9275_v30  ;;  %15832 = vmatpush3.msra.mxu1 %v9426_v17 }
0x3f4b   :  { %15833 = vmatprep.subr.mxu1 %v9425_v26 }
0x3f4c   :  { %v17920_v45 = vadd.f32 %v9283_v34, %v17687_v25  ;;  %15834 = vmatpush3.msra.mxu1 %v9425_v26 }
0x3f4d   :  { %15835 = vmatprep.subr.mxu1 %v9424_v37 }
0x3f4e   :  { %v9291_v23 = vsel %vm304_vm4, %v17920_v45, 0.0  ;;  %15836 = vmatpush3.msra.mxu1 %v9424_v37 }
0x3f4f   :  { %9292 = vadd.xlane.f32.xlu0 %v9291_v23  ;;  %15876 = vmatprep.subr.mxu1 %v16568_v6  ;;  %v14523_v23 = vld [vmem:[%s18602_s26] ss:$0 sm:$0xff] }
0x3f53   :  { %9301 = vadd.xlane.f32.xlu0 %v9300_v24 }
0x3fd8   :  { %v9293_v28 = vpop.xlane.xlu0 %9292 }
0x3fd9   :  { %v9295_v29 = vmul.f32 0.03125, %v9293_v28 }
0x3fdb   :  { %v17926_v32 = vsub.f32 %v17920_v45, %v9295_v29 }
0x3fdc   :  { %v9302_v22 = vpop.xlane.xlu0 %9301 }
0x3fdd   :  { %v9306_v35 = vmul.f32 0.03125, %v9302_v22  ;;  %v9299_v25 = vmul.f32 %v17926_v32, %v17926_v32 }
0x3fdf   :  { %v9308_v4 = vadd.f32 1e-05, %v9306_v35  ;;  %v9303_v38 = vsel %vm304_vm4, %v9299_v25, 0.0 }
0x3fe0   :  { %9304 = vadd.xlane.f32.xlu1 %v9303_v38 }
0x3fe1   :  { %16392 = vrsqrt.f32 %v9308_v4 }
0x3fee   :  { %v16393_v39 = vpop.eup %16392 }
0x3fef   :  { %v9312_v41 = vmul.f32 %v16393_v39, %v9296_v62 }
0x3ff1   :  { %v9320_v43 = vmul.f32 %v14518_v42, %v9312_v41  ;;  %v14531_v41 = vld [vmem:[%s18581_s14 + $0x38] sm:$0xff] }
0x3ff2   :  { %15840 = vmatprep.subr.mxu0 %v14531_v41 }
0x3ff3   :  { %v9328_v44 = vadd.f32 %v14519_v7, %v9320_v43  ;;  %v14529_v43 = vld [vmem:[%s18581_s14 + $0x28] sm:$0xff] }
0x3ff5   :  { %15802 = vmatprep.mubr.msk.f32.mxu0 %vm304_vm4, %v9328_v44  ;;  %v14528_v44 = vld [vmem:[%s18581_s14 + $0x20] sm:$0xff] }
0x4069   :  { %v9305_v21 = vpop.xlane.xlu1 %9304 }
0x406a   :  { %v9307_v59 = vmul.f32 0.03125, %v9305_v21  ;;  %v14533_v21 = vld [vmem:[%s18584_s24 + $0x1] ss:$0 sm:$0xff]  ;;  %s18606_s24 = smov 40  }
0x406c   :  { %v9309_v63 = vadd.f32 1e-05, %v9307_v59 }
0x406e   :  { %16394 = vrsqrt.f32 %v9309_v63 }
0x407b   :  { %v16395_v57 = vpop.eup %16394 }
0x407c   :  { %v9313_v1 = vmul.f32 %v16395_v57, %v17926_v32 }
0x407e   :  { %v9321_v8 = vmul.f32 %v14518_v42, %v9313_v1 }
0x4080   :  { %v9329_v10 = vadd.f32 %v14519_v7, %v9321_v8  ;;  %v14530_v7 = vld [vmem:[%s18581_s14 + $0x30] sm:$0xff]  ;;  %s18603_s14 = smov 104  }
0x4082   :  { %15803 = vmatmul.mubr.msk.f32.vlgmr.msra.gmra.mxu0 %vm304_vm4, %v9329_v10 }
0x4083   :  { %15841 = vmatpush3.msra.mxu0 %v14531_v41 }
0x4084   :  { %15842 = vmatprep.subr.mxu0 %v14530_v7 }
0x4085   :  { %15843 = vmatpush3.msra.mxu0 %v14530_v7 }
0x4086   :  { %15844 = vmatprep.subr.mxu0 %v14529_v43 }
0x4087   :  { %15845 = vmatpush3.msra.mxu0 %v14529_v43 }
0x4088   :  { %15846 = vmatprep.subr.mxu0 %v14528_v44 }
0x4089   :  { %15847 = vmatpush3.msra.mxu0 %v14528_v44  ;;  %v18046_v44 = vld [vmem:[%s18587_s30 + $0x28] sm:$0xff] }
0x408a   :  { %15851 = vmatprep.subr.mxu0 %v16568_v6 }
0x4142   :  { %v15804_v11 = vpop.f32.mrf.mxu0 }
0x4143   :  { %v9419_v18 = vadd.f32 %v15804_v11, %v14520_v53 }
0x4144   :  { %v9413_v16 = vpop.f32.mrf.mxu0 }
0x4145   :  { %v9414_v61 = vadd.f32 %v14520_v53, %v9413_v16  ;;  %v9423_v46 = vmax.f32 %v9419_v18, 0.0 }
0x4147   :  { %v9422_v0 = vmax.f32 %v9414_v61, 0.0 }
0x4149   :  { %15837 = vmatprep.mubr.f32.mxu1 %v9422_v0 }
0x414a   :  { %15838 = vmatmul.mubr.f32.vlgmr.msra.gmra.mxu1 %v9423_v46 }
0x414b   :  { %15878 = vmatprep.mubr.msk.f32.mxu1 %vm16569_vm5, %v16568_v6 }
0x420a   :  { %v15839_v30 = vpop.f32.mrf.mxu1 }
0x420b   :  { %v9516_v62 = vadd.f32 %v15839_v30, %v17920_v45 }
0x420c   :  { %v9506_v55 = vpop.f32.mrf.mxu1 }
0x420d   :  { %v9515_v34 = vadd.f32 %v9506_v55, %v17911_v5  ;;  %v17965_v24 = vadd.f32 %v14523_v23, %v9516_v62 }
0x420f   :  { %v17963_v31 = vadd.f32 %v14523_v23, %v9515_v34  ;;  %v9533_v29 = vsel %vm304_vm4, %v17965_v24, 0.0 }
0x4211   :  { %v9530_v28 = vsel %vm304_vm4, %v17963_v31, 0.0 }
0x4212   :  { %9531 = vadd.xlane.f32.xlu0 %v9530_v28 }
0x4216   :  { %9534 = vadd.xlane.f32.xlu0 %v9533_v29 }
0x429b   :  { %v9532_v32 = vpop.xlane.xlu0 %9531 }
0x429c   :  { %v9536_v45 = vmul.f32 0.03125, %v9532_v32 }
0x429e   :  { %v9538_v5 = vsub.f32 %v17963_v31, %v9536_v45 }
0x429f   :  { %v9535_v22 = vpop.xlane.xlu0 %9534 }
0x42a0   :  { %v9537_v35 = vmul.f32 0.03125, %v9535_v22  ;;  %v9540_v25 = vmul.f32 %v9538_v5, %v9538_v5 }
0x42a2   :  { %v9539_v4 = vsub.f32 %v17965_v24, %v9537_v35  ;;  %v9542_v38 = vsel %vm304_vm4, %v9540_v25, 0.0 }
0x42a3   :  { %9543 = vadd.xlane.f32.xlu0 %v9542_v38 }
0x42a4   :  { %v9541_v39 = vmul.f32 %v9539_v4, %v9539_v4 }
0x42a6   :  { %v9545_v42 = vsel %vm304_vm4, %v9541_v39, 0.0 }
0x42a7   :  { %9546 = vadd.xlane.f32.xlu0 %v9545_v42 }
0x432c   :  { %v9544_v47 = vpop.xlane.xlu0 %9543 }
0x432d   :  { %v9548_v48 = vmul.f32 0.03125, %v9544_v47 }
0x432f   :  { %v9550_v49 = vadd.f32 1e-05, %v9548_v48 }
0x4330   :  { %v9547_v36 = vpop.xlane.xlu0 %9546 }
0x4331   :  { %16396 = vrsqrt.f32 %v9550_v49  ;;  %v9549_v3 = vmul.f32 0.03125, %v9547_v36 }
0x4333   :  { %v9551_v50 = vadd.f32 1e-05, %v9549_v3 }
0x4335   :  { %16398 = vrsqrt.f32 %v9551_v50 }
0x433e   :  { %v16397_v33 = vpop.eup %16396 }
0x433f   :  { %v9554_v13 = vmul.f32 %v16397_v33, %v9538_v5  ;;  %v18027_v5 = vld [vmem:[%s18587_s30 + $0x20] sm:$0xff] }
0x4340   :  { %15877 = vmatpush3.msra.mxu1 %v18027_v5 }
0x4341   :  { %v9562_v52 = vmul.f32 %v14526_v51, %v9554_v13  ;;  %15886 = vmatprep.subr.mxu1 %v16568_v6 }
0x4342   :  { %v16399_v40 = vpop.eup %16398 }
0x4343   :  { %v9555_v54 = vmul.f32 %v16399_v40, %v9539_v4  ;;  %v9570_v27 = vadd.f32 %v14527_v2, %v9562_v52 }
0x4345   :  { %v9563_v56 = vmul.f32 %v14526_v51, %v9555_v54  ;;  %15848 = vmatprep.mubr.msk.f32.mxu0 %vm304_vm4, %v9570_v27 }
0x4347   :  { %v9571_v58 = vadd.f32 %v14527_v2, %v9563_v56 }
0x4349   :  { %15849 = vmatmul.mubr.msk.f32.vlgmr.msra.gmra.mxu0 %vm304_vm4, %v9571_v58 }
0x434a   :  { %15853 = vmatprep.mubr.msk.f32.mxu0 %vm16569_vm5, %v16568_v6 }
0x4409   :  { %v15850_v59 = vpop.f32.mrf.mxu0 }
0x440a   :  { %v17987_v63 = vadd.f32 %v15850_v59, %v14533_v21 }
0x440b   :  { %v9657_v57 = vpop.f32.mrf.mxu0 }
0x440c   :  { %v17989_v1 = vadd.f32 %v14533_v21, %v9657_v57 }
0x440e   :  { %9674 = vrot.lane.b32.xlu0 %v17989_v1, %s16571_s5 }
0x4412   :  { %9761 = vrot.lane.b32.xlu0 %v17989_v1, %s16570_s0 }
0x4416   :  { %9839 = vrot.lane.b32.xlu0 %v17989_v1, %s16573_s21 }
0x4480   :  { %v9675_v8 = vpop.permute.xlu0 %9674 }
0x4481   :  { %15852 = vmatpush3.xpose.msk.msra.mxu0 %vm448_vm6, %v9675_v8 }
0x4482   :  { %15856 = vmatprep.subr.mxu0 %v16568_v6 }
0x4484   :  { %15854 = vmatmul.mubr.msk.f32.vlgmr.msra.gmra.mxu0 %vm448_vm6, %v17989_v1  ;;  %v9762_v10 = vpop.permute.xlu0 %9761 }
0x4485   :  { %15857 = vmatpush3.msra.mxu0 %v9762_v10  ;;  %15858 = vmatprep.mubr.msk.f32.mxu0 %vm16569_vm5, %v16568_v6 }
0x4486   :  { %15861 = vmatprep.subr.mxu0 %v16568_v6 }
0x4488   :  { %v9840_v46 = vpop.permute.xlu0 %9839 }
0x4544   :  { %v9746_v19 = vpop.f32.mrf.mxu0 }
0x4545   :  { %v9750_v17 = vmul.f32 0.35355338, %v9746_v19 }
0x4546   :  { %v15855_v26 = vpop.f32.mrf.mxu0 }
0x4547   :  { %v9751_v37 = vsel %vm17466_vm11, %v9750_v17, -inf  ;;  %v18083_v17 = vld [vmem:[%s18587_s30 + $0x30] sm:$0xff] }
0x4548   :  { %v9752_v53 = vsel %vm448_vm6, %v9751_v37, -inf }
0x4549   :  { %9753 = vmax.xlane.f32.xlu1 %v9752_v53 }
0x455a   :  { %9841 = vrot.lane.b32.xlu1 %v17989_v1, %s16572_s9 }
0x455e   :  { %9928 = vrot.lane.b32.xlu1 %v17989_v1, %s16576_s18 }
0x45d2   :  { %v9754_v11 = vpop.xlane.xlu1 %9753 }
0x45d3   :  { %v9755_v18 = vsub.f32 %v9751_v37, %v9754_v11 }
0x45d5   :  { %v9756_v16 = vmul.f32 1.442695, %v9755_v18 }
0x45d6   :  { %v9842_v61 = vpop.permute.xlu1 %9841 }
0x45d7   :  { %16400 = vpow2.f32 %v9756_v16 }
0x45da   :  { %v9929_v30 = vpop.permute.xlu1 %9928 }
0x45e4   :  { %v16401_v0 = vpop.eup %16400 }
0x45e5   :  { %15859 = vmatmul.mubr.msk.f32.vlgmr.msra.gmra.mxu0 %vm448_vm6, %v16401_v0  ;;  %v9758_v45 = vsel %vm448_vm6, %v16401_v0, 0.0 }
0x45e6   :  { %15862 = vmatpush3.xpose.msk.msra.mxu0 %vm448_vm6, %v9842_v61  ;;  %15863 = vmatprep.mubr.msk.f32.mxu0 %vm16569_vm5, %v16568_v6 }
0x45e7   :  { %15866 = vmatprep.subr.mxu0 %v16568_v6 }
0x45e9   :  { %15864 = vmatmul.mubr.msk.f32.vlgmr.msra.gmra.mxu0 %vm448_vm6, %v9840_v46 }
0x45ea   :  { %15867 = vmatpush3.msra.mxu0 %v9929_v30  ;;  %15868 = vmatprep.mubr.msk.f32.mxu0 %vm16569_vm5, %v16568_v6 }
0x45eb   :  { %15871 = vmatprep.subr.mxu0 %v16568_v6 }
0x46a5   :  { %v9833_v55 = vpop.f32.mrf.mxu0 }
0x46a7   :  { %v15860_v62 = vpop.f32.mrf.mxu0 }
0x46a9   :  { %v9913_v34 = vpop.f32.mrf.mxu0 }
0x46aa   :  { %v9917_v23 = vmul.f32 0.35355338, %v9913_v34 }
0x46ab   :  { %v15865_v28 = vpop.f32.mrf.mxu0 }
0x46ac   :  { %v9918_v29 = vsel %vm17466_vm11, %v9917_v23, -inf }
0x46ad   :  { %v9919_v32 = vsel %vm448_vm6, %v9918_v29, -inf }
0x46ae   :  { %9920 = vmax.xlane.f32.xlu0 %v9919_v32 }
0x46c4   :  { %10154 = vrot.lane.b32.xlu0 %v17989_v1, %s16574_s15 }
0x46e3   :  { %9759 = vadd.xlane.f32.xlu0 %v9758_v45 }
0x46f9   :  { %10241 = vrot.lane.b32.xlu0 %v17989_v1, %s16577_s22 }
0x46fd   :  { %10393 = vrot.lane.b32.xlu0 %v17989_v1, %s18603_s14 }
0x4737   :  { %v9921_v22 = vpop.xlane.xlu0 %9920 }
0x4738   :  { %v9922_v35 = vsub.f32 %v9918_v29, %v9921_v22 }
0x473a   :  { %v9923_v25 = vmul.f32 1.442695, %v9922_v35 }
0x473b   :  { %v10155_v39 = vpop.permute.xlu0 %10154 }
0x473c   :  { %16402 = vpow2.f32 %v9923_v25 }
0x4749   :  { %v16403_v4 = vpop.eup %16402 }
0x474a   :  { %15869 = vmatmul.mubr.msk.f32.vlgmr.msra.gmra.mxu0 %vm448_vm6, %v16403_v4  ;;  %v9925_v38 = vsel %vm448_vm6, %v16403_v4, 0.0 }
0x474b   :  { %9926 = vadd.xlane.f32.xlu1 %v9925_v38  ;;  %15873 = vmatprep.mubr.msk.f32.mxu0 %vm16569_vm5, %v16568_v6  ;;  %v18116_v38 = vld [vmem:[%s18587_s30 + $0x38] sm:$0xff] }
0x474c   :  { %15872 = vmatpush3.msra.mxu0 %v18046_v44 }
0x474d   :  { %15881 = vmatprep.subr.mxu0 %v16568_v6 }
0x475c   :  { %10152 = vrot.lane.b32.xlu1 %v17989_v1, %s18604_s29 }
0x476c   :  { %v9760_v42 = vpop.xlane.xlu0 %9759 }
0x476d   :  { %16404 = vrcp.f32 %v9760_v42 }
0x4770   :  { %v10242_v43 = vpop.permute.xlu0 %10241 }
0x4774   :  { %v10394_v19 = vpop.permute.xlu0 %10393 }
0x477a   :  { %v16405_v41 = vpop.eup %16404 }
0x477b   :  { %v9838_v7 = vmul.f32 %v16405_v41, %v9833_v55 }
0x477d   :  { %15879 = vmatmul.mubr.msk.f32.vlgmr.msra.gmra.mxu1 %vm448_vm6, %v9838_v7 }
0x477e   :  { %15887 = vmatpush3.msra.mxu1 %v10242_v43  ;;  %15888 = vmatprep.mubr.msk.f32.mxu1 %vm16569_vm5, %v16568_v6 }
0x477f   :  { %15896 = vmatprep.subr.mxu1 %v16568_v6 }
0x47d4   :  { %v9927_v47 = vpop.xlane.xlu1 %9926 }
0x47d5   :  { %16406 = vrcp.f32 %v9927_v47 }
0x47d8   :  { %v10153_v50 = vpop.permute.xlu1 %10152 }
0x47e2   :  { %v16407_v48 = vpop.eup %16406 }
0x480a   :  { %v10000_v49 = vpop.f32.mrf.mxu0 }
0x480b   :  { %v10005_v36 = vmul.f32 %v16407_v48, %v10000_v49 }
0x480c   :  { %v15870_v3 = vpop.f32.mrf.mxu0 }
0x480d   :  { %15874 = vmatmul.mubr.msk.f32.vlgmr.msra.gmra.mxu0 %vm448_vm6, %v10005_v36 }
0x480e   :  { %15882 = vmatpush3.xpose.msk.msra.mxu0 %vm448_vm6, %v10155_v39  ;;  %15883 = vmatprep.mubr.msk.f32.mxu0 %vm16569_vm5, %v16568_v6 }
0x480f   :  { %15891 = vmatprep.subr.mxu0 %v16568_v6 }
0x4811   :  { %15884 = vmatmul.mubr.msk.f32.vlgmr.msra.gmra.mxu0 %vm448_vm6, %v10153_v50 }
0x4812   :  { %15893 = vmatprep.mubr.msk.f32.mxu0 %vm16569_vm5, %v16568_v6  ;;  %15892 = vmatpush3.msra.mxu0 %v18083_v17 }
0x4813   :  { %15901 = vmatprep.subr.mxu0 %v16568_v6 }
0x483d   :  { %v18058_v33 = vpop.f32.mrf.mxu1 }
0x483f   :  { %v15880_v51 = vpop.f32.mrf.mxu1 }
0x48cd   :  { %v18060_v13 = vpop.f32.mrf.mxu0 }
0x48ce   :  { %v10149_v22 = vadd.f32 %v18058_v33, %v18060_v13 }
0x48cf   :  { %v15875_v2 = vpop.f32.mrf.mxu0 }
0x48d1   :  { %v10226_v52 = vpop.f32.mrf.mxu0 }
0x48d2   :  { %v10230_v40 = vmul.f32 0.35355338, %v10226_v52 }
0x48d3   :  { %v15885_v54 = vpop.f32.mrf.mxu0 }
0x48d4   :  { %v10231_v27 = vsel %vm17466_vm11, %v10230_v40, -inf }
0x48d5   :  { %v10232_v56 = vsel %vm448_vm6, %v10231_v27, -inf }
0x48d6   :  { %10233 = vmax.xlane.f32.xlu1 %v10232_v56 }
0x48e7   :  { %10395 = vrot.lane.b32.xlu1 %v17989_v1, %s18605_s19 }
0x495f   :  { %v10234_v58 = vpop.xlane.xlu1 %10233 }
0x4960   :  { %v10235_v21 = vsub.f32 %v10231_v27, %v10234_v58 }
0x4962   :  { %v10236_v59 = vmul.f32 1.442695, %v10235_v21 }
0x4963   :  { %v10396_v8 = vpop.permute.xlu1 %10395 }
0x4964   :  { %16408 = vpow2.f32 %v10236_v59 }
0x4971   :  { %v16409_v57 = vpop.eup %16408 }
0x4972   :  { %15889 = vmatmul.mubr.msk.f32.vlgmr.msra.gmra.mxu1 %vm448_vm6, %v16409_v57  ;;  %v10238_v10 = vsel %vm448_vm6, %v16409_v57, 0.0 }
0x4973   :  { %15897 = vmatpush3.xpose.msk.msra.mxu1 %vm448_vm6, %v10396_v8  ;;  %10239 = vadd.xlane.f32.xlu0 %v10238_v10 }
0x4974   :  { %15898 = vmatprep.mubr.msk.f32.mxu1 %vm16569_vm5, %v16568_v6  ;;  %15906 = vmatprep.subr.mxu1 %v16568_v6 }
0x4976   :  { %15899 = vmatmul.mubr.msk.f32.vlgmr.msra.gmra.mxu1 %vm448_vm6, %v10394_v19 }
0x4977   :  { %15908 = vmatprep.mubr.msk.f32.mxu1 %vm16569_vm5, %v16568_v6  ;;  %15907 = vmatpush3.msra.mxu1 %v18116_v38 }
0x4978   :  { %15916 = vmatprep.subr.mxu1 %v16568_v6 }
0x4989   :  { %10482 = vrot.lane.b32.xlu0 %v17989_v1, %s18606_s24 }
0x498d   :  { %10802 = vrot.lane.b32.xlu0 %v17987_v63, %s16572_s9 }
0x4991   :  { %10800 = vrot.lane.b32.xlu0 %v17987_v63, %s16573_s21 }
0x49fc   :  { %v10240_v26 = vpop.xlane.xlu0 %10239 }
0x49fd   :  { %16410 = vrcp.f32 %v10240_v26 }
0x4a00   :  { %v10483_v16 = vpop.permute.xlu0 %10482 }
0x4a04   :  { %v10803_v32 = vpop.permute.xlu0 %10802 }
0x4a08   :  { %v10801_v45 = vpop.permute.xlu0 %10800 }
0x4a0a   :  { %v16411_v37 = vpop.eup %16410 }
0x4a32   :  { %v10313_v53 = vpop.f32.mrf.mxu1 }
0x4a33   :  { %v10318_v11 = vmul.f32 %v16411_v37, %v10313_v53 }
0x4a34   :  { %v15890_v18 = vpop.f32.mrf.mxu1 }
0x4a35   :  { %15894 = vmatmul.mubr.msk.f32.vlgmr.msra.gmra.mxu0 %vm448_vm6, %v10318_v11 }
0x4a36   :  { %15902 = vmatpush3.msra.mxu0 %v10483_v16  ;;  %v10467_v1 = vpop.f32.mrf.mxu1  ;;  %15903 = vmatprep.mubr.msk.f32.mxu0 %vm16569_vm5, %v16568_v6 }
0x4a37   :  { %v10471_v61 = vmul.f32 0.35355338, %v10467_v1  ;;  %15911 = vmatprep.subr.mxu0 %v16568_v6 }
0x4a38   :  { %v15900_v0 = vpop.f32.mrf.mxu1 }
0x4a39   :  { %v10472_v46 = vsel %vm17466_vm11, %v10471_v61, -inf }
0x4a3a   :  { %v10473_v30 = vsel %vm448_vm6, %v10472_v46, -inf }
0x4a3b   :  { %10474 = vmax.xlane.f32.xlu1 %v10473_v30 }
0x4a4c   :  { %10635 = vrot.lane.b32.xlu1 %v17987_v63, %s16571_s5 }
0x4ac4   :  { %v10475_v55 = vpop.xlane.xlu1 %10474 }
0x4ac5   :  { %v10476_v62 = vsub.f32 %v10472_v46, %v10475_v55 }
0x4ac7   :  { %v10477_v34 = vmul.f32 1.442695, %v10476_v62 }
0x4ac8   :  { %v10636_v28 = vpop.permute.xlu1 %10635 }
0x4ac9   :  { %16412 = vpow2.f32 %v10477_v34 }
0x4ad6   :  { %v16413_v23 = vpop.eup %16412 }
0x4ad7   :  { %15904 = vmatmul.mubr.msk.f32.vlgmr.msra.gmra.mxu0 %vm448_vm6, %v16413_v23  ;;  %v10479_v29 = vsel %vm448_vm6, %v16413_v23, 0.0 }
0x4ad8   :  { %15912 = vmatpush3.xpose.msk.msra.mxu0 %vm448_vm6, %v10636_v28  ;;  %10480 = vadd.xlane.f32.xlu0 %v10479_v29 }
0x4ad9   :  { %15913 = vmatprep.mubr.msk.f32.mxu0 %vm16569_vm5, %v16568_v6  ;;  %15921 = vmatprep.subr.mxu0 %v16568_v6 }
0x4adb   :  { %15914 = vmatmul.mubr.msk.f32.vlgmr.msra.gmra.mxu0 %vm448_vm6, %v17987_v63 }
0x4adc   :  { %15922 = vmatpush3.xpose.msk.msra.mxu0 %vm448_vm6, %v10803_v32  ;;  %15923 = vmatprep.mubr.msk.f32.mxu0 %vm16569_vm5, %v16568_v6 }
0x4add   :  { %15931 = vmatprep.subr.mxu0 %v16568_v6 }
0x4adf   :  { %15924 = vmatmul.mubr.msk.f32.vlgmr.msra.gmra.mxu0 %vm448_vm6, %v10801_v45 }
0x4ae0   :  { %15932 = vmatpush3.msra.mxu0 %v18046_v44  ;;  %15933 = vmatprep.mubr.msk.f32.mxu0 %vm16569_vm5, %v16568_v6 }
0x4ae1   :  { %15941 = vmatprep.subr.mxu0 %v16568_v6 }
0x4af5   :  { %v10388_v35 = vpop.f32.mrf.mxu0 }
0x4af6   :  { %v10392_v25 = vadd.f32 %v10388_v35, %v10149_v22 }
0x4af7   :  { %v15895_v4 = vpop.f32.mrf.mxu0 }
0x4b61   :  { %v10481_v39 = vpop.xlane.xlu0 %10480 }
0x4b62   :  { %16414 = vrcp.f32 %v10481_v39 }
0x4b6f   :  { %v16415_v42 = vpop.eup %16414 }
0x4b97   :  { %v10554_v41 = vpop.f32.mrf.mxu0 }
0x4b98   :  { %v10559_v7 = vmul.f32 %v16415_v42, %v10554_v41 }
0x4b99   :  { %v15905_v43 = vpop.f32.mrf.mxu0 }
0x4b9a   :  { %15909 = vmatmul.mubr.msk.f32.vlgmr.msra.gmra.mxu1 %vm448_vm6, %v10559_v7 }
0x4b9b   :  { %v10707_v44 = vpop.f32.mrf.mxu0  ;;  %15918 = vmatprep.mubr.msk.f32.mxu1 %vm16569_vm5, %v16568_v6 }
0x4b9c   :  { %v10711_v47 = vmul.f32 0.35355338, %v10707_v44 }
0x4b9d   :  { %v15915_v48 = vpop.f32.mrf.mxu0 }
0x4b9e   :  { %v10712_v49 = vsel %vm17466_vm11, %v10711_v47, -inf }
0x4b9f   :  { %v10874_v36 = vpop.f32.mrf.mxu0  ;;  %v10713_v3 = vsel %vm448_vm6, %v10712_v49, -inf }
0x4ba0   :  { %v10878_v50 = vmul.f32 0.35355338, %v10874_v36  ;;  %10714 = vmax.xlane.f32.xlu1 %v10713_v3 }
0x4ba1   :  { %v15925_v33 = vpop.f32.mrf.mxu0 }
0x4ba2   :  { %v10879_v51 = vsel %vm17466_vm11, %v10878_v50, -inf }
0x4ba3   :  { %v10880_v13 = vsel %vm448_vm6, %v10879_v51, -inf }
0x4ba4   :  { %10881 = vmax.xlane.f32.xlu0 %v10880_v13 }
0x4bb1   :  { %10889 = vrot.lane.b32.xlu1 %v17987_v63, %s16576_s18 }
0x4bba   :  { %10722 = vrot.lane.b32.xlu0 %v17987_v63, %s16570_s0  ;;  %s18607_s0 = sld [smem:[#allocation9_spill]] }
0x4bbe   :  { %11115 = vrot.lane.b32.xlu0 %v17987_v63, %s16574_s15 }
0x4bc2   :  { %11113 = vrot.lane.b32.xlu0 %v17987_v63, %s18604_s29 }
0x4c29   :  { %v10715_v2 = vpop.xlane.xlu1 %10714 }
0x4c2a   :  { %v10716_v52 = vsub.f32 %v10712_v49, %v10715_v2 }
0x4c2c   :  { %v10717_v40 = vmul.f32 1.442695, %v10716_v52 }
0x4c2d   :  { %v10882_v54 = vpop.xlane.xlu0 %10881  ;;  %v10890_v59 = vpop.permute.xlu1 %10889 }
0x4c2e   :  { %16416 = vpow2.f32 %v10717_v40  ;;  %v10883_v27 = vsub.f32 %v10879_v51, %v10882_v54 }
0x4c30   :  { %v10884_v56 = vmul.f32 1.442695, %v10883_v27 }
0x4c31   :  { %v10723_v58 = vpop.permute.xlu0 %10722 }
0x4c32   :  { %16418 = vpow2.f32 %v10884_v56  ;;  %15917 = vmatpush3.msra.mxu1 %v10723_v58  ;;  %v14573_v56 = vld [vmem:[%s18588_s6 + $0x1] ss:$0 sm:$0xff] }
0x4c33   :  { %15926 = vmatprep.subr.mxu1 %v16568_v6 }
0x4c35   :  { %v11116_v53 = vpop.permute.xlu0 %11115 }
0x4c39   :  { %v11114_v11 = vpop.permute.xlu0 %11113 }
0x4c3b   :  { %v16417_v21 = vpop.eup %16416 }
0x4c3c   :  { %15919 = vmatmul.mubr.msk.f32.vlgmr.msra.gmra.mxu1 %vm448_vm6, %v16417_v21  ;;  %v10719_v57 = vsel %vm448_vm6, %v16417_v21, 0.0 }
0x4c3d   :  { %15927 = vmatpush3.msra.mxu1 %v10890_v59  ;;  %10720 = vadd.xlane.f32.xlu0 %v10719_v57 }
0x4c3e   :  { %15928 = vmatprep.mubr.msk.f32.mxu1 %vm16569_vm5, %v16568_v6  ;;  %15936 = vmatprep.subr.mxu1 %v16568_v6 }
0x4c3f   :  { %v16419_v8 = vpop.eup %16418 }
0x4c40   :  { %15929 = vmatmul.mubr.msk.f32.vlgmr.msra.gmra.mxu1 %vm448_vm6, %v16419_v8  ;;  %v10886_v10 = vsel %vm448_vm6, %v16419_v8, 0.0 }
0x4c41   :  { %10887 = vadd.xlane.f32.xlu1 %v10886_v10  ;;  %15937 = vmatpush3.msra.mxu1 %v18027_v5 }
0x4c42   :  { %15938 = vmatprep.mubr.msk.f32.mxu1 %vm16569_vm5, %v16568_v6  ;;  %15946 = vmatprep.subr.mxu1 %v16568_v6 }
0x4c52   :  { %11202 = vrot.lane.b32.xlu1 %v17987_v63, %s16577_s22 }
0x4c53   :  { %11356 = vrot.lane.b32.xlu0 %v17987_v63, %s18605_s19 }
0x4c5a   :  { %v10629_v19 = vpop.f32.mrf.mxu1 }
0x4c5b   :  { %v18153_v26 = vadd.f32 %v10629_v19, %v10392_v25  ;;  %v14589_v19 = vld [vmem:[%s18589_s12 + $0x38] sm:$0xff] }
0x4c5c   :  { %v15910_v37 = vpop.f32.mrf.mxu1 }
0x4c5d   :  { %v11601_v58 = vadd.f32 %v14573_v56, %v18153_v26 }
0x4c5f   :  { %v18195_v60 = vadd.f32 %v11601_v58, %v17963_v31 }
0x4cc6   :  { %v10721_v18 = vpop.xlane.xlu0 %10720 }
0x4cc7   :  { %16420 = vrcp.f32 %v10721_v18  ;;  %v14588_v18 = vld [vmem:[%s18589_s12 + $0x30] sm:$0xff] }
0x4cca   :  { %v10888_v5 = vpop.xlane.xlu1 %10887  ;;  %v11357_v43 = vpop.permute.xlu0 %11356 }
0x4ccb   :  { %16422 = vrcp.f32 %v10888_v5  ;;  %v14587_v5 = vld [vmem:[%s18589_s12 + $0x28] sm:$0xff] }
0x4cce   :  { %v11203_v46 = vpop.permute.xlu1 %11202 }
0x4cd4   :  { %v16421_v16 = vpop.eup %16420 }
0x4cd8   :  { %v16423_v30 = vpop.eup %16422 }
0x4cfc   :  { %v10794_v1 = vpop.f32.mrf.mxu1 }
0x4cfd   :  { %v10799_v61 = vmul.f32 %v16421_v16, %v10794_v1  ;;  %v14586_v16 = vld [vmem:[%s18589_s12 + $0x20] sm:$0xff] }
0x4cfe   :  { %v15920_v0 = vpop.f32.mrf.mxu1 }
0x4cff   :  { %15939 = vmatmul.mubr.msk.f32.vlgmr.msra.gmra.mxu1 %vm448_vm6, %v10799_v61 }
0x4d00   :  { %15947 = vmatpush3.msra.mxu1 %v11203_v46  ;;  %v10961_v55 = vpop.f32.mrf.mxu1  ;;  %15948 = vmatprep.mubr.msk.f32.mxu1 %vm16569_vm5, %v16568_v6 }
0x4d01   :  { %v10966_v62 = vmul.f32 %v16423_v30, %v10961_v55  ;;  %15956 = vmatprep.subr.mxu1 %v16568_v6 }
0x4d02   :  { %v15930_v34 = vpop.f32.mrf.mxu1 }
0x4d03   :  { %15934 = vmatmul.mubr.msk.f32.vlgmr.msra.gmra.mxu0 %vm448_vm6, %v10966_v62  ;;  %v14591_v34 = vld [vmem:[%s18590_s20 + $0x1] ss:$0 sm:$0xff] }
0x4d04   :  { %15942 = vmatpush3.xpose.msk.msra.mxu0 %vm448_vm6, %v11116_v53  ;;  %15943 = vmatprep.mubr.msk.f32.mxu0 %vm16569_vm5, %v16568_v6 }
0x4d05   :  { %15951 = vmatprep.subr.mxu0 %v16568_v6 }
0x4d07   :  { %15944 = vmatmul.mubr.msk.f32.vlgmr.msra.gmra.mxu0 %vm448_vm6, %v11114_v11 }
0x4d08   :  { %15952 = vmatpush3.msra.mxu0 %v18083_v17  ;;  %15953 = vmatprep.mubr.msk.f32.mxu0 %vm16569_vm5, %v16568_v6 }
0x4d09   :  { %15961 = vmatprep.subr.mxu0 %v16568_v6 }
0x4dbf   :  { %v11109_v23 = vpop.f32.mrf.mxu1 }
0x4dc1   :  { %v15940_v28 = vpop.f32.mrf.mxu1 }
0x4dc3   :  { %v11036_v29 = vpop.f32.mrf.mxu0 }
0x4dc4   :  { %v11110_v32 = vadd.f32 %v11109_v23, %v11036_v29 }
0x4dc5   :  { %v15935_v45 = vpop.f32.mrf.mxu0 }
0x4dc7   :  { %v11187_v22 = vpop.f32.mrf.mxu0 }
0x4dc8   :  { %v11191_v35 = vmul.f32 0.35355338, %v11187_v22 }
0x4dc9   :  { %v15945_v25 = vpop.f32.mrf.mxu0 }
0x4dca   :  { %v11192_v4 = vsel %vm17466_vm11, %v11191_v35, -inf }
0x4dcb   :  { %v11193_v39 = vsel %vm448_vm6, %v11192_v4, -inf }
0x4dcc   :  { %11194 = vmax.xlane.f32.xlu1 %v11193_v39 }
0x4ddd   :  { %11354 = vrot.lane.b32.xlu1 %v17987_v63, %s18603_s14 }
0x4e55   :  { %v11195_v17 = vpop.xlane.xlu1 %11194 }
0x4e56   :  { %v11196_v42 = vsub.f32 %v11192_v4, %v11195_v17 }
0x4e58   :  { %v11197_v41 = vmul.f32 1.442695, %v11196_v42 }
0x4e59   :  { %v11355_v47 = vpop.permute.xlu1 %11354 }
0x4e5a   :  { %16424 = vpow2.f32 %v11197_v41 }
0x4e67   :  { %v16425_v7 = vpop.eup %16424 }
0x4e68   :  { %15949 = vmatmul.mubr.msk.f32.vlgmr.msra.gmra.mxu1 %vm448_vm6, %v16425_v7  ;;  %v11199_v44 = vsel %vm448_vm6, %v16425_v7, 0.0 }
0x4e69   :  { %15957 = vmatpush3.xpose.msk.msra.mxu1 %vm448_vm6, %v11357_v43  ;;  %11200 = vadd.xlane.f32.xlu1 %v11199_v44  ;;  %v14576_v43 = vld [vmem:[%s18591_s4 + $0x1] ss:$0 sm:$0xff] }
0x4e6a   :  { %15958 = vmatprep.mubr.msk.f32.mxu1 %vm16569_vm5, %v16568_v6  ;;  %15966 = vmatprep.subr.mxu1 %v16568_v6 }
0x4e6c   :  { %15959 = vmatmul.mubr.msk.f32.vlgmr.msra.gmra.mxu1 %vm448_vm6, %v11355_v47  ;;  %v14577_v47 = vld [vmem:[%s18593_s10 + $0x1] ss:$0 sm:$0xff] }
0x4e6d   :  { %15967 = vmatpush3.msra.mxu1 %v18116_v38  ;;  %15968 = vmatprep.mubr.msk.f32.mxu1 %vm16569_vm5, %v16568_v6 }
0x4e6e   :  { %15982 = vmatprep.subr.mxu1 %v14589_v19 }
0x4ef2   :  { %v11201_v48 = vpop.xlane.xlu1 %11200 }
0x4ef3   :  { %16426 = vrcp.f32 %v11201_v48 }
0x4f00   :  { %v16427_v49 = vpop.eup %16426 }
0x4f28   :  { %v11274_v36 = vpop.f32.mrf.mxu1 }
0x4f29   :  { %v11279_v3 = vmul.f32 %v16427_v49, %v11274_v36  ;;  %v14581_v36 = vld [vmem:[%s18592_s7 + $0x38] sm:$0xff] }
0x4f2a   :  { %v15950_v50 = vpop.f32.mrf.mxu1 }
0x4f2b   :  { %15954 = vmatmul.mubr.msk.f32.vlgmr.msra.gmra.mxu0 %vm448_vm6, %v11279_v3  ;;  %v14580_v3 = vld [vmem:[%s18592_s7 + $0x30] sm:$0xff]  ;;  %v14579_v50 = vld [vmem:[%s18592_s7 + $0x28] sm:$0xff] }
0x4f2c   :  { %v11428_v33 = vpop.f32.mrf.mxu1  ;;  %15963 = vmatprep.mubr.msk.f32.mxu0 %vm16569_vm5, %v16568_v6 }
0x4f2d   :  { %v11432_v51 = vmul.f32 0.35355338, %v11428_v33  ;;  %v14578_v33 = vld [vmem:[%s18592_s7 + $0x20] sm:$0xff] }
0x4f2e   :  { %v15960_v13 = vpop.f32.mrf.mxu1 }
0x4f2f   :  { %v11433_v38 = vsel %vm17466_vm11, %v11432_v51, -inf }
0x4f30   :  { %v11434_v2 = vsel %vm448_vm6, %v11433_v38, -inf }
0x4f31   :  { %11435 = vmax.xlane.f32.xlu0 %v11434_v2 }
0x4f47   :  { %11443 = vrot.lane.b32.xlu0 %v17987_v63, %s18606_s24  ;;  %v11609_v63 = vsel %vm304_vm4, %v18195_v60, 0.0 }
0x4fba   :  { %v11436_v52 = vpop.xlane.xlu0 %11435 }
0x4fbb   :  { %v11437_v40 = vsub.f32 %v11433_v38, %v11436_v52 }
0x4fbd   :  { %v11438_v54 = vmul.f32 1.442695, %v11437_v40 }
0x4fbe   :  { %v11444_v27 = vpop.permute.xlu0 %11443 }
0x4fbf   :  { %16428 = vpow2.f32 %v11438_v54  ;;  %15962 = vmatpush3.msra.mxu0 %v11444_v27  ;;  %v14583_v27 = vld [vmem:[%s18594_s11 + $0x1] ss:$0 sm:$0xff] }
0x4fc0   :  { %15971 = vmatprep.subr.mxu0 %v14581_v36 }
0x4fcc   :  { %v16429_v21 = vpop.eup %16428 }
0x4fcd   :  { %15964 = vmatmul.mubr.msk.f32.vlgmr.msra.gmra.mxu0 %vm448_vm6, %v16429_v21  ;;  %v11440_v59 = vsel %vm448_vm6, %v16429_v21, 0.0 }
0x4fce   :  { %11441 = vadd.xlane.f32.xlu1 %v11440_v59  ;;  %15972 = vmatpush3.msra.mxu0 %v14581_v36 }
0x4fcf   :  { %15973 = vmatprep.subr.mxu0 %v14580_v3 }
0x4fd0   :  { %15974 = vmatpush3.msra.mxu0 %v14580_v3 }
0x4fd1   :  { %15975 = vmatprep.subr.mxu0 %v14579_v50 }
0x4fd2   :  { %11610 = vadd.xlane.f32.xlu1 %v11609_v63  ;;  %15976 = vmatpush3.msra.mxu0 %v14579_v50 }
0x4fd3   :  { %15977 = vmatprep.subr.mxu0 %v14578_v33 }
0x4fd4   :  { %15978 = vmatpush3.msra.mxu0 %v14578_v33 }
0x4fd5   :  { %15993 = vmatprep.subr.mxu0 %v16568_v6 }
0x4feb   :  { %v11349_v57 = vpop.f32.mrf.mxu0 }
0x4fec   :  { %v11353_v8 = vadd.f32 %v11349_v57, %v11110_v32 }
0x4fed   :  { %v15955_v10 = vpop.f32.mrf.mxu0 }
0x5057   :  { %v11442_v26 = vpop.xlane.xlu1 %11441 }
0x5058   :  { %16430 = vrcp.f32 %v11442_v26 }
0x505b   :  { %v11611_v1 = vpop.xlane.xlu1 %11610 }
0x505c   :  { %v11615_v61 = vmul.f32 0.03125, %v11611_v1 }
0x505e   :  { %v11617_v30 = vsub.f32 %v18195_v60, %v11615_v61 }
0x5060   :  { %v11619_v23 = vmul.f32 %v11617_v30, %v11617_v30 }
0x5062   :  { %v11621_v22 = vsel %vm304_vm4, %v11619_v23, 0.0  ;;  %v18276_v23 = vld [vmem:[%s18595_s1 + $0x20] sm:$0xff] }
0x5065   :  { %v16431_v31 = vpop.eup %16430 }
0x508d   :  { %v11515_v37 = vpop.f32.mrf.mxu0 }
0x508e   :  { %v11520_v53 = vmul.f32 %v16431_v31, %v11515_v37 }
0x508f   :  { %v15965_v11 = vpop.f32.mrf.mxu0 }
0x5090   :  { %15969 = vmatmul.mubr.msk.f32.vlgmr.msra.gmra.mxu1 %vm448_vm6, %v11520_v53 }
0x5091   :  { %15983 = vmatpush3.msra.mxu1 %v14589_v19  ;;  %15990 = vmatprep.mubr.msk.f32.mxu1 %vm304_vm4, %v17668_v12 }
0x5092   :  { %15984 = vmatprep.subr.mxu1 %v14588_v18 }
0x5093   :  { %15985 = vmatpush3.msra.mxu1 %v14588_v18 }
0x5094   :  { %15986 = vmatprep.subr.mxu1 %v14587_v5 }
0x5095   :  { %15987 = vmatpush3.msra.mxu1 %v14587_v5 }
0x5096   :  { %15988 = vmatprep.subr.mxu1 %v14586_v16 }
0x5097   :  { %15989 = vmatpush3.msra.mxu1 %v14586_v16 }
0x5098   :  { %15991 = vmatmul.mubr.msk.f32.vlgmr.msra.gmra.mxu1 %vm304_vm4, %v17678_v9  ;;  %15998 = vmatprep.subr.mxu1 %v16568_v6 }
0x5099   :  { %16000 = vmatprep.mubr.msk.f32.mxu1 %vm16569_vm5, %v16568_v6 }
0x5150   :  { %v11590_v12 = vpop.f32.mrf.mxu1 }
0x5151   :  { %v11594_v0 = vadd.f32 %v11590_v12, %v11353_v8 }
0x5152   :  { %v15970_v46 = vpop.f32.mrf.mxu1 }
0x5153   :  { %v11602_v55 = vadd.f32 %v14573_v56, %v11594_v0 }
0x5155   :  { %v18215_v62 = vadd.f32 %v11602_v55, %v17965_v24 }
0x5157   :  { %v11612_v9 = vsel %vm304_vm4, %v18215_v62, 0.0 }
0x5158   :  { %v15992_v28 = vpop.f32.mrf.mxu1  ;;  %11613 = vadd.xlane.f32.xlu1 %v11612_v9 }
0x5159   :  { %v18220_v29 = vadd.f32 %v15992_v28, %v14591_v34 }
0x515a   :  { %v11824_v32 = vpop.f32.mrf.mxu1 }
0x515b   :  { %v18222_v45 = vadd.f32 %v14591_v34, %v11824_v32 }
0x515c   :  { %11622 = vadd.xlane.f32.xlu1 %v11621_v22 }
0x515d   :  { %12007 = vrot.lane.b32.xlu0 %v18222_v45, %s16573_s21 }
0x51cf   :  { %v12008_v63 = vpop.permute.xlu0 %12007 }
0x51e1   :  { %v11614_v24 = vpop.xlane.xlu1 %11613 }
0x51e2   :  { %v11616_v35 = vmul.f32 0.03125, %v11614_v24 }
0x51e4   :  { %v11618_v25 = vsub.f32 %v18215_v62, %v11616_v35 }
0x51e5   :  { %v11623_v4 = vpop.xlane.xlu1 %11622 }
0x51e6   :  { %v11627_v39 = vmul.f32 0.03125, %v11623_v4  ;;  %v11620_v17 = vmul.f32 %v11618_v25, %v11618_v25 }
0x51e8   :  { %v11629_v42 = vadd.f32 1e-05, %v11627_v39  ;;  %v11624_v41 = vsel %vm304_vm4, %v11620_v17, 0.0 }
0x51e9   :  { %11625 = vadd.xlane.f32.xlu1 %v11624_v41 }
0x51ea   :  { %16432 = vrsqrt.f32 %v11629_v42 }
0x51f7   :  { %v16433_v7 = vpop.eup %16432 }
0x51f8   :  { %v11633_v44 = vmul.f32 %v16433_v7, %v11617_v30 }
0x51fa   :  { %v11641_v48 = vmul.f32 %v14576_v43, %v11633_v44 }
0x51fc   :  { %v11649_v49 = vadd.f32 %v14577_v47, %v11641_v48 }
0x51fe   :  { %15979 = vmatprep.mubr.msk.f32.mxu0 %vm304_vm4, %v11649_v49 }
0x5272   :  { %v11626_v51 = vpop.xlane.xlu1 %11625 }
0x5273   :  { %v11628_v13 = vmul.f32 0.03125, %v11626_v51 }
0x5275   :  { %v11630_v38 = vadd.f32 1e-05, %v11628_v13 }
0x5277   :  { %16434 = vrsqrt.f32 %v11630_v38 }
0x5284   :  { %v16435_v2 = vpop.eup %16434 }
0x5285   :  { %v11634_v52 = vmul.f32 %v16435_v2, %v11618_v25  ;;  %v18287_v25 = vld [vmem:[%s18595_s1 + $0x28] sm:$0xff] }
0x5287   :  { %v11642_v40 = vmul.f32 %v14576_v43, %v11634_v52 }
0x5289   :  { %v11650_v54 = vadd.f32 %v14577_v47, %v11642_v40 }
0x528b   :  { %15980 = vmatmul.mubr.msk.f32.vlgmr.msra.gmra.mxu0 %vm304_vm4, %v11650_v54 }
0x528c   :  { %15994 = vmatpush3.xpose.msk.msra.mxu0 %vm448_vm6, %v18222_v45  ;;  %15995 = vmatprep.mubr.msk.f32.mxu0 %vm16569_vm5, %v16568_v6 }
0x528d   :  { %16003 = vmatprep.subr.mxu0 %v16568_v6 }
0x534b   :  { %v15981_v56 = vpop.f32.mrf.mxu0 }
0x534c   :  { %v18244_v58 = vadd.f32 %v15981_v56, %v14583_v27 }
0x534d   :  { %v11736_v21 = vpop.f32.mrf.mxu0 }
0x534e   :  { %v11737_v59 = vadd.f32 %v14583_v27, %v11736_v21 }
0x5350   :  { %12005 = vrot.lane.b32.xlu1 %v11737_v59, %s16573_s21  ;;  %15996 = vmatmul.mubr.msk.f32.vlgmr.msra.gmra.mxu0 %vm448_vm6, %v11737_v59 }
0x5351   :  { %16004 = vmatpush3.xpose.msk.msra.mxu0 %vm448_vm6, %v12008_v63  ;;  %16005 = vmatprep.mubr.msk.f32.mxu0 %vm16569_vm5, %v16568_v6  ;;  %v18326_v63 = vld [vmem:[%s18595_s1 + $0x30] sm:$0xff] }
0x5352   :  { %16013 = vmatprep.subr.mxu0 %v16568_v6 }
0x53c2   :  { %v12006_v57 = vpop.permute.xlu1 %12005 }
0x53c3   :  { %16006 = vmatmul.mubr.msk.f32.vlgmr.msra.gmra.mxu0 %vm448_vm6, %v12006_v57 }
0x53c4   :  { %16015 = vmatprep.mubr.msk.f32.mxu0 %vm16569_vm5, %v16568_v6  ;;  %16014 = vmatpush3.msra.mxu0 %v18287_v25 }
0x53c5   :  { %16023 = vmatprep.subr.mxu0 %v16568_v6 }
0x5410   :  { %v11912_v8 = vpop.f32.mrf.mxu0 }
0x5411   :  { %v11916_v10 = vmul.f32 0.35355338, %v11912_v8 }
0x5412   :  { %v15997_v19 = vpop.f32.mrf.mxu0 }
0x5413   :  { %v11917_v26 = vsel %vm182_vm7, %v11916_v10, -inf }
0x5414   :  { %v11918_v31 = vsel %vm448_vm6, %v11917_v26, -inf }
0x5415   :  { %11919 = vmax.xlane.f32.xlu0 %v11918_v31 }
0x542b   :  { %11927 = vrot.lane.b32.xlu0 %v18222_v45, %s16571_s5 }
0x5483   :  { %v12079_v37 = vpop.f32.mrf.mxu0 }
0x5484   :  { %v12083_v53 = vmul.f32 0.35355338, %v12079_v37 }
0x5485   :  { %v16007_v11 = vpop.f32.mrf.mxu0 }
0x5486   :  { %v12084_v18 = vsel %vm182_vm7, %v12083_v53, -inf }
0x5487   :  { %v12085_v5 = vsel %vm448_vm6, %v12084_v18, -inf }
0x5488   :  { %12086 = vmax.xlane.f32.xlu1 %v12085_v5 }
0x5499   :  { %12094 = vrot.lane.b32.xlu1 %v18222_v45, %s16572_s9 }
0x549d   :  { %12320 = vrot.lane.b32.xlu1 %v18222_v45, %s18604_s29 }
0x549e   :  { %v11920_v16 = vpop.xlane.xlu0 %11919 }
0x549f   :  { %v11921_v1 = vsub.f32 %v11917_v26, %v11920_v16 }
0x54a1   :  { %v11922_v61 = vmul.f32 1.442695, %v11921_v1  ;;  %12318 = vrot.lane.b32.xlu1 %v11737_v59, %s18604_s29 }
0x54a2   :  { %v11928_v12 = vpop.permute.xlu0 %11927 }
0x54a3   :  { %16436 = vpow2.f32 %v11922_v61  ;;  %15999 = vmatpush3.msra.mxu1 %v11928_v12 }
0x54a4   :  { %16008 = vmatprep.subr.mxu1 %v16568_v6 }
0x54b0   :  { %v16437_v0 = vpop.eup %16436 }
0x54b1   :  { %16001 = vmatmul.mubr.msk.f32.vlgmr.msra.gmra.mxu1 %vm448_vm6, %v16437_v0  ;;  %v11924_v46 = vsel %vm448_vm6, %v16437_v0, 0.0 }
0x54b2   :  { %16010 = vmatprep.mubr.msk.f32.mxu1 %vm16569_vm5, %v16568_v6 }
0x54c5   :  { %11925 = vadd.xlane.f32.xlu1 %v11924_v46 }
0x54d6   :  { %12559 = vrot.lane.b32.xlu1 %v11737_v59, %s18603_s14 }
0x5511   :  { %v12087_v30 = vpop.xlane.xlu1 %12086 }
0x5512   :  { %v12088_v55 = vsub.f32 %v12084_v18, %v12087_v30 }
0x5514   :  { %v12089_v34 = vmul.f32 1.442695, %v12088_v55 }
0x5515   :  { %v12095_v9 = vpop.permute.xlu1 %12094 }
0x5516   :  { %16438 = vpow2.f32 %v12089_v34  ;;  %16009 = vmatpush3.msra.mxu1 %v12095_v9  ;;  %v18360_v9 = vld [vmem:[%s18595_s1 + $0x38] sm:$0xff] }
0x5517   :  { %16018 = vmatprep.subr.mxu1 %v16568_v6 }
0x5519   :  { %v12321_v22 = vpop.permute.xlu1 %12320 }
0x551d   :  { %v12319_v24 = vpop.permute.xlu1 %12318 }
0x5523   :  { %v16439_v28 = vpop.eup %16438 }
0x5524   :  { %16011 = vmatmul.mubr.msk.f32.vlgmr.msra.gmra.mxu1 %vm448_vm6, %v16439_v28  ;;  %v12091_v32 = vsel %vm448_vm6, %v16439_v28, 0.0 }
0x5525   :  { %12092 = vadd.xlane.f32.xlu0 %v12091_v32  ;;  %16019 = vmatpush3.msra.mxu1 %v18276_v23 }
0x5526   :  { %16020 = vmatprep.mubr.msk.f32.mxu1 %vm16569_vm5, %v16568_v6  ;;  %16028 = vmatprep.subr.mxu1 %v16568_v6 }
0x553b   :  { %12407 = vrot.lane.b32.xlu0 %v18222_v45, %s16574_s15 }
0x554e   :  { %v11926_v35 = vpop.xlane.xlu1 %11925 }
0x554f   :  { %16440 = vrcp.f32 %v11926_v35 }
0x5552   :  { %v12560_v59 = vpop.permute.xlu1 %12559 }
0x555c   :  { %v16441_v4 = vpop.eup %16440 }
0x5571   :  { %v11999_v39 = vpop.f32.mrf.mxu1 }
0x5572   :  { %v12004_v17 = vmul.f32 %v16441_v4, %v11999_v39 }
0x5573   :  { %v16002_v42 = vpop.f32.mrf.mxu1 }
0x5574   :  { %16021 = vmatmul.mubr.msk.f32.vlgmr.msra.gmra.mxu1 %vm448_vm6, %v12004_v17 }
0x5575   :  { %16030 = vmatprep.mubr.msk.f32.mxu1 %vm16569_vm5, %v16568_v6 }
0x55ae   :  { %v12093_v41 = vpop.xlane.xlu0 %12092 }
0x55af   :  { %16442 = vrcp.f32 %v12093_v41 }
0x55b2   :  { %v12408_v7 = vpop.permute.xlu0 %12407 }
0x55b3   :  { %16029 = vmatpush3.msra.mxu1 %v12408_v7 }
0x55b4   :  { %16038 = vmatprep.subr.mxu1 %v16568_v6 }
0x55bc   :  { %v16443_v43 = vpop.eup %16442 }
0x55e4   :  { %v12166_v44 = vpop.f32.mrf.mxu1 }
0x55e5   :  { %v12171_v47 = vmul.f32 %v16443_v43, %v12166_v44 }
0x55e6   :  { %v16012_v48 = vpop.f32.mrf.mxu1 }
0x55e7   :  { %16016 = vmatmul.mubr.msk.f32.vlgmr.msra.gmra.mxu0 %vm448_vm6, %v12171_v47 }
0x55e8   :  { %16024 = vmatpush3.xpose.msk.msra.mxu0 %vm448_vm6, %v12321_v22  ;;  %16025 = vmatprep.mubr.msk.f32.mxu0 %vm16569_vm5, %v16568_v6 }
0x55e9   :  { %16033 = vmatprep.subr.mxu0 %v16568_v6 }
0x55eb   :  { %16026 = vmatmul.mubr.msk.f32.vlgmr.msra.gmra.mxu0 %vm448_vm6, %v12319_v24 }
0x55ec   :  { %16035 = vmatprep.mubr.msk.f32.mxu0 %vm16569_vm5, %v16568_v6  ;;  %16034 = vmatpush3.msra.mxu0 %v18326_v63 }
0x55ed   :  { %16043 = vmatprep.subr.mxu0 %v16568_v6 }
0x5634   :  { %v18303_v49 = vpop.f32.mrf.mxu1 }
0x5636   :  { %v16022_v36 = vpop.f32.mrf.mxu1 }
0x56a7   :  { %v18305_v3 = vpop.f32.mrf.mxu0 }
0x56a8   :  { %v12315_v46 = vadd.f32 %v18303_v49, %v18305_v3 }
0x56a9   :  { %v16017_v50 = vpop.f32.mrf.mxu0 }
0x56ab   :  { %v12392_v33 = vpop.f32.mrf.mxu0 }
0x56ac   :  { %v12396_v51 = vmul.f32 0.35355338, %v12392_v33 }
0x56ad   :  { %v16027_v13 = vpop.f32.mrf.mxu0 }
0x56ae   :  { %v12397_v38 = vsel %vm182_vm7, %v12396_v51, -inf }
0x56af   :  { %v12398_v2 = vsel %vm448_vm6, %v12397_v38, -inf }
0x56b0   :  { %12399 = vmax.xlane.f32.xlu0 %v12398_v2 }
0x56c6   :  { %12561 = vrot.lane.b32.xlu0 %v18222_v45, %s18603_s14 }
0x5739   :  { %v12400_v52 = vpop.xlane.xlu0 %12399 }
0x573a   :  { %v12401_v40 = vsub.f32 %v12397_v38, %v12400_v52 }
0x573c   :  { %v12402_v54 = vmul.f32 1.442695, %v12401_v40 }
0x573d   :  { %v12562_v56 = vpop.permute.xlu0 %12561 }
0x573e   :  { %16444 = vpow2.f32 %v12402_v54 }
0x574b   :  { %v16445_v27 = vpop.eup %16444 }
0x574c   :  { %16031 = vmatmul.mubr.msk.f32.vlgmr.msra.gmra.mxu1 %vm448_vm6, %v16445_v27  ;;  %v12404_v21 = vsel %vm448_vm6, %v16445_v27, 0.0 }
0x574d   :  { %16039 = vmatpush3.xpose.msk.msra.mxu1 %vm448_vm6, %v12562_v56  ;;  %12405 = vadd.xlane.f32.xlu0 %v12404_v21 }
0x574e   :  { %16040 = vmatprep.mubr.msk.f32.mxu1 %vm16569_vm5, %v16568_v6  ;;  %16048 = vmatprep.subr.mxu1 %v16568_v6 }
0x5750   :  { %16041 = vmatmul.mubr.msk.f32.vlgmr.msra.gmra.mxu1 %vm448_vm6, %v12560_v59 }
0x5751   :  { %16050 = vmatprep.mubr.msk.f32.mxu1 %vm16569_vm5, %v16568_v6  ;;  %16049 = vmatpush3.msra.mxu1 %v18360_v9 }
0x5752   :  { %16058 = vmatprep.subr.mxu1 %v16568_v6 }
0x5763   :  { %12648 = vrot.lane.b32.xlu0 %v18222_v45, %s18605_s19 }
0x5767   :  { %12965 = vrot.lane.b32.xlu0 %v18244_v58, %s16573_s21 }
0x57d6   :  { %v12406_v57 = vpop.xlane.xlu0 %12405 }
0x57d7   :  { %16446 = vrcp.f32 %v12406_v57 }
0x57da   :  { %v12649_v31 = vpop.permute.xlu0 %12648 }
0x57de   :  { %v12966_v0 = vpop.permute.xlu0 %12965 }
0x57e4   :  { %v16447_v8 = vpop.eup %16446 }
0x580c   :  { %v12479_v10 = vpop.f32.mrf.mxu1 }
0x580d   :  { %v12484_v19 = vmul.f32 %v16447_v8, %v12479_v10 }
0x580e   :  { %v16032_v26 = vpop.f32.mrf.mxu1 }
0x580f   :  { %16036 = vmatmul.mubr.msk.f32.vlgmr.msra.gmra.mxu0 %vm448_vm6, %v12484_v19 }
0x5810   :  { %16044 = vmatpush3.msra.mxu0 %v12649_v31  ;;  %v12633_v45 = vpop.f32.mrf.mxu1  ;;  %16045 = vmatprep.mubr.msk.f32.mxu0 %vm16569_vm5, %v16568_v6 }
0x5811   :  { %v12637_v37 = vmul.f32 0.35355338, %v12633_v45  ;;  %16053 = vmatprep.subr.mxu0 %v16568_v6 }
0x5812   :  { %v16042_v53 = vpop.f32.mrf.mxu1 }
0x5813   :  { %v12638_v11 = vsel %vm182_vm7, %v12637_v37, -inf }
0x5814   :  { %v12639_v18 = vsel %vm448_vm6, %v12638_v11, -inf }
0x5815   :  { %12640 = vmax.xlane.f32.xlu1 %v12639_v18 }
0x5826   :  { %12967 = vrot.lane.b32.xlu1 %v18220_v29, %s16573_s21 }
0x589e   :  { %v12641_v5 = vpop.xlane.xlu1 %12640 }
0x589f   :  { %v12642_v16 = vsub.f32 %v12638_v11, %v12641_v5 }
0x58a1   :  { %v12643_v1 = vmul.f32 1.442695, %v12642_v16 }
0x58a2   :  { %v12968_v14 = vpop.permute.xlu1 %12967 }
0x58a3   :  { %16448 = vpow2.f32 %v12643_v1 }
0x58b0   :  { %v16449_v61 = vpop.eup %16448 }
0x58b1   :  { %16046 = vmatmul.mubr.msk.f32.vlgmr.msra.gmra.mxu0 %vm448_vm6, %v16449_v61  ;;  %v12645_v12 = vsel %vm448_vm6, %v16449_v61, 0.0 }
0x58b2   :  { %16054 = vmatpush3.xpose.msk.msra.mxu0 %vm448_vm6, %v18220_v29  ;;  %12646 = vadd.xlane.f32.xlu0 %v12645_v12 }
0x58b3   :  { %16055 = vmatprep.mubr.msk.f32.mxu0 %vm16569_vm5, %v16568_v6  ;;  %16063 = vmatprep.subr.mxu0 %v16568_v6 }
0x58b5   :  { %16056 = vmatmul.mubr.msk.f32.vlgmr.msra.gmra.mxu0 %vm448_vm6, %v18244_v58 }
0x58b6   :  { %16064 = vmatpush3.xpose.msk.msra.mxu0 %vm448_vm6, %v12968_v14  ;;  %16065 = vmatprep.mubr.msk.f32.mxu0 %vm16569_vm5, %v16568_v6 }
0x58b7   :  { %16073 = vmatprep.subr.mxu0 %v16568_v6 }
0x58b9   :  { %16066 = vmatmul.mubr.msk.f32.vlgmr.msra.gmra.mxu0 %vm448_vm6, %v12966_v0 }
0x58ba   :  { %16074 = vmatpush3.msra.mxu0 %v18287_v25  ;;  %16075 = vmatprep.mubr.msk.f32.mxu0 %vm16569_vm5, %v16568_v6 }
0x58bb   :  { %16083 = vmatprep.subr.mxu0 %v16568_v6 }
0x58cf   :  { %v12554_v30 = vpop.f32.mrf.mxu0 }
0x58d0   :  { %v12558_v55 = vadd.f32 %v12554_v30, %v12315_v46 }
0x58d1   :  { %v16037_v34 = vpop.f32.mrf.mxu0 }
0x593b   :  { %v12647_v28 = vpop.xlane.xlu0 %12646 }
0x593c   :  { %16450 = vrcp.f32 %v12647_v28 }
0x5949   :  { %v16451_v32 = vpop.eup %16450 }
0x5971   :  { %v12720_v22 = vpop.f32.mrf.mxu0 }
0x5972   :  { %v12725_v24 = vmul.f32 %v16451_v32, %v12720_v22 }
0x5973   :  { %v16047_v35 = vpop.f32.mrf.mxu0 }
0x5974   :  { %16051 = vmatmul.mubr.msk.f32.vlgmr.msra.gmra.mxu1 %vm448_vm6, %v12725_v24 }
0x5975   :  { %v12872_v25 = vpop.f32.mrf.mxu0  ;;  %16060 = vmatprep.mubr.msk.f32.mxu1 %vm16569_vm5, %v16568_v6 }
0x5976   :  { %v12876_v4 = vmul.f32 0.35355338, %v12872_v25 }
0x5977   :  { %v16057_v39 = vpop.f32.mrf.mxu0 }
0x5978   :  { %v12877_v17 = vsel %vm187_vm8, %v12876_v4, -inf }
0x5979   :  { %v13039_v42 = vpop.f32.mrf.mxu0  ;;  %v12878_v41 = vsel %vm448_vm6, %v12877_v17, -inf }
0x597a   :  { %v13043_v7 = vmul.f32 0.35355338, %v13039_v42  ;;  %12879 = vmax.xlane.f32.xlu1 %v12878_v41 }
0x597b   :  { %v16067_v43 = vpop.f32.mrf.mxu0 }
0x597c   :  { %v13044_v44 = vsel %vm187_vm8, %v13043_v7, -inf }
0x597d   :  { %v13045_v47 = vsel %vm448_vm6, %v13044_v44, -inf }
0x597e   :  { %13046 = vmax.xlane.f32.xlu0 %v13045_v47 }
0x598b   :  { %13054 = vrot.lane.b32.xlu1 %v18220_v29, %s16572_s9 }
0x598f   :  { %13280 = vrot.lane.b32.xlu1 %v18220_v29, %s18604_s29 }
0x5993   :  { %13278 = vrot.lane.b32.xlu1 %v18244_v58, %s18604_s29 }
0x5994   :  { %12887 = vrot.lane.b32.xlu0 %v18220_v29, %s16571_s5 }
0x5a03   :  { %v12880_v48 = vpop.xlane.xlu1 %12879 }
0x5a04   :  { %v12881_v49 = vsub.f32 %v12877_v17, %v12880_v48  ;;  %v14631_v48 = vld [vmem:[%s18596_s2 + $0x1] ss:$0 sm:$0xff] }
0x5a06   :  { %v12882_v36 = vmul.f32 1.442695, %v12881_v49 }
0x5a07   :  { %v13047_v3 = vpop.xlane.xlu0 %13046  ;;  %v13055_v38 = vpop.permute.xlu1 %13054 }
0x5a08   :  { %16452 = vpow2.f32 %v12882_v36  ;;  %v13048_v50 = vsub.f32 %v13044_v44, %v13047_v3 }
0x5a0a   :  { %v13049_v33 = vmul.f32 1.442695, %v13048_v50 }
0x5a0b   :  { %v12888_v51 = vpop.permute.xlu0 %12887  ;;  %v13281_v21 = vpop.permute.xlu1 %13280 }
0x5a0c   :  { %16454 = vpow2.f32 %v13049_v33  ;;  %16059 = vmatpush3.msra.mxu1 %v12888_v51 }
0x5a0d   :  { %16068 = vmatprep.subr.mxu1 %v16568_v6 }
0x5a0f   :  { %v13279_v59 = vpop.permute.xlu1 %13278 }
0x5a15   :  { %v16453_v13 = vpop.eup %16452 }
0x5a16   :  { %16061 = vmatmul.mubr.msk.f32.vlgmr.msra.gmra.mxu1 %vm448_vm6, %v16453_v13  ;;  %v12884_v2 = vsel %vm448_vm6, %v16453_v13, 0.0 }
0x5a17   :  { %16069 = vmatpush3.msra.mxu1 %v13055_v38  ;;  %12885 = vadd.xlane.f32.xlu1 %v12884_v2 }
0x5a18   :  { %16070 = vmatprep.mubr.msk.f32.mxu1 %vm16569_vm5, %v16568_v6  ;;  %16078 = vmatprep.subr.mxu1 %v16568_v6 }
0x5a19   :  { %v16455_v52 = vpop.eup %16454 }
0x5a1a   :  { %16071 = vmatmul.mubr.msk.f32.vlgmr.msra.gmra.mxu1 %vm448_vm6, %v16455_v52  ;;  %v13051_v40 = vsel %vm448_vm6, %v16455_v52, 0.0 }
0x5a1b   :  { %13052 = vadd.xlane.f32.xlu0 %v13051_v40  ;;  %16079 = vmatpush3.msra.mxu1 %v18276_v23 }
0x5a1c   :  { %16080 = vmatprep.mubr.msk.f32.mxu1 %vm16569_vm5, %v16568_v6  ;;  %16088 = vmatprep.subr.mxu1 %v16568_v6 }
0x5a28   :  { %13521 = vrot.lane.b32.xlu1 %v18220_v29, %s18603_s14 }
0x5a34   :  { %v12795_v54 = vpop.f32.mrf.mxu1 }
0x5a35   :  { %v18395_v27 = vadd.f32 %v12795_v54, %v12558_v55 }
0x5a36   :  { %v16052_v56 = vpop.f32.mrf.mxu1 }
0x5a37   :  { %v13766_v49 = vadd.f32 %v14631_v48, %v18395_v27  ;;  %v14134_v27 = vld [vmem:[%s18607_s0] sm:$0xff] }
0x5a39   :  { %v18439_v3 = vadd.f32 %v13766_v49, %v18195_v60  ;;  %v14647_v49 = vld [vmem:[%s18600_s23 + $0x98] sm:$0xff] }
0x5a3b   :  { %v13774_v50 = vsel %vm304_vm4, %v18439_v3, 0.0 }
0x5aa0   :  { %v12886_v57 = vpop.xlane.xlu1 %12885 }
0x5aa1   :  { %16456 = vrcp.f32 %v12886_v57 }
0x5aa4   :  { %v13053_v8 = vpop.xlane.xlu0 %13052  ;;  %v13522_v32 = vpop.permute.xlu1 %13521 }
0x5aa5   :  { %16458 = vrcp.f32 %v13053_v8 }
0x5aae   :  { %v16457_v10 = vpop.eup %16456 }
0x5ab2   :  { %v16459_v31 = vpop.eup %16458 }
0x5ad6   :  { %v12959_v23 = vpop.f32.mrf.mxu1 }
0x5ad7   :  { %v12964_v19 = vmul.f32 %v16457_v10, %v12959_v23 }
0x5ad8   :  { %v16062_v26 = vpop.f32.mrf.mxu1 }
0x5ad9   :  { %16081 = vmatmul.mubr.msk.f32.vlgmr.msra.gmra.mxu1 %vm448_vm6, %v12964_v19  ;;  %v18450_v26 = vld [vmem:[%s18597_s3 + $0x1] ss:$0 sm:$0xff] }
0x5ada   :  { %v13126_v45 = vpop.f32.mrf.mxu1  ;;  %16090 = vmatprep.mubr.msk.f32.mxu1 %vm16569_vm5, %v16568_v6 }
0x5adb   :  { %v13131_v37 = vmul.f32 %v16459_v31, %v13126_v45  ;;  %v18453_v45 = vld [vmem:[%s18598_s8 + $0x1] ss:$0 sm:$0xff] }
0x5adc   :  { %v16072_v53 = vpop.f32.mrf.mxu1 }
0x5add   :  { %16076 = vmatmul.mubr.msk.f32.vlgmr.msra.gmra.mxu0 %vm448_vm6, %v13131_v37 }
0x5ade   :  { %16084 = vmatpush3.xpose.msk.msra.mxu0 %vm448_vm6, %v13281_v21  ;;  %16085 = vmatprep.mubr.msk.f32.mxu0 %vm16569_vm5, %v16568_v6 }
0x5adf   :  { %16093 = vmatprep.subr.mxu0 %v16568_v6 }
0x5ae1   :  { %16086 = vmatmul.mubr.msk.f32.vlgmr.msra.gmra.mxu0 %vm448_vm6, %v13279_v59 }
0x5ae2   :  { %16094 = vmatpush3.msra.mxu0 %v18326_v63  ;;  %16095 = vmatprep.mubr.msk.f32.mxu0 %vm16569_vm5, %v16568_v6 }
0x5ae3   :  { %16103 = vmatprep.subr.mxu0 %v16568_v6 }
0x5b99   :  { %v13274_v11 = vpop.f32.mrf.mxu1 }
0x5b9b   :  { %v16082_v18 = vpop.f32.mrf.mxu1 }
0x5b9d   :  { %v13201_v5 = vpop.f32.mrf.mxu0 }
0x5b9e   :  { %v13275_v16 = vadd.f32 %v13274_v11, %v13201_v5 }
0x5b9f   :  { %v16077_v1 = vpop.f32.mrf.mxu0 }
0x5ba1   :  { %v13352_v61 = vpop.f32.mrf.mxu0 }
0x5ba2   :  { %v13356_v12 = vmul.f32 0.35355338, %v13352_v61 }
0x5ba3   :  { %v16087_v14 = vpop.f32.mrf.mxu0 }
0x5ba4   :  { %v13357_v0 = vsel %vm187_vm8, %v13356_v12, -inf }
0x5ba5   :  { %v13358_v46 = vsel %vm448_vm6, %v13357_v0, -inf }
0x5ba6   :  { %13359 = vmax.xlane.f32.xlu0 %v13358_v46 }
0x5bbc   :  { %13367 = vrot.lane.b32.xlu0 %v18220_v29, %s16574_s15 }
0x5bc0   :  { %13519 = vrot.lane.b32.xlu0 %v18244_v58, %s18603_s14 }
0x5c2f   :  { %v13360_v63 = vpop.xlane.xlu0 %13359 }
0x5c30   :  { %v13361_v30 = vsub.f32 %v13357_v0, %v13360_v63 }
0x5c32   :  { %v13362_v55 = vmul.f32 1.442695, %v13361_v30  ;;  %v14639_v30 = vld [vmem:[%s18599_s28 + $0x38] sm:$0xff] }
0x5c33   :  { %v13368_v34 = vpop.permute.xlu0 %13367 }
0x5c34   :  { %16460 = vpow2.f32 %v13362_v55  ;;  %16089 = vmatpush3.msra.mxu1 %v13368_v34  ;;  %v14637_v55 = vld [vmem:[%s18599_s28 + $0x28] sm:$0xff]  ;;  %v14636_v34 = vld [vmem:[%s18599_s28 + $0x20] sm:$0xff] }
0x5c35   :  { %16098 = vmatprep.subr.mxu1 %v16568_v6 }
0x5c37   :  { %v13520_v58 = vpop.permute.xlu0 %13519 }
0x5c41   :  { %v16461_v28 = vpop.eup %16460 }
0x5c42   :  { %16091 = vmatmul.mubr.msk.f32.vlgmr.msra.gmra.mxu1 %vm448_vm6, %v16461_v28  ;;  %v13364_v22 = vsel %vm448_vm6, %v16461_v28, 0.0  ;;  %v14659_v28 = vld [vmem:[%s18600_s23 + $0xf8] sm:$0xff] }
0x5c43   :  { %16099 = vmatpush3.xpose.msk.msra.mxu1 %vm448_vm6, %v13522_v32  ;;  %13365 = vadd.xlane.f32.xlu0 %v13364_v22  ;;  %v14658_v32 = vld [vmem:[%s18600_s23 + $0xf0] sm:$0xff]  ;;  %v14657_v22 = vld [vmem:[%s18600_s23 + $0xe8] sm:$0xff] }
0x5c44   :  { %16100 = vmatprep.mubr.msk.f32.mxu1 %vm16569_vm5, %v16568_v6  ;;  %16108 = vmatprep.subr.mxu1 %v16568_v6 }
0x5c46   :  { %16101 = vmatmul.mubr.msk.f32.vlgmr.msra.gmra.mxu1 %vm448_vm6, %v13520_v58  ;;  %v14656_v58 = vld [vmem:[%s18600_s23 + $0xe0] sm:$0xff] }
0x5c47   :  { %16109 = vmatpush3.msra.mxu1 %v18360_v9  ;;  %16110 = vmatprep.mubr.msk.f32.mxu1 %vm16569_vm5, %v16568_v6 }
0x5c48   :  { %16124 = vmatprep.subr.mxu1 %v14659_v28 }
0x5c59   :  { %13608 = vrot.lane.b32.xlu0 %v18220_v29, %s18605_s19 }
0x5ccc   :  { %v13366_v24 = vpop.xlane.xlu0 %13365 }
0x5ccd   :  { %16462 = vrcp.f32 %v13366_v24  ;;  %v14655_v24 = vld [vmem:[%s18600_s23 + $0xd8] sm:$0xff] }
0x5cd0   :  { %v13609_v17 = vpop.permute.xlu0 %13608 }
0x5cda   :  { %v16463_v35 = vpop.eup %16462 }
0x5d02   :  { %v13439_v25 = vpop.f32.mrf.mxu1 }
0x5d03   :  { %v13444_v4 = vmul.f32 %v16463_v35, %v13439_v25  ;;  %v14654_v35 = vld [vmem:[%s18600_s23 + $0xd0] sm:$0xff]  ;;  %v14653_v25 = vld [vmem:[%s18600_s23 + $0xc8] sm:$0xff] }
0x5d04   :  { %v16092_v39 = vpop.f32.mrf.mxu1 }
0x5d05   :  { %16096 = vmatmul.mubr.msk.f32.vlgmr.msra.gmra.mxu0 %vm448_vm6, %v13444_v4  ;;  %v14652_v4 = vld [vmem:[%s18600_s23 + $0xc0] sm:$0xff]  ;;  %v14651_v39 = vld [vmem:[%s18600_s23 + $0xb8] sm:$0xff] }
0x5d06   :  { %16104 = vmatpush3.msra.mxu0 %v13609_v17  ;;  %v13593_v42 = vpop.f32.mrf.mxu1  ;;  %16105 = vmatprep.mubr.msk.f32.mxu0 %vm16569_vm5, %v16568_v6  ;;  %v14650_v17 = vld [vmem:[%s18600_s23 + $0xb0] sm:$0xff] }
0x5d07   :  { %v13597_v9 = vmul.f32 0.35355338, %v13593_v42  ;;  %16113 = vmatprep.subr.mxu0 %v14639_v30  ;;  %v14649_v42 = vld [vmem:[%s18600_s23 + $0xa8] sm:$0xff] }
0x5d08   :  { %v16102_v41 = vpop.f32.mrf.mxu1 }
0x5d09   :  { %v13598_v29 = vsel %vm187_vm8, %v13597_v9, -inf  ;;  %v14648_v9 = vld [vmem:[%s18600_s23 + $0xa0] sm:$0xff] }
0x5d0a   :  { %v13599_v7 = vsel %vm448_vm6, %v13598_v29, -inf }
0x5d0b   :  { %13600 = vmax.xlane.f32.xlu1 %v13599_v7 }
0x5d94   :  { %v13601_v43 = vpop.xlane.xlu1 %13600 }
0x5d95   :  { %v13602_v44 = vsub.f32 %v13598_v29, %v13601_v43 }
0x5d97   :  { %v13603_v47 = vmul.f32 1.442695, %v13602_v44 }
0x5d99   :  { %16464 = vpow2.f32 %v13603_v47 }
0x5da6   :  { %v16465_v36 = vpop.eup %16464 }
0x5da7   :  { %16106 = vmatmul.mubr.msk.f32.vlgmr.msra.gmra.mxu0 %vm448_vm6, %v16465_v36  ;;  %v13605_v15 = vsel %vm448_vm6, %v16465_v36, 0.0  ;;  %v14646_v36 = vld [vmem:[%s18600_s23 + $0x90] sm:$0xff] }
0x5da8   :  { %13606 = vadd.xlane.f32.xlu1 %v13605_v15  ;;  %16114 = vmatpush3.msra.mxu0 %v14639_v30  ;;  %v14645_v15 = vld [vmem:[%s18600_s23 + $0x88] sm:$0xff] }
0x5da9   :  { %v14135_v30 = vld [vmem:[%s18607_s0 + $0x8] sm:$0xff] }
0x5dac   :  { %13775 = vadd.xlane.f32.xlu1 %v13774_v50  ;;  %v14644_v50 = vld [vmem:[%s18600_s23 + $0x80] sm:$0xff] }
0x5dc5   :  { %v13514_v33 = vpop.f32.mrf.mxu0 }
0x5dc6   :  { %v13518_v51 = vadd.f32 %v13514_v33, %v13275_v16  ;;  %v14641_v33 = vld [vmem:[%s18601_s16 + $0x1] ss:$0 sm:$0xff] }
0x5dc7   :  { %v16097_v13 = vpop.f32.mrf.mxu0 }
0x5e31   :  { %v13607_v38 = vpop.xlane.xlu1 %13606 }
0x5e32   :  { %16466 = vrcp.f32 %v13607_v38 }
0x5e35   :  { %v13776_v2 = vpop.xlane.xlu1 %13775 }
0x5e36   :  { %v13780_v52 = vmul.f32 0.03125, %v13776_v2 }
0x5e38   :  { %v13782_v40 = vsub.f32 %v18439_v3, %v13780_v52 }
0x5e3a   :  { %v13784_v60 = vmul.f32 %v13782_v40, %v13782_v40 }
0x5e3c   :  { %v13786_v54 = vsel %vm304_vm4, %v13784_v60, 0.0  ;;  %v14019_v60 = vld [vmem:[%s16789_s25 + $0x18] sm:$0xff] }
0x5e3d   :  { %13787 = vadd.xlane.f32.xlu0 %v13786_v54  ;;  %v14018_v54 = vld [vmem:[%s16789_s25 + $0x10] sm:$0xff] }
0x5e3f   :  { %v16467_v56 = vpop.eup %16466 }
0x5e53   :  { %14137 = vperm.xlu0 %16238, %v14134_v27   ;;  %v14017_v27 = vld [vmem:[%s16789_s25 + $0x8] sm:$0xff] }
0x5e67   :  { %v13680_v21 = vpop.f32.mrf.mxu0 }
0x5e68   :  { %v13685_v59 = vmul.f32 %v16467_v56, %v13680_v21  ;;  %v14016_v56 = vld [vmem:[%s16789_s25] sm:$0xff] }
0x5e69   :  { %v16107_v57 = vpop.f32.mrf.mxu0 }
0x5e6a   :  { %16111 = vmatmul.mubr.msk.f32.vlgmr.msra.gmra.mxu1 %vm448_vm6, %v13685_v59 }
0x5e6b   :  { %16125 = vmatpush3.msra.mxu1 %v14659_v28 }
0x5e6c   :  { %16126 = vmatprep.subr.mxu1 %v14658_v32 }
0x5e6d   :  { %16127 = vmatpush3.msra.mxu1 %v14658_v32 }
0x5e6e   :  { %16128 = vmatprep.subr.mxu1 %v14657_v22 }
0x5e6f   :  { %16129 = vmatpush3.msra.mxu1 %v14657_v22 }
0x5e70   :  { %16130 = vmatprep.subr.mxu1 %v14656_v58 }
0x5e71   :  { %16131 = vmatpush3.msra.mxu1 %v14656_v58 }
0x5e72   :  { %16132 = vmatprep.subr.mxu1 %v14655_v24 }
0x5e73   :  { %16133 = vmatpush3.msra.mxu1 %v14655_v24 }
0x5e74   :  { %16134 = vmatprep.subr.mxu1 %v14654_v35 }
0x5e75   :  { %16135 = vmatpush3.msra.mxu1 %v14654_v35 }
0x5e76   :  { %16136 = vmatprep.subr.mxu1 %v14653_v25 }
0x5e77   :  { %16137 = vmatpush3.msra.mxu1 %v14653_v25 }
0x5e78   :  { %16138 = vmatprep.subr.mxu1 %v14652_v4 }
0x5e79   :  { %16139 = vmatpush3.msra.mxu1 %v14652_v4 }
0x5e7a   :  { %16140 = vmatprep.subr.mxu1 %v14651_v39 }
0x5e7b   :  { %16141 = vmatpush3.msra.mxu1 %v14651_v39 }
0x5e7c   :  { %16142 = vmatprep.subr.mxu1 %v14650_v17 }
0x5e7d   :  { %16143 = vmatpush3.msra.mxu1 %v14650_v17 }
0x5e7e   :  { %16144 = vmatprep.subr.mxu1 %v14649_v42 }
0x5e7f   :  { %16145 = vmatpush3.msra.mxu1 %v14649_v42 }
0x5e80   :  { %16146 = vmatprep.subr.mxu1 %v14648_v9 }
0x5e81   :  { %16147 = vmatpush3.msra.mxu1 %v14648_v9 }
0x5e82   :  { %16148 = vmatprep.subr.mxu1 %v14647_v49 }
0x5e83   :  { %16149 = vmatpush3.msra.mxu1 %v14647_v49 }
0x5e84   :  { %16150 = vmatprep.subr.mxu1 %v14646_v36 }
0x5e85   :  { %16151 = vmatpush3.msra.mxu1 %v14646_v36 }
0x5e86   :  { %16152 = vmatprep.subr.mxu1 %v14645_v15 }
0x5e87   :  { %16153 = vmatpush3.msra.mxu1 %v14645_v15 }
0x5e88   :  { %16154 = vmatprep.subr.mxu1 %v14644_v50 }
0x5e89   :  { %16155 = vmatpush3.msra.mxu1 %v14644_v50 }
0x5ec6   :  { %v13788_v8 = vpop.xlane.xlu0 %13787 }
0x5ec7   :  { %v13792_v10 = vmul.f32 0.03125, %v13788_v8  ;;  %v14661_v8 = vld [vmem:[%s18602_s26 + $0x1] ss:$0 sm:$0xff] }
0x5ec9   :  { %v13794_v23 = vadd.f32 1e-05, %v13792_v10 }
0x5ecb   :  { %16468 = vrsqrt.f32 %v13794_v23 }
0x5ece   :  { %v14138_v22 = vpop.permute.xlu0 %14137 }
0x5ecf   :  { %vm14142_vm13 = vcmp.eq.s32.totalorder %v16826_v20, %v14138_v22 }
0x5ed0   :  { %v14665_v42 = vsel %vm14142_vm13, 1.0, %v16568_v6 }
0x5ed8   :  { %v16469_v19 = vpop.eup %16468 }
0x5ed9   :  { %v13798_v31 = vmul.f32 %v16469_v19, %v13782_v40 }
0x5edb   :  { %v13806_v37 = vmul.f32 %v18450_v26, %v13798_v31 }
0x5edd   :  { %v13814_v53 = vadd.f32 %v18453_v45, %v13806_v37 }
0x5edf   :  { %16121 = vmatprep.mubr.msk.f32.mxu0 %vm304_vm4, %v13814_v53 }
0x5f2a   :  { %v13755_v11 = vpop.f32.mrf.mxu1 }
0x5f2b   :  { %v13759_v18 = vadd.f32 %v13755_v11, %v13518_v51 }
0x5f2c   :  { %v16112_v5 = vpop.f32.mrf.mxu1 }
0x5f2d   :  { %v13767_v16 = vadd.f32 %v14631_v48, %v13759_v18 }
0x5f2f   :  { %v18459_v1 = vadd.f32 %v13767_v16, %v18215_v62  ;;  %v14638_v62 = vld [vmem:[%s18599_s28 + $0x30] sm:$0xff] }
0x5f30   :  { %16115 = vmatprep.subr.mxu0 %v14638_v62 }
0x5f31   :  { %v13777_v61 = vsel %vm304_vm4, %v18459_v1, 0.0  ;;  %16116 = vmatpush3.msra.mxu0 %v14638_v62 }
0x5f32   :  { %13778 = vadd.xlane.f32.xlu1 %v13777_v61  ;;  %16117 = vmatprep.subr.mxu0 %v14637_v55 }
0x5f33   :  { %16118 = vmatpush3.msra.mxu0 %v14637_v55 }
0x5f34   :  { %16119 = vmatprep.subr.mxu0 %v14636_v34 }
0x5f35   :  { %16120 = vmatpush3.msra.mxu0 %v14636_v34 }
0x5f36   :  { %16159 = vmatprep.subr.mxu0 %v14019_v60 }
0x5fbb   :  { %v13779_v12 = vpop.xlane.xlu1 %13778 }
0x5fbc   :  { %v13781_v14 = vmul.f32 0.03125, %v13779_v12 }
0x5fbe   :  { %v13783_v0 = vsub.f32 %v18459_v1, %v13781_v14 }
0x5fc0   :  { %v13785_v46 = vmul.f32 %v13783_v0, %v13783_v0 }
0x5fc2   :  { %v13789_v63 = vsel %vm304_vm4, %v13785_v46, 0.0 }
0x5fc3   :  { %13790 = vadd.xlane.f32.xlu1 %v13789_v63 }
0x604c   :  { %v13791_v41 = vpop.xlane.xlu1 %13790 }
0x604d   :  { %v13793_v29 = vmul.f32 0.03125, %v13791_v41 }
0x604f   :  { %v13795_v7 = vadd.f32 1e-05, %v13793_v29 }
0x6051   :  { %16470 = vrsqrt.f32 %v13795_v7 }
0x605e   :  { %v16471_v43 = vpop.eup %16470 }
0x605f   :  { %v13799_v44 = vmul.f32 %v16471_v43, %v13783_v0 }
0x6061   :  { %v13807_v47 = vmul.f32 %v18450_v26, %v13799_v44  ;;  %v14662_v26 = vld [vmem:[%s16794_s13] ss:$0 sm:$0xff]  ;;  %s16582_s13 = smov [#allocation2]  }
0x6062   :  { %s14240_s25 = sshll.u32 %s16582_s13, 4  ;;  %s14241_s25 = int_to_ptr.vmem [resolvable:$true] %s14240_s25 }
0x6063   :  { %v13815_v48 = vadd.f32 %v18453_v45, %v13807_v47  ;;  %s16481_s5 = scalar_lea.vmem %s14241_s25, 256  ;;  %p16486_p1 = scmp.lt.s32.totalorder %s14241_s25, %s14241_s25 }
0x6064   :  { %p16482_p0 = scmp.ne.s32.totalorder %s14241_s25, %s16481_s5  ;;  %p16487_p2 = scmp.lt.s32.totalorder %s16481_s5, %s16481_s5 }
0x6065   :  { %16122 = vmatmul.mubr.msk.f32.vlgmr.msra.gmra.mxu0 %vm304_vm4, %v13815_v48 }
0x6066   :  { %16160 = vmatpush3.msra.mxu0 %v14019_v60  ;;  %p16488_p3 = por %p16487_p2, %p16486_p1 }
0x6067   :  { %16161 = vmatprep.subr.mxu0 %v14018_v54 }
0x6068   :  { %16162 = vmatpush3.msra.mxu0 %v14018_v54  ;;  %p16489_p4 = pnand %p16488_p3, %p16482_p0 }
0x6069   :  { %16163 = vmatprep.subr.mxu0 %v14017_v27 }
0x606a   :  { %16164 = vmatpush3.msra.mxu0 %v14017_v27 }
0x606b   :  { %16165 = vmatprep.subr.mxu0 %v14016_v56 }
0x606c   :  { %16166 = vmatpush3.msra.mxu0 %v14016_v56 }
0x606d   :  { %16170 = vmatprep.subr.mxu0 %v16568_v6 }
0x6125   :  { %v16123_v51 = vpop.f32.mrf.mxu0 }
0x6126   :  { %v13907_v13 = vadd.f32 %v16123_v51, %v14641_v33 }
0x6127   :  { %v13901_v38 = vpop.f32.mrf.mxu0 }
0x6128   :  { %v13902_v2 = vadd.f32 %v14641_v33, %v13901_v38  ;;  %v13911_v40 = vmax.f32 %v13907_v13, 0.0 }
0x612a   :  { %v13910_v52 = vmax.f32 %v13902_v2, 0.0 }
0x612c   :  { %16156 = vmatprep.mubr.f32.mxu1 %v13910_v52 }
0x612d   :  { %16157 = vmatmul.mubr.f32.vlgmr.msra.gmra.mxu1 %v13911_v40 }
0x61ed   :  { %v16158_v21 = vpop.f32.mrf.mxu1 }
0x61ee   :  { %v14005_v59 = vadd.f32 %v16158_v21, %v18459_v1 }
0x61ef   :  { %v13995_v57 = vpop.f32.mrf.mxu1 }
0x61f0   :  { %v14004_v10 = vadd.f32 %v13995_v57, %v18439_v3  ;;  %v14015_v19 = vadd.f32 %v14661_v8, %v14005_v59 }
0x61f2   :  { %v14014_v23 = vadd.f32 %v14661_v8, %v14004_v10 }
0x61f4   :  { %16167 = vmatprep.mubr.msk.f32.mxu0 %vm304_vm4, %v14014_v23 }
0x61f5   :  { %16168 = vmatmul.mubr.msk.f32.vlgmr.msra.gmra.mxu0 %vm304_vm4, %v14015_v19 }
0x61f6   :  { %16174 = vmatprep.mubr.msk.f32.mxu0 %vm16569_vm5, %v16568_v6 }
0x62b5   :  { %v16169_v31 = vpop.f32.mrf.mxu0 }
0x62b6   :  { %v14105_v45 = vadd.f32 %v16169_v31, %v14662_v26 }
0x62b7   :  { %v14099_v37 = vpop.f32.mrf.mxu0 }
0x62b8   :  { %14109 = vst.msk [vmem:[#allocation2 + $0x8] sm:$0xff] %vm216_vm1, %v14105_v45  ;;  %v14100_v53 = vadd.f32 %v14662_v26, %v14099_v37  ;;  %v14113_v11 = vsel %vm216_vm1, %v14105_v45, -inf }
0x62b9   :  { %14114 = vmax.xlane.f32.xlu1 %v14113_v11 }
0x62ba   :  { %14108 = vst.msk [vmem:[#allocation2] sm:$0xff] %vm216_vm1, %v14100_v53  ;;  %v14110_v3 = vsel %vm216_vm1, %v14100_v53, -inf }
0x62bd   :  { %14111 = vmax.xlane.f32.xlu1 %v14110_v3 }
0x6342   :  { %v14115_v18 = vpop.xlane.xlu1 %14114 }
0x6343   :  { %v14117_v5 = vsub.f32 %v14105_v45, %v14115_v18 }
0x6345   :  { %v14120_v16 = vmul.f32 1.442695, %v14117_v5 }
0x6346   :  { %v14112_v1 = vpop.xlane.xlu1 %14111 }
0x6347   :  { %16472 = vpow2.f32 %v14120_v16  ;;  %v14116_v61 = vsub.f32 %v14100_v53, %v14112_v1 }
0x6349   :  { %v14118_v12 = vmul.f32 1.442695, %v14116_v61 }
0x634b   :  { %16474 = vpow2.f32 %v14118_v12 }
0x6354   :  { %v16473_v14 = vpop.eup %16472 }
0x6355   :  { %v14125_v0 = vsel %vm216_vm1, %v16473_v14, 0.0 }
0x6356   :  { %14126 = vadd.xlane.f32.xlu1 %v14125_v0 }
0x6358   :  { %v16475_v46 = vpop.eup %16474 }
0x6359   :  { %v14122_v63 = vsel %vm216_vm1, %v16475_v46, 0.0 }
0x635a   :  { %14123 = vadd.xlane.f32.xlu1 %v14122_v63 }
0x636b   :  { %14140 = vperm.xlu1 %16239, %v14135_v30  }
0x63df   :  { %v14127_v62 = vpop.xlane.xlu1 %14126 }
0x63e0   :  { %16476 = vlog2.f32 %v14127_v62 }
0x63e3   :  { %v14124_v55 = vpop.xlane.xlu1 %14123 }
0x63e4   :  { %16478 = vlog2.f32 %v14124_v55 }
0x63e7   :  { %v14141_v34 = vpop.permute.xlu1 %14140 }
0x63e8   :  { %vm14143_vm12 = vcmp.eq.s32.totalorder %v16826_v20, %v14141_v34  ;;  %v16581_v20 = vmov 1.0  }
0x63e9   :  { %v14666_v58 = vsel %vm14143_vm12, 1.0, %v16568_v6 }
0x63ed   :  { %v16477_v28 = vpop.eup %16476 }
0x63ee   :  { %v14131_v32 = vmul.f32 0.6931472, %v16477_v28 }
0x63f0   :  { %v14133_v24 = vsub.f32 %v14117_v5, %v14131_v32 }
0x63f1   :  { %v16479_v35 = vpop.eup %16478 }
0x63f2   :  { %v14129_v25 = vmul.f32 0.6931472, %v16479_v35  ;;  %v14149_v4 = vmul.f32 %v14666_v58, %v14133_v24 }
0x63f4   :  { %v14153_v39 = vsel %vm216_vm1, %v14149_v4, 0.0  ;;  %v14132_v17 = vsub.f32 %v14116_v61, %v14129_v25 }
0x63f5   :  { %14154 = vadd.xlane.f32.xlu1 %v14153_v39 }
0x63f6   :  { %v14148_v9 = vmul.f32 %v14665_v42, %v14132_v17 }
0x63f8   :  { %v14150_v41 = vsel %vm216_vm1, %v14148_v9, 0.0 }
0x63f9   :  { %14151 = vadd.xlane.f32.xlu0 %v14150_v41 }
0x647e   :  { %v14155_v29 = vpop.xlane.xlu1 %14154 }
0x647f   :  { %v14157_v7 = vsub.f32 0.0, %v14155_v29 }
0x6481   :  { %16171 = vmatpush3.msra.mxu0 %v14157_v7 }
0x6482   :  { %v14152_v43 = vpop.xlane.xlu0 %14151  ;;  %16172 = vmatprep.subr.mxu0 %v16568_v6 }
0x6483   :  { %v14156_v44 = vsub.f32 0.0, %v14152_v43 }
0x6485   :  { %16173 = vmatpush3.msra.mxu0 %v14156_v44 }
0x6486   :  { %16175 = vmatmul.mubr.msk.f32.vlgmr.msra.gmra.mxu0 %vm14158_vm14, %v16581_v20 }
0x6487   :  { %16492 = shalt.err (!%p16489_p4)
}
0x6488   :  { %s16583_s9 = smov 128   ;;  %s16584_s21 = smov 8   ;;  %vm14233_vm15 = vcmask 0  }
0x6489   :  { %14246 = dma.vmem_to_hbm [thread:$0]  %s14241_s25, 256, %s16799_s27, [#allocation3], %s16583_s9, %s16583_s9, %s16584_s21  }
0x648a   :  { %s16585_s15 = smov [#allocation4]  }
0x648b   :  { %s14253_s16 = sshll.u32 %s16585_s15, 4  ;;  %s14254_s16 = int_to_ptr.vmem [resolvable:$true] %s14253_s16 }
0x648c   :  { %s16501_s18 = scalar_lea.vmem %s14254_s16, 16  ;;  %s16505_s22 = scalar_lea.vmem %s14254_s16, 32 }
0x648d   :  { %p16502_p5 = scmp.ne.s32.totalorder %s14254_s16, %s16501_s18  ;;  %p16506_p6 = scmp.lt.s32.totalorder %s14254_s16, %s14254_s16 }
0x648e   :  { %p16507_p7 = scmp.lt.s32.totalorder %s16505_s22, %s16501_s18 }
0x6490   :  { %p16508_p8 = por %p16507_p7, %p16506_p6 }
0x6492   :  { %p16509_p9 = pnand %p16508_p8, %p16502_p5 }
0x6546   :  { %v14228_v6 = vpop.f32.mrf.mxu0 }
0x6547   :  { %v14232_v47 = vmul.f32 0.0625, %v14228_v6 }
0x6548   :  { %v16176_v48 = vpop.f32.mrf.mxu0 }
0x6549   :  { %14234 = vst.msk [vmem:[#allocation4] sm:$0x1] %vm14233_vm15, %v14232_v47 }
0x654a   :  { %16512 = shalt.err (!%p16509_p9)
}
0x654b   :  { %14256 = dma.vmem_to_hbm [thread:$0]  %s14254_s16, 16, %s16804_s17, [#allocation5]  }
0x654c   :  { %16521 = dma.done.wait [#allocation3], 256  }
0x654d   :  { %16522 = vsyncadd [#allocation3], 4294967040 }
0x654e   :  { %16523 = dma.done.wait [#allocation5], 16  }
0x654f   :  { %16524 = vsyncadd [#allocation5], 4294967280 }
0x6550   :  { %14263 = vsyncpa [#allocation3], 1 }
0x6551   :  { %14264 = vsyncpa [#allocation5], 1 }

</bundles_post_ra>
